<compile_context>
chip_gen: v7x
topology: tpu7x:2x2x1
jax: 0.10.0
libtpu: 0.0.40
codegen_flags: <defaults>
</compile_context>

<pallas_src>
import math
from dataclasses import dataclass

import jax
import jax.numpy as jnp
from jax.experimental import pallas as pl
from jax.experimental.pallas import tpu as pltpu


# ---------------------------------------------------------------------------
# small helpers
# ---------------------------------------------------------------------------

def _round_up(x, m):
    return (x + m - 1) // m * m


def _pick_tile(n, max_tile, mult):
    """Tile size (multiple of `mult`) and padded extent for a dim of size n."""
    if n <= max_tile:
        t = _round_up(max(n, 1), mult)
        return t, t
    return max_tile, _round_up(n, max_tile)


def _pad_axis(x, axis, size):
    pad = size - x.shape[axis]
    if pad <= 0:
        return x
    widths = [(0, 0)] * x.ndim
    widths[axis] = (0, pad)
    return jnp.pad(x, widths)


def _sum_to_11(x):
    """Full reduction of a 2-D tile to a (1, 1) value (lane then sublane)."""
    return jnp.sum(jnp.sum(x, axis=1, keepdims=True), axis=0, keepdims=True)


def _write_scalar(ref, val11):
    """Write a (1,1) partial sum into element [.., 0, 0] of a lane-dense block."""
    shp = ref.shape
    nd = len(shp)
    r = jax.lax.broadcasted_iota(jnp.int32, shp, nd - 2)
    c = jax.lax.broadcasted_iota(jnp.int32, shp, nd - 1)
    ref[...] = jnp.where(jnp.logical_and(r == 0, c == 0), val11, 0.0)


def _pow_static(x, p):
    p = float(p)
    if p == float(int(p)) and 0.0 <= p <= 8.0:
        n = int(p)
        if n == 0:
            return jnp.ones_like(x)
        out = x
        for _ in range(n - 1):
            out = out * x
        return out
    return jnp.power(x, p)


def _similarity_from_sq(res_sq, proj_sq, cfg, transpose):
    """Similarity from SQUARED residue / projected distance (static flags).

    Gaussian path never takes a sqrt; rational path uses the EUP approximate
    reciprocal instead of a VPU divide.
    """
    if cfg["use_gaussian_sim"]:
        inv_142_sq = 1.0 / (1.42 * 1.42)
        return jnp.exp(-proj_sq * cfg["projected_power"]
                       - res_sq * inv_142_sq * cfg["residue_power"])
    nr = jnp.sqrt(res_sq) * (1.0 / 1.42)
    res_sim = pl.reciprocal(_pow_static(1.0 + nr, cfg["residue_power"]),
                            approx=True)
    if not cfg["use_projected"]:
        return res_sim
    proj = jnp.sqrt(proj_sq)
    proj_sim = pl.reciprocal(_pow_static(1.0 + proj, cfg["projected_power"]),
                             approx=True)
    if cfg["use_additive"] and not transpose:
        return 0.5 * (res_sim + proj_sim)
    return res_sim * proj_sim


def _sim_cfg(args):
    return dict(use_gaussian_sim=bool(args.use_gaussian_sim),
                use_projected=bool(args.use_projected),
                use_additive=bool(args.use_additive),
                projected_power=float(args.projected_power),
                residue_power=float(args.residue_power))


_VMEM_LIMIT = 32 * 1024 * 1024


# ---------------------------------------------------------------------------
# cdist (used only for the teacher top-k neighbor search)
# ---------------------------------------------------------------------------

def _cdist_kernel(a_ref, bsq_ref, bt_ref, out_ref):
    a = a_ref[...]                                             # [TM, D]
    asq = jnp.sum(a * a, axis=-1, keepdims=True)               # [TM, 1]
    d2 = asq + bsq_ref[...] - 2.0 * jnp.dot(
        a, bt_ref[...], preferred_element_type=jnp.float32)    # [TM, Mbp]
    out_ref[...] = jnp.sqrt(jnp.maximum(d2, 0.0))


def cdist(a, b, *, max_row_tile=256):
    """torch.cdist (p=2): matmul form on the MXU, rows tiled, lane-dense cols."""
    a = a.astype(jnp.float32)
    b = b.astype(jnp.float32)
    ma, d = a.shape
    mb = b.shape[0]
    tm, map_ = _pick_tile(ma, max_row_tile, 8)
    mbp = _round_up(mb, 128)
    a_p = _pad_axis(a, 0, map_)
    bt = _pad_axis(b.T, 1, mbp)                                # [D, Mbp]
    bsq = _pad_axis(jnp.sum(b * b, axis=-1)[None, :], 1, mbp)  # [1, Mbp]
    out = pl.pallas_call(
        _cdist_kernel,
        out_shape=jax.ShapeDtypeStruct((map_, mbp), jnp.float32),
        grid=(map_ // tm,),
        in_specs=[pl.BlockSpec((tm, d), lambda i: (i, 0)),
                  pl.BlockSpec((1, mbp), lambda i: (0, 0)),
                  pl.BlockSpec((d, mbp), lambda i: (0, 0))],
        out_specs=pl.BlockSpec((tm, mbp), lambda i: (i, 0)),
        compiler_params=pltpu.CompilerParams(
            dimension_semantics=("parallel",),
            vmem_limit_bytes=_VMEM_LIMIT),
    )(a_p, bsq, bt)
    return out[:ma, :mb]


# ---------------------------------------------------------------------------
# fused RC (point-neighbor) loss kernel
#   per grid step (i, j): residue/proj of all t points in column tile j w.r.t.
#   the TB planes of row tile i + cdist(s_rows_i, s_cols_j) + masked MSE,
#   emitted as a lane-dense (8,128) partial-sum block.
# ---------------------------------------------------------------------------

def _make_rc_kernel(n_valid, K, TB, TN, delta, cfg):
    def kernel(stk_ref, srow_ref, tcol_ref, scol_ref, tsq_ref, ssq_ref,
               out_ref):
        i = pl.program_id(0)
        j = pl.program_id(1)
        lhs = stk_ref[0]                                       # [(K+1)*TB, D]
        tcol = tcol_ref[...]                                   # [D, TN]
        coords = jnp.dot(lhs, tcol,
                         preferred_element_type=jnp.float32)   # [(K+1)*TB, TN]
        centers = lhs[:TB]                                     # [TB, D]
        csq = jnp.sum(centers * centers, axis=-1, keepdims=True)
        cent_sq = tsq_ref[...] + csq - 2.0 * coords[:TB]       # ||t - c||^2
        proj_sq = jnp.zeros((TB, TN), jnp.float32)
        for k in range(K):                                     # orthonormal rows
            pk = lhs[(k + 1) * TB:(k + 2) * TB]
            ck = jnp.sum(pk * centers, axis=-1, keepdims=True)
            dk = coords[(k + 1) * TB:(k + 2) * TB] - ck
            proj_sq = proj_sq + dk * dk
        res_sq = jnp.maximum(cent_sq - proj_sq, 0.0)
        sim = _similarity_from_sq(res_sq, proj_sq, cfg, transpose=False)

        srow = srow_ref[...]                                   # [TB, D]
        rsq = jnp.sum(srow * srow, axis=-1, keepdims=True)
        sd2 = rsq + ssq_ref[...] - 2.0 * jnp.dot(
            srow, scol_ref[...], preferred_element_type=jnp.float32)
        s_dist = jnp.sqrt(jnp.maximum(sd2, 0.0))

        err = (delta * (1.0 - sim) - s_dist) ** 2
        rid = i * TB + jax.lax.broadcasted_iota(jnp.int32, (TB, TN), 0)
        cid = j * TN + jax.lax.broadcasted_iota(jnp.int32, (TB, TN), 1)
        valid = jnp.logical_and(rid != cid,
                                jnp.logical_and(rid < n_valid, cid < n_valid))
        _write_scalar(out_ref, _sum_to_11(jnp.where(valid, err, 0.0)))
    return kernel


def rc_fused_loss(s_emb, t_emb, plane_centers, point_planes, delta, cfg, *,
                  max_row_tile=128, max_col_tile=512):
    s_emb = s_emb.astype(jnp.float32)
    t_emb = t_emb.astype(jnp.float32)
    n, d = s_emb.shape
    K = point_planes.shape[1]
    TB, bp = _pick_tile(n, max_row_tile, 8)
    TN, mp = _pick_tile(n, max_col_tile, 128)
    gi, gj = bp // TB, mp // TN

    # stacked per-row-tile LHS: [centers_tile; plane_0_tile; ...; plane_{K-1}_tile]
    centers_p = _pad_axis(plane_centers.astype(jnp.float32), 0, bp)
    planes_t = _pad_axis(
        jnp.transpose(point_planes.astype(jnp.float32), (1, 0, 2)), 1, bp)
    stacked = jnp.concatenate([centers_p[None], planes_t], axis=0)  # [K+1,Bp,D]
    stacked = (stacked.reshape(K + 1, gi, TB, d)
               .transpose(1, 0, 2, 3).reshape(gi, (K + 1) * TB, d))
    s_rows = _pad_axis(s_emb, 0, bp)

    t_cols = _pad_axis(t_emb.T, 1, mp)                          # [D, Mp]
    s_cols = _pad_axis(s_emb.T, 1, mp)
    tsq = _pad_axis(jnp.sum(t_emb * t_emb, axis=-1)[None, :], 1, mp)
    ssq = _pad_axis(jnp.sum(s_emb * s_emb, axis=-1)[None, :], 1, mp)

    out = pl.pallas_call(
        _make_rc_kernel(n, K, TB, TN, float(delta), cfg),
        out_shape=jax.ShapeDtypeStruct((gi * gj, 8, 128), jnp.float32),
        grid=(gi, gj),
        in_specs=[
            pl.BlockSpec((1, (K + 1) * TB, d), lambda i, j: (i, 0, 0)),
            pl.BlockSpec((TB, d), lambda i, j: (i, 0)),
            pl.BlockSpec((d, TN), lambda i, j: (0, j)),
            pl.BlockSpec((d, TN), lambda i, j: (0, j)),
            pl.BlockSpec((1, TN), lambda i, j: (0, j)),
            pl.BlockSpec((1, TN), lambda i, j: (0, j)),
        ],
        out_specs=pl.BlockSpec((1, 8, 128), lambda i, j: (i * gj + j, 0, 0)),
        compiler_params=pltpu.CompilerParams(
            dimension_semantics=("parallel", "parallel"),
            vmem_limit_bytes=_VMEM_LIMIT),
    )(stacked, s_rows, t_cols, s_cols, tsq, ssq)
    return jnp.sum(out) / (n * (n - 1))


# ---------------------------------------------------------------------------
# fused proxy loss kernel ([P, N] orientation, N on lanes)
#   cdist(proxies, s), forward stats (trunc-orthonormal + raw proxy planes),
#   transpose stats (teacher planes, centers s / t), proxy-plane cosine
#   distances, masked proxy-MSE and proxy-plane-MSE partial sums.
# ---------------------------------------------------------------------------

def _make_proxy_kernel(p_valid, n_valid, K, Pp, TN, delta, cfg):
    def kernel(stk_t_ref, stk_k_ref, tcol_ref, scol_ref, tsq_ref, ssq_ref,
               tpl_ref, mse_ref, plane_ref):
        j = pl.program_id(0)
        tcol = tcol_ref[...]                                   # [D, TN]
        scol = scol_ref[...]                                   # [D, TN]

        # forward stats: points t, centers proxies, planes = trunc vh / raw.
        lhs_t = stk_t_ref[...]                                 # [(2K+1)*Pp, D]
        prox = lhs_t[:Pp]                                      # [Pp, D]
        psq = jnp.sum(prox * prox, axis=-1, keepdims=True)     # [Pp, 1]
        ct = jnp.dot(lhs_t, tcol,
                     preferred_element_type=jnp.float32)       # [(2K+1)*Pp, TN]
        cent_sq = tsq_ref[...] + psq - 2.0 * ct[:Pp]           # ||t - prox||^2
        res_sq = jnp.zeros((Pp, TN), jnp.float32)
        proj_sq = jnp.zeros((Pp, TN), jnp.float32)
        for k in range(K):
            vh_k = lhs_t[(1 + k) * Pp:(2 + k) * Pp]
            raw_k = lhs_t[(1 + K + k) * Pp:(2 + K + k) * Pp]
            dvh = ct[(1 + k) * Pp:(2 + k) * Pp] - jnp.sum(
                vh_k * prox, axis=-1, keepdims=True)
            draw = ct[(1 + K + k) * Pp:(2 + K + k) * Pp] - jnp.sum(
                raw_k * prox, axis=-1, keepdims=True)
            res_sq = res_sq + dvh * dvh
            proj_sq = proj_sq + draw * draw
        res_sq = jnp.maximum(cent_sq - res_sq, 0.0)
        sim = _similarity_from_sq(res_sq, proj_sq, cfg, transpose=False)

        # transpose stats + proxy-plane cosine coords (teacher planes as RHS).
        lhs_k = stk_k_ref[...]                                 # [(K+1)*Pp, D]
        xs = jnp.dot(prox, scol, preferred_element_type=jnp.float32)
        tcent_sq = psq + ssq_ref[...] - 2.0 * xs               # ||prox - s||^2
        tres_sq = jnp.zeros((Pp, TN), jnp.float32)
        tproj_sq = jnp.zeros((Pp, TN), jnp.float32)
        cos_sq = jnp.zeros((K * Pp, TN), jnp.float32)
        for k in range(K):
            tpl_k = tpl_ref[k]                                 # [D, TN]
            a_all = jnp.dot(lhs_k, tpl_k,
                            preferred_element_type=jnp.float32)  # [(K+1)*Pp, TN]
            a_pk = a_all[:Pp]
            bs = jnp.sum(tpl_k * scol, axis=0, keepdims=True)  # plane_k . s_n
            bt = jnp.sum(tpl_k * tcol, axis=0, keepdims=True)  # plane_k . t_n
            dr = a_pk - bs                                      # residue center s
            dp = a_pk - bt                                      # proj center t
            tres_sq = tres_sq + dr * dr
            tproj_sq = tproj_sq + dp * dp
            cc = a_all[Pp:]                                     # ppn coords
            cos_sq = cos_sq + cc * cc
        tres_sq = jnp.maximum(tcent_sq - tres_sq, 0.0)
        t_sim = _similarity_from_sq(tres_sq, tproj_sq, cfg, transpose=True)

        total_sim = sim + t_sim                                 # [Pp, TN]
        s_dist = jnp.sqrt(jnp.maximum(tcent_sq, 0.0))           # cdist(prox, s)
        rid = jax.lax.broadcasted_iota(jnp.int32, (Pp, TN), 0)
        cid = j * TN + jax.lax.broadcasted_iota(jnp.int32, (Pp, TN), 1)
        valid = jnp.logical_and(rid < p_valid, cid < n_valid).astype(jnp.float32)

        err = (delta * (1.0 - total_sim) - s_dist) ** 2
        _write_scalar(mse_ref, _sum_to_11(err * valid))

        cosd = jnp.sqrt(cos_sq)
        plane_part = jnp.zeros((1, 1), jnp.float32)
        for k in range(K):
            pe = (total_sim - cosd[k * Pp:(k + 1) * Pp]) ** 2
            plane_part = plane_part + _sum_to_11(pe * valid)
        _write_scalar(plane_ref, plane_part)
    return kernel


def proxy_fused_loss(proxies_n, s_emb, t_emb, vh_masked, raw_planes, ppn,
                     teacher_planes, delta, cfg, *, max_col_tile=512):
    proxies_n = proxies_n.astype(jnp.float32)
    s_emb = s_emb.astype(jnp.float32)
    t_emb = t_emb.astype(jnp.float32)
    P, d = proxies_n.shape
    K = raw_planes.shape[1]
    N = s_emb.shape[0]
    Pp = _round_up(max(P, 1), 8)
    TN, mp = _pick_tile(N, max_col_tile, 128)
    gj = mp // TN

    def pad_planes(pl_):                                        # [P,K,D] -> [K,Pp,D]
        return _pad_axis(jnp.transpose(pl_.astype(jnp.float32), (1, 0, 2)), 1, Pp)

    prox_p = _pad_axis(proxies_n, 0, Pp)                        # [Pp, D]
    stk_t = jnp.concatenate(
        [prox_p[None], pad_planes(vh_masked), pad_planes(raw_planes)],
        axis=0).reshape((2 * K + 1) * Pp, d)
    stk_k = jnp.concatenate(
        [prox_p[None], pad_planes(ppn)], axis=0).reshape((K + 1) * Pp, d)

    t_cols = _pad_axis(t_emb.T, 1, mp)                          # [D, Mp]
    s_cols = _pad_axis(s_emb.T, 1, mp)
    tsq = _pad_axis(jnp.sum(t_emb * t_emb, axis=-1)[None, :], 1, mp)
    ssq = _pad_axis(jnp.sum(s_emb * s_emb, axis=-1)[None, :], 1, mp)
    tpl = _pad_axis(jnp.transpose(teacher_planes.astype(jnp.float32),
                                  (1, 2, 0)), 2, mp)            # [K, D, Mp]

    out_mse, out_plane = pl.pallas_call(
        _make_proxy_kernel(P, N, K, Pp, TN, float(delta), cfg),
        out_shape=(jax.ShapeDtypeStruct((gj, 8, 128), jnp.float32),
                   jax.ShapeDtypeStruct((gj, 8, 128), jnp.float32)),
        grid=(gj,),
        in_specs=[
            pl.BlockSpec(((2 * K + 1) * Pp, d), lambda j: (0, 0)),
            pl.BlockSpec(((K + 1) * Pp, d), lambda j: (0, 0)),
            pl.BlockSpec((d, TN), lambda j: (0, j)),
            pl.BlockSpec((d, TN), lambda j: (0, j)),
            pl.BlockSpec((1, TN), lambda j: (0, j)),
            pl.BlockSpec((1, TN), lambda j: (0, j)),
            pl.BlockSpec((K, d, TN), lambda j: (0, 0, j)),
        ],
        out_specs=(pl.BlockSpec((1, 8, 128), lambda j: (j, 0, 0)),
                   pl.BlockSpec((1, 8, 128), lambda j: (j, 0, 0))),
        compiler_params=pltpu.CompilerParams(
            dimension_semantics=("parallel",),
            vmem_limit_bytes=_VMEM_LIMIT),
    )(stk_t, stk_k, t_cols, s_cols, tsq, ssq, tpl)
    return jnp.sum(out_mse) / (P * N) + jnp.sum(out_plane) / (P * K * N)


# ---------------------------------------------------------------------------
# Plain-JAX glue (normalize, SVD plane fitting) + module
# ---------------------------------------------------------------------------

def _l2_normalize(x, axis=-1, eps=1e-12):
    nrm = jnp.sqrt(jnp.sum(x * x, axis=axis, keepdims=True))
    return x / jnp.maximum(nrm, eps)


@dataclass
class Args:
    embedding_size: int = 32
    bg_embedding_size: int = 32
    num_proxies: int = 4
    num_dims: int = 3
    num_neighbors: int = 5
    num_local: int = 4            # only used by *_old path (not in forward)
    proxy_norm: bool = True
    projected_power: float = 2.0
    residue_power: float = 2.0
    use_gaussian_sim: bool = False
    use_projected: bool = True
    use_additive: bool = False
    no_proxy: bool = False
    only_proxy: bool = False


class NeighborProjLoss:
    """JAX/Pallas port of neighbor_proj_loss.forward (forward semantics)."""

    def __init__(self, args, sigma, delta, view, disable_mu, topk, key):
        self.args = args
        self.sigma = sigma
        self.delta = delta
        self.view = view
        self.disable_mu = disable_mu
        self.topk = topk
        self._cfg = _sim_cfg(args)
        P, Df, Dg, K = (args.num_proxies, args.embedding_size,
                        args.bg_embedding_size, args.num_dims)
        k1, k2, k3, k4 = jax.random.split(key, 4)
        # kaiming_normal_(mode='fan_out') -> std = sqrt(2 / fan_out)
        self.proxies_f = jax.random.normal(k1, (P, Df), jnp.float32) * math.sqrt(2.0 / P)
        self.proxies_g = jax.random.normal(k2, (P, Dg), jnp.float32) * math.sqrt(2.0 / P)
        self.proxy_planes_f = (jax.random.normal(k3, (P, K, Df), jnp.float32)
                               * math.sqrt(2.0 / (P * Df)))
        self.proxy_planes_g = (jax.random.normal(k4, (P, K, Dg), jnp.float32)
                               * math.sqrt(2.0 / (P * Dg)))

    # -- teacher-side local plane fitting (SVD; plain JAX) -------------------
    def get_proj_similarity_planes(self, t_emb):
        args = self.args
        num_dims, num_neighbors = args.num_dims, args.num_neighbors
        T_dist = cdist(t_emb, t_emb)
        _, topk_idx = jax.lax.top_k(-T_dist, num_neighbors)    # k smallest
        neigh_pts = t_emb[topk_idx]                            # [N, k, D]

        # TODO(synk): no Pallas SVD primitive; greedy neighbor selection +
        # plane fitting stays in plain JAX (masked rows keep vh unchanged).
        def per_row(pts):
            mask = jnp.arange(num_neighbors) < (num_dims - 1)
            for samp in range(num_dims - 1, num_neighbors):
                cand = mask.at[samp].set(True)
                w = cand.astype(jnp.float32)[:, None]
                cnt = jnp.sum(w)
                origin = jnp.sum(pts * w, axis=0) / cnt
                centered = (pts - origin) * w
                _, _, vh = jnp.linalg.svd(centered, full_matrices=False)
                vh_k = vh[:num_dims]
                p0 = pts[0] - origin
                resid = jnp.linalg.norm(p0 - (p0 @ vh_k.T) @ vh_k)
                mask = jnp.where(resid > 0.1, mask, cand)
            origin = pts[0]                     # first neighbor == the point
            w = mask.astype(jnp.float32)[:, None]
            centered = (pts - origin) * w
            _, _, vh = jnp.linalg.svd(centered, full_matrices=False)
            return vh[:num_dims], origin

        point_planes, plane_centers = jax.vmap(per_row)(neigh_pts)
        return point_planes, plane_centers

    # -- RC (point-neighbor) loss --------------------------------------------
    def get_point_neighbor_loss(self, s_in, t_in, epoch):
        s_emb = _l2_normalize(s_in)
        t_emb = _l2_normalize(t_in)
        point_planes, plane_centers = self.get_proj_similarity_planes(t_emb)
        # fully fused: plane stats + cdist(s,s) + similarity + masked MSE
        # (the [N, N] residue / projected matrices never hit HBM).
        loss = rc_fused_loss(s_emb, t_emb, plane_centers, point_planes,
                             self.delta, self._cfg)
        return loss, point_planes

    # -- proxy loss ------------------------------------------------------------
    def proxy_loss(self, s_in, t_in, point_planes_teacher,
                   proxies_f, proxy_planes_f, epoch):
        args = self.args
        s_emb = _l2_normalize(s_in) if self.disable_mu else s_in
        t_emb = _l2_normalize(t_in)
        proxies_n = _l2_normalize(proxies_f) if args.proxy_norm else proxies_f

        # proxy planes truncated to 99% spectral energy (rank mask on vh).
        # TODO(synk): SVD has no Pallas equivalent; stays in plain JAX.
        def trunc_plane(plane):
            _, s, vh = jnp.linalg.svd(plane, full_matrices=False)
            s_sum = jnp.cumsum(s) / jnp.sum(s)
            s_mod = jnp.where(s_sum < 0.99, 2.0, s_sum)
            rank = jnp.argmin(s_mod)
            m = (jnp.arange(vh.shape[0]) <= rank).astype(vh.dtype)[:, None]
            return vh * m

        vh_masked = jax.vmap(trunc_plane)(proxy_planes_f)       # [P, K, D]
        ppn = _l2_normalize(proxy_planes_f, axis=2)              # [P, K, D]

        return proxy_fused_loss(proxies_n, s_emb, t_emb, vh_masked,
                                proxy_planes_f, ppn, point_planes_teacher,
                                self.delta, self._cfg)

    # -- forward ---------------------------------------------------------------
    def forward(self, s_f, t_f, epoch):
        args = self.args
        if args.num_proxies == 0:
            z = jnp.float32(0.0)
            return dict(RC=z, proxy=z, loss=z)
        loss_RC, point_planes_teacher = self.get_point_neighbor_loss(s_f, t_f, epoch)
        if args.no_proxy:
            loss_proxy = jnp.zeros_like(loss_RC)
        else:
            loss_proxy = self.proxy_loss(s_f, t_f, point_planes_teacher,
                                         self.proxies_f, self.proxy_planes_f,
                                         epoch)
        loss = loss_proxy if args.only_proxy else loss_RC + loss_proxy
        return dict(RC=loss_RC, proxy=loss_proxy, loss=loss)

    __call__ = forward


# ---------------------------------------------------------------------------
# main
# ---------------------------------------------------------------------------

if __name__ == "__main__":
    args = Args()
    key = jax.random.PRNGKey(0)
    k_mod, k_s, k_t = jax.random.split(key, 3)

    module = NeighborProjLoss(args, sigma=1.0, delta=1.0, view=2,
                              disable_mu=True, topk=5, key=k_mod)

    N = 8
    s_f = jax.random.normal(k_s, (N, args.embedding_size), jnp.float32)
    t_f = jax.random.normal(k_t, (N, args.embedding_size), jnp.float32)

    fwd = jax.jit(lambda s, t: module.forward(s, t, epoch=0))
    out = fwd(s_f, t_f)
    jax.block_until_ready(out["loss"])

    assert bool(jnp.isfinite(out["RC"]))
    assert bool(jnp.isfinite(out["proxy"]))
    assert bool(jnp.isfinite(out["loss"]))
    print("KERNEL_OK")
</pallas_src>

<mosaic_0001>
module attributes {stable_mosaic.version = 11 : i64} {
  func.func @_cdist_kernel(%arg0: i32, %arg1: memref<8x32xf32, #tpu.memory_space<vmem>>, %arg2: memref<1x128xf32, #tpu.memory_space<vmem>>, %arg3: memref<32x128xf32, #tpu.memory_space<vmem>>, %arg4: memref<8x128xf32, #tpu.memory_space<vmem>>) attributes {dimension_semantics = [#tpu.dimension_semantics<parallel>], iteration_bounds = array<i64: 1>, scalar_prefetch = 0 : i64, scratch_operands = 0 : i64, tpu.core_type = #tpu.core_type<tc>, window_params = [{transform_indices = @transform_0, window_bounds = array<i64: 8, 32>}, {pipeline_mode = #tpu.pipeline_mode<synchronous>, transform_indices = @transform_1, window_bounds = array<i64: 1, 128>}, {pipeline_mode = #tpu.pipeline_mode<synchronous>, transform_indices = @transform_2, window_bounds = array<i64: 32, 128>}, {transform_indices = @transform_3, window_bounds = array<i64: 8, 128>}]} {
    %c0 = arith.constant 0 : index
    %c0_0 = arith.constant 0 : index
    %0 = vector.load %arg1[%c0, %c0_0] : memref<8x32xf32, #tpu.memory_space<vmem>>, vector<8x32xf32>
    %1 = arith.mulf %0, %0 : vector<8x32xf32>
    %cst = arith.constant dense<0.000000e+00> : vector<8xf32>
    %2 = vector.multi_reduction <add>, %1, %cst [1] : vector<8x32xf32> to vector<8xf32>
    %3 = vector.shape_cast %2 : vector<8xf32> to vector<8x1xf32>
    %c0_1 = arith.constant 0 : index
    %c0_2 = arith.constant 0 : index
    %4 = vector.load %arg2[%c0_1, %c0_2] : memref<1x128xf32, #tpu.memory_space<vmem>>, vector<1x128xf32>
    %5 = vector.broadcast %3 : vector<8x1xf32> to vector<8x128xf32>
    %6 = vector.broadcast %4 : vector<1x128xf32> to vector<8x128xf32>
    %7 = arith.addf %5, %6 : vector<8x128xf32>
    %c0_3 = arith.constant 0 : index
    %c0_4 = arith.constant 0 : index
    %8 = vector.load %arg3[%c0_3, %c0_4] : memref<32x128xf32, #tpu.memory_space<vmem>>, vector<32x128xf32>
    %cst_5 = arith.constant dense<0.000000e+00> : vector<8x128xf32>
    %9 = tpu.matmul %0, %8, %cst_5 {dimension_numbers = #tpu.dot_dimension_numbers<[1], [0], [0], [1], [0, 0, 1, 1], [], []>} : vector<8x32xf32>, vector<32x128xf32>, vector<8x128xf32> -> vector<8x128xf32>
    %cst_6 = arith.constant 2.000000e+00 : f32
    %10 = vector.broadcast %cst_6 : f32 to vector<8x128xf32>
    %11 = arith.mulf %10, %9 : vector<8x128xf32>
    %12 = arith.subf %7, %11 : vector<8x128xf32>
    %cst_7 = arith.constant 0.000000e+00 : f32
    %13 = vector.broadcast %cst_7 : f32 to vector<8x128xf32>
    %14 = arith.maximumf %12, %13 : vector<8x128xf32>
    %15 = math.sqrt %14 : vector<8x128xf32>
    %c0_8 = arith.constant 0 : index
    %c0_9 = arith.constant 0 : index
    %16 = vector.load %arg4[%c0_8, %c0_9] : memref<8x128xf32, #tpu.memory_space<vmem>>, vector<8x128xf32>
    tpu.vector_store %arg4[%c0_8, %c0_9], %15 {strides = array<i32>} : memref<8x128xf32, #tpu.memory_space<vmem>>, vector<8x128xf32>,
    return
  }
  func.func @transform_0(%arg0: i32) -> (i32, i32) {
    %c0_i32 = arith.constant 0 : i32
    %c0_i32_0 = arith.constant 0 : i32
    return %arg0, %c0_i32 : i32, i32
  }
  func.func @transform_1(%arg0: i32) -> (i32, i32) {
    %c0_i32 = arith.constant 0 : i32
    %c0_i32_0 = arith.constant 0 : i32
    %c0_i32_1 = arith.constant 0 : i32
    return %c0_i32, %c0_i32_0 : i32, i32
  }
  func.func @transform_2(%arg0: i32) -> (i32, i32) {
    %c0_i32 = arith.constant 0 : i32
    %c0_i32_0 = arith.constant 0 : i32
    %c0_i32_1 = arith.constant 0 : i32
    return %c0_i32, %c0_i32_0 : i32, i32
  }
  func.func @transform_3(%arg0: i32) -> (i32, i32) {
    %c0_i32 = arith.constant 0 : i32
    %c0_i32_0 = arith.constant 0 : i32
    return %arg0, %c0_i32 : i32, i32
  }
}

module attributes {stable_mosaic.version = 11 : i64} {
  func.func @kernel(%arg0: i32, %arg1: i32, %arg2: memref<1x32x32xf32, #tpu.memory_space<vmem>>, %arg3: memref<8x32xf32, #tpu.memory_space<vmem>>, %arg4: memref<32x128xf32, #tpu.memory_space<vmem>>, %arg5: memref<32x128xf32, #tpu.memory_space<vmem>>, %arg6: memref<1x128xf32, #tpu.memory_space<vmem>>, %arg7: memref<1x128xf32, #tpu.memory_space<vmem>>, %arg8: memref<1x8x128xf32, #tpu.memory_space<vmem>>) attributes {dimension_semantics = [#tpu.dimension_semantics<parallel>, #tpu.dimension_semantics<parallel>], iteration_bounds = array<i64: 1, 1>, scalar_prefetch = 0 : i64, scratch_operands = 0 : i64, tpu.core_type = #tpu.core_type<tc>, window_params = [{transform_indices = @transform_0, window_bounds = array<i64: 1, 32, 32>}, {transform_indices = @transform_1, window_bounds = array<i64: 8, 32>}, {transform_indices = @transform_2, window_bounds = array<i64: 32, 128>}, {transform_indices = @transform_3, window_bounds = array<i64: 32, 128>}, {transform_indices = @transform_4, window_bounds = array<i64: 1, 128>}, {transform_indices = @transform_5, window_bounds = array<i64: 1, 128>}, {transform_indices = @transform_6, window_bounds = array<i64: 1, 8, 128>}]} {
    %c0 = arith.constant 0 : index
    %c0_0 = arith.constant 0 : index
    %c0_1 = arith.constant 0 : index
    %0 = vector.load %arg2[%c0, %c0_0, %c0_1] : memref<1x32x32xf32, #tpu.memory_space<vmem>>, vector<1x32x32xf32>
    %1 = vector.shape_cast %0 : vector<1x32x32xf32> to vector<32x32xf32>
    %c0_2 = arith.constant 0 : index
    %c0_3 = arith.constant 0 : index
    %2 = vector.load %arg4[%c0_2, %c0_3] : memref<32x128xf32, #tpu.memory_space<vmem>>, vector<32x128xf32>
    %cst = arith.constant dense<0.000000e+00> : vector<32x128xf32>
    %3 = tpu.matmul %1, %2, %cst {dimension_numbers = #tpu.dot_dimension_numbers<[1], [0], [0], [1], [0, 0, 1, 1], [], []>} : vector<32x32xf32>, vector<32x128xf32>, vector<32x128xf32> -> vector<32x128xf32>
    %4 = vector.extract_strided_slice %1 {offsets = [0, 0], sizes = [8, 32], strides = [1, 1]} : vector<32x32xf32> to vector<8x32xf32>
    %5 = arith.mulf %4, %4 : vector<8x32xf32>
    %cst_4 = arith.constant dense<0.000000e+00> : vector<8xf32>
    %6 = vector.multi_reduction <add>, %5, %cst_4 [1] : vector<8x32xf32> to vector<8xf32>
    %7 = vector.shape_cast %6 : vector<8xf32> to vector<8x1xf32>
    %c0_5 = arith.constant 0 : index
    %c0_6 = arith.constant 0 : index
    %8 = vector.load %arg6[%c0_5, %c0_6] : memref<1x128xf32, #tpu.memory_space<vmem>>, vector<1x128xf32>
    %9 = vector.broadcast %8 : vector<1x128xf32> to vector<8x128xf32>
    %10 = vector.broadcast %7 : vector<8x1xf32> to vector<8x128xf32>
    %11 = arith.addf %9, %10 : vector<8x128xf32>
    %12 = vector.extract_strided_slice %3 {offsets = [0, 0], sizes = [8, 128], strides = [1, 1]} : vector<32x128xf32> to vector<8x128xf32>
    %cst_7 = arith.constant 2.000000e+00 : f32
    %13 = vector.broadcast %cst_7 : f32 to vector<8x128xf32>
    %14 = arith.mulf %13, %12 : vector<8x128xf32>
    %15 = arith.subf %11, %14 : vector<8x128xf32>
    %cst_8 = arith.constant 0.000000e+00 : f32
    %16 = vector.broadcast %cst_8 : f32 to vector<8x128xf32>
    %17 = vector.extract_strided_slice %1 {offsets = [8, 0], sizes = [8, 32], strides = [1, 1]} : vector<32x32xf32> to vector<8x32xf32>
    %18 = arith.mulf %17, %4 : vector<8x32xf32>
    %cst_9 = arith.constant dense<0.000000e+00> : vector<8xf32>
    %19 = vector.multi_reduction <add>, %18, %cst_9 [1] : vector<8x32xf32> to vector<8xf32>
    %20 = vector.shape_cast %19 : vector<8xf32> to vector<8x1xf32>
    %21 = vector.extract_strided_slice %3 {offsets = [8, 0], sizes = [8, 128], strides = [1, 1]} : vector<32x128xf32> to vector<8x128xf32>
    %22 = vector.broadcast %20 : vector<8x1xf32> to vector<8x128xf32>
    %23 = arith.subf %21, %22 : vector<8x128xf32>
    %24 = arith.mulf %23, %23 : vector<8x128xf32>
    %25 = arith.addf %16, %24 : vector<8x128xf32>
    %26 = vector.extract_strided_slice %1 {offsets = [16, 0], sizes = [8, 32], strides = [1, 1]} : vector<32x32xf32> to vector<8x32xf32>
    %27 = arith.mulf %26, %4 : vector<8x32xf32>
    %cst_10 = arith.constant dense<0.000000e+00> : vector<8xf32>
    %28 = vector.multi_reduction <add>, %27, %cst_10 [1] : vector<8x32xf32> to vector<8xf32>
    %29 = vector.shape_cast %28 : vector<8xf32> to vector<8x1xf32>
    %30 = vector.extract_strided_slice %3 {offsets = [16, 0], sizes = [8, 128], strides = [1, 1]} : vector<32x128xf32> to vector<8x128xf32>
    %31 = vector.broadcast %29 : vector<8x1xf32> to vector<8x128xf32>
    %32 = arith.subf %30, %31 : vector<8x128xf32>
    %33 = arith.mulf %32, %32 : vector<8x128xf32>
    %34 = arith.addf %25, %33 : vector<8x128xf32>
    %35 = vector.extract_strided_slice %1 {offsets = [24, 0], sizes = [8, 32], strides = [1, 1]} : vector<32x32xf32> to vector<8x32xf32>
    %36 = arith.mulf %35, %4 : vector<8x32xf32>
    %cst_11 = arith.constant dense<0.000000e+00> : vector<8xf32>
    %37 = vector.multi_reduction <add>, %36, %cst_11 [1] : vector<8x32xf32> to vector<8xf32>
    %38 = vector.shape_cast %37 : vector<8xf32> to vector<8x1xf32>
    %39 = vector.extract_strided_slice %3 {offsets = [24, 0], sizes = [8, 128], strides = [1, 1]} : vector<32x128xf32> to vector<8x128xf32>
    %40 = vector.broadcast %38 : vector<8x1xf32> to vector<8x128xf32>
    %41 = arith.subf %39, %40 : vector<8x128xf32>
    %42 = arith.mulf %41, %41 : vector<8x128xf32>
    %43 = arith.addf %34, %42 : vector<8x128xf32>
    %44 = arith.subf %15, %43 : vector<8x128xf32>
    %cst_12 = arith.constant 0.000000e+00 : f32
    %45 = vector.broadcast %cst_12 : f32 to vector<8x128xf32>
    %46 = arith.maximumf %44, %45 : vector<8x128xf32>
    %47 = math.sqrt %46 : vector<8x128xf32>
    %cst_13 = arith.constant 0.704225361 : f32
    %48 = vector.broadcast %cst_13 : f32 to vector<8x128xf32>
    %49 = arith.mulf %47, %48 : vector<8x128xf32>
    %cst_14 = arith.constant 1.000000e+00 : f32
    %50 = vector.broadcast %cst_14 : f32 to vector<8x128xf32>
    %51 = arith.addf %50, %49 : vector<8x128xf32>
    %52 = arith.mulf %51, %51 : vector<8x128xf32>
    %53 = tpu.reciprocal %52 {approx = true} : vector<8x128xf32> -> vector<8x128xf32>
    %54 = math.sqrt %43 : vector<8x128xf32>
    %cst_15 = arith.constant 1.000000e+00 : f32
    %55 = vector.broadcast %cst_15 : f32 to vector<8x128xf32>
    %56 = arith.addf %55, %54 : vector<8x128xf32>
    %57 = arith.mulf %56, %56 : vector<8x128xf32>
    %58 = tpu.reciprocal %57 {approx = true} : vector<8x128xf32> -> vector<8x128xf32>
    %59 = arith.mulf %53, %58 : vector<8x128xf32>
    %c0_16 = arith.constant 0 : index
    %c0_17 = arith.constant 0 : index
    %60 = vector.load %arg3[%c0_16, %c0_17] : memref<8x32xf32, #tpu.memory_space<vmem>>, vector<8x32xf32>
    %61 = arith.mulf %60, %60 : vector<8x32xf32>
    %cst_18 = arith.constant dense<0.000000e+00> : vector<8xf32>
    %62 = vector.multi_reduction <add>, %61, %cst_18 [1] : vector<8x32xf32> to vector<8xf32>
    %63 = vector.shape_cast %62 : vector<8xf32> to vector<8x1xf32>
    %c0_19 = arith.constant 0 : index
    %c0_20 = arith.constant 0 : index
    %64 = vector.load %arg7[%c0_19, %c0_20] : memref<1x128xf32, #tpu.memory_space<vmem>>, vector<1x128xf32>
    %65 = vector.broadcast %63 : vector<8x1xf32> to vector<8x128xf32>
    %66 = vector.broadcast %64 : vector<1x128xf32> to vector<8x128xf32>
    %67 = arith.addf %65, %66 : vector<8x128xf32>
    %c0_21 = arith.constant 0 : index
    %c0_22 = arith.constant 0 : index
    %68 = vector.load %arg5[%c0_21, %c0_22] : memref<32x128xf32, #tpu.memory_space<vmem>>, vector<32x128xf32>
    %cst_23 = arith.constant dense<0.000000e+00> : vector<8x128xf32>
    %69 = tpu.matmul %60, %68, %cst_23 {dimension_numbers = #tpu.dot_dimension_numbers<[1], [0], [0], [1], [0, 0, 1, 1], [], []>} : vector<8x32xf32>, vector<32x128xf32>, vector<8x128xf32> -> vector<8x128xf32>
    %cst_24 = arith.constant 2.000000e+00 : f32
    %70 = vector.broadcast %cst_24 : f32 to vector<8x128xf32>
    %71 = arith.mulf %70, %69 : vector<8x128xf32>
    %72 = arith.subf %67, %71 : vector<8x128xf32>
    %cst_25 = arith.constant 0.000000e+00 : f32
    %73 = vector.broadcast %cst_25 : f32 to vector<8x128xf32>
    %74 = arith.maximumf %72, %73 : vector<8x128xf32>
    %75 = math.sqrt %74 : vector<8x128xf32>
    %cst_26 = arith.constant 1.000000e+00 : f32
    %76 = vector.broadcast %cst_26 : f32 to vector<8x128xf32>
    %77 = arith.subf %76, %59 : vector<8x128xf32>
    %cst_27 = arith.constant 1.000000e+00 : f32
    %78 = vector.broadcast %cst_27 : f32 to vector<8x128xf32>
    %79 = arith.mulf %78, %77 : vector<8x128xf32>
    %80 = arith.subf %79, %75 : vector<8x128xf32>
    %81 = arith.mulf %80, %80 : vector<8x128xf32>
    %c8_i32 = arith.constant 8 : i32
    %82 = arith.muli %arg0, %c8_i32 : i32
    %83 = tpu.iota {dimensions = array<i32: 0>} : vector<8x128xi32>
    %84 = vector.broadcast %82 : i32 to vector<8x128xi32>
    %85 = arith.addi %84, %83 : vector<8x128xi32>
    %c128_i32 = arith.constant 128 : i32
    %86 = arith.muli %arg1, %c128_i32 : i32
    %87 = tpu.iota {dimensions = array<i32: 1>} : vector<8x128xi32>
    %88 = vector.broadcast %86 : i32 to vector<8x128xi32>
    %89 = arith.addi %88, %87 : vector<8x128xi32>
    %90 = arith.cmpi ne, %85, %89 : vector<8x128xi32>
    %c8_i32_28 = arith.constant 8 : i32
    %91 = vector.broadcast %c8_i32_28 : i32 to vector<8x128xi32>
    %92 = arith.cmpi slt, %85, %91 : vector<8x128xi32>
    %c8_i32_29 = arith.constant 8 : i32
    %93 = vector.broadcast %c8_i32_29 : i32 to vector<8x128xi32>
    %94 = arith.cmpi slt, %89, %93 : vector<8x128xi32>
    %95 = arith.andi %92, %94 : vector<8x128xi1>
    %96 = arith.andi %90, %95 : vector<8x128xi1>
    %cst_30 = arith.constant 0.000000e+00 : f32
    %97 = vector.broadcast %cst_30 : f32 to vector<8x128xf32>
    %98 = arith.select %96, %81, %97 : vector<8x128xi1>, vector<8x128xf32>
    %cst_31 = arith.constant dense<0.000000e+00> : vector<8xf32>
    %99 = vector.multi_reduction <add>, %98, %cst_31 [1] : vector<8x128xf32> to vector<8xf32>
    %100 = vector.shape_cast %99 : vector<8xf32> to vector<8x1xf32>
    %cst_32 = arith.constant dense<0.000000e+00> : vector<1xf32>
    %101 = vector.multi_reduction <add>, %100, %cst_32 [0] : vector<8x1xf32> to vector<1xf32>
    %102 = vector.shape_cast %101 : vector<1xf32> to vector<1x1xf32>
    %103 = tpu.iota {dimensions = array<i32: 1>} : vector<1x8x128xi32>
    %104 = tpu.iota {dimensions = array<i32: 2>} : vector<1x8x128xi32>
    %c0_i32 = arith.constant 0 : i32
    %105 = vector.broadcast %c0_i32 : i32 to vector<1x8x128xi32>
    %106 = arith.cmpi eq, %103, %105 : vector<1x8x128xi32>
    %c0_i32_33 = arith.constant 0 : i32
    %107 = vector.broadcast %c0_i32_33 : i32 to vector<1x8x128xi32>
    %108 = arith.cmpi eq, %104, %107 : vector<1x8x128xi32>
    %109 = arith.andi %106, %108 : vector<1x8x128xi1>
    %cst_34 = arith.constant 0.000000e+00 : f32
    %110 = vector.shape_cast %102 : vector<1x1xf32> to vector<1x1x1xf32>
    %111 = vector.broadcast %110 : vector<1x1x1xf32> to vector<1x8x128xf32>
    %112 = vector.broadcast %cst_34 : f32 to vector<1x8x128xf32>
    %113 = arith.select %109, %111, %112 : vector<1x8x128xi1>, vector<1x8x128xf32>
    %c0_35 = arith.constant 0 : index
    %c0_36 = arith.constant 0 : index
    %c0_37 = arith.constant 0 : index
    %114 = vector.load %arg8[%c0_35, %c0_36, %c0_37] : memref<1x8x128xf32, #tpu.memory_space<vmem>>, vector<1x8x128xf32>
    tpu.vector_store %arg8[%c0_35, %c0_36, %c0_37], %113 {strides = array<i32>} : memref<1x8x128xf32, #tpu.memory_space<vmem>>, vector<1x8x128xf32>,
    return
  }
  func.func @transform_0(%arg0: i32, %arg1: i32) -> (i32, i32, i32) {
    %c0_i32 = arith.constant 0 : i32
    %c0_i32_0 = arith.constant 0 : i32
    %c0_i32_1 = arith.constant 0 : i32
    return %arg0, %c0_i32, %c0_i32_0 : i32, i32, i32
  }
  func.func @transform_1(%arg0: i32, %arg1: i32) -> (i32, i32) {
    %c0_i32 = arith.constant 0 : i32
    %c0_i32_0 = arith.constant 0 : i32
    return %arg0, %c0_i32 : i32, i32
  }
  func.func @transform_2(%arg0: i32, %arg1: i32) -> (i32, i32) {
    %c0_i32 = arith.constant 0 : i32
    %c0_i32_0 = arith.constant 0 : i32
    return %c0_i32, %arg1 : i32, i32
  }
  func.func @transform_3(%arg0: i32, %arg1: i32) -> (i32, i32) {
    %c0_i32 = arith.constant 0 : i32
    %c0_i32_0 = arith.constant 0 : i32
    return %c0_i32, %arg1 : i32, i32
  }
  func.func @transform_4(%arg0: i32, %arg1: i32) -> (i32, i32) {
    %c0_i32 = arith.constant 0 : i32
    %c0_i32_0 = arith.constant 0 : i32
    return %c0_i32, %arg1 : i32, i32
  }
  func.func @transform_5(%arg0: i32, %arg1: i32) -> (i32, i32) {
    %c0_i32 = arith.constant 0 : i32
    %c0_i32_0 = arith.constant 0 : i32
    return %c0_i32, %arg1 : i32, i32
  }
  func.func @transform_6(%arg0: i32, %arg1: i32) -> (i32, i32, i32) {
    %c1_i32 = arith.constant 1 : i32
    %0 = arith.muli %arg0, %c1_i32 : i32
    %1 = arith.addi %0, %arg1 : i32
    %c0_i32 = arith.constant 0 : i32
    %c0_i32_0 = arith.constant 0 : i32
    %c0_i32_1 = arith.constant 0 : i32
    return %1, %c0_i32, %c0_i32_0 : i32, i32, i32
  }
}

module attributes {stable_mosaic.version = 11 : i64} {
  func.func @kernel(%arg0: i32, %arg1: memref<56x32xf32, #tpu.memory_space<vmem>>, %arg2: memref<32x32xf32, #tpu.memory_space<vmem>>, %arg3: memref<32x128xf32, #tpu.memory_space<vmem>>, %arg4: memref<32x128xf32, #tpu.memory_space<vmem>>, %arg5: memref<1x128xf32, #tpu.memory_space<vmem>>, %arg6: memref<1x128xf32, #tpu.memory_space<vmem>>, %arg7: memref<3x32x128xf32, #tpu.memory_space<vmem>>, %arg8: memref<1x8x128xf32, #tpu.memory_space<vmem>>, %arg9: memref<1x8x128xf32, #tpu.memory_space<vmem>>) attributes {dimension_semantics = [#tpu.dimension_semantics<parallel>], iteration_bounds = array<i64: 1>, scalar_prefetch = 0 : i64, scratch_operands = 0 : i64, tpu.core_type = #tpu.core_type<tc>, window_params = [{pipeline_mode = #tpu.pipeline_mode<synchronous>, transform_indices = @transform_0, window_bounds = array<i64: 56, 32>}, {pipeline_mode = #tpu.pipeline_mode<synchronous>, transform_indices = @transform_1, window_bounds = array<i64: 32, 32>}, {transform_indices = @transform_2, window_bounds = array<i64: 32, 128>}, {transform_indices = @transform_3, window_bounds = array<i64: 32, 128>}, {transform_indices = @transform_4, window_bounds = array<i64: 1, 128>}, {transform_indices = @transform_5, window_bounds = array<i64: 1, 128>}, {transform_indices = @transform_6, window_bounds = array<i64: 3, 32, 128>}, {transform_indices = @transform_7, window_bounds = array<i64: 1, 8, 128>}, {transform_indices = @transform_8, window_bounds = array<i64: 1, 8, 128>}]} {
    %c0 = arith.constant 0 : index
    %c0_0 = arith.constant 0 : index
    %0 = vector.load %arg3[%c0, %c0_0] : memref<32x128xf32, #tpu.memory_space<vmem>>, vector<32x128xf32>
    %c0_1 = arith.constant 0 : index
    %c0_2 = arith.constant 0 : index
    %1 = vector.load %arg4[%c0_1, %c0_2] : memref<32x128xf32, #tpu.memory_space<vmem>>, vector<32x128xf32>
    %c0_3 = arith.constant 0 : index
    %c0_4 = arith.constant 0 : index
    %2 = vector.load %arg1[%c0_3, %c0_4] : memref<56x32xf32, #tpu.memory_space<vmem>>, vector<56x32xf32>
    %3 = vector.extract_strided_slice %2 {offsets = [0, 0], sizes = [8, 32], strides = [1, 1]} : vector<56x32xf32> to vector<8x32xf32>
    %4 = arith.mulf %3, %3 : vector<8x32xf32>
    %cst = arith.constant dense<0.000000e+00> : vector<8xf32>
    %5 = vector.multi_reduction <add>, %4, %cst [1] : vector<8x32xf32> to vector<8xf32>
    %6 = vector.shape_cast %5 : vector<8xf32> to vector<8x1xf32>
    %cst_5 = arith.constant dense<0.000000e+00> : vector<56x128xf32>
    %7 = tpu.matmul %2, %0, %cst_5 {dimension_numbers = #tpu.dot_dimension_numbers<[1], [0], [0], [1], [0, 0, 1, 1], [], []>} : vector<56x32xf32>, vector<32x128xf32>, vector<56x128xf32> -> vector<56x128xf32>
    %c0_6 = arith.constant 0 : index
    %c0_7 = arith.constant 0 : index
    %8 = vector.load %arg5[%c0_6, %c0_7] : memref<1x128xf32, #tpu.memory_space<vmem>>, vector<1x128xf32>
    %9 = vector.broadcast %8 : vector<1x128xf32> to vector<8x128xf32>
    %10 = vector.broadcast %6 : vector<8x1xf32> to vector<8x128xf32>
    %11 = arith.addf %9, %10 : vector<8x128xf32>
    %12 = vector.extract_strided_slice %7 {offsets = [0, 0], sizes = [8, 128], strides = [1, 1]} : vector<56x128xf32> to vector<8x128xf32>
    %cst_8 = arith.constant 2.000000e+00 : f32
    %13 = vector.broadcast %cst_8 : f32 to vector<8x128xf32>
    %14 = arith.mulf %13, %12 : vector<8x128xf32>
    %15 = arith.subf %11, %14 : vector<8x128xf32>
    %cst_9 = arith.constant 0.000000e+00 : f32
    %16 = vector.broadcast %cst_9 : f32 to vector<8x128xf32>
    %cst_10 = arith.constant 0.000000e+00 : f32
    %17 = vector.broadcast %cst_10 : f32 to vector<8x128xf32>
    %18 = vector.extract_strided_slice %2 {offsets = [8, 0], sizes = [8, 32], strides = [1, 1]} : vector<56x32xf32> to vector<8x32xf32>
    %19 = vector.extract_strided_slice %2 {offsets = [32, 0], sizes = [8, 32], strides = [1, 1]} : vector<56x32xf32> to vector<8x32xf32>
    %20 = vector.extract_strided_slice %7 {offsets = [8, 0], sizes = [8, 128], strides = [1, 1]} : vector<56x128xf32> to vector<8x128xf32>
    %21 = arith.mulf %18, %3 : vector<8x32xf32>
    %cst_11 = arith.constant dense<0.000000e+00> : vector<8xf32>
    %22 = vector.multi_reduction <add>, %21, %cst_11 [1] : vector<8x32xf32> to vector<8xf32>
    %23 = vector.shape_cast %22 : vector<8xf32> to vector<8x1xf32>
    %24 = vector.broadcast %23 : vector<8x1xf32> to vector<8x128xf32>
    %25 = arith.subf %20, %24 : vector<8x128xf32>
    %26 = vector.extract_strided_slice %7 {offsets = [32, 0], sizes = [8, 128], strides = [1, 1]} : vector<56x128xf32> to vector<8x128xf32>
    %27 = arith.mulf %19, %3 : vector<8x32xf32>
    %cst_12 = arith.constant dense<0.000000e+00> : vector<8xf32>
    %28 = vector.multi_reduction <add>, %27, %cst_12 [1] : vector<8x32xf32> to vector<8xf32>
    %29 = vector.shape_cast %28 : vector<8xf32> to vector<8x1xf32>
    %30 = vector.broadcast %29 : vector<8x1xf32> to vector<8x128xf32>
    %31 = arith.subf %26, %30 : vector<8x128xf32>
    %32 = arith.mulf %25, %25 : vector<8x128xf32>
    %33 = arith.addf %16, %32 : vector<8x128xf32>
    %34 = arith.mulf %31, %31 : vector<8x128xf32>
    %35 = arith.addf %17, %34 : vector<8x128xf32>
    %36 = vector.extract_strided_slice %2 {offsets = [16, 0], sizes = [8, 32], strides = [1, 1]} : vector<56x32xf32> to vector<8x32xf32>
    %37 = vector.extract_strided_slice %2 {offsets = [40, 0], sizes = [8, 32], strides = [1, 1]} : vector<56x32xf32> to vector<8x32xf32>
    %38 = vector.extract_strided_slice %7 {offsets = [16, 0], sizes = [8, 128], strides = [1, 1]} : vector<56x128xf32> to vector<8x128xf32>
    %39 = arith.mulf %36, %3 : vector<8x32xf32>
    %cst_13 = arith.constant dense<0.000000e+00> : vector<8xf32>
    %40 = vector.multi_reduction <add>, %39, %cst_13 [1] : vector<8x32xf32> to vector<8xf32>
    %41 = vector.shape_cast %40 : vector<8xf32> to vector<8x1xf32>
    %42 = vector.broadcast %41 : vector<8x1xf32> to vector<8x128xf32>
    %43 = arith.subf %38, %42 : vector<8x128xf32>
    %44 = vector.extract_strided_slice %7 {offsets = [40, 0], sizes = [8, 128], strides = [1, 1]} : vector<56x128xf32> to vector<8x128xf32>
    %45 = arith.mulf %37, %3 : vector<8x32xf32>
    %cst_14 = arith.constant dense<0.000000e+00> : vector<8xf32>
    %46 = vector.multi_reduction <add>, %45, %cst_14 [1] : vector<8x32xf32> to vector<8xf32>
    %47 = vector.shape_cast %46 : vector<8xf32> to vector<8x1xf32>
    %48 = vector.broadcast %47 : vector<8x1xf32> to vector<8x128xf32>
    %49 = arith.subf %44, %48 : vector<8x128xf32>
    %50 = arith.mulf %43, %43 : vector<8x128xf32>
    %51 = arith.addf %33, %50 : vector<8x128xf32>
    %52 = arith.mulf %49, %49 : vector<8x128xf32>
    %53 = arith.addf %35, %52 : vector<8x128xf32>
    %54 = vector.extract_strided_slice %2 {offsets = [24, 0], sizes = [8, 32], strides = [1, 1]} : vector<56x32xf32> to vector<8x32xf32>
    %55 = vector.extract_strided_slice %2 {offsets = [48, 0], sizes = [8, 32], strides = [1, 1]} : vector<56x32xf32> to vector<8x32xf32>
    %56 = vector.extract_strided_slice %7 {offsets = [24, 0], sizes = [8, 128], strides = [1, 1]} : vector<56x128xf32> to vector<8x128xf32>
    %57 = arith.mulf %54, %3 : vector<8x32xf32>
    %cst_15 = arith.constant dense<0.000000e+00> : vector<8xf32>
    %58 = vector.multi_reduction <add>, %57, %cst_15 [1] : vector<8x32xf32> to vector<8xf32>
    %59 = vector.shape_cast %58 : vector<8xf32> to vector<8x1xf32>
    %60 = vector.broadcast %59 : vector<8x1xf32> to vector<8x128xf32>
    %61 = arith.subf %56, %60 : vector<8x128xf32>
    %62 = vector.extract_strided_slice %7 {offsets = [48, 0], sizes = [8, 128], strides = [1, 1]} : vector<56x128xf32> to vector<8x128xf32>
    %63 = arith.mulf %55, %3 : vector<8x32xf32>
    %cst_16 = arith.constant dense<0.000000e+00> : vector<8xf32>
    %64 = vector.multi_reduction <add>, %63, %cst_16 [1] : vector<8x32xf32> to vector<8xf32>
    %65 = vector.shape_cast %64 : vector<8xf32> to vector<8x1xf32>
    %66 = vector.broadcast %65 : vector<8x1xf32> to vector<8x128xf32>
    %67 = arith.subf %62, %66 : vector<8x128xf32>
    %68 = arith.mulf %61, %61 : vector<8x128xf32>
    %69 = arith.addf %51, %68 : vector<8x128xf32>
    %70 = arith.mulf %67, %67 : vector<8x128xf32>
    %71 = arith.addf %53, %70 : vector<8x128xf32>
    %72 = arith.subf %15, %69 : vector<8x128xf32>
    %cst_17 = arith.constant 0.000000e+00 : f32
    %73 = vector.broadcast %cst_17 : f32 to vector<8x128xf32>
    %74 = arith.maximumf %72, %73 : vector<8x128xf32>
    %75 = math.sqrt %74 : vector<8x128xf32>
    %cst_18 = arith.constant 0.704225361 : f32
    %76 = vector.broadcast %cst_18 : f32 to vector<8x128xf32>
    %77 = arith.mulf %75, %76 : vector<8x128xf32>
    %cst_19 = arith.constant 1.000000e+00 : f32
    %78 = vector.broadcast %cst_19 : f32 to vector<8x128xf32>
    %79 = arith.addf %78, %77 : vector<8x128xf32>
    %80 = arith.mulf %79, %79 : vector<8x128xf32>
    %81 = tpu.reciprocal %80 {approx = true} : vector<8x128xf32> -> vector<8x128xf32>
    %82 = math.sqrt %71 : vector<8x128xf32>
    %cst_20 = arith.constant 1.000000e+00 : f32
    %83 = vector.broadcast %cst_20 : f32 to vector<8x128xf32>
    %84 = arith.addf %83, %82 : vector<8x128xf32>
    %85 = arith.mulf %84, %84 : vector<8x128xf32>
    %86 = tpu.reciprocal %85 {approx = true} : vector<8x128xf32> -> vector<8x128xf32>
    %87 = arith.mulf %81, %86 : vector<8x128xf32>
    %c0_21 = arith.constant 0 : index
    %c0_22 = arith.constant 0 : index
    %88 = vector.load %arg2[%c0_21, %c0_22] : memref<32x32xf32, #tpu.memory_space<vmem>>, vector<32x32xf32>
    %cst_23 = arith.constant dense<0.000000e+00> : vector<8x128xf32>
    %89 = tpu.matmul %3, %1, %cst_23 {dimension_numbers = #tpu.dot_dimension_numbers<[1], [0], [0], [1], [0, 0, 1, 1], [], []>} : vector<8x32xf32>, vector<32x128xf32>, vector<8x128xf32> -> vector<8x128xf32>
    %c0_24 = arith.constant 0 : index
    %c0_25 = arith.constant 0 : index
    %90 = vector.load %arg6[%c0_24, %c0_25] : memref<1x128xf32, #tpu.memory_space<vmem>>, vector<1x128xf32>
    %91 = vector.broadcast %6 : vector<8x1xf32> to vector<8x128xf32>
    %92 = vector.broadcast %90 : vector<1x128xf32> to vector<8x128xf32>
    %93 = arith.addf %91, %92 : vector<8x128xf32>
    %cst_26 = arith.constant 2.000000e+00 : f32
    %94 = vector.broadcast %cst_26 : f32 to vector<8x128xf32>
    %95 = arith.mulf %94, %89 : vector<8x128xf32>
    %96 = arith.subf %93, %95 : vector<8x128xf32>
    %cst_27 = arith.constant 0.000000e+00 : f32
    %97 = vector.broadcast %cst_27 : f32 to vector<8x128xf32>
    %cst_28 = arith.constant 0.000000e+00 : f32
    %98 = vector.broadcast %cst_28 : f32 to vector<8x128xf32>
    %cst_29 = arith.constant 0.000000e+00 : f32
    %99 = vector.broadcast %cst_29 : f32 to vector<24x128xf32>
    %c0_30 = arith.constant 0 : index
    %c0_31 = arith.constant 0 : index
    %c0_32 = arith.constant 0 : index
    %100 = vector.load %arg7[%c0_30, %c0_31, %c0_32] : memref<3x32x128xf32, #tpu.memory_space<vmem>>, vector<1x32x128xf32>
    %101 = vector.shape_cast %100 : vector<1x32x128xf32> to vector<32x128xf32>
    %cst_33 = arith.constant dense<0.000000e+00> : vector<32x128xf32>
    %102 = tpu.matmul %88, %101, %cst_33 {dimension_numbers = #tpu.dot_dimension_numbers<[1], [0], [0], [1], [0, 0, 1, 1], [], []>} : vector<32x32xf32>, vector<32x128xf32>, vector<32x128xf32> -> vector<32x128xf32>
    %103 = vector.extract_strided_slice %102 {offsets = [0, 0], sizes = [8, 128], strides = [1, 1]} : vector<32x128xf32> to vector<8x128xf32>
    %104 = arith.mulf %101, %1 : vector<32x128xf32>
    %cst_34 = arith.constant dense<0.000000e+00> : vector<128xf32>
    %105 = vector.multi_reduction <add>, %104, %cst_34 [0] : vector<32x128xf32> to vector<128xf32>
    %106 = vector.shape_cast %105 : vector<128xf32> to vector<1x128xf32>
    %107 = arith.mulf %101, %0 : vector<32x128xf32>
    %cst_35 = arith.constant dense<0.000000e+00> : vector<128xf32>
    %108 = vector.multi_reduction <add>, %107, %cst_35 [0] : vector<32x128xf32> to vector<128xf32>
    %109 = vector.shape_cast %108 : vector<128xf32> to vector<1x128xf32>
    %110 = vector.broadcast %106 : vector<1x128xf32> to vector<8x128xf32>
    %111 = arith.subf %103, %110 : vector<8x128xf32>
    %112 = vector.broadcast %109 : vector<1x128xf32> to vector<8x128xf32>
    %113 = arith.subf %103, %112 : vector<8x128xf32>
    %114 = arith.mulf %111, %111 : vector<8x128xf32>
    %115 = arith.addf %97, %114 : vector<8x128xf32>
    %116 = arith.mulf %113, %113 : vector<8x128xf32>
    %117 = arith.addf %98, %116 : vector<8x128xf32>
    %118 = vector.extract_strided_slice %102 {offsets = [8, 0], sizes = [24, 128], strides = [1, 1]} : vector<32x128xf32> to vector<24x128xf32>
    %119 = arith.mulf %118, %118 : vector<24x128xf32>
    %120 = arith.addf %99, %119 : vector<24x128xf32>
    %c1 = arith.constant 1 : index
    %c0_36 = arith.constant 0 : index
    %c0_37 = arith.constant 0 : index
    %121 = vector.load %arg7[%c1, %c0_36, %c0_37] : memref<3x32x128xf32, #tpu.memory_space<vmem>>, vector<1x32x128xf32>
    %122 = vector.shape_cast %121 : vector<1x32x128xf32> to vector<32x128xf32>
    %cst_38 = arith.constant dense<0.000000e+00> : vector<32x128xf32>
    %123 = tpu.matmul %88, %122, %cst_38 {dimension_numbers = #tpu.dot_dimension_numbers<[1], [0], [0], [1], [0, 0, 1, 1], [], []>} : vector<32x32xf32>, vector<32x128xf32>, vector<32x128xf32> -> vector<32x128xf32>
    %124 = vector.extract_strided_slice %123 {offsets = [0, 0], sizes = [8, 128], strides = [1, 1]} : vector<32x128xf32> to vector<8x128xf32>
    %125 = arith.mulf %122, %1 : vector<32x128xf32>
    %cst_39 = arith.constant dense<0.000000e+00> : vector<128xf32>
    %126 = vector.multi_reduction <add>, %125, %cst_39 [0] : vector<32x128xf32> to vector<128xf32>
    %127 = vector.shape_cast %126 : vector<128xf32> to vector<1x128xf32>
    %128 = arith.mulf %122, %0 : vector<32x128xf32>
    %cst_40 = arith.constant dense<0.000000e+00> : vector<128xf32>
    %129 = vector.multi_reduction <add>, %128, %cst_40 [0] : vector<32x128xf32> to vector<128xf32>
    %130 = vector.shape_cast %129 : vector<128xf32> to vector<1x128xf32>
    %131 = vector.broadcast %127 : vector<1x128xf32> to vector<8x128xf32>
    %132 = arith.subf %124, %131 : vector<8x128xf32>
    %133 = vector.broadcast %130 : vector<1x128xf32> to vector<8x128xf32>
    %134 = arith.subf %124, %133 : vector<8x128xf32>
    %135 = arith.mulf %132, %132 : vector<8x128xf32>
    %136 = arith.addf %115, %135 : vector<8x128xf32>
    %137 = arith.mulf %134, %134 : vector<8x128xf32>
    %138 = arith.addf %117, %137 : vector<8x128xf32>
    %139 = vector.extract_strided_slice %123 {offsets = [8, 0], sizes = [24, 128], strides = [1, 1]} : vector<32x128xf32> to vector<24x128xf32>
    %140 = arith.mulf %139, %139 : vector<24x128xf32>
    %141 = arith.addf %120, %140 : vector<24x128xf32>
    %c2 = arith.constant 2 : index
    %c0_41 = arith.constant 0 : index
    %c0_42 = arith.constant 0 : index
    %142 = vector.load %arg7[%c2, %c0_41, %c0_42] : memref<3x32x128xf32, #tpu.memory_space<vmem>>, vector<1x32x128xf32>
    %143 = vector.shape_cast %142 : vector<1x32x128xf32> to vector<32x128xf32>
    %cst_43 = arith.constant dense<0.000000e+00> : vector<32x128xf32>
    %144 = tpu.matmul %88, %143, %cst_43 {dimension_numbers = #tpu.dot_dimension_numbers<[1], [0], [0], [1], [0, 0, 1, 1], [], []>} : vector<32x32xf32>, vector<32x128xf32>, vector<32x128xf32> -> vector<32x128xf32>
    %145 = vector.extract_strided_slice %144 {offsets = [0, 0], sizes = [8, 128], strides = [1, 1]} : vector<32x128xf32> to vector<8x128xf32>
    %146 = arith.mulf %143, %1 : vector<32x128xf32>
    %cst_44 = arith.constant dense<0.000000e+00> : vector<128xf32>
    %147 = vector.multi_reduction <add>, %146, %cst_44 [0] : vector<32x128xf32> to vector<128xf32>
    %148 = vector.shape_cast %147 : vector<128xf32> to vector<1x128xf32>
    %149 = arith.mulf %143, %0 : vector<32x128xf32>
    %cst_45 = arith.constant dense<0.000000e+00> : vector<128xf32>
    %150 = vector.multi_reduction <add>, %149, %cst_45 [0] : vector<32x128xf32> to vector<128xf32>
    %151 = vector.shape_cast %150 : vector<128xf32> to vector<1x128xf32>
    %152 = vector.broadcast %148 : vector<1x128xf32> to vector<8x128xf32>
    %153 = arith.subf %145, %152 : vector<8x128xf32>
    %154 = vector.broadcast %151 : vector<1x128xf32> to vector<8x128xf32>
    %155 = arith.subf %145, %154 : vector<8x128xf32>
    %156 = arith.mulf %153, %153 : vector<8x128xf32>
    %157 = arith.addf %136, %156 : vector<8x128xf32>
    %158 = arith.mulf %155, %155 : vector<8x128xf32>
    %159 = arith.addf %138, %158 : vector<8x128xf32>
    %160 = vector.extract_strided_slice %144 {offsets = [8, 0], sizes = [24, 128], strides = [1, 1]} : vector<32x128xf32> to vector<24x128xf32>
    %161 = arith.mulf %160, %160 : vector<24x128xf32>
    %162 = arith.addf %141, %161 : vector<24x128xf32>
    %163 = arith.subf %96, %157 : vector<8x128xf32>
    %cst_46 = arith.constant 0.000000e+00 : f32
    %164 = vector.broadcast %cst_46 : f32 to vector<8x128xf32>
    %165 = arith.maximumf %163, %164 : vector<8x128xf32>
    %166 = math.sqrt %165 : vector<8x128xf32>
    %cst_47 = arith.constant 0.704225361 : f32
    %167 = vector.broadcast %cst_47 : f32 to vector<8x128xf32>
    %168 = arith.mulf %166, %167 : vector<8x128xf32>
    %cst_48 = arith.constant 1.000000e+00 : f32
    %169 = vector.broadcast %cst_48 : f32 to vector<8x128xf32>
    %170 = arith.addf %169, %168 : vector<8x128xf32>
    %171 = arith.mulf %170, %170 : vector<8x128xf32>
    %172 = tpu.reciprocal %171 {approx = true} : vector<8x128xf32> -> vector<8x128xf32>
    %173 = math.sqrt %159 : vector<8x128xf32>
    %cst_49 = arith.constant 1.000000e+00 : f32
    %174 = vector.broadcast %cst_49 : f32 to vector<8x128xf32>
    %175 = arith.addf %174, %173 : vector<8x128xf32>
    %176 = arith.mulf %175, %175 : vector<8x128xf32>
    %177 = tpu.reciprocal %176 {approx = true} : vector<8x128xf32> -> vector<8x128xf32>
    %178 = arith.mulf %172, %177 : vector<8x128xf32>
    %179 = arith.addf %87, %178 : vector<8x128xf32>
    %cst_50 = arith.constant 0.000000e+00 : f32
    %180 = vector.broadcast %cst_50 : f32 to vector<8x128xf32>
    %181 = arith.maximumf %96, %180 : vector<8x128xf32>
    %182 = math.sqrt %181 : vector<8x128xf32>
    %183 = tpu.iota {dimensions = array<i32: 0>} : vector<8x128xi32>
    %c128_i32 = arith.constant 128 : i32
    %184 = arith.muli %arg0, %c128_i32 : i32
    %185 = tpu.iota {dimensions = array<i32: 1>} : vector<8x128xi32>
    %186 = vector.broadcast %184 : i32 to vector<8x128xi32>
    %187 = arith.addi %186, %185 : vector<8x128xi32>
    %c4_i32 = arith.constant 4 : i32
    %188 = vector.broadcast %c4_i32 : i32 to vector<8x128xi32>
    %189 = arith.cmpi slt, %183, %188 : vector<8x128xi32>
    %c8_i32 = arith.constant 8 : i32
    %190 = vector.broadcast %c8_i32 : i32 to vector<8x128xi32>
    %191 = arith.cmpi slt, %187, %190 : vector<8x128xi32>
    %192 = arith.andi %189, %191 : vector<8x128xi1>
    %193 = arith.extui %192 : vector<8x128xi1> to vector<8x128xi32>
    %194 = arith.sitofp %193 : vector<8x128xi32> to vector<8x128xf32>
    %cst_51 = arith.constant 1.000000e+00 : f32
    %195 = vector.broadcast %cst_51 : f32 to vector<8x128xf32>
    %196 = arith.subf %195, %179 : vector<8x128xf32>
    %cst_52 = arith.constant 1.000000e+00 : f32
    %197 = vector.broadcast %cst_52 : f32 to vector<8x128xf32>
    %198 = arith.mulf %197, %196 : vector<8x128xf32>
    %199 = arith.subf %198, %182 : vector<8x128xf32>
    %200 = arith.mulf %199, %199 : vector<8x128xf32>
    %201 = arith.mulf %200, %194 : vector<8x128xf32>
    %cst_53 = arith.constant dense<0.000000e+00> : vector<8xf32>
    %202 = vector.multi_reduction <add>, %201, %cst_53 [1] : vector<8x128xf32> to vector<8xf32>
    %203 = vector.shape_cast %202 : vector<8xf32> to vector<8x1xf32>
    %cst_54 = arith.constant dense<0.000000e+00> : vector<1xf32>
    %204 = vector.multi_reduction <add>, %203, %cst_54 [0] : vector<8x1xf32> to vector<1xf32>
    %205 = vector.shape_cast %204 : vector<1xf32> to vector<1x1xf32>
    %206 = tpu.iota {dimensions = array<i32: 1>} : vector<1x8x128xi32>
    %207 = tpu.iota {dimensions = array<i32: 2>} : vector<1x8x128xi32>
    %c0_i32 = arith.constant 0 : i32
    %208 = vector.broadcast %c0_i32 : i32 to vector<1x8x128xi32>
    %209 = arith.cmpi eq, %206, %208 : vector<1x8x128xi32>
    %c0_i32_55 = arith.constant 0 : i32
    %210 = vector.broadcast %c0_i32_55 : i32 to vector<1x8x128xi32>
    %211 = arith.cmpi eq, %207, %210 : vector<1x8x128xi32>
    %212 = arith.andi %209, %211 : vector<1x8x128xi1>
    %cst_56 = arith.constant 0.000000e+00 : f32
    %213 = vector.shape_cast %205 : vector<1x1xf32> to vector<1x1x1xf32>
    %214 = vector.broadcast %213 : vector<1x1x1xf32> to vector<1x8x128xf32>
    %215 = vector.broadcast %cst_56 : f32 to vector<1x8x128xf32>
    %216 = arith.select %212, %214, %215 : vector<1x8x128xi1>, vector<1x8x128xf32>
    %c0_57 = arith.constant 0 : index
    %c0_58 = arith.constant 0 : index
    %c0_59 = arith.constant 0 : index
    %217 = vector.load %arg8[%c0_57, %c0_58, %c0_59] : memref<1x8x128xf32, #tpu.memory_space<vmem>>, vector<1x8x128xf32>
    tpu.vector_store %arg8[%c0_57, %c0_58, %c0_59], %216 {strides = array<i32>} : memref<1x8x128xf32, #tpu.memory_space<vmem>>, vector<1x8x128xf32>,
    %218 = math.sqrt %162 : vector<24x128xf32>
    %cst_60 = arith.constant 0.000000e+00 : f32
    %219 = vector.broadcast %cst_60 : f32 to vector<1x1xf32>
    %220 = vector.extract_strided_slice %218 {offsets = [0, 0], sizes = [8, 128], strides = [1, 1]} : vector<24x128xf32> to vector<8x128xf32>
    %221 = arith.subf %179, %220 : vector<8x128xf32>
    %222 = arith.mulf %221, %221 : vector<8x128xf32>
    %223 = arith.mulf %222, %194 : vector<8x128xf32>
    %cst_61 = arith.constant dense<0.000000e+00> : vector<8xf32>
    %224 = vector.multi_reduction <add>, %223, %cst_61 [1] : vector<8x128xf32> to vector<8xf32>
    %225 = vector.shape_cast %224 : vector<8xf32> to vector<8x1xf32>
    %cst_62 = arith.constant dense<0.000000e+00> : vector<1xf32>
    %226 = vector.multi_reduction <add>, %225, %cst_62 [0] : vector<8x1xf32> to vector<1xf32>
    %227 = vector.shape_cast %226 : vector<1xf32> to vector<1x1xf32>
    %228 = arith.addf %219, %227 : vector<1x1xf32>
    %229 = vector.extract_strided_slice %218 {offsets = [8, 0], sizes = [8, 128], strides = [1, 1]} : vector<24x128xf32> to vector<8x128xf32>
    %230 = arith.subf %179, %229 : vector<8x128xf32>
    %231 = arith.mulf %230, %230 : vector<8x128xf32>
    %232 = arith.mulf %231, %194 : vector<8x128xf32>
    %cst_63 = arith.constant dense<0.000000e+00> : vector<8xf32>
    %233 = vector.multi_reduction <add>, %232, %cst_63 [1] : vector<8x128xf32> to vector<8xf32>
    %234 = vector.shape_cast %233 : vector<8xf32> to vector<8x1xf32>
    %cst_64 = arith.constant dense<0.000000e+00> : vector<1xf32>
    %235 = vector.multi_reduction <add>, %234, %cst_64 [0] : vector<8x1xf32> to vector<1xf32>
    %236 = vector.shape_cast %235 : vector<1xf32> to vector<1x1xf32>
    %237 = arith.addf %228, %236 : vector<1x1xf32>
    %238 = vector.extract_strided_slice %218 {offsets = [16, 0], sizes = [8, 128], strides = [1, 1]} : vector<24x128xf32> to vector<8x128xf32>
    %239 = arith.subf %179, %238 : vector<8x128xf32>
    %240 = arith.mulf %239, %239 : vector<8x128xf32>
    %241 = arith.mulf %240, %194 : vector<8x128xf32>
    %cst_65 = arith.constant dense<0.000000e+00> : vector<8xf32>
    %242 = vector.multi_reduction <add>, %241, %cst_65 [1] : vector<8x128xf32> to vector<8xf32>
    %243 = vector.shape_cast %242 : vector<8xf32> to vector<8x1xf32>
    %cst_66 = arith.constant dense<0.000000e+00> : vector<1xf32>
    %244 = vector.multi_reduction <add>, %243, %cst_66 [0] : vector<8x1xf32> to vector<1xf32>
    %245 = vector.shape_cast %244 : vector<1xf32> to vector<1x1xf32>
    %246 = arith.addf %237, %245 : vector<1x1xf32>
    %247 = tpu.iota {dimensions = array<i32: 1>} : vector<1x8x128xi32>
    %248 = tpu.iota {dimensions = array<i32: 2>} : vector<1x8x128xi32>
    %c0_i32_67 = arith.constant 0 : i32
    %249 = vector.broadcast %c0_i32_67 : i32 to vector<1x8x128xi32>
    %250 = arith.cmpi eq, %247, %249 : vector<1x8x128xi32>
    %c0_i32_68 = arith.constant 0 : i32
    %251 = vector.broadcast %c0_i32_68 : i32 to vector<1x8x128xi32>
    %252 = arith.cmpi eq, %248, %251 : vector<1x8x128xi32>
    %253 = arith.andi %250, %252 : vector<1x8x128xi1>
    %cst_69 = arith.constant 0.000000e+00 : f32
    %254 = vector.shape_cast %246 : vector<1x1xf32> to vector<1x1x1xf32>
    %255 = vector.broadcast %254 : vector<1x1x1xf32> to vector<1x8x128xf32>
    %256 = vector.broadcast %cst_69 : f32 to vector<1x8x128xf32>
    %257 = arith.select %253, %255, %256 : vector<1x8x128xi1>, vector<1x8x128xf32>
    %c0_70 = arith.constant 0 : index
    %c0_71 = arith.constant 0 : index
    %c0_72 = arith.constant 0 : index
    %258 = vector.load %arg9[%c0_70, %c0_71, %c0_72] : memref<1x8x128xf32, #tpu.memory_space<vmem>>, vector<1x8x128xf32>
    tpu.vector_store %arg9[%c0_70, %c0_71, %c0_72], %257 {strides = array<i32>} : memref<1x8x128xf32, #tpu.memory_space<vmem>>, vector<1x8x128xf32>,
    return
  }
  func.func @transform_0(%arg0: i32) -> (i32, i32) {
    %c0_i32 = arith.constant 0 : i32
    %c0_i32_0 = arith.constant 0 : i32
    %c0_i32_1 = arith.constant 0 : i32
    return %c0_i32, %c0_i32_0 : i32, i32
  }
  func.func @transform_1(%arg0: i32) -> (i32, i32) {
    %c0_i32 = arith.constant 0 : i32
    %c0_i32_0 = arith.constant 0 : i32
    %c0_i32_1 = arith.constant 0 : i32
    return %c0_i32, %c0_i32_0 : i32, i32
  }
  func.func @transform_2(%arg0: i32) -> (i32, i32) {
    %c0_i32 = arith.constant 0 : i32
    %c0_i32_0 = arith.constant 0 : i32
    return %c0_i32, %arg0 : i32, i32
  }
  func.func @transform_3(%arg0: i32) -> (i32, i32) {
    %c0_i32 = arith.constant 0 : i32
    %c0_i32_0 = arith.constant 0 : i32
    return %c0_i32, %arg0 : i32, i32
  }
  func.func @transform_4(%arg0: i32) -> (i32, i32) {
    %c0_i32 = arith.constant 0 : i32
    %c0_i32_0 = arith.constant 0 : i32
    return %c0_i32, %arg0 : i32, i32
  }
  func.func @transform_5(%arg0: i32) -> (i32, i32) {
    %c0_i32 = arith.constant 0 : i32
    %c0_i32_0 = arith.constant 0 : i32
    return %c0_i32, %arg0 : i32, i32
  }
  func.func @transform_6(%arg0: i32) -> (i32, i32, i32) {
    %c0_i32 = arith.constant 0 : i32
    %c0_i32_0 = arith.constant 0 : i32
    %c0_i32_1 = arith.constant 0 : i32
    return %c0_i32, %c0_i32_0, %arg0 : i32, i32, i32
  }
  func.func @transform_7(%arg0: i32) -> (i32, i32, i32) {
    %c0_i32 = arith.constant 0 : i32
    %c0_i32_0 = arith.constant 0 : i32
    %c0_i32_1 = arith.constant 0 : i32
    return %arg0, %c0_i32, %c0_i32_0 : i32, i32, i32
  }
  func.func @transform_8(%arg0: i32) -> (i32, i32, i32) {
    %c0_i32 = arith.constant 0 : i32
    %c0_i32_0 = arith.constant 0 : i32
    %c0_i32_1 = arith.constant 0 : i32
    return %arg0, %c0_i32, %c0_i32_0 : i32, i32, i32
  }
}

</mosaic_0001>

<bundles_post_ra>
// kernel: custom-call.195
= control target key start
LH: loop header
LB: loop body
LE: loop exit
PB: predicated region body
PF: predicated region fallthrough
CT: control target
= control target key end

     0   :  { %s885_s9 = smov 0   ;;  %s887_s10 = smov 0   ;;  %s1142_s0 = inlined_call_operand.vmem [shape: f32[8,32,5], index: 0, kind: input, shape index: {}]   ;;  %s1143_s1 = inlined_call_operand.vmem [shape: f32[8,32,5], index: 1, kind: output, shape index: {0}]   ;;  %s1144_s2 = inlined_call_operand.vmem [shape: f32[8,5], index: 2, kind: output, shape index: {1}]  }
   0x1   :  { %s889_s11 = smov 0   ;;  %s891_s12 = smov 0  }
   0x2   :  { %s893_s13 = smov 0  }
   0x3 LB: > { %s28_s14 = sadd.s32 1, %s858_s12  ;;  %s709_s15 = sadd.s32 4294967295, %s862_s13   ;;  %s862_s13 = sphi %s893_s13, %s9_s13   ;;  %s858_s12 = sphi %s891_s12, %s1159_s12   ;;  %s854_s11 = sphi %s889_s11, %s1158_s11   ;;  %s850_s10 = sphi %s887_s10, %s1157_s10   ;;  %s846_s9 = sphi %s885_s9, %s1156_s9  }
   0x4   : > { %p30_p0 = scmp.ge.s32.totalorder %s28_s14, 8  ;;  %s33_s16 = ssub.s32 0, %s858_s12 }
   0x5   : > { %s711_s17 = smin.u32 %s858_s12, %s33_s16  ;;  %p57_p1 = scmp.ne.s32.totalorder %s850_s10, %s846_s9 }
   0x6   : > { %s1161_s14 = smov (%p30_p0, %s28_s14), 0  ;;  %s35_s18 = sshrl.u32 %s711_s17, 3 }
   0x7   : > { %s39_s19 = ssub.s32 0, %s1161_s14  ;;  %p58_p2 = scmp.eq.s32.totalorder %s709_s15, 7 }
   0x8   : > { %s712_s20 = smin.u32 %s39_s19, %s1161_s14  ;;  %s47_s24 = sadd.s32 1, %s850_s10 }
   0x9   : > { %s41_s21 = sshrl.u32 %s712_s20, 3  ;;  %p922_p3 = por %p58_p2, %p57_p1 }
   0xa   : > { %s44_s23 = ssub.s32 %s35_s18, %s41_s21  ;;  %p714_p5 = scmp.ge.s32.totalorder %s862_s13, 8 }
   0xb   : > { %p45_p4 = scmp.eq.s32.totalorder %s44_s23, 0  ;;  %s82_s26 = sand.u32 (!%p714_p5), 1, %s862_s13  }
   0xc   : > { %80 = sbr.rel (%p714_p5) target bundleno = 19 (0x13), region = 16  ;;  %s758_s27 = sshll.u32 (!%p714_p5), %s858_s12, 5 }
   0xd   : > { %s928_s25 = scalar_select %p45_p4, %s850_s10, %s47_s24  }
   0xe   : > { %s715_s28 = sshll.u32 (!%p714_p5), %s82_s26, 5  ;;  %s90_s3 = scalar_lea.vmem (!%p714_p5), %s1142_s0, %s758_s27 }
   0xf   : > { %v124_v0 = vld [vmem:[%s90_s3] sm:$0xff] (!%p714_p5)  ;;  %v126_v1 = vld [vmem:[%s90_s3 + $0x8] sm:$0xff] (!%p714_p5)  ;;  %v128_v2 = vld [vmem:[%s90_s3 + $0x10] sm:$0xff] (!%p714_p5)  ;;  %s84_s4 = scalar_lea.vmem (!%p714_p5), [#allocation0], %s715_s28 }
  0x10   : > { %125 = vst [vmem:[%s84_s4] sm:$0xff] (!%p714_p5), %v124_v0  ;;  %127 = vst [vmem:[%s84_s4 + $0x8] sm:$0xff] (!%p714_p5), %v126_v1  ;;  %v130_v3 = vld [vmem:[%s90_s3 + $0x18] sm:$0xff] (!%p714_p5) }
  0x11   : > { %129 = vst [vmem:[%s84_s4 + $0x10] sm:$0xff] (!%p714_p5), %v128_v2  ;;  %131 = vst [vmem:[%s84_s4 + $0x18] sm:$0xff] (!%p714_p5), %v130_v3 }
  0x13 PF: > { %p718_p6 = scmp.ge.s32.totalorder %s862_s13, 1  ;;  %p136_p7 = scmp.lt.s32.totalorder %s862_s13, 9 }
  0x15   : > { %p137_p8 = pnand %p718_p6, %p136_p7 }
  0x17   : > { %140 = sbr.rel (%p137_p8) target bundleno = 349 (0x15d), region = 54 }
  0x1e   : > { %s143_s5 = sand.u32 1, %s709_s15   ;;  %s157_s6 = sand.u32 1, %s846_s9   ;;  %v868_v8 = vmov 0.0  }
  0x1f   : > { %s719_s7 = sshll.u32 %s143_s5, 5  ;;  %s941_s8 = sshll.u32 %s157_s6, 3 }
  0x20   : > { %s168_s16 = sand.u32 7, %s854_s11   ;;  %s145_s17 = scalar_lea.vmem [#allocation0], %s719_s7 }
  0x21   : > { %v170_v4 = vld [vmem:[%s145_s17] sm:$0xff]  ;;  %v722_v5 = vld [vmem:[%s145_s17 + $0x8] sm:$0xff]  ;;  %v724_v6 = vld [vmem:[%s145_s17 + $0x10] sm:$0xff]  ;;  %s159_s18 = scalar_lea.vmem [#allocation2], %s941_s8  ;;  %s949_s20 = scalar_lea.vmem [#allocation1], %s719_s7 }
  0x22   : > { %s947_s19 = scalar_lea.vmem %s159_s18, %s168_s16 [#allocation2]  ;;  %171 = vst [vmem:[%s949_s20] sm:$0xff] %v170_v4  ;;  %723 = vst [vmem:[%s949_s20 + $0x8] sm:$0xff] %v722_v5  ;;  %v726_v7 = vld [vmem:[%s145_s17 + $0x18] sm:$0xff]  ;;  %s956_s9 = smov 0  }
  0x23   : > { %725 = vst [vmem:[%s949_s20 + $0x10] sm:$0xff] %v724_v6  ;;  %727 = vst [vmem:[%s949_s20 + $0x18] sm:$0xff] %v726_v7 }
  0x24   : > { %184 = vst [vmem:[%s947_s19] sm:$0x1] %v868_v8 }
  0x25 LB: >> { %v192_v9 = vlaneseq  ;;  %v966_v12 = vstv %s866_s9  ;;  %s249_s15 = scalar_lea.vmem %s949_s20, %s866_s9 [#allocation1]  ;;  %s361_s21 = scalar_lea.vmem [#allocation3], %s866_s9  ;;  %s866_s9 = sphi %s956_s9, %s190_s9  }
  0x26   : >> { %s378_s23 = smov [#allocation3] }
  0x27   : >> { %v963_v11 = vshrl.u32 %v192_v9, 7 }
  0x29   : >> { %v191_v10 = vld [vmem:[%s949_s20] sm:$0xff]  ;;  %vm196_vm0 = vcmp.gt.s32.totalorder %v963_v11, %v966_v12  ;;  %v728_v13 = vld [vmem:[%s949_s20 + $0x8] sm:$0xff]  ;;  %v203_v14 = vadd.s32 8, %v963_v11  ;;  %v213_v16 = vadd.s32 16, %v963_v11  ;;  %v223_v18 = vadd.s32 24, %v963_v11 }
  0x2a   : >> { %v729_v15 = vld [vmem:[%s949_s20 + $0x10] sm:$0xff]  ;;  %v730_v17 = vld [vmem:[%s949_s20 + $0x18] sm:$0xff]  ;;  %v197_v19 = vsel %vm196_vm0, %v191_v10, 0.0  ;;  %v984_v36 = vld [vmem:[%s249_s15] ss:$0 sm:$0xff]  ;;  %v288_v11 = vmov %v963_v11  ;;  %s285_s20 = smov %s949_s20  ;;  %v1009_v10 = vand.u32 127, %v192_v9 }
  0x2b   : >> { %v198_v20 = vmul.f32 %v197_v19, %v197_v19  ;;  %vm205_vm1 = vcmp.gt.s32.totalorder %v203_v14, %v966_v12  ;;  %vm215_vm2 = vcmp.gt.s32.totalorder %v213_v16, %v966_v12  ;;  %vm225_vm3 = vcmp.gt.s32.totalorder %v223_v18, %v966_v12  ;;  %v733_v5 = vld [vmem:[%s285_s20 + $0x10] sm:$0xff]  ;;  %v289_v6 = vld [vmem:[%s285_s20] sm:$0xff]  ;;  %v734_v7 = vld [vmem:[%s285_s20 + $0x18] sm:$0xff] }
  0x2c   : >> { %v206_v21 = vsel %vm205_vm1, %v728_v13, 0.0  ;;  %v216_v22 = vsel %vm215_vm2, %v729_v15, 0.0  ;;  %v228_v23 = vsel %vm225_vm3, %v730_v17, 0.0  ;;  %v251_v37 = vand.u32 2147483647, %v984_v36  ;;  %v732_v8 = vld [vmem:[%s285_s20 + $0x8] sm:$0xff]  ;;  %s1041_s20 = smov %s949_s20 }
  0x2d   : >> { %v207_v24 = vmul.f32 %v206_v21, %v206_v21  ;;  %v217_v25 = vmul.f32 %v216_v22, %v216_v22  ;;  %v229_v27 = vmul.f32 %v228_v23, %v228_v23  ;;  %vm276_vm9 = vcmp.lt.f32.partialorder %v984_v36, 0.0 }
  0x2e   : >> { %v252_v42 = vmax.f32 %v251_v37, 0.0  ;;  %v343_v2 = vadd.s32 24, %v288_v11  ;;  %v325_v3 = vadd.s32 16, %v288_v11  ;;  %v307_v4 = vadd.s32 8, %v288_v11 }
  0x2f   : >> { %v208_v26 = vadd.f32 %v207_v24, %v198_v20  ;;  %vm292_vm12 = vcmp.gt.s32.totalorder %v288_v11, %v966_v12  ;;  %vm1014_vm0 = vcmp.eq.s32.totalorder %v1009_v10, %v966_v12  ;;  %v381_v11 = vmov %v963_v11 }
  0x30   : >> { %vm345_vm10 = vcmp.gt.s32.totalorder %v343_v2, %v966_v12  ;;  %vm346_vm11 = vcmp.lt.s32.totalorder %v343_v2, 32  ;;  %vm327_vm13 = vcmp.gt.s32.totalorder %v325_v3, %v966_v12  ;;  %vm309_vm15 = vcmp.gt.s32.totalorder %v307_v4, %v966_v12 }
  0x31   : >> { %v218_v28 = vadd.f32 %v217_v25, %v208_v26  ;;  %vm347_vm14 = vmand %vm345_vm10, %vm346_vm11  ;;  %v293_v13 = vsel %vm292_vm12, %v289_v6, 0.0  ;;  %v328_v14 = vsel %vm327_vm13, %v733_v5, 0.0  ;;  %v310_v16 = vsel %vm309_vm15, %v732_v8, 0.0 }
  0x32   : >> { %v348_v15 = vsel %vm347_vm14, %v734_v7, 0.0 }
  0x33   : >> { %v230_v29 = vadd.f32 %v229_v27, %v218_v28 }
  0x35   : >> { %v231_v30 = vrot.slane %v230_v29, 4 }
  0x37   : >> { %v232_v31 = vadd.f32 %v231_v30, %v230_v29 }
  0x39   : >> { %v233_v32 = vrot.slane %v232_v31, 2 }
  0x3b   : >> { %v234_v33 = vadd.f32 %v233_v32, %v232_v31 }
  0x3d   : >> { %v235_v34 = vrot.slane %v234_v33, 1 }
  0x3f   : >> { %v979_v35 = vadd.f32 %v235_v34, %v234_v33 }
  0x41   : >> { %810 = vrsqrt.f32 %v979_v35  ;;  %vm239_vm4 = vcmp.eq.f32.partialorder %v979_v35, inf  ;;  %v242_v39 = vand.u32 2147483648, %v979_v35  ;;  %vm241_vm5 = vcmp.eq.f32.partialorder %v979_v35, 0.0 }
  0x4b   : >> { %v811_v38 = vpop.eup %810 }
  0x4c   : >> { %v238_v40 = vmul.f32 %v811_v38, %v979_v35 }
  0x4e   : >> { %v240_v41 = vsel %vm239_vm4, %v979_v35, %v238_v40  ;;  %v869_v35 = vmov 1.0   ;;  %v374_v40 = vld [vmem:[%s947_s19] ss:$0 sm:$0xff] }
  0x4f   : >> { %v243_v43 = vsel %vm241_vm5, %v242_v39, %v240_v41 }
  0x50   : >> { %v253_v44 = vand.u32 2147483647, %v243_v43  ;;  %v384_v43 = vld [vmem:[%s1041_s20] sm:$0xff] }
  0x52   : >> { %v254_v45 = vmax.f32 %v252_v42, %v253_v44 }
  0x54   : >> { %812 = vrcp.f32 %v254_v45  ;;  %vm266_vm8 = vcmp.eq.f32.partialorder %v254_v45, 0.0 }
  0x5e   : >> { %v813_v46 = vpop.eup %812 }
  0x5f   : >> { %v256_v47 = vmul.f32 %v813_v46, %v251_v37  ;;  %v259_v48 = vmul.f32 0.0, %v813_v46  ;;  %v263_v49 = vmul.f32 %v813_v46, %v253_v44  ;;  %v736_v44 = vld [vmem:[%s1041_s20 + $0x8] sm:$0xff]  ;;  %v400_v46 = vadd.s32 24, %v381_v11 }
  0x60   : >> { %v419_v11 = vmov %v963_v11 }
  0x61   : >> { %v257_v50 = vmul.f32 %v256_v47, %v256_v47  ;;  %v260_v51 = vmul.f32 %v259_v48, %v259_v48  ;;  %v264_v52 = vmul.f32 %v263_v49, %v263_v49  ;;  %v740_v47 = vld [vmem:[%s1041_s20 + $0x18] sm:$0xff]  ;;  %vm406_vm1 = vcmp.lt.s32.totalorder %v400_v46, 32 }
  0x62   : >> { %v461_v3 = vadd.s32 16, %v419_v11  ;;  %vm436_vm2 = vcmp.ge.s32.totalorder %v419_v11, %v966_v12  ;;  %v482_v4 = vadd.s32 24, %v419_v11 }
  0x63   : >> { %v261_v53 = vadd.f32 %v260_v51, %v257_v50  ;;  %vm1062_vm4 = vmand %vm1014_vm0, %vm436_vm2 }
  0x65   : >> { %v265_v54 = vadd.f32 %v264_v52, %v261_v53 }
  0x67   : >> { %814 = vrsqrt.f32 %v265_v54  ;;  %vm269_vm6 = vcmp.eq.f32.partialorder %v265_v54, inf  ;;  %v272_v56 = vand.u32 2147483648, %v265_v54  ;;  %vm271_vm7 = vcmp.eq.f32.partialorder %v265_v54, 0.0 }
  0x71   : >> { %v815_v55 = vpop.eup %814 }
  0x72   : >> { %v268_v57 = vmul.f32 %v815_v55, %v265_v54 }
  0x74   : >> { %v270_v58 = vsel %vm269_vm6, %v265_v54, %v268_v57  ;;  %vm499_vm6 = vcmp.ge.s32.totalorder %v482_v4, %v966_v12 }
  0x75   : >> { %v273_v59 = vsel %vm271_vm7, %v272_v56, %v270_v58  ;;  %vm1085_vm10 = vmand %vm1014_vm0, %vm499_vm6 }
  0x76   : >> { %v274_v60 = vmul.f32 %v273_v59, %v254_v45  ;;  %v738_v45 = vld [vmem:[%s1041_s20 + $0x10] sm:$0xff]  ;;  %s1053_s20 = smov %s1041_s20 }
  0x77   : >> { %v426_v6 = vld [vmem:[%s1053_s20] sm:$0xff]  ;;  %v742_v7 = vld [vmem:[%s1053_s20 + $0x8] sm:$0xff]  ;;  %v745_v8 = vld [vmem:[%s1053_s20 + $0x10] sm:$0xff]  ;;  %s503_s24 = scalar_lea.vmem %s1053_s20, %s866_s9  ;;  %s190_s9 = sadd.s32 1, %s866_s9  }
  0x78   : >> { %v275_v61 = vsel %vm266_vm8, 0.0, %v274_v60  ;;  %vm428_vm8 = vcmp.gt.s32.totalorder %v1009_v10, %v966_v12  ;;  %p187_p9 = scmp.ge.s32.totalorder %s190_s9, 5  }
  0x79   : >> { %v277_v62 = vxor.u32 2147483648, %v275_v61  ;;  %s759_s26 = sshll.u32 (%p187_p9), %s854_s11, 5 }
  0x7a   : > { %s524_s29 = scalar_lea.vmem (%p187_p9), %s1143_s1, %s759_s26 }
  0x7b   : >> { %v278_v63 = vsel %vm276_vm9, %v275_v61, %v277_v62 }
  0x7c   : >> { %v998_v0 = vsel %vm241_vm5, %v984_v36, %v278_v63  ;;  %816 = vrcp.f32 %v278_v63  ;;  %v279_v17 = vsub.f32 %v278_v63, %v984_v36 }
  0x7d   : >> { %v284_v1 = vsub.f32 %v984_v36, %v998_v0 }
  0x7f   : >> { %818 = vrcp.f32 %v284_v1  ;;  %v440_v1 = vadd.s32 8, %v419_v11 }
  0x81   : >> { %vm457_vm3 = vcmp.ge.s32.totalorder %v440_v1, %v966_v12 }
  0x82   : >> { %vm1071_vm7 = vmand %vm1014_vm0, %vm457_vm3 }
  0x86   : >> { %v817_v18 = vpop.eup %816 }
  0x87   : >> { %v281_v9 = vmul.f32 %v817_v18, %v279_v17 }
  0x89   : >> { %v819_v19 = vpop.eup %818  ;;  %v283_v33 = vsel %vm241_vm5, 0.0, %v281_v9 }
  0x8a   : >> { %v330_v21 = vmul.f32 %v819_v19, %v328_v14  ;;  %v295_v22 = vmul.f32 %v819_v19, %v293_v13  ;;  %v350_v23 = vmul.f32 %v819_v19, %v348_v15  ;;  %v312_v24 = vmul.f32 %v819_v19, %v310_v16  ;;  %v748_v15 = vld [vmem:[%s1053_s20 + $0x18] sm:$0xff] }
  0x8b   : >> { %v367_v34 = vsel %vm1014_vm0, %v283_v33, 0.0 }
  0x8c   : >> { %v331_v25 = vsel %vm241_vm5, 0.0, %v330_v21  ;;  %v296_v26 = vsel %vm241_vm5, 0.0, %v295_v22  ;;  %v351_v27 = vsel %vm241_vm5, 0.0, %v350_v23  ;;  %v313_v28 = vsel %vm241_vm5, 0.0, %v312_v24 }
  0x8d   : >> { %v336_v29 = vsel %vm1014_vm0, %v331_v25, 0.0  ;;  %v301_v30 = vsel %vm1014_vm0, %v296_v26, 0.0  ;;  %v356_v31 = vsel %vm1014_vm0, %v351_v27, 0.0  ;;  %v318_v32 = vsel %vm1014_vm0, %v313_v28, 0.0 }
  0x8e   : >> { %337 = vadd.xlane.f32.xlu1 %v336_v29  ;;  %302 = vadd.xlane.f32.xlu0 %v301_v30  ;;  %vm478_vm5 = vcmp.ge.s32.totalorder %v461_v3, %v966_v12 }
  0x8f   : >> { %vm1079_vm9 = vmand %vm1014_vm0, %vm478_vm5 }
  0x92   : >> { %357 = vadd.xlane.f32.xlu1 %v356_v31  ;;  %319 = vadd.xlane.f32.xlu0 %v318_v32 }
  0x96   : >> { %368 = vadd.xlane.f32.xlu0 %v367_v34 }
 0x11b   : >> { %v338_v36 = vpop.xlane.xlu1 %337  ;;  %v303_v37 = vpop.xlane.xlu0 %302 }
 0x11c   : >> { %340 = vst [vmem:[#allocation3 + $0x10] sm:$0xff] %v338_v36  ;;  %304 = vst [vmem:[#allocation3] sm:$0xff] %v303_v37 }
 0x11f   : >> { %v358_v38 = vpop.xlane.xlu1 %357  ;;  %v320_v39 = vpop.xlane.xlu0 %319 }
 0x120   : >> { %360 = vst [vmem:[#allocation3 + $0x18] sm:$0xff] %v358_v38  ;;  %322 = vst [vmem:[#allocation3 + $0x8] sm:$0xff] %v320_v39 }
 0x121   : >> { %362 = vst [vmem:[%s361_s21] sm:$0x1] %v869_v35 }
 0x123   : >> { %v369_v41 = vpop.xlane.xlu0 %368 }
 0x124   : >> { %v375_v42 = vsel %vm1014_vm0, %v369_v41, %v374_v40 }
 0x125   : >> { %376 = vst [vmem:[%s947_s19] sm:$0x1] %v375_v42 }
 0x128   : >> { %v383_v48 = vld [vmem:[%s378_s23] sm:$0xff]  ;;  %v735_v49 = vld [vmem:[%s378_s23 + $0x8] sm:$0xff]  ;;  %v737_v50 = vld [vmem:[%s378_s23 + $0x10] sm:$0xff] }
 0x129   : >> { %v385_v51 = vmul.f32 %v384_v43, %v383_v48  ;;  %v391_v52 = vmul.f32 %v736_v44, %v735_v49  ;;  %v739_v53 = vld [vmem:[%s378_s23 + $0x18] sm:$0xff]  ;;  %v398_v56 = vmul.f32 %v738_v45, %v737_v50  ;;  %s416_s23 = smov %s378_s23 }
 0x12a   : >> { %v405_v54 = vmul.f32 %v740_v47, %v739_v53  ;;  %v424_v13 = vld [vmem:[%s416_s23] sm:$0xff]  ;;  %v741_v17 = vld [vmem:[%s416_s23 + $0x8] sm:$0xff]  ;;  %v744_v18 = vld [vmem:[%s416_s23 + $0x10] sm:$0xff] }
 0x12b   : >> { %v392_v55 = vadd.f32 %v391_v52, %v385_v51  ;;  %v747_v11 = vld [vmem:[%s416_s23 + $0x18] sm:$0xff] }
 0x12c   : >> { %v407_v58 = vsel %vm406_vm1, %v405_v54, 0.0 }
 0x12d   : >> { %v399_v57 = vadd.f32 %v398_v56, %v392_v55 }
 0x12f   : >> { %v408_v59 = vadd.f32 %v407_v58, %v399_v57 }
 0x131   : >> { %v409_v60 = vrot.slane %v408_v59, 4 }
 0x133   : >> { %v410_v61 = vadd.f32 %v409_v60, %v408_v59 }
 0x135   : >> { %v411_v62 = vrot.slane %v410_v61, 2 }
 0x137   : >> { %v412_v63 = vadd.f32 %v411_v62, %v410_v61 }
 0x139   : >> { %v413_v2 = vrot.slane %v412_v63, 1 }
 0x13b   : >> { %v414_v5 = vadd.f32 %v413_v2, %v412_v63 }
 0x13d   : >> { %v420_v16 = vmul.f32 %v414_v5, %v369_v41 }
 0x13f   : >> { %v425_v21 = vmul.f32 %v424_v13, %v420_v16  ;;  %v445_v22 = vmul.f32 %v741_v17, %v420_v16  ;;  %v466_v23 = vmul.f32 %v744_v18, %v420_v16  ;;  %v487_v24 = vmul.f32 %v747_v11, %v420_v16 }
 0x141   : >> { %v429_v26 = vsub.f32 %v426_v6, %v425_v21  ;;  %v450_v27 = vsub.f32 %v742_v7, %v445_v22  ;;  %v471_v12 = vsub.f32 %v745_v8, %v466_v23  ;;  %v492_v10 = vsub.f32 %v748_v15, %v487_v24 }
 0x143   : >> { %v430_v28 = vsel %vm428_vm8, %v429_v26, %v426_v6  ;;  %v451_v29 = vsel %vm428_vm8, %v450_v27, %v742_v7  ;;  %v472_v30 = vsel %vm428_vm8, %v471_v12, %v745_v8  ;;  %v493_v31 = vsel %vm428_vm8, %v492_v10, %v748_v15 }
 0x144   : >> { %v438_v32 = vsel %vm1062_vm4, %v424_v13, %v430_v28  ;;  %v459_v33 = vsel %vm1071_vm7, %v741_v17, %v451_v29  ;;  %v480_v34 = vsel %vm1079_vm9, %v744_v18, %v472_v30  ;;  %v501_v36 = vsel %vm1085_vm10, %v747_v11, %v493_v31 }
 0x145   : >> { %439 = vst [vmem:[%s1053_s20] sm:$0xff] %v438_v32  ;;  %743 = vst [vmem:[%s1053_s20 + $0x8] sm:$0xff] %v459_v33 }
 0x146   : >> { %746 = vst [vmem:[%s1053_s20 + $0x10] sm:$0xff] %v480_v34  ;;  %749 = vst [vmem:[%s1053_s20 + $0x18] sm:$0xff] %v501_v36 }
 0x149   : > { %189 = sbr.rel (!%p187_p9) target bundleno = 37 (0x25), region = 206 }
 0x14d   : >> { %v504_v37 = vld [vmem:[%s503_s24] ss:$0 sm:$0xff] }
 0x14e   : >> { %v509_v38 = vsel %vm1014_vm0, %v998_v0, %v504_v37 }
 0x14f   : >> { %510 = vst [vmem:[%s503_s24] sm:$0x1] %v509_v38 }
 0x150   : > { %p572_p10 = scmp.lt.s32.totalorder (%p922_p3), %s854_s11, 0  ;;  %s573_s30 = ssub.s32 (%p922_p3), 0, %s854_s11  ;;  %v607_v20 = vld [vmem:[%s159_s18] sm:$0xff] (%p922_p3) }
 0x151   : > { %s754_s3 = smin.u32 (%p922_p3), %s854_s11, %s573_s30 }
 0x152   : > { %571 = sbr.rel (!%p922_p3) target bundleno = 349 (0x15d), region = 99  ;;  %s575_s4 = sshrl.u32 (%p922_p3), %s754_s3, 3 }
 0x153   : > { %s576_s5 = ssub.s32 (%p922_p3), 0, %s575_s4 }
 0x156   : > { %v558_v39 = vld [vmem:[%s949_s20] sm:$0xff]  ;;  %v560_v35 = vld [vmem:[%s949_s20 + $0x8] sm:$0xff]  ;;  %v562_v40 = vld [vmem:[%s949_s20 + $0x10] sm:$0xff] }
 0x157   : > { %v564_v0 = vld [vmem:[%s949_s20 + $0x18] sm:$0xff]  ;;  %559 = vst [vmem:[%s524_s29] sm:$0xff] %v558_v39  ;;  %561 = vst [vmem:[%s524_s29 + $0x8] sm:$0xff] %v560_v35 }
 0x158   : > { %563 = vst [vmem:[%s524_s29 + $0x10] sm:$0xff] %v562_v40  ;;  %565 = vst [vmem:[%s524_s29 + $0x18] sm:$0xff] %v564_v0 }
 0x159   : > { %s1163_s5 = smov (!%p572_p10, %s576_s5), %s575_s4 }
 0x15a   : > { %s755_s6 = sshll.u32 %s1163_s5, 3 }
 0x15b   : > { %s579_s17 = scalar_lea.vmem %s1144_s2, %s755_s6 }
 0x15c   : > { %608 = vst [vmem:[%s579_s17] sm:$0xff] %v607_v20 }
 0x15d PF: > { %s9_s13 = sadd.s32 1, %s862_s13   ;;  %s1156_s9 = smov %s850_s10 }
 0x15e   : > { %p6_p11 = scmp.ge.s32.totalorder %s9_s13, 10   ;;  %s1157_s10 = smov %s928_s25 }
 0x15f   : > { %s1158_s11 = smov %s858_s12  ;;  %s1159_s12 = smov %s1161_s14 }
 0x160   :  { %8 = sbr.rel (!%p6_p11) target bundleno = 3 (0x3), region = 217 }

// kernel: _lambda_.3
= control target key start
LH: loop header
LB: loop body
LE: loop exit
PB: predicated region body
PF: predicated region fallthrough
CT: control target
= control target key end

     0   :  { %v149_v0 = vmov 0.0|0.0   ;;  %vm150_vm0 = vmmov 0   ;;  %v151_v4 = vmov 0.0   ;;  %vm16_vm1 = vcmask 261120   ;;  %s193_s2 = inlined_call_operand.vmem [shape: f32[32,128], index: 2, kind: input, shape index: {}]   ;;  %s194_s0 = inlined_call_operand.vmem [shape: f32[8,32], index: 0, kind: input, shape index: {}]   ;;  %s195_s1 = inlined_call_operand.vmem [shape: f32[1,128], index: 1, kind: input, shape index: {}]   ;;  %s196_s3 = inlined_call_operand.vmem [shape: f32[8,128], index: 3, kind: output, shape index: {}]  }
   0x1   :  { %138 = vmatprep.subr.bf16.mxu0 %v149_v0  ;;  %v28_v1 = vld [vmem:[%s193_s2] sm:$0xff]  ;;  %v29_v2 = vld [vmem:[%s193_s2 + $0x8] sm:$0xff]  ;;  %v30_v3 = vld [vmem:[%s193_s2 + $0x10] sm:$0xff]  ;;  %135 = vmatprep.mubr.msk.f32.mxu0 %vm150_vm0, %v151_v4 }
   0x2   :  { %v139_v5 = vpack.c.bf16 %v29_v2, %v28_v1  ;;  %v31_v6 = vld [vmem:[%s193_s2 + $0x18] sm:$0xff]  ;;  %v14_v7 = vld [vmem:[%s194_s0] sm:$0xff] }
   0x3   :  { %v15_v8 = vmul.f32 %v14_v7, %v14_v7  ;;  %v142_v9 = vpack.c.bf16 %v31_v6, %v30_v3  ;;  %v120_v12 = vld [vmem:[%s195_s1] ss:$0 sm:$0xff] }
   0x4   :  { %140 = vmatpush3.bf16.msra.mxu0 %v139_v5 }
   0x5   :  { %141 = vmatprep.subr.bf16.mxu0 %v149_v0  ;;  %v17_v10 = vsel %vm16_vm1, %v15_v8, 0.0 }
   0x6   :  { %18 = vadd.xlane.f32.xlu0 %v17_v10 }
   0x8   :  { %143 = vmatpush3.bf16.msra.mxu0 %v142_v9 }
   0xb   :  { %136 = vmatmul.mubr.msk.f32.vlgmr.msra.gmra.mrb[0].mxu0 %vm16_vm1, %v14_v7 }
  0x93   :  { %v19_v11 = vpop.xlane.xlu0 %18 }
  0x94   :  { %v27_v13 = vadd.f32 %v120_v12, %v19_v11 }
  0xde   :  { %v101_v14 = vpop.f32.mrb[0].mxu0 }
  0xdf   :  { %v105_v15 = vmul.f32 2.0, %v101_v14  ;;  %v137_v16 = vpop.f32.mrb[1].mxu0 }
  0xe1   :  { %v106_v17 = vsub.f32 %v27_v13, %v105_v15 }
  0xe3   :  { %v107_v18 = vmax.f32 %v106_v17, 0.0 }
  0xe5   :  { %147 = vrsqrt.f32 %v107_v18  ;;  %vm110_vm2 = vcmp.eq.f32.partialorder %v107_v18, inf  ;;  %v113_v21 = vand.u32 2147483648, %v107_v18  ;;  %vm112_vm3 = vcmp.eq.f32.partialorder %v107_v18, 0.0 }
  0xef   :  { %v148_v19 = vpop.eup %147 }
  0xf0   :  { %v109_v20 = vmul.f32 %v148_v19, %v107_v18 }
  0xf2   :  { %v111_v22 = vsel %vm110_vm2, %v107_v18, %v109_v20 }
  0xf3   :  { %v114_v23 = vsel %vm112_vm3, %v113_v21, %v111_v22 }
  0xf4   :  { %115 = vst [vmem:[%s196_s3] sm:$0xff] %v114_v23 }

// kernel: custom-call.196
= control target key start
LH: loop header
LB: loop body
LE: loop exit
PB: predicated region body
PF: predicated region fallthrough
CT: control target
= control target key end

     0   :  { %s254_s6 = smov 0   ;;  %s282_s0 = inlined_call_operand.vmem [shape: f32[8,5,5], index: 0, kind: input, shape index: {}]   ;;  %s283_s1 = inlined_call_operand.vmem [shape: f32[8,5,5], index: 1, kind: output, shape index: {}]  }
   0x1 LB: > { %s212_s7 = sadd.s32 4294967295, %s242_s6   ;;  %p214_p0 = scmp.ge.s32.totalorder %s242_s6, 8  ;;  %s242_s6 = sphi %s254_s6, %s7_s6  }
   0x2   : > { %s23_s8 = sand.u32 (!%p214_p0), 1, %s242_s6   ;;  %s216_s9 = sshll.u32 (!%p214_p0), %s242_s6, 3 }
   0x3   : > { %21 = sbr.rel (%p214_p0) target bundleno = 10 (0xa), region = 16  ;;  %s215_s10 = sshll.u32 (!%p214_p0), %s23_s8, 3 }
   0x4   : > { %s27_s13 = scalar_lea.vmem (!%p214_p0), %s282_s0, %s216_s9  ;;  %s25_s14 = scalar_lea.vmem (!%p214_p0), [#allocation0], %s215_s10 }
   0x5   : > { %v55_v0 = vld [vmem:[%s27_s13] sm:$0xff] (!%p214_p0) }
   0x6   : > { %56 = vst [vmem:[%s25_s14] sm:$0xff] (!%p214_p0), %v55_v0 }
   0xa PF: > { %p217_p1 = scmp.ge.s32.totalorder %s242_s6, 1  ;;  %p61_p2 = scmp.lt.s32.totalorder %s242_s6, 9 }
   0xc   : > { %p62_p3 = pnand %p217_p1, %p61_p2 }
   0xd   : > { %s68_s15 = sand.u32 (!%p62_p3), 1, %s212_s7   ;;  %v79_v1 = vlaneseq (!%p62_p3)  ;;  %vm93_vm0 = vcmask (!%p62_p3), 39936   ;;  %s225_s18 = sshll.u32 (!%p62_p3), %s212_s7, 3 }
   0xe   : > { %65 = sbr.rel (%p62_p3) target bundleno = 601 (0x259), region = 54  ;;  %s218_s16 = sshll.u32 (!%p62_p3), %s68_s15, 3 }
   0xf   : > { %v80_v2 = vand.u32 (!%p62_p3), 127, %v79_v1  ;;  %v82_v3 = vshrl.u32 (!%p62_p3), %v79_v1, 7  ;;  %s70_s17 = scalar_lea.vmem (!%p62_p3), [#allocation0], %s218_s16  ;;  %s141_s21 = scalar_lea.vmem (!%p62_p3), %s283_s1, %s225_s18 }
  0x10   : > { %v85_v4 = vld [vmem:[%s70_s17] sm:$0xff] (!%p62_p3) }
  0x11   : > { %v220_v5 = vld [vmem:[%s70_s17 + $0x1] ss:$0 sm:$0xff] (!%p62_p3)  ;;  %vm84_vm1 = vcmp.eq.s32.totalorder (!%p62_p3), %v80_v2, %v82_v3  ;;  %vm88_vm2 = vcmp.eq.s32.totalorder (!%p62_p3), %v80_v2, 0  ;;  %v221_v10 = vld [vmem:[%s70_s17 + $0x2] ss:$0 sm:$0xff] (!%p62_p3)  ;;  %vm97_vm3 = vcmp.eq.s32.totalorder (!%p62_p3), %v80_v2, 1 }
  0x12   : > { %v94_v6 = vsel (!%p62_p3), %vm93_vm0, %v220_v5, 0.0  ;;  %v89_v7 = vsel (!%p62_p3), %vm88_vm2, %v85_v4, 1.0  ;;  %v105_v11 = vsel (!%p62_p3), %vm93_vm0, %v221_v10, 0.0  ;;  %v222_v15 = vld [vmem:[%s70_s17 + $0x3] ss:$0 sm:$0xff] (!%p62_p3)  ;;  %vm108_vm4 = vcmp.eq.s32.totalorder (!%p62_p3), %v80_v2, 2 }
  0x13   : > { %v90_v8 = vsel (!%p62_p3), %vm84_vm1, %v89_v7, 0.0  ;;  %v116_v16 = vsel (!%p62_p3), %vm93_vm0, %v222_v15, 0.0  ;;  %v223_v20 = vld [vmem:[%s70_s17 + $0x4] ss:$0 sm:$0xff] (!%p62_p3)  ;;  %vm119_vm5 = vcmp.eq.s32.totalorder (!%p62_p3), %v80_v2, 3  ;;  %vm130_vm6 = vcmp.eq.s32.totalorder (!%p62_p3), %v80_v2, 4 }
  0x14   : > { %v98_v9 = vmul.f32 (!%p62_p3), %v94_v6, %v90_v8  ;;  %v127_v21 = vsel (!%p62_p3), %vm93_vm0, %v223_v20, 0.0 }
  0x16   : > { %99 = vadd.xlane.f32.xlu0 %v98_v9 }
  0xa3   : > { %v100_v12 = vpop.xlane.xlu0 %99 }
  0xa4   : > { %v101_v13 = vsel %vm97_vm3, %v100_v12, %v90_v8 }
  0xa5   : > { %v109_v14 = vmul.f32 %v105_v11, %v101_v13 }
  0xa7   : > { %110 = vadd.xlane.f32.xlu0 %v109_v14 }
 0x134   : > { %v111_v17 = vpop.xlane.xlu0 %110 }
 0x135   : > { %v112_v18 = vsel %vm108_vm4, %v111_v17, %v101_v13 }
 0x136   : > { %v120_v19 = vmul.f32 %v116_v16, %v112_v18 }
 0x138   : > { %121 = vadd.xlane.f32.xlu1 %v120_v19 }
 0x1c5   : > { %v122_v22 = vpop.xlane.xlu1 %121 }
 0x1c6   : > { %v123_v23 = vsel %vm119_vm5, %v122_v22, %v112_v18 }
 0x1c7   : > { %v131_v24 = vmul.f32 %v127_v21, %v123_v23 }
 0x1c9   : > { %132 = vadd.xlane.f32.xlu1 %v131_v24 }
 0x256   : > { %v133_v25 = vpop.xlane.xlu1 %132 }
 0x257   : > { %v134_v26 = vsel %vm130_vm6, %v133_v25, %v123_v23 }
 0x258   : > { %170 = vst [vmem:[%s141_s21] sm:$0xff] %v134_v26 }
 0x259 PF: > { %s7_s6 = sadd.s32 1, %s242_s6  }
 0x25a   : > { %p4_p4 = scmp.ge.s32.totalorder %s7_s6, 10  }
 0x25c   :  { %6 = sbr.rel (!%p4_p4) target bundleno = 1 (0x1), region = 122 }

// kernel: custom-call.242
= control target key start
LH: loop header
LB: loop body
LE: loop exit
PB: predicated region body
PF: predicated region fallthrough
CT: control target
= control target key end

     0   :  { %s731_s9 = smov 0   ;;  %s733_s10 = smov 0   ;;  %s913_s0 = inlined_call_operand.vmem [shape: f32[8,10,5], index: 0, kind: input, shape index: {}]   ;;  %s914_s1 = inlined_call_operand.vmem [shape: f32[8,10,5], index: 1, kind: output, shape index: {0}]   ;;  %s915_s2 = inlined_call_operand.vmem [shape: f32[8,5], index: 2, kind: output, shape index: {1}]  }
   0x1   :  { %s735_s11 = smov 0   ;;  %s737_s12 = smov 0  }
   0x2   :  { %s739_s13 = smov 0  }
   0x3 LB: > { %s28_s14 = sadd.s32 1, %s704_s12  ;;  %s573_s15 = sadd.s32 4294967295, %s708_s13   ;;  %s708_s13 = sphi %s739_s13, %s9_s13   ;;  %s704_s12 = sphi %s737_s12, %s922_s12   ;;  %s700_s11 = sphi %s735_s11, %s921_s11   ;;  %s696_s10 = sphi %s733_s10, %s920_s10   ;;  %s692_s9 = sphi %s731_s9, %s919_s9  }
   0x4   : > { %p30_p0 = scmp.ge.s32.totalorder %s28_s14, 8  ;;  %s33_s16 = ssub.s32 0, %s704_s12 }
   0x5   : > { %s575_s17 = smin.u32 %s704_s12, %s33_s16  ;;  %p57_p1 = scmp.ne.s32.totalorder %s696_s10, %s692_s9 }
   0x6   : > { %s924_s14 = smov (%p30_p0, %s28_s14), 0  ;;  %s35_s18 = sshrl.u32 %s575_s17, 3 }
   0x7   : > { %s39_s19 = ssub.s32 0, %s924_s14  ;;  %p58_p2 = scmp.eq.s32.totalorder %s573_s15, 7 }
   0x8   : > { %s576_s20 = smin.u32 %s39_s19, %s924_s14  ;;  %s47_s24 = sadd.s32 1, %s696_s10 }
   0x9   : > { %s41_s21 = sshrl.u32 %s576_s20, 3  ;;  %p768_p3 = por %p58_p2, %p57_p1 }
   0xa   : > { %s44_s23 = ssub.s32 %s35_s18, %s41_s21  ;;  %p578_p5 = scmp.ge.s32.totalorder %s708_s13, 8 }
   0xb   : > { %p45_p4 = scmp.eq.s32.totalorder %s44_s23, 0  ;;  %s82_s26 = sand.u32 (!%p578_p5), 1, %s708_s13  }
   0xc   : > { %80 = sbr.rel (%p578_p5) target bundleno = 19 (0x13), region = 16  ;;  %s604_s27 = sshll.u32 (!%p578_p5), %s704_s12, 4 }
   0xd   : > { %s774_s25 = scalar_select %p45_p4, %s696_s10, %s47_s24  }
   0xe   : > { %s579_s28 = sshll.u32 (!%p578_p5), %s82_s26, 4  ;;  %s90_s3 = scalar_lea.vmem (!%p578_p5), %s913_s0, %s604_s27 }
   0xf   : > { %v120_v0 = vld [vmem:[%s90_s3] sm:$0xff] (!%p578_p5)  ;;  %v122_v1 = vld [vmem:[%s90_s3 + $0x8] sm:$0xff] (!%p578_p5)  ;;  %s84_s4 = scalar_lea.vmem (!%p578_p5), [#allocation0], %s579_s28 }
  0x10   : > { %121 = vst [vmem:[%s84_s4] sm:$0xff] (!%p578_p5), %v120_v0  ;;  %123 = vst [vmem:[%s84_s4 + $0x8] sm:$0xff] (!%p578_p5), %v122_v1 }
  0x13 PF: > { %p582_p6 = scmp.ge.s32.totalorder %s708_s13, 1  ;;  %p128_p7 = scmp.lt.s32.totalorder %s708_s13, 9 }
  0x15   : > { %p129_p8 = pnand %p582_p6, %p128_p7 }
  0x17   : > { %132 = sbr.rel (%p129_p8) target bundleno = 340 (0x154), region = 54 }
  0x1e   : > { %s135_s5 = sand.u32 1, %s573_s15   ;;  %s149_s6 = sand.u32 1, %s692_s9   ;;  %v714_v4 = vmov 0.0  }
  0x1f   : > { %s583_s7 = sshll.u32 %s135_s5, 4  ;;  %s787_s8 = sshll.u32 %s149_s6, 3 }
  0x20   : > { %s160_s16 = sand.u32 7, %s700_s11   ;;  %s137_s17 = scalar_lea.vmem [#allocation0], %s583_s7 }
  0x21   : > { %v162_v2 = vld [vmem:[%s137_s17] sm:$0xff]  ;;  %v586_v3 = vld [vmem:[%s137_s17 + $0x8] sm:$0xff]  ;;  %s151_s18 = scalar_lea.vmem [#allocation2], %s787_s8  ;;  %s795_s20 = scalar_lea.vmem [#allocation1], %s583_s7 }
  0x22   : > { %s793_s19 = scalar_lea.vmem %s151_s18, %s160_s16 [#allocation2]  ;;  %163 = vst [vmem:[%s795_s20] sm:$0xff] %v162_v2  ;;  %587 = vst [vmem:[%s795_s20 + $0x8] sm:$0xff] %v586_v3  ;;  %s800_s9 = smov 0  }
  0x23   : > { %168 = vst [vmem:[%s793_s19] sm:$0x1] %v714_v4 }
  0x24 LB: >> { %v176_v5 = vlaneseq  ;;  %v810_v8 = vstv %s712_s9  ;;  %s213_s15 = scalar_lea.vmem %s795_s20, %s712_s9 [#allocation1]  ;;  %s289_s21 = scalar_lea.vmem [#allocation3], %s712_s9  ;;  %s712_s9 = sphi %s800_s9, %s174_s9  }
  0x25   : >> { %s306_s23 = smov [#allocation3] }
  0x26   : >> { %v807_v7 = vshrl.u32 %v176_v5, 7  ;;  %v839_v56 = vand.u32 127, %v176_v5 }
  0x28   : >> { %vm180_vm0 = vcmp.gt.s32.totalorder %v807_v7, %v810_v8  ;;  %v187_v9 = vadd.s32 8, %v807_v7  ;;  %v252_v7 = vmov %v807_v7  ;;  %vm843_vm14 = vcmp.eq.s32.totalorder %v839_v56, %v810_v8 }
  0x29   : >> { %v175_v6 = vld [vmem:[%s795_s20] sm:$0xff]  ;;  %v588_v11 = vld [vmem:[%s795_s20 + $0x8] sm:$0xff]  ;;  %v271_v52 = vadd.s32 8, %v252_v7  ;;  %s249_s20 = smov %s795_s20  ;;  %vm256_vm12 = vcmp.gt.s32.totalorder %v252_v7, %v810_v8  ;;  %v309_v7 = vmov %v807_v7 }
  0x2a   : >> { %v181_v10 = vsel %vm180_vm0, %v175_v6, 0.0  ;;  %vm189_vm1 = vcmp.gt.s32.totalorder %v187_v9, %v810_v8  ;;  %vm190_vm2 = vcmp.lt.s32.totalorder %v187_v9, 10  ;;  %v214_v22 = vld [vmem:[%s213_s15] ss:$0 sm:$0xff]  ;;  %v590_v55 = vld [vmem:[%s249_s20 + $0x8] sm:$0xff] }
  0x2b   : >> { %v182_v12 = vmul.f32 %v181_v10, %v181_v10  ;;  %vm191_vm3 = vmand %vm189_vm1, %vm190_vm2  ;;  %v215_v23 = vand.u32 2147483647, %v214_v22  ;;  %vm240_vm9 = vcmp.lt.f32.partialorder %v214_v22, 0.0  ;;  %vm273_vm10 = vcmp.gt.s32.totalorder %v271_v52, %v810_v8  ;;  %v253_v54 = vld [vmem:[%s249_s20] sm:$0xff]  ;;  %s305_s20 = smov %s795_s20 }
  0x2c   : >> { %v192_v13 = vsel %vm191_vm3, %v588_v11, 0.0  ;;  %vm274_vm11 = vcmp.lt.s32.totalorder %v271_v52, 10  ;;  %v257_v58 = vsel %vm256_vm12, %v253_v54, 0.0  ;;  %v302_v9 = vld [vmem:[%s793_s19] ss:$0 sm:$0xff]  ;;  %vm342_vm2 = vcmp.gt.s32.totalorder %v839_v56, %v810_v8 }
  0x2d   : >> { %v193_v14 = vmul.f32 %v192_v13, %v192_v13  ;;  %v216_v28 = vmax.f32 %v215_v23, 0.0  ;;  %vm275_vm13 = vmand %vm273_vm10, %vm274_vm11 }
  0x2e   : >> { %v276_v59 = vsel %vm275_vm13, %v590_v55, 0.0 }
  0x2f   : >> { %v194_v15 = vadd.f32 %v193_v14, %v182_v12  ;;  %v715_v14 = vmov 1.0  }
  0x31   : >> { %v195_v16 = vrot.slane %v194_v15, 4 }
  0x33   : >> { %v196_v17 = vadd.f32 %v195_v16, %v194_v15  ;;  %v314_v15 = vadd.s32 8, %v309_v7  ;;  %v312_v16 = vld [vmem:[%s305_s20] sm:$0xff]  ;;  %v333_v7 = vmov %v807_v7 }
  0x34   : >> { %vm350_vm0 = vcmp.ge.s32.totalorder %v333_v7, %v810_v8 }
  0x35   : >> { %v197_v18 = vrot.slane %v196_v17, 2  ;;  %vm320_vm15 = vcmp.lt.s32.totalorder %v314_v15, 10  ;;  %vm351_vm3 = vmand %vm843_vm14, %vm350_vm0 }
  0x37   : >> { %v198_v19 = vadd.f32 %v197_v18, %v196_v17  ;;  %v592_v17 = vld [vmem:[%s305_s20 + $0x8] sm:$0xff]  ;;  %s329_s20 = smov %s305_s20 }
  0x38   : >> { %s375_s24 = scalar_lea.vmem %s329_s20, %s712_s9  ;;  %s174_s9 = sadd.s32 1, %s712_s9  }
  0x39   : >> { %v199_v20 = vrot.slane %v198_v19, 1  ;;  %p171_p9 = scmp.ge.s32.totalorder %s174_s9, 5  }
  0x3a   : > { %s605_s26 = sshll.u32 (%p171_p9), %s700_s11, 4 }
  0x3b   : >> { %v817_v21 = vadd.f32 %v199_v20, %v198_v19  ;;  %s396_s29 = scalar_lea.vmem (%p171_p9), %s914_s1, %s605_s26 }
  0x3d   : >> { %656 = vrsqrt.f32 %v817_v21  ;;  %vm203_vm4 = vcmp.eq.f32.partialorder %v817_v21, inf  ;;  %v206_v25 = vand.u32 2147483648, %v817_v21  ;;  %vm205_vm5 = vcmp.eq.f32.partialorder %v817_v21, 0.0 }
  0x47   : >> { %v657_v24 = vpop.eup %656 }
  0x48   : >> { %v202_v26 = vmul.f32 %v657_v24, %v817_v21 }
  0x4a   : >> { %v204_v27 = vsel %vm203_vm4, %v817_v21, %v202_v26 }
  0x4b   : >> { %v207_v29 = vsel %vm205_vm5, %v206_v25, %v204_v27 }
  0x4c   : >> { %v217_v30 = vand.u32 2147483647, %v207_v29  ;;  %v354_v29 = vadd.s32 8, %v333_v7 }
  0x4e   : >> { %v218_v31 = vmax.f32 %v216_v28, %v217_v30  ;;  %vm371_vm1 = vcmp.ge.s32.totalorder %v354_v29, %v810_v8 }
  0x4f   : >> { %vm372_vm4 = vmand %vm843_vm14, %vm371_vm1 }
  0x50   : >> { %658 = vrcp.f32 %v218_v31  ;;  %vm230_vm8 = vcmp.eq.f32.partialorder %v218_v31, 0.0 }
  0x5a   : >> { %v659_v32 = vpop.eup %658 }
  0x5b   : >> { %v220_v33 = vmul.f32 %v659_v32, %v215_v23  ;;  %v223_v34 = vmul.f32 0.0, %v659_v32  ;;  %v227_v35 = vmul.f32 %v659_v32, %v217_v30 }
  0x5d   : >> { %v221_v36 = vmul.f32 %v220_v33, %v220_v33  ;;  %v224_v37 = vmul.f32 %v223_v34, %v223_v34  ;;  %v228_v38 = vmul.f32 %v227_v35, %v227_v35  ;;  %v594_v35 = vld [vmem:[%s329_s20 + $0x8] sm:$0xff] }
  0x5f   : >> { %v225_v39 = vadd.f32 %v224_v37, %v221_v36 }
  0x61   : >> { %v229_v40 = vadd.f32 %v228_v38, %v225_v39 }
  0x63   : >> { %660 = vrsqrt.f32 %v229_v40  ;;  %vm233_vm6 = vcmp.eq.f32.partialorder %v229_v40, inf  ;;  %v236_v42 = vand.u32 2147483648, %v229_v40  ;;  %vm235_vm7 = vcmp.eq.f32.partialorder %v229_v40, 0.0 }
  0x6d   : >> { %v661_v41 = vpop.eup %660 }
  0x6e   : >> { %v232_v43 = vmul.f32 %v661_v41, %v229_v40 }
  0x70   : >> { %v234_v44 = vsel %vm233_vm6, %v229_v40, %v232_v43 }
  0x71   : >> { %v237_v45 = vsel %vm235_vm7, %v236_v42, %v234_v44 }
  0x72   : >> { %v238_v46 = vmul.f32 %v237_v45, %v218_v31  ;;  %v340_v31 = vld [vmem:[%s329_s20] sm:$0xff] }
  0x74   : >> { %v239_v47 = vsel %vm230_vm8, 0.0, %v238_v46 }
  0x75   : >> { %v241_v48 = vxor.u32 2147483648, %v239_v47 }
  0x77   : >> { %v242_v49 = vsel %vm240_vm9, %v239_v47, %v241_v48 }
  0x78   : >> { %v832_v50 = vsel %vm205_vm5, %v214_v22, %v242_v49  ;;  %662 = vrcp.f32 %v242_v49  ;;  %v243_v53 = vsub.f32 %v242_v49, %v214_v22 }
  0x79   : >> { %v248_v51 = vsub.f32 %v214_v22, %v832_v50 }
  0x7b   : >> { %664 = vrcp.f32 %v248_v51 }
  0x82   : >> { %v663_v57 = vpop.eup %662 }
  0x83   : >> { %v245_v60 = vmul.f32 %v663_v57, %v243_v53 }
  0x85   : >> { %v665_v61 = vpop.eup %664  ;;  %v247_v63 = vsel %vm205_vm5, 0.0, %v245_v60 }
  0x86   : >> { %v259_v0 = vmul.f32 %v665_v61, %v257_v58  ;;  %v278_v1 = vmul.f32 %v665_v61, %v276_v59  ;;  %v295_v2 = vsel %vm843_vm14, %v247_v63, 0.0 }
  0x87   : >> { %296 = vadd.xlane.f32.xlu1 %v295_v2 }
  0x88   : >> { %v260_v3 = vsel %vm205_vm5, 0.0, %v259_v0  ;;  %v279_v4 = vsel %vm205_vm5, 0.0, %v278_v1 }
  0x89   : >> { %v265_v5 = vsel %vm843_vm14, %v260_v3, 0.0  ;;  %v284_v6 = vsel %vm843_vm14, %v279_v4, 0.0 }
  0x8a   : >> { %266 = vadd.xlane.f32.xlu0 %v265_v5 }
  0x8e   : >> { %285 = vadd.xlane.f32.xlu0 %v284_v6 }
 0x114   : >> { %v297_v10 = vpop.xlane.xlu1 %296 }
 0x115   : >> { %v303_v11 = vsel %vm843_vm14, %v297_v10, %v302_v9 }
 0x116   : >> { %304 = vst [vmem:[%s793_s19] sm:$0x1] %v303_v11 }
 0x117   : >> { %v267_v12 = vpop.xlane.xlu0 %266 }
 0x118   : >> { %268 = vst [vmem:[#allocation3] sm:$0xff] %v267_v12 }
 0x11b   : >> { %v286_v13 = vpop.xlane.xlu0 %285 }
 0x11c   : >> { %288 = vst [vmem:[#allocation3 + $0x8] sm:$0xff] %v286_v13 }
 0x11d   : >> { %290 = vst [vmem:[%s289_s21] sm:$0x1] %v715_v14 }
 0x124   : >> { %v311_v18 = vld [vmem:[%s306_s23] sm:$0xff]  ;;  %v591_v19 = vld [vmem:[%s306_s23 + $0x8] sm:$0xff]  ;;  %s330_s23 = smov %s306_s23 }
 0x125   : >> { %v313_v20 = vmul.f32 %v312_v16, %v311_v18  ;;  %v319_v21 = vmul.f32 %v592_v17, %v591_v19  ;;  %v338_v33 = vld [vmem:[%s330_s23] sm:$0xff]  ;;  %v593_v34 = vld [vmem:[%s330_s23 + $0x8] sm:$0xff] }
 0x127   : >> { %v321_v22 = vsel %vm320_vm15, %v319_v21, 0.0 }
 0x128   : >> { %v322_v23 = vadd.f32 %v321_v22, %v313_v20 }
 0x12a   : >> { %v323_v24 = vrot.slane %v322_v23, 4 }
 0x12c   : >> { %v324_v25 = vadd.f32 %v323_v24, %v322_v23 }
 0x12e   : >> { %v325_v26 = vrot.slane %v324_v25, 2 }
 0x130   : >> { %v326_v27 = vadd.f32 %v325_v26, %v324_v25 }
 0x132   : >> { %v327_v28 = vrot.slane %v326_v27, 1 }
 0x134   : >> { %v328_v30 = vadd.f32 %v327_v28, %v326_v27 }
 0x136   : >> { %v334_v32 = vmul.f32 %v328_v30, %v297_v10 }
 0x138   : >> { %v339_v36 = vmul.f32 %v338_v33, %v334_v32  ;;  %v359_v37 = vmul.f32 %v593_v34, %v334_v32 }
 0x13a   : >> { %v343_v38 = vsub.f32 %v340_v31, %v339_v36  ;;  %v364_v7 = vsub.f32 %v594_v35, %v359_v37 }
 0x13c   : >> { %v344_v39 = vsel %vm342_vm2, %v343_v38, %v340_v31  ;;  %v365_v40 = vsel %vm342_vm2, %v364_v7, %v594_v35 }
 0x13d   : >> { %v352_v41 = vsel %vm351_vm3, %v338_v33, %v344_v39  ;;  %v373_v42 = vsel %vm372_vm4, %v593_v34, %v365_v40 }
 0x13e   : >> { %353 = vst [vmem:[%s329_s20] sm:$0xff] %v352_v41  ;;  %595 = vst [vmem:[%s329_s20 + $0x8] sm:$0xff] %v373_v42 }
 0x141   : > { %173 = sbr.rel (!%p171_p9) target bundleno = 36 (0x24), region = 188 }
 0x145   : >> { %v376_v43 = vld [vmem:[%s375_s24] ss:$0 sm:$0xff] }
 0x146   : >> { %v381_v8 = vsel %vm843_vm14, %v832_v50, %v376_v43 }
 0x147   : >> { %382 = vst [vmem:[%s375_s24] sm:$0x1] %v381_v8 }
 0x148   : > { %p436_p10 = scmp.lt.s32.totalorder (%p768_p3), %s700_s11, 0  ;;  %s437_s30 = ssub.s32 (%p768_p3), 0, %s700_s11  ;;  %v471_v46 = vld [vmem:[%s151_s18] sm:$0xff] (%p768_p3) }
 0x149   : > { %435 = sbr.rel (!%p768_p3) target bundleno = 340 (0x154), region = 99  ;;  %s600_s3 = smin.u32 (%p768_p3), %s700_s11, %s437_s30 }
 0x14a   : > { %s439_s4 = sshrl.u32 (%p768_p3), %s600_s3, 3 }
 0x14b   : > { %s440_s5 = ssub.s32 (%p768_p3), 0, %s439_s4 }
 0x14e   : > { %v426_v44 = vld [vmem:[%s795_s20] sm:$0xff]  ;;  %v428_v45 = vld [vmem:[%s795_s20 + $0x8] sm:$0xff] }
 0x14f   : > { %427 = vst [vmem:[%s396_s29] sm:$0xff] %v426_v44  ;;  %429 = vst [vmem:[%s396_s29 + $0x8] sm:$0xff] %v428_v45 }
 0x150   : > { %s926_s5 = smov (!%p436_p10, %s440_s5), %s439_s4 }
 0x151   : > { %s601_s6 = sshll.u32 %s926_s5, 3 }
 0x152   : > { %s443_s17 = scalar_lea.vmem %s915_s2, %s601_s6 }
 0x153   : > { %472 = vst [vmem:[%s443_s17] sm:$0xff] %v471_v46 }
 0x154 PF: > { %s9_s13 = sadd.s32 1, %s708_s13   ;;  %s919_s9 = smov %s696_s10 }
 0x155   : > { %p6_p11 = scmp.ge.s32.totalorder %s9_s13, 10   ;;  %s920_s10 = smov %s774_s25 }
 0x156   : > { %s921_s11 = smov %s704_s12  ;;  %s922_s12 = smov %s924_s14 }
 0x157   :  { %8 = sbr.rel (!%p6_p11) target bundleno = 3 (0x3), region = 199 }

// kernel: custom-call.244
= control target key start
LH: loop header
LB: loop body
LE: loop exit
PB: predicated region body
PF: predicated region fallthrough
CT: control target
= control target key end

     0   :  { %s391_s6 = smov 0   ;;  %s393_s7 = smov 0   ;;  %s459_s0 = inlined_call_operand.vmem [shape: f32[8,5,5], index: 0, kind: input, shape index: {}]   ;;  %s460_s1 = inlined_call_operand.vmem [shape: f32[8,5,5], index: 1, kind: output, shape index: {}]  }
   0x1   :  { %s395_s8 = smov 0  }
   0x2 LB: > { %s301_s9 = sadd.s32 4294967295, %s378_s8   ;;  %s26_s10 = sadd.s32 1, %s374_s7  ;;  %s378_s8 = sphi %s395_s8, %s7_s8   ;;  %s374_s7 = sphi %s393_s7, %s462_s7   ;;  %s370_s6 = sphi %s391_s6, %s461_s6  }
   0x3   : > { %p28_p0 = scmp.ge.s32.totalorder %s26_s10, 8  ;;  %p303_p1 = scmp.ge.s32.totalorder %s378_s8, 8 }
   0x4   : > { %s42_s11 = sand.u32 (!%p303_p1), 1, %s378_s8   ;;  %s305_s12 = sshll.u32 (!%p303_p1), %s374_s7, 3 }
   0x5   : > { %s464_s10 = smov (%p28_p0, %s26_s10), 0  ;;  %40 = sbr.rel (%p303_p1) target bundleno = 12 (0xc), region = 16 }
   0x6   : > { %s304_s13 = sshll.u32 (!%p303_p1), %s42_s11, 3  ;;  %s48_s16 = scalar_lea.vmem (!%p303_p1), %s459_s0, %s305_s12 }
   0x7   : > { %v76_v0 = vld [vmem:[%s48_s16] sm:$0xff] (!%p303_p1)  ;;  %s44_s17 = scalar_lea.vmem (!%p303_p1), [#allocation0], %s304_s13 }
   0x8   : > { %77 = vst [vmem:[%s44_s17] sm:$0xff] (!%p303_p1), %v76_v0 }
   0xc PF: > { %p306_p2 = scmp.ge.s32.totalorder %s378_s8, 1  ;;  %p82_p3 = scmp.lt.s32.totalorder %s378_s8, 9 }
   0xe   : > { %p83_p4 = pnand %p306_p2, %p82_p3 }
   0xf   : > { %s89_s18 = sand.u32 (!%p83_p4), 1, %s301_s9   ;;  %v380_v1 = vmov (!%p83_p4), 0.0   ;;  %vm101_vm0 = vcmask (!%p83_p4), 7168   ;;  %vm119_vm1 = vcmask (!%p83_p4), 15368   ;;  %vm136_vm2 = vcmask (!%p83_p4), 1047553   ;;  %s318_s22 = sshll.u32 (!%p83_p4), %s370_s6, 3 }
  0x10   : > { %86 = sbr.rel (%p83_p4) target bundleno = 867 (0x363), region = 54  ;;  %s307_s19 = sshll.u32 (!%p83_p4), %s89_s18, 3  ;;  %vm137_vm3 = vmand (!%p83_p4), %vm119_vm1, %vm136_vm2  ;;  %vm141_vm4 = vcmask (!%p83_p4), 23568   ;;  %vm158_vm5 = vcmask (!%p83_p4), 1047554   ;;  %vm163_vm7 = vcmask (!%p83_p4), 31768   ;;  %vm180_vm8 = vcmask (!%p83_p4), 1047555  }
  0x11   : > { %s418_s20 = scalar_lea.vmem (!%p83_p4), [#allocation1], %s307_s19  ;;  %s422_s21 = scalar_lea.vmem (!%p83_p4), [#allocation0], %s307_s19  ;;  %vm159_vm6 = vmand (!%p83_p4), %vm141_vm4, %vm158_vm5  ;;  %vm185_vm10 = vcmask (!%p83_p4), 39968   ;;  %vm202_vm11 = vcmask (!%p83_p4), 1047556  }
  0x12   : > { %100 = vst [vmem:[%s418_s20] sm:$0xff] (!%p83_p4), %v380_v1  ;;  %v103_v5 = vld [vmem:[%s422_s21] ss:$0 sm:$0xff] (!%p83_p4)  ;;  %v310_v17 = vld [vmem:[%s422_s21 + $0x1] ss:$0 sm:$0xff] (!%p83_p4)  ;;  %v312_v29 = vld [vmem:[%s422_s21 + $0x2] ss:$0 sm:$0xff] (!%p83_p4)  ;;  %s214_s25 = scalar_lea.vmem (!%p83_p4), %s460_s1, %s318_s22 }
  0x13   : > { %v426_v9 = vld [vmem:[%s422_s21] sm:$0xff] (!%p83_p4)  ;;  %vm181_vm9 = vmand (!%p83_p4), %vm163_vm7, %vm180_vm8 }
  0x14   : > { %v314_v41 = vld [vmem:[%s422_s21 + $0x3] ss:$0 sm:$0xff] (!%p83_p4)  ;;  %v316_v53 = vld [vmem:[%s422_s21 + $0x4] ss:$0 sm:$0xff] (!%p83_p4)  ;;  %vm203_vm12 = vmand (!%p83_p4), %vm185_vm10, %vm202_vm11 }
  0x19   : > { %v102_v2 = vld [vmem:[%s418_s20] ss:$0 sm:$0xff] }
  0x1a   : > { %v104_v3 = vmul.f32 %v102_v2, %v102_v2  ;;  %v111_v4 = vmul.f32 0.0, %v102_v2 }
  0x1c   : > { %105 = vadd.xlane.f32.xlu0 %v104_v3 }
  0x20   : > { %112 = vadd.xlane.f32.xlu0 %v111_v4 }
  0xa9   : > { %v106_v6 = vpop.xlane.xlu0 %105 }
  0xaa   : > { %v107_v7 = vsub.f32 %v103_v5, %v106_v6 }
  0xac   : > { %346 = vrsqrt.f32 %v107_v7 }
  0xad   : > { %v113_v8 = vpop.xlane.xlu0 %112 }
  0xae   : > { %v114_v10 = vsub.f32 %v426_v9, %v113_v8 }
  0xb6   : > { %v347_v11 = vpop.eup %346 }
  0xb7   : > { %v115_v12 = vmul.f32 %v347_v11, %v114_v10 }
  0xb9   : > { %v116_v13 = vsel %vm101_vm0, %v115_v12, 0.0 }
  0xba   : > { %118 = vst [vmem:[%s418_s20] sm:$0xff] %v116_v13 }
  0xc1   : > { %v309_v14 = vld [vmem:[%s418_s20 + $0x1] ss:$0 sm:$0xff] }
  0xc2   : > { %v124_v15 = vmul.f32 %v309_v14, %v309_v14  ;;  %v131_v16 = vmul.f32 %v309_v14, %v116_v13 }
  0xc4   : > { %125 = vadd.xlane.f32.xlu1 %v124_v15 }
  0xc8   : > { %132 = vadd.xlane.f32.xlu1 %v131_v16 }
 0x151   : > { %v126_v18 = vpop.xlane.xlu1 %125 }
 0x152   : > { %v127_v19 = vsub.f32 %v310_v17, %v126_v18 }
 0x154   : > { %348 = vrsqrt.f32 %v127_v19 }
 0x155   : > { %v133_v20 = vpop.xlane.xlu1 %132 }
 0x156   : > { %v134_v21 = vsub.f32 %v426_v9, %v133_v20 }
 0x15e   : > { %v349_v22 = vpop.eup %348 }
 0x15f   : > { %v135_v23 = vmul.f32 %v349_v22, %v134_v21 }
 0x161   : > { %v138_v24 = vsel %vm137_vm3, %v135_v23, 0.0 }
 0x162   : > { %v139_v25 = vadd.f32 %v138_v24, %v116_v13 }
 0x164   : > { %140 = vst [vmem:[%s418_s20] sm:$0xff] %v139_v25 }
 0x16b   : > { %v311_v26 = vld [vmem:[%s418_s20 + $0x2] ss:$0 sm:$0xff] }
 0x16c   : > { %v153_v27 = vmul.f32 %v311_v26, %v139_v25  ;;  %v146_v28 = vmul.f32 %v311_v26, %v311_v26 }
 0x16e   : > { %154 = vadd.xlane.f32.xlu1 %v153_v27  ;;  %147 = vadd.xlane.f32.xlu0 %v146_v28 }
 0x1fb   : > { %v148_v30 = vpop.xlane.xlu0 %147  ;;  %v155_v32 = vpop.xlane.xlu1 %154 }
 0x1fc   : > { %v149_v31 = vsub.f32 %v312_v29, %v148_v30  ;;  %v156_v33 = vsub.f32 %v426_v9, %v155_v32 }
 0x1fe   : > { %350 = vrsqrt.f32 %v149_v31 }
 0x208   : > { %v351_v34 = vpop.eup %350 }
 0x209   : > { %v157_v35 = vmul.f32 %v351_v34, %v156_v33 }
 0x20b   : > { %v160_v36 = vsel %vm159_vm6, %v157_v35, 0.0 }
 0x20c   : > { %v161_v37 = vadd.f32 %v160_v36, %v139_v25 }
 0x20e   : > { %162 = vst [vmem:[%s418_s20] sm:$0xff] %v161_v37 }
 0x215   : > { %v313_v38 = vld [vmem:[%s418_s20 + $0x3] ss:$0 sm:$0xff] }
 0x216   : > { %v175_v39 = vmul.f32 %v313_v38, %v161_v37  ;;  %v168_v40 = vmul.f32 %v313_v38, %v313_v38 }
 0x218   : > { %176 = vadd.xlane.f32.xlu1 %v175_v39  ;;  %169 = vadd.xlane.f32.xlu0 %v168_v40 }
 0x2a5   : > { %v170_v42 = vpop.xlane.xlu0 %169  ;;  %v177_v44 = vpop.xlane.xlu1 %176 }
 0x2a6   : > { %v171_v43 = vsub.f32 %v314_v41, %v170_v42  ;;  %v178_v45 = vsub.f32 %v426_v9, %v177_v44 }
 0x2a8   : > { %352 = vrsqrt.f32 %v171_v43 }
 0x2b2   : > { %v353_v46 = vpop.eup %352 }
 0x2b3   : > { %v179_v47 = vmul.f32 %v353_v46, %v178_v45 }
 0x2b5   : > { %v182_v48 = vsel %vm181_vm9, %v179_v47, 0.0 }
 0x2b6   : > { %v183_v49 = vadd.f32 %v182_v48, %v161_v37 }
 0x2b8   : > { %184 = vst [vmem:[%s418_s20] sm:$0xff] %v183_v49 }
 0x2bf   : > { %v315_v50 = vld [vmem:[%s418_s20 + $0x4] ss:$0 sm:$0xff] }
 0x2c0   : > { %v197_v51 = vmul.f32 %v315_v50, %v183_v49  ;;  %v190_v52 = vmul.f32 %v315_v50, %v315_v50 }
 0x2c2   : > { %198 = vadd.xlane.f32.xlu1 %v197_v51  ;;  %191 = vadd.xlane.f32.xlu0 %v190_v52 }
 0x34f   : > { %v192_v54 = vpop.xlane.xlu0 %191  ;;  %v199_v56 = vpop.xlane.xlu1 %198 }
 0x350   : > { %v193_v55 = vsub.f32 %v316_v53, %v192_v54  ;;  %v200_v57 = vsub.f32 %v426_v9, %v199_v56 }
 0x352   : > { %354 = vrsqrt.f32 %v193_v55 }
 0x35c   : > { %v355_v58 = vpop.eup %354 }
 0x35d   : > { %v201_v59 = vmul.f32 %v355_v58, %v200_v57 }
 0x35f   : > { %v204_v60 = vsel %vm203_vm12, %v201_v59, 0.0 }
 0x360   : > { %v205_v61 = vadd.f32 %v204_v60, %v183_v49 }
 0x362   : > { %206 = vst [vmem:[%s418_s20] sm:$0xff] %v205_v61  ;;  %243 = vst [vmem:[%s214_s25] sm:$0xff] %v205_v61 }
 0x363 PF: > { %s7_s8 = sadd.s32 1, %s378_s8   ;;  %s461_s6 = smov %s374_s7 }
 0x364   : > { %p4_p5 = scmp.ge.s32.totalorder %s7_s8, 10   ;;  %s462_s7 = smov %s464_s10 }
 0x366   :  { %6 = sbr.rel (!%p4_p5) target bundleno = 2 (0x2), region = 126 }

// kernel: custom-call.245
= control target key start
LH: loop header
LB: loop body
LE: loop exit
PB: predicated region body
PF: predicated region fallthrough
CT: control target
= control target key end

     0   :  { %s355_s6 = smov 0   ;;  %s357_s7 = smov 0   ;;  %s395_s0 = inlined_call_operand.vmem [shape: f32[8,1,5,5], index: 0, kind: input, shape index: {}]   ;;  %s396_s1 = inlined_call_operand.vmem [shape: f32[8,1,5,5], index: 1, kind: output, shape index: {}]  }
   0x1   :  { %s359_s8 = smov 0  }
   0x2 LB: > { %s281_s9 = sadd.s32 4294967295, %s342_s8   ;;  %s33_s10 = sadd.s32 1, %s338_s7  ;;  %s342_s8 = sphi %s359_s8, %s7_s8   ;;  %s338_s7 = sphi %s357_s7, %s398_s7   ;;  %s334_s6 = sphi %s355_s6, %s397_s6  }
   0x3   : > { %p35_p0 = scmp.ge.s32.totalorder %s33_s10, 8  ;;  %p283_p1 = scmp.ge.s32.totalorder %s342_s8, 8 }
   0x4   : > { %s49_s11 = sand.u32 (!%p283_p1), 1, %s342_s8   ;;  %s285_s12 = sshll.u32 (!%p283_p1), %s338_s7, 3 }
   0x5   : > { %s400_s10 = smov (%p35_p0, %s33_s10), 0  ;;  %47 = sbr.rel (%p283_p1) target bundleno = 12 (0xc), region = 16 }
   0x6   : > { %s284_s13 = sshll.u32 (!%p283_p1), %s49_s11, 3  ;;  %s56_s16 = scalar_lea.vmem (!%p283_p1), %s395_s0, %s285_s12 }
   0x7   : > { %v84_v0 = vld [vmem:[%s56_s16] sm:$0xff] (!%p283_p1)  ;;  %s51_s17 = scalar_lea.vmem (!%p283_p1), [#allocation0], %s284_s13 }
   0x8   : > { %85 = vst [vmem:[%s51_s17] sm:$0xff] (!%p283_p1), %v84_v0 }
   0xc PF: > { %p286_p2 = scmp.ge.s32.totalorder %s342_s8, 1  ;;  %p90_p3 = scmp.lt.s32.totalorder %s342_s8, 9 }
   0xe   : > { %p91_p4 = pnand %p286_p2, %p90_p3 }
  0x10   : > { %94 = sbr.rel (%p91_p4) target bundleno = 778 (0x30a), region = 54 }
  0x17   : > { %s97_s18 = sand.u32 1, %s281_s9   ;;  %v108_v1 = vlaneseq  ;;  %v344_v10 = vmov -1.0   ;;  %s290_s21 = sshll.u32 %s334_s6, 3 }
  0x18   : > { %s287_s19 = sshll.u32 %s97_s18, 3  ;;  %s189_s24 = scalar_lea.vmem %s396_s1, %s290_s21 }
  0x19   : > { %v109_v2 = vand.u32 127, %v108_v1  ;;  %v112_v3 = vshrl.u32 %v108_v1, 7  ;;  %s99_s20 = scalar_lea.vmem [#allocation0], %s287_s19 }
  0x1a   : > { %v115_v4 = vld [vmem:[%s99_s20] sm:$0xff] }
  0x1b   : > { %vm110_vm0 = vcmp.lt.s32.totalorder %v109_v2, 5  ;;  %vm114_vm1 = vcmp.eq.s32.totalorder %v112_v3, %v109_v2  ;;  %vm119_vm2 = vcmp.ge.s32.totalorder %v112_v3, %v109_v2  ;;  %vm133_vm4 = vcmp.eq.s32.totalorder %v109_v2, 0 }
  0x1c   : > { %v116_v5 = vsel %vm114_vm1, %v115_v4, 0.0  ;;  %vm120_vm3 = vmand %vm119_vm2, %vm110_vm0  ;;  %vm130_vm5 = vcmp.eq.s32.totalorder %v109_v2, %v112_v3  ;;  %v134_v11 = vsel %vm133_vm4, 1.0, %v344_v10  ;;  %vm141_vm6 = vcmp.eq.s32.totalorder %v109_v2, 1 }
  0x1d   : > { %v121_v6 = vsel %vm120_vm3, %v115_v4, 0.0  ;;  %117 = vadd.xlane.f32.xlu0 %v116_v5  ;;  %v135_v12 = vsel %vm130_vm5, %v134_v11, 0.0  ;;  %vm151_vm7 = vcmp.eq.s32.totalorder %v109_v2, 2  ;;  %vm161_vm8 = vcmp.eq.s32.totalorder %v109_v2, 3 }
  0x1e   : > { %vm171_vm9 = vcmp.eq.s32.totalorder %v109_v2, 4 }
  0xaa   : > { %v118_v7 = vpop.xlane.xlu0 %117 }
  0xab   : > { %318 = vrcp.f32 %v118_v7  ;;  %vm178_vm10 = vweird.f32 %v118_v7 }
  0xb5   : > { %v319_v8 = vpop.eup %318 }
  0xb6   : > { %v123_v9 = vmul.f32 %v319_v8, %v121_v6 }
  0xb8   : > { %124 = vst [vmem:[#allocation2] sm:$0xff] %v123_v9 }
  0xbf   : > { %v137_v13 = vld [vmem:[#allocation2 + $0x1] ss:$0 sm:$0xff]  ;;  %v147_v16 = vld [vmem:[#allocation2 + $0x2] ss:$0 sm:$0xff]  ;;  %v157_v21 = vld [vmem:[#allocation2 + $0x3] ss:$0 sm:$0xff] }
  0xc0   : > { %v138_v14 = vxor.u32 2147483648, %v137_v13  ;;  %v148_v18 = vxor.u32 2147483648, %v147_v16  ;;  %v158_v23 = vxor.u32 2147483648, %v157_v21  ;;  %v167_v26 = vld [vmem:[#allocation2 + $0x4] ss:$0 sm:$0xff] }
  0xc1   : > { %v168_v28 = vxor.u32 2147483648, %v167_v26 }
  0xc2   : > { %v142_v15 = vmul.f32 %v138_v14, %v135_v12 }
  0xc4   : > { %143 = vadd.xlane.f32.xlu0 %v142_v15 }
 0x151   : > { %v144_v17 = vpop.xlane.xlu0 %143 }
 0x152   : > { %v145_v19 = vsel %vm141_vm6, %v144_v17, %v135_v12 }
 0x153   : > { %v152_v20 = vmul.f32 %v148_v18, %v145_v19 }
 0x155   : > { %153 = vadd.xlane.f32.xlu1 %v152_v20 }
 0x1e2   : > { %v154_v22 = vpop.xlane.xlu1 %153 }
 0x1e3   : > { %v155_v24 = vsel %vm151_vm7, %v154_v22, %v145_v19 }
 0x1e4   : > { %v162_v25 = vmul.f32 %v158_v23, %v155_v24 }
 0x1e6   : > { %163 = vadd.xlane.f32.xlu1 %v162_v25 }
 0x273   : > { %v164_v27 = vpop.xlane.xlu1 %163 }
 0x274   : > { %v165_v29 = vsel %vm161_vm8, %v164_v27, %v155_v24 }
 0x275   : > { %v172_v30 = vmul.f32 %v168_v28, %v165_v29 }
 0x277   : > { %173 = vadd.xlane.f32.xlu0 %v172_v30 }
 0x304   : > { %v174_v31 = vpop.xlane.xlu0 %173 }
 0x305   : > { %v175_v32 = vsel %vm171_vm9, %v174_v31, %v165_v29 }
 0x306   : > { %v177_v33 = vmul.f32 %v319_v8, %v175_v32 }
 0x308   : > { %v179_v34 = vsel %vm178_vm10, %v175_v32, %v177_v33 }
 0x309   : > { %218 = vst [vmem:[%s189_s24] sm:$0xff] %v179_v34 }
 0x30a PF: > { %s7_s8 = sadd.s32 1, %s342_s8   ;;  %s397_s6 = smov %s338_s7 }
 0x30b   : > { %p4_p5 = scmp.ge.s32.totalorder %s7_s8, 10   ;;  %s398_s7 = smov %s400_s10 }
 0x30d   :  { %6 = sbr.rel (!%p4_p5) target bundleno = 2 (0x2), region = 122 }

// kernel: custom-call.197
= control target key start
LH: loop header
LB: loop body
LE: loop exit
PB: predicated region body
PF: predicated region fallthrough
CT: control target
= control target key end

     0   :  { %s1694_s30 = smov 0   ;;  %s1696_s10 = smov 0   ;;  %s2021_s0 = inlined_call_operand.vmem [shape: f32[8,3,3], index: 0, kind: input, shape index: {}]   ;;  %s2022_s1 = inlined_call_operand.vmem [shape: f32[8,3,3], index: 1, kind: input, shape index: {}]   ;;  %s2023_s2 = inlined_call_operand.vmem [shape: f32[8,3,3], index: 2, kind: input, shape index: {}]   ;;  %s2024_s3 = inlined_call_operand.vmem [shape: f32[8,3,3], index: 3, kind: input, shape index: {}]   ;;  %s2025_s4 = inlined_call_operand.vmem [shape: f32[8,3], index: 4, kind: output, shape index: {0}]   ;;  %s2026_s5 = inlined_call_operand.vmem [shape: f32[8,3], index: 5, kind: output, shape index: {1}]   ;;  %s2027_s6 = inlined_call_operand.vmem [shape: f32[8,3,3], index: 6, kind: output, shape index: {2}]   ;;  %s2028_s7 = inlined_call_operand.vmem [shape: f32[8,3,3], index: 7, kind: output, shape index: {3}]   ;;  %s2029_s8 = inlined_call_operand.vmem [shape: f32[8,3,3], index: 8, kind: output, shape index: {4}]   ;;  %s2030_s9 = inlined_call_operand.vmem [shape: f32[8,3,3], index: 9, kind: output, shape index: {5}]  }
   0x1   :  { %s1698_s11 = smov 0  }
   0x2 LB: > { %s1710_s12 = sadd.s32 4294967295, %s1631_s11   ;;  %s1713_s13 = sadd.s32 1, %s1631_s11   ;;  %s1631_s11 = sphi %s1698_s11, %s2049_s11   ;;  %s1627_s10 = sphi %s1696_s10, %s2048_s10   ;;  %s1623_s30 = sphi %s1694_s30, %s2047_s30  }
   0x3   : > { %s20_s14 = sshrl.u32 %s1631_s11, 3  ;;  %s21_s15 = sshrl.u32 %s1713_s13, 3 }
   0x4   : > { %s22_s16 = ssub.s32 %s20_s14, %s21_s15  ;;  %s25_s17 = sadd.s32 1, %s1627_s10 }
   0x5   : > { %p23_p0 = scmp.eq.s32.totalorder %s22_s16, 0  ;;  %p35_p1 = scmp.ne.s32.totalorder %s1627_s10, %s1623_s30 }
   0x6   : > { %p36_p2 = scmp.eq.s32.totalorder %s1710_s12, 7  ;;  %p1492_p4 = scmp.ge.s32.totalorder %s1631_s11, 8 }
   0x7   : > { %s1722_s18 = scalar_select %p23_p0, %s1627_s10, %s25_s17  }
   0x8   : > { %p1724_p3 = por %p36_p2, %p35_p1  ;;  %86 = sbr.rel (%p1492_p4) target bundleno = 17 (0x11), region = 16 }
   0x9   : > { %2031 = sst [smem:[#allocation31_spill]] %s1722_s18  ;;  %s88_s20 = sand.u32 (!%p1492_p4), 1, %s1631_s11  }
   0xa   : > { %s1494_s21 = sshll.u32 (!%p1492_p4), %s1631_s11, 2  ;;  %s1493_s22 = sshll.u32 (!%p1492_p4), %s88_s20, 2 }
   0xb   : > { %s92_s25 = scalar_lea.vmem (!%p1492_p4), %s2021_s0, %s1494_s21  ;;  %s90_s26 = scalar_lea.vmem (!%p1492_p4), [#allocation1], %s1493_s22 }
   0xc   : > { %v108_v0 = vld [vmem:[%s92_s25] sm:$0xf] (!%p1492_p4)  ;;  %s129_s29 = scalar_lea.vmem (!%p1492_p4), %s2022_s1, %s1494_s21  ;;  %s166_s16 = scalar_lea.vmem (!%p1492_p4), %s2023_s2, %s1494_s21 }
   0xd   : > { %109 = vst [vmem:[%s90_s26] sm:$0xf] (!%p1492_p4), %v108_v0  ;;  %v145_v1 = vld [vmem:[%s129_s29] sm:$0xf] (!%p1492_p4)  ;;  %s127_s17 = scalar_lea.vmem (!%p1492_p4), [#allocation3], %s1493_s22  ;;  %s203_s23 = scalar_lea.vmem (!%p1492_p4), %s2024_s3, %s1494_s21 }
   0xe   : > { %146 = vst [vmem:[%s127_s17] sm:$0xf] (!%p1492_p4), %v145_v1  ;;  %v182_v2 = vld [vmem:[%s166_s16] sm:$0xf] (!%p1492_p4)  ;;  %s164_s24 = scalar_lea.vmem (!%p1492_p4), [#allocation5], %s1493_s22  ;;  %s201_s25 = scalar_lea.vmem (!%p1492_p4), [#allocation7], %s1493_s22 }
   0xf   : > { %183 = vst [vmem:[%s164_s24] sm:$0xf] %v182_v2  ;;  %v219_v3 = vld [vmem:[%s203_s23] sm:$0xf] }
  0x10   : > { %220 = vst [vmem:[%s201_s25] sm:$0xf] %v219_v3 }
  0x11 PF: > { %p1501_p5 = scmp.ge.s32.totalorder %s1631_s11, 1  ;;  %p236_p6 = scmp.lt.s32.totalorder %s1631_s11, 9 }
  0x13   : > { %p237_p7 = pnand %p1501_p5, %p236_p6 }
  0x15   : > { %240 = sbr.rel (%p237_p7) target bundleno = 991 (0x3df), region = 140 }
  0x1c   : > { %s259_s26 = sand.u32 1, %s1710_s12   ;;  %s277_s27 = sand.u32 1, %s1623_s30   ;;  %v337_v4 = vlaneseq  ;;  %v1641_v5 = vmov 0.0  }
  0x1d   : > { %s1747_s28 = sshll.u32 %s259_s26, 2  ;;  %s1749_s18 = sshll.u32 %s277_s27, 3  ;;  %332 = vst [vmem:[#allocation10] sm:$0xff] %v1641_v5  ;;  %333 = vst [vmem:[#allocation12] sm:$0xff] %v1641_v5 }
  0x1e   : > { %334 = vst [vmem:[#allocation14] sm:$0xff] %v1641_v5  ;;  %335 = vst [vmem:[#allocation16] sm:$0xff] %v1641_v5  ;;  %v1751_v6 = vand.u32 127, %v337_v4  ;;  %v1753_v7 = vshrl.u32 %v337_v4, 7  ;;  %s261_s11 = scalar_lea.vmem [#allocation1], %s1747_s28  ;;  %s265_s30 = scalar_lea.vmem [#allocation3], %s1747_s28 }
  0x1f   : > { %v304_v8 = vld [vmem:[%s261_s11] sm:$0xf]  ;;  %v308_v9 = vld [vmem:[%s265_s30] sm:$0xf]  ;;  %s269_s21 = scalar_lea.vmem [#allocation5], %s1747_s28  ;;  %s273_s22 = scalar_lea.vmem [#allocation7], %s1747_s28 }
  0x20   : > { %305 = vst [vmem:[#allocation0] sm:$0xf] %v304_v8  ;;  %309 = vst [vmem:[#allocation2] sm:$0xf] %v308_v9  ;;  %v312_v10 = vld [vmem:[%s269_s21] sm:$0xf]  ;;  %v339_v6 = vmov %v1751_v6  ;;  %v342_v7 = vmov %v1753_v7 }
  0x21   : > { %v316_v11 = vld [vmem:[%s273_s22] sm:$0xf]  ;;  %313 = vst [vmem:[#allocation4] sm:$0xf] %v312_v10  ;;  %v352_v6 = vmov %v1751_v6  ;;  %v355_v7 = vmov %v1753_v7  ;;  %s320_s29 = smov [#allocation18]  ;;  %s323_s14 = smov [#allocation19]  ;;  %vm346_vm0 = vcmp.eq.s32.totalorder %v342_v7, %v339_v6 }
  0x22   : > { %317 = vst [vmem:[#allocation6] sm:$0xf] %v316_v11  ;;  %vm359_vm1 = vcmp.eq.s32.totalorder %v355_v7, %v352_v6  ;;  %s336_s15 = smov [#allocation10]  ;;  %s349_s16 = smov [#allocation16]  ;;  %vm1381_vm2 = vcmp.lt.s32.totalorder %v1751_v6, 3  ;;  %v1373_v6 = vmov %v1751_v6  ;;  %v1376_v7 = vmov %v1753_v7 }
  0x23   : > { %s326_s17 = smov [#allocation20]  ;;  %s329_s20 = smov [#allocation21]  ;;  %vm1386_vm3 = vcmp.eq.s32.totalorder %v1376_v7, %v1373_v6  ;;  %v1424_v6 = vmov %v1751_v6  ;;  %v1393_v7 = vmov %v1753_v7 }
  0x24   : > { %v343_v12 = vld [vmem:[%s336_s15] sm:$0x7]  ;;  %s1377_s30 = smov [#allocation18]  ;;  %s1394_s21 = smov [#allocation19]  ;;  %v1390_v6 = vmov %v1751_v6  ;;  %v1427_v7 = vmov %v1753_v7 }
  0x25   : > { %v356_v13 = vld [vmem:[%s349_s16] sm:$0x7]  ;;  %v347_v16 = vsel %vm346_vm0, 1.0, %v343_v12  ;;  %s1411_s22 = smov [#allocation20]  ;;  %v1407_v6 = vmov %v1751_v6  ;;  %v1410_v7 = vmov %v1753_v7  ;;  %vm1437_vm4 = vcmp.eq.s32.totalorder %v1427_v7, %v1424_v6 }
  0x26   : > { %v360_v17 = vsel %vm359_vm1, 1.0, %v356_v13  ;;  %348 = vst [vmem:[%s336_s15] sm:$0x7] %v347_v16 }
  0x27   : > { %v321_v14 = vld [vmem:[#allocation0] sm:$0xff]  ;;  %v324_v15 = vld [vmem:[#allocation2] sm:$0xff]  ;;  %361 = vst [vmem:[%s349_s16] sm:$0x7] %v360_v17 }
  0x28   : > { %322 = vst [vmem:[%s320_s29] sm:$0xff] %v321_v14  ;;  %325 = vst [vmem:[%s323_s14] sm:$0xff] %v324_v15  ;;  %v327_v18 = vld [vmem:[#allocation4] sm:$0xff]  ;;  %s1428_s29 = smov [#allocation21] }
  0x29   : > { %v330_v19 = vld [vmem:[#allocation6] sm:$0xff]  ;;  %328 = vst [vmem:[%s326_s17] sm:$0xff] %v327_v18 }
  0x2a   : > { %331 = vst [vmem:[%s329_s20] sm:$0xff] %v330_v19 }
  0x2f   : > { %v1383_v20 = vld [vmem:[%s1377_s30] sm:$0x7] }
  0x30   : > { %v1400_v21 = vld [vmem:[%s1394_s21] sm:$0x7]  ;;  %v1384_v22 = vsel %vm1381_vm2, %v1383_v20, 0.0 }
  0x31   : > { %v1401_v23 = vsel %vm1381_vm2, %v1400_v21, 0.0  ;;  %v1417_v24 = vld [vmem:[%s1411_s22] sm:$0x7]  ;;  %v1385_v26 = vmul.f32 %v1384_v22, %v1384_v22 }
  0x32   : > { %v1434_v25 = vld [vmem:[%s1428_s29] sm:$0x7]  ;;  %v1402_v27 = vmul.f32 %v1401_v23, %v1401_v23  ;;  %v1418_v28 = vsel %vm1381_vm2, %v1417_v24, 0.0 }
  0x33   : > { %v1435_v29 = vsel %vm1381_vm2, %v1434_v25, 0.0  ;;  %v1419_v30 = vmul.f32 %v1418_v28, %v1418_v28  ;;  %v1387_v33 = vsel %vm1386_vm3, 0.0, %v1385_v26 }
  0x34   : > { %v1404_v31 = vadd.f32 %v1402_v27, %v1385_v26  ;;  %v1436_v32 = vmul.f32 %v1435_v29, %v1435_v29  ;;  %v1403_v34 = vadd.f32 %v1402_v27, %v1387_v33 }
  0x36   : > { %v1421_v35 = vadd.f32 %v1419_v30, %v1404_v31  ;;  %v1420_v36 = vadd.f32 %v1419_v30, %v1403_v34  ;;  %v1438_v37 = vsel %vm1437_vm4, 0.0, %v1436_v32 }
  0x38   : > { %v1440_v38 = vadd.f32 %v1436_v32, %v1421_v35  ;;  %v1439_v39 = vadd.f32 %v1438_v37, %v1420_v36 }
  0x3a   : > { %1441 = vadd.xlane.f32.xlu0 %v1440_v38 }
  0x3e   : > { %1449 = vadd.xlane.f32.xlu0 %v1439_v39 }
  0xc7   : > { %v1442_v40 = vpop.xlane.xlu0 %1441 }
  0xc8   : > { %v1443_v41 = vrot.slane %v1442_v40, 4 }
  0xca   : > { %v1444_v42 = vadd.f32 %v1443_v41, %v1442_v40 }
  0xcb   : > { %v1450_v43 = vpop.xlane.xlu0 %1449 }
  0xcc   : > { %v1445_v44 = vrot.slane %v1444_v42, 2  ;;  %v1451_v45 = vrot.slane %v1450_v43, 4 }
  0xce   : > { %v1452_v46 = vadd.f32 %v1451_v45, %v1450_v43  ;;  %v1446_v47 = vadd.f32 %v1445_v44, %v1444_v42 }
  0xd0   : > { %v1453_v48 = vrot.slane %v1452_v46, 2  ;;  %v1447_v50 = vrot.slane %v1446_v47, 1 }
  0xd2   : > { %v1454_v49 = vadd.f32 %v1453_v48, %v1452_v46  ;;  %v1448_v53 = vadd.f32 %v1447_v50, %v1446_v47 }
  0xd4   : > { %v1455_v51 = vrot.slane %v1454_v49, 1 }
  0xd6   : > { %v1456_v52 = vadd.f32 %v1455_v51, %v1454_v49 }
  0xd8   : > { %1542 = vpush %v1456_v52 }
  0xd9   : > { %1544 = vpush %v1448_v53 }
 0x109   : > { %s1543_s14 = spop %1542 }
 0x10a   : > { %s1545_s15 = spop %1544 }
 0x10b   : > { %s1459_s16 = smul.f32 1e-10, %s1545_s15 }
 0x10d   : > { %p1460_p8 = scmp.le.f32.partialorder %s1543_s14, %s1459_s16 }
 0x10e   : > { %s1787_s17 = smov (!%p1460_p8), 0  }
 0x10f   : > { %1463 = sbr.rel (%p1460_p8) target bundleno = 953 (0x3b9), region = 475 }
 0x116 LB: >> { %s1792_s20 = smov 0   ;;  %s1635_s17 = sphi %s1787_s17, %s2033_s17  }
 0x117 LB: >>> { %s466_s30 = smov [#allocation18]  ;;  %v470_v6 = vmov %v1751_v6  ;;  %v473_v7 = vmov %v1753_v7  ;;  %s486_s21 = smov [#allocation19]  ;;  %vm789_vm14 = vcmp.eq.s32.totalorder %v1753_v7, 0  ;;  %vm801_vm15 = vcmp.eq.s32.totalorder %v1753_v7, 2  ;;  %s1639_s20 = sphi %s1792_s20, %s465_s20  }
 0x118   : >>> { %v490_v6 = vmov %v1751_v6  ;;  %v493_v7 = vmov %v1753_v7  ;;  %v474_v54 = vld [vmem:[%s466_s30] sm:$0x7]  ;;  %vm477_vm5 = vcmp.eq.s32.totalorder %v473_v7, %v470_v6  ;;  %s506_s22 = smov [#allocation21]  ;;  %s467_s29 = smov [#allocation22] }
 0x119   : >>> { %vm497_vm6 = vcmp.eq.s32.totalorder %v493_v7, %v490_v6  ;;  %v510_v6 = vmov %v1751_v6  ;;  %v513_v7 = vmov %v1753_v7  ;;  %v478_v55 = vsel %vm477_vm5, %v474_v54, 0.0  ;;  %v494_v56 = vld [vmem:[%s486_s21] sm:$0x7]  ;;  %s487_s14 = smov [#allocation23]  ;;  %s507_s15 = smov [#allocation24] }
 0x11a   : >>> { %vm517_vm7 = vcmp.eq.s32.totalorder %v513_v7, %v510_v6  ;;  %v479_v57 = vrot.slane %v478_v55, 4  ;;  %v498_v58 = vsel %vm497_vm6, %v494_v56, 0.0  ;;  %v514_v59 = vld [vmem:[%s506_s22] sm:$0x7]  ;;  %s530_s16 = smov [#allocation23]  ;;  %s528_s30 = smov [#allocation22]  ;;  %v579_v6 = vmov %v1751_v6 }
 0x11b   : >>> { %v499_v60 = vrot.slane %v498_v58, 4  ;;  %v518_v61 = vsel %vm517_vm7, %v514_v59, 0.0  ;;  %s532_s21 = smov [#allocation24]  ;;  %s567_s22 = smov [#allocation25]  ;;  %v582_v7 = vmov %v1753_v7  ;;  %v594_v6 = vmov %v1751_v6 }
 0x11c   : >>> { %v480_v62 = vadd.f32 %v479_v57, %v478_v55  ;;  %v519_v63 = vrot.slane %v518_v61, 4  ;;  %v597_v7 = vmov %v1753_v7  ;;  %vm584_vm12 = vcmp.eq.s32.totalorder %v582_v7, %v579_v6  ;;  %s1811_s24 = smov [#allocation20]  ;;  %s1817_s23 = smov [#allocation12] }
 0x11d   : >>> { %v500_v0 = vadd.f32 %v499_v60, %v498_v58  ;;  %vm599_vm13 = vcmp.eq.s32.totalorder %v597_v7, %v594_v6  ;;  %s829_s11 = smov [#allocation29]  ;;  %s1823_s27 = smov [#allocation16]  ;;  %v615_v55 = vld [vmem:[%s1811_s24] sm:$0x7]  ;;  %v692_v6 = vmov %v1751_v6  ;;  %v695_v7 = vmov %v1753_v7 }
 0x11e   : >>> { %v481_v1 = vrot.slane %v480_v62, 2  ;;  %v520_v2 = vadd.f32 %v519_v63, %v518_v61  ;;  %v838_v58 = vld [vmem:[%s1817_s23] sm:$0x7]  ;;  %s607_s26 = smov [#allocation30]  ;;  %s831_s25 = smov [#allocation30]  ;;  %v706_v6 = vmov %v1751_v6  ;;  %v709_v7 = vmov %v1753_v7 }
 0x11f   : >>> { %v501_v3 = vrot.slane %v500_v0, 2  ;;  %v840_v61 = vld [vmem:[%s1823_s27] sm:$0x7]  ;;  %vm699_vm0 = vcmp.eq.s32.totalorder %v695_v7, %v692_v6  ;;  %v665_v6 = vmov %v1751_v6  ;;  %v668_v7 = vmov %v1753_v7  ;;  %s465_s20 = sadd.s32 1, %s1639_s20  }
 0x120   : >>> { %v482_v4 = vadd.f32 %v481_v1, %v480_v62  ;;  %v521_v5 = vrot.slane %v520_v2, 2  ;;  %v679_v6 = vmov %v1751_v6  ;;  %v682_v7 = vmov %v1753_v7  ;;  %p462_p9 = scmp.ge.s32.totalorder %s465_s20, 5  }
 0x121   : >>> { %v502_v8 = vadd.f32 %v501_v3, %v500_v0  ;;  %vm714_vm1 = vcmp.eq.s32.totalorder %v709_v7, %v706_v6  ;;  %vm673_vm3 = vcmp.eq.s32.totalorder %v668_v7, %v665_v6  ;;  %vm686_vm4 = vcmp.eq.s32.totalorder %v682_v7, %v679_v6 }
 0x122   : >>> { %v483_v9 = vrot.slane %v482_v4, 1  ;;  %v522_v10 = vadd.f32 %v521_v5, %v520_v2  ;;  %vm728_vm5 = vcmp.eq.s32.totalorder %v1751_v6, 0  ;;  %vm732_vm6 = vcmp.eq.s32.totalorder %v1751_v6, 1 }
 0x123   : >>> { %v503_v11 = vrot.slane %v502_v8, 1  ;;  %vm745_vm7 = vcmp.eq.s32.totalorder %v1751_v6, 2  ;;  %v366_v6 = vmov (%p462_p9), %v1751_v6  ;;  %v369_v7 = vmov (%p462_p9), %v1753_v7 }
 0x124   : >>> { %v484_v12 = vadd.f32 %v483_v9, %v482_v4  ;;  %v523_v13 = vrot.slane %v522_v10, 1  ;;  %v419_v6 = vmov (%p462_p9), %v1751_v6 }
 0x125   : >>> { %v504_v14 = vadd.f32 %v503_v11, %v502_v8 }
 0x126   : >>> { %485 = vst [vmem:[%s467_s29] sm:$0x1] %v484_v12  ;;  %v524_v15 = vadd.f32 %v523_v13, %v522_v10  ;;  %s569_s29 = smov [#allocation26] }
 0x127   : >>> { %505 = vst [vmem:[%s487_s14] sm:$0x1] %v504_v14  ;;  %s526_s14 = smov [#allocation27] }
 0x128   : >>> { %525 = vst [vmem:[%s507_s15] sm:$0x1] %v524_v15  ;;  %s527_s15 = smov [#allocation28]  ;;  %s571_s14 = smov %s526_s14 }
 0x129   : >>> { %s573_s15 = smov %s527_s15 }
 0x12d   : >>> { %v529_v18 = vld [vmem:[%s528_s30] sm:$0xff]  ;;  %s590_s30 = smov [#allocation28] }
 0x12e   : >>> { %v531_v16 = vld [vmem:[%s530_s16] sm:$0xff]  ;;  %v552_v31 = vand.u32 2147483647, %v529_v18  ;;  %s575_s16 = smov [#allocation27] }
 0x12f   : >>> { %v535_v17 = vmul.f32 2.0, %v531_v16  ;;  %v533_v19 = vld [vmem:[%s532_s21] sm:$0xff]  ;;  %v553_v36 = vand.u32 2147483647, %v531_v16  ;;  %s588_s21 = smov [#allocation29] }
 0x130   : >>> { %v534_v20 = vsub.f32 %v533_v19, %v529_v18  ;;  %v554_v32 = vand.u32 2147483647, %v533_v19 }
 0x131   : >>> { %1593 = vrcp.f32 %v535_v17 }
 0x132   : >>> { %v555_v35 = vmin.f32 %v552_v31, %v554_v32 }
 0x134   : >>> { %v556_v37 = vmul.f32 1.1920929e-08, %v555_v35 }
 0x136   : >>> { %vm557_vm11 = vcmp.le.f32.partialorder %v553_v36, %v556_v37 }
 0x13b   : >>> { %v1594_v21 = vpop.eup %1593 }
 0x13c   : >>> { %v537_v22 = vmul.f32 %v1594_v21, %v534_v20 }
 0x13e   : >>> { %v539_v23 = vmul.f32 %v537_v22, %v537_v22  ;;  %vm538_vm10 = vcmp.ge.f32.partialorder %v537_v22, 0.0 }
 0x140   : >>> { %v540_v24 = vadd.f32 1.0, %v539_v23 }
 0x142   : >>> { %1595 = vrsqrt.f32 %v540_v24  ;;  %vm543_vm8 = vcmp.eq.f32.partialorder %v540_v24, inf  ;;  %v546_v26 = vand.u32 2147483648, %v540_v24  ;;  %vm545_vm9 = vcmp.eq.f32.partialorder %v540_v24, 0.0 }
 0x14c   : >>> { %v1596_v25 = vpop.eup %1595 }
 0x14d   : >>> { %v542_v27 = vmul.f32 %v1596_v25, %v540_v24 }
 0x14f   : >>> { %v544_v28 = vsel %vm543_vm8, %v540_v24, %v542_v27  ;;  %vm381_vm8 = vcmp.eq.s32.totalorder (%p462_p9), %v369_v7, %v366_v6  ;;  %v422_v7 = vmov (%p462_p9), %v1753_v7  ;;  %v385_v6 = vmov (%p462_p9), %v1751_v6 }
 0x150   : >>> { %v547_v29 = vsel %vm545_vm9, %v546_v26, %v544_v28  ;;  %v388_v7 = vmov (%p462_p9), %v1753_v7  ;;  %v402_v6 = vmov (%p462_p9), %v1751_v6  ;;  %vm434_vm9 = vcmp.eq.s32.totalorder (%p462_p9), %v422_v7, %v419_v6 }
 0x151   : >>> { %v548_v30 = vxor.u32 2147483648, %v547_v29  ;;  %v405_v7 = vmov (%p462_p9), %v1753_v7 }
 0x153   : >>> { %v549_v33 = vsel %vm538_vm10, %v547_v29, %v548_v30 }
 0x154   : >>> { %v550_v34 = vadd.f32 %v549_v33, %v537_v22 }
 0x156   : >>> { %1597 = vrcp.f32 %v550_v34 }
 0x160   : >>> { %v1598_v38 = vpop.eup %1597 }
 0x161   : >>> { %v558_v39 = vsel %vm557_vm11, 0.0, %v1598_v38 }
 0x162   : >>> { %v559_v40 = vmul.f32 %v558_v39, %v558_v39  ;;  %v563_v41 = vmul.f32 %v558_v39, %v531_v16 }
 0x164   : >>> { %v560_v42 = vadd.f32 1.0, %v559_v40  ;;  %v564_v43 = vsub.f32 %v529_v18, %v563_v41  ;;  %v566_v44 = vadd.f32 %v563_v41, %v533_v19 }
 0x166   : >>> { %1599 = vrsqrt.f32 %v560_v42  ;;  %568 = vst [vmem:[%s567_s22] sm:$0xff] %v564_v43  ;;  %570 = vst [vmem:[%s569_s29] sm:$0xff] %v566_v44  ;;  %s605_s22 = smov [#allocation29]  ;;  %s1807_s29 = smov [#allocation18] }
 0x167   : >>> { %v613_v53 = vld [vmem:[%s1807_s29] sm:$0x7] }
 0x170   : >>> { %v1600_v45 = vpop.eup %1599 }
 0x171   : >>> { %572 = vst [vmem:[%s571_s14] sm:$0xff] %v1600_v45  ;;  %v562_v46 = vmul.f32 %v1600_v45, %v558_v39  ;;  %s603_s14 = smov [#allocation30] }
 0x173   : >>> { %574 = vst [vmem:[%s573_s15] sm:$0xff] %v562_v46  ;;  %s1809_s15 = smov [#allocation19] }
 0x174   : >>> { %v614_v54 = vld [vmem:[%s1809_s15] sm:$0x7] }
 0x178   : >>> { %v576_v47 = vld [vmem:[%s575_s16] ss:$0 sm:$0xff]  ;;  %s1813_s16 = smov [#allocation21] }
 0x179   : >>> { %v585_v48 = vsel %vm584_vm12, %v576_v47, 0.0  ;;  %v616_v56 = vld [vmem:[%s1813_s16] sm:$0x7] }
 0x17a   : >>> { %586 = vadd.xlane.f32.xlu0 %v585_v48  ;;  %v591_v49 = vld [vmem:[%s590_s30] ss:$0 sm:$0xff]  ;;  %s1815_s30 = smov [#allocation10] }
 0x17b   : >>> { %v600_v50 = vsel %vm599_vm13, %v591_v49, 0.0  ;;  %v837_v57 = vld [vmem:[%s1815_s30] sm:$0x7] }
 0x17e   : >>> { %601 = vadd.xlane.f32.xlu0 %v600_v50 }
 0x207   : >>> { %v587_v51 = vpop.xlane.xlu0 %586 }
 0x208   : >>> { %589 = vst [vmem:[%s588_s21] sm:$0xff] %v587_v51  ;;  %s1819_s21 = smov [#allocation14] }
 0x209   : >>> { %v839_v59 = vld [vmem:[%s1819_s21] sm:$0x7] }
 0x20b   : >>> { %v602_v52 = vpop.xlane.xlu0 %601 }
 0x20c   : >>> { %604 = vst [vmem:[%s603_s14] sm:$0xff] %v602_v52  ;;  %s1843_s14 = smov [#allocation21] }
 0x20f   : >>> { %v606_v60 = vld [vmem:[%s605_s22] sm:$0xff]  ;;  %s1841_s22 = smov [#allocation20] }
 0x210   : >>> { %v830_v62 = vld [vmem:[%s829_s11] sm:$0xff]  ;;  %v617_v63 = vmul.f32 %v613_v53, %v606_v60  ;;  %v620_v0 = vmul.f32 %v614_v54, %v606_v60  ;;  %v624_v1 = vmul.f32 %v615_v55, %v606_v60  ;;  %v627_v2 = vmul.f32 %v616_v56, %v606_v60  ;;  %s1839_s11 = smov [#allocation10] }
 0x211   : >>> { %v841_v3 = vmul.f32 %v837_v57, %v830_v62  ;;  %v844_v4 = vmul.f32 %v838_v58, %v830_v62  ;;  %v848_v5 = vmul.f32 %v839_v59, %v830_v62  ;;  %v851_v8 = vmul.f32 %v840_v61, %v830_v62 }
 0x213   : >>> { %v608_v9 = vld [vmem:[%s607_s26] sm:$0xff]  ;;  %s635_s26 = smov [#allocation28] }
 0x214   : >>> { %v832_v10 = vld [vmem:[%s831_s25] sm:$0xff]  ;;  %v618_v11 = vmul.f32 %v615_v55, %v608_v9  ;;  %v621_v12 = vmul.f32 %v616_v56, %v608_v9  ;;  %v623_v13 = vmul.f32 %v613_v53, %v608_v9  ;;  %v626_v14 = vmul.f32 %v614_v54, %v608_v9  ;;  %s633_s25 = smov [#allocation27] }
 0x215   : >>> { %v842_v15 = vmul.f32 %v839_v59, %v832_v10  ;;  %v845_v16 = vmul.f32 %v840_v61, %v832_v10  ;;  %v847_v17 = vmul.f32 %v837_v57, %v832_v10  ;;  %v850_v18 = vmul.f32 %v838_v58, %v832_v10  ;;  %v634_v27 = vld [vmem:[%s633_s25] ss:$0 sm:$0xff]  ;;  %s662_s25 = smov [#allocation25] }
 0x216   : >>> { %v619_v19 = vsub.f32 %v617_v63, %v618_v11  ;;  %v622_v20 = vsub.f32 %v620_v0, %v621_v12  ;;  %v625_v21 = vadd.f32 %v624_v1, %v623_v13  ;;  %v628_v22 = vadd.f32 %v627_v2, %v626_v14  ;;  %v636_v28 = vld [vmem:[%s635_s26] ss:$0 sm:$0xff]  ;;  %s661_s26 = smov [#allocation18] }
 0x217   : >>> { %v843_v23 = vsub.f32 %v841_v3, %v842_v15  ;;  %v846_v24 = vsub.f32 %v844_v4, %v845_v16  ;;  %v849_v25 = vadd.f32 %v848_v5, %v847_v17  ;;  %v852_v26 = vadd.f32 %v851_v8, %v850_v18  ;;  %v669_v63 = vld [vmem:[%s662_s25] ss:$0 sm:$0xff]  ;;  %s905_s25 = sadd.s32 (%p462_p9), 1, %s1635_s17  }
 0x218   : >>> { %630 = vst [vmem:[%s1809_s15] sm:$0x7] %v622_v20  ;;  %632 = vst [vmem:[%s1813_s16] sm:$0x7] %v628_v22  ;;  %s1845_s15 = smov [#allocation18]  ;;  %s703_s16 = smov [#allocation26] }
 0x219   : >>> { %629 = vst [vmem:[%s1807_s29] sm:$0x7] %v619_v19  ;;  %631 = vst [vmem:[%s1811_s24] sm:$0x7] %v625_v21  ;;  %s1847_s24 = smov [#allocation14]  ;;  %s1855_s29 = smov [#allocation19]  ;;  %v710_v59 = vld [vmem:[%s703_s16] ss:$0 sm:$0xff] }
 0x21a   : >>> { %853 = vst [vmem:[%s1815_s30] sm:$0x7] %v843_v23  ;;  %854 = vst [vmem:[%s1817_s23] sm:$0x7] %v846_v24  ;;  %s1849_s23 = smov [#allocation12]  ;;  %s689_s30 = smov [#allocation20] }
 0x21b   : >>> { %855 = vst [vmem:[%s1819_s21] sm:$0x7] %v849_v25  ;;  %856 = vst [vmem:[%s1823_s27] sm:$0x7] %v852_v26  ;;  %s1853_s27 = smov [#allocation16]  ;;  %s702_s21 = smov [#allocation21] }
 0x21c   : >>> { %s805_s16 = smov [#allocation19]  ;;  %p458_p10 = scmp.ge.s32.totalorder (%p462_p9), %s905_s25, 15 }
 0x21d   : >> { %s2033_s17 = smov (%p462_p9), %s905_s25 }
 0x21f   : >>> { %v644_v30 = vld [vmem:[%s1843_s14] sm:$0x7] }
 0x220   : >>> { %v643_v29 = vld [vmem:[%s1841_s22] sm:$0x7]  ;;  %v652_v36 = vmul.f32 %v644_v30, %v636_v28  ;;  %v655_v42 = vmul.f32 %v644_v30, %v634_v27 }
 0x221   : >>> { %v641_v31 = vld [vmem:[%s1845_s15] sm:$0x7]  ;;  %v651_v35 = vmul.f32 %v643_v29, %v634_v27  ;;  %v654_v37 = vmul.f32 %v643_v29, %v636_v28 }
 0x222   : >>> { %v859_v32 = vld [vmem:[%s1839_s11] ss:$0 sm:$0xff]  ;;  %v1521_v34 = vld [vmem:[%s1839_s11 + $0x2] ss:$0 sm:$0xff]  ;;  %v645_v48 = vmul.f32 %v641_v31, %v634_v27  ;;  %v648_v49 = vmul.f32 %v641_v31, %v636_v28 }
 0x223   : >>> { %v1520_v33 = vld [vmem:[%s1839_s11 - $0x1] sm:$0x6]  ;;  %v1525_v45 = vld [vmem:[%s1849_s23 + $0x2] ss:$0 sm:$0xff]  ;;  %v653_v47 = vsub.f32 %v651_v35, %v652_v36  ;;  %v656_v53 = vadd.f32 %v655_v42, %v654_v37 }
 0x224   : >>> { %v866_v38 = vsel %vm789_vm14, %v859_v32, %v1520_v33  ;;  %v870_v39 = vld [vmem:[%s1847_s24] ss:$0 sm:$0xff]  ;;  %v1523_v40 = vld [vmem:[%s1847_s24 + $0x1] sm:$0x3] }
 0x225   : >>> { %v883_v41 = vld [vmem:[%s1849_s23] ss:$0 sm:$0xff]  ;;  %869 = vst [vmem:[%s1839_s11] sm:$0x7] %v866_v38  ;;  %v878_v43 = vsel %vm801_vm15, %v1521_v34, %v1523_v40  ;;  %v1527_v51 = vld [vmem:[%s1853_s27 + $0x1] sm:$0x3]  ;;  %659 = vst [vmem:[%s1841_s22] sm:$0x7] %v653_v47 }
 0x226   : >>> { %v1524_v44 = vld [vmem:[%s1849_s23 - $0x1] sm:$0x6]  ;;  %1522 = vst [vmem:[%s1839_s11 + $0x1] sm:$0x1] %v870_v39  ;;  %880 = vst [vmem:[%s1847_s24] sm:$0x7] %v878_v43  ;;  %v902_v54 = vsel %vm801_vm15, %v1525_v45, %v1527_v51  ;;  %s676_s11 = smov [#allocation19] }
 0x227   : >>> { %v894_v46 = vld [vmem:[%s1853_s27] ss:$0 sm:$0xff]  ;;  %v890_v50 = vsel %vm789_vm14, %v883_v41, %v1524_v44  ;;  %660 = vst [vmem:[%s1843_s14] sm:$0x7] %v656_v53  ;;  %s1897_s22 = smov [#allocation20]  ;;  %s1642_s14 = smov 1  }
 0x228   : >>> { %v642_v52 = vld [vmem:[%s1855_s29] sm:$0x7]  ;;  %893 = vst [vmem:[%s1849_s23] sm:$0x7] %v890_v50  ;;  %904 = vst [vmem:[%s1853_s27] sm:$0x7] %v902_v54  ;;  %s718_s24 = smov [#allocation19]  ;;  %s1900_s27 = smov [#allocation21] }
 0x229   : >>> { %v646_v55 = vmul.f32 %v642_v52, %v636_v28  ;;  %v649_v56 = vmul.f32 %v642_v52, %v634_v27  ;;  %1526 = vst [vmem:[%s1849_s23 + $0x1] sm:$0x1] %v894_v46  ;;  %s1643_s23 = smov 127  }
 0x22b   : >>> { %v647_v57 = vsub.f32 %v645_v48, %v646_v55  ;;  %v650_v58 = vadd.f32 %v649_v56, %v648_v49 }
 0x22c   : >>> { %v696_v60 = vld [vmem:[%s689_s30] sm:$0x7] }
 0x22d   : >>> { %657 = vst [vmem:[%s1845_s15] sm:$0x7] %v647_v57  ;;  %658 = vst [vmem:[%s1855_s29] sm:$0x7] %v650_v58  ;;  %v700_v61 = vsel %vm699_vm0, 0.0, %v696_v60  ;;  %s717_s15 = smov [#allocation18]  ;;  %s781_s29 = smov [#allocation18] }
 0x22e   : >>> { %v711_v62 = vld [vmem:[%s702_s21] sm:$0x7]  ;;  %701 = vst [vmem:[%s689_s30] sm:$0x7] %v700_v61  ;;  %s782_s30 = smov [#allocation20] }
 0x22f   : >>> { %v715_v0 = vsel %vm714_vm1, %v710_v59, %v711_v62 }
 0x230   : >>> { %716 = vst [vmem:[%s702_s21] sm:$0x7] %v715_v0  ;;  %s806_s21 = smov [#allocation21] }
 0x234   : >>> { %v670_v1 = vld [vmem:[%s661_s26] sm:$0x7] }
 0x235   : >>> { %v683_v2 = vld [vmem:[%s676_s11] sm:$0x7]  ;;  %v674_v3 = vsel %vm673_vm3, %v669_v63, %v670_v1 }
 0x236   : >>> { %v687_v4 = vsel %vm686_vm4, 0.0, %v683_v2  ;;  %675 = vst [vmem:[%s661_s26] sm:$0x7] %v674_v3  ;;  %v755_v5 = vld [vmem:[%s1897_s22] sm:$0x7]  ;;  %s370_s26 = smov (%p462_p9), [#allocation18] }
 0x237   : >>> { %688 = vst [vmem:[%s676_s11] sm:$0x7] %v687_v4  ;;  %756 = vrot.lane.b32.xlu0 %v755_v5, %s1642_s14  ;;  %v751_v11 = vld [vmem:[%s1900_s27] sm:$0x7]  ;;  %s389_s11 = smov (%p462_p9), [#allocation19] }
 0x238   : >>> { %v772_v12 = vld [vmem:[%s1900_s27] sm:$0x7] }
 0x239   : >>> { %v754_v30 = vld [vmem:[%s1897_s22] sm:$0x7] }
 0x23d   : >>> { %v723_v8 = vld [vmem:[%s717_s15] sm:$0x7] }
 0x23e   : >>> { %724 = vrot.lane.b32.xlu1 %v723_v8, %s1642_s14  ;;  %v719_v9 = vld [vmem:[%s718_s24] sm:$0x7] }
 0x23f   : >>> { %v740_v10 = vld [vmem:[%s718_s24] sm:$0x7] }
 0x240   : >>> { %v722_v18 = vld [vmem:[%s717_s15] sm:$0x7] }
 0x242   : >>> { %720 = vrot.lane.b32.xlu1 %v719_v9, %s1642_s14 }
 0x246   : >>> { %741 = vrot.lane.b32.xlu1 %v740_v10, %s1643_s23 }
 0x24a   : >>> { %752 = vrot.lane.b32.xlu1 %v751_v11, %s1642_s14  ;;  %s423_s14 = smov (%p462_p9), [#allocation21] }
 0x24e   : >>> { %773 = vrot.lane.b32.xlu1 %v772_v12, %s1643_s23 }
 0x2a9   : >>> { %v757_v20 = vpop.permute.xlu0 %756 }
 0x2aa   : >>> { %v761_v22 = vsel %vm728_vm5, %v755_v5, %v757_v20 }
 0x2b0   : >>> { %v725_v13 = vpop.permute.xlu1 %724 }
 0x2b1   : >>> { %v729_v14 = vsel %vm728_vm5, %v723_v8, %v725_v13 }
 0x2b4   : >>> { %v721_v15 = vpop.permute.xlu1 %720 }
 0x2b5   : >>> { %v733_v16 = vsel %vm732_vm6, %v721_v15, %v729_v14 }
 0x2b6   : >>> { %v739_v17 = vsel %vm1381_vm2, %v733_v16, 0.0 }
 0x2b7   : >>> { %747 = vst [vmem:[%s717_s15] sm:$0x7] %v739_v17 }
 0x2b8   : >>> { %v742_v19 = vpop.permute.xlu1 %741 }
 0x2b9   : >>> { %v746_v21 = vsel %vm745_vm7, %v722_v18, %v742_v19 }
 0x2ba   : >>> { %748 = vst [vmem:[%s718_s24] sm:$0x7] %v746_v21 }
 0x2bc   : >>> { %v753_v23 = vpop.permute.xlu1 %752 }
 0x2bd   : >>> { %v765_v24 = vsel %vm732_vm6, %v753_v23, %v761_v22 }
 0x2be   : >>> { %v783_v25 = vld [vmem:[%s781_s29] ss:$0 sm:$0xff]  ;;  %v1513_v27 = vld [vmem:[%s781_s29 + $0x2] ss:$0 sm:$0xff]  ;;  %v771_v29 = vsel %vm1381_vm2, %v765_v24, 0.0 }
 0x2bf   : >>> { %v1512_v26 = vld [vmem:[%s781_s29 - $0x1] sm:$0x6]  ;;  %779 = vst [vmem:[%s1897_s22] sm:$0x7] %v771_v29  ;;  %s406_s22 = smov (%p462_p9), [#allocation20] }
 0x2c0   : >>> { %v790_v28 = vsel %vm789_vm14, %v783_v25, %v1512_v26  ;;  %v774_v31 = vpop.permute.xlu1 %773 }
 0x2c1   : >>> { %793 = vst [vmem:[%s781_s29] sm:$0x7] %v790_v28  ;;  %v807_v32 = vld [vmem:[%s805_s16] ss:$0 sm:$0xff]  ;;  %v1517_v34 = vld [vmem:[%s805_s16 + $0x2] ss:$0 sm:$0xff]  ;;  %v778_v35 = vsel %vm745_vm7, %v754_v30, %v774_v31 }
 0x2c2   : >>> { %v1516_v33 = vld [vmem:[%s805_s16 - $0x1] sm:$0x6]  ;;  %780 = vst [vmem:[%s1900_s27] sm:$0x7] %v778_v35 }
 0x2c3   : >>> { %v814_v36 = vsel %vm789_vm14, %v807_v32, %v1516_v33 }
 0x2c4   : >>> { %817 = vst [vmem:[%s805_s16] sm:$0x7] %v814_v36 }
 0x2c6   : >>> { %v794_v37 = vld [vmem:[%s782_s30] ss:$0 sm:$0xff]  ;;  %v1515_v38 = vld [vmem:[%s782_s30 + $0x1] sm:$0x3] }
 0x2c7   : >>> { %1514 = vst [vmem:[%s781_s29 + $0x1] sm:$0x1] %v794_v37  ;;  %v802_v39 = vsel %vm801_vm15, %v1513_v27, %v1515_v38  ;;  %464 = sbr.rel (!%p462_p9) target bundleno = 279 (0x117), region = 470 }
 0x2c8   : >>> { %804 = vst [vmem:[%s782_s30] sm:$0x7] %v802_v39 }
 0x2c9   : >>> { %v818_v40 = vld [vmem:[%s806_s21] ss:$0 sm:$0xff]  ;;  %v1519_v41 = vld [vmem:[%s806_s21 + $0x1] sm:$0x3] }
 0x2ca   : >>> { %1518 = vst [vmem:[%s805_s16 + $0x1] sm:$0x1] %v818_v40  ;;  %v826_v42 = vsel %vm801_vm15, %v1517_v34, %v1519_v41 }
 0x2cb   : >>> { %828 = vst [vmem:[%s806_s21] sm:$0x7] %v826_v42 }
 0x2ce   : >> { %v376_v43 = vld [vmem:[%s370_s26] sm:$0x7] }
 0x2cf   : >> { %v377_v45 = vsel %vm1381_vm2, %v376_v43, 0.0  ;;  %v412_v47 = vld [vmem:[%s406_s22] sm:$0x7] }
 0x2d0   : >> { %v378_v49 = vmul.f32 %v377_v45, %v377_v45  ;;  %v413_v51 = vsel %vm1381_vm2, %v412_v47, 0.0 }
 0x2d1   : >> { %v395_v44 = vld [vmem:[%s389_s11] sm:$0x7]  ;;  %v414_v53 = vmul.f32 %v413_v51, %v413_v51 }
 0x2d2   : >> { %v396_v46 = vsel %vm1381_vm2, %v395_v44, 0.0  ;;  %v429_v48 = vld [vmem:[%s423_s14] sm:$0x7]  ;;  %v382_v56 = vsel %vm381_vm8, 0.0, %v378_v49 }
 0x2d3   : >> { %v397_v50 = vmul.f32 %v396_v46, %v396_v46  ;;  %v430_v52 = vsel %vm1381_vm2, %v429_v48, 0.0 }
 0x2d4   : >> { %v431_v55 = vmul.f32 %v430_v52, %v430_v52 }
 0x2d5   : >> { %v399_v54 = vadd.f32 %v397_v50, %v378_v49  ;;  %v398_v57 = vadd.f32 %v397_v50, %v382_v56 }
 0x2d6   : >> { %v435_v60 = vsel %vm434_vm9, 0.0, %v431_v55 }
 0x2d7   : >> { %v416_v58 = vadd.f32 %v414_v53, %v399_v54  ;;  %v415_v59 = vadd.f32 %v414_v53, %v398_v57 }
 0x2d9   : >> { %v437_v61 = vadd.f32 %v431_v55, %v416_v58  ;;  %v436_v62 = vadd.f32 %v435_v60, %v415_v59 }
 0x2db   : >> { %438 = vadd.xlane.f32.xlu0 %v437_v61 }
 0x2df   : >> { %446 = vadd.xlane.f32.xlu0 %v436_v62 }
 0x368   : >> { %v439_v63 = vpop.xlane.xlu0 %438 }
 0x369   : >> { %v440_v0 = vrot.slane %v439_v63, 4 }
 0x36b   : >> { %v441_v1 = vadd.f32 %v440_v0, %v439_v63 }
 0x36c   : >> { %v447_v2 = vpop.xlane.xlu0 %446 }
 0x36d   : >> { %v442_v3 = vrot.slane %v441_v1, 2  ;;  %v448_v4 = vrot.slane %v447_v2, 4 }
 0x36f   : >> { %v449_v5 = vadd.f32 %v448_v4, %v447_v2  ;;  %v443_v8 = vadd.f32 %v442_v3, %v441_v1 }
 0x371   : >> { %v450_v9 = vrot.slane %v449_v5, 2  ;;  %v444_v11 = vrot.slane %v443_v8, 1 }
 0x373   : >> { %v451_v10 = vadd.f32 %v450_v9, %v449_v5  ;;  %v445_v14 = vadd.f32 %v444_v11, %v443_v8 }
 0x375   : >> { %v452_v12 = vrot.slane %v451_v10, 1 }
 0x377   : >> { %v453_v13 = vadd.f32 %v452_v12, %v451_v10 }
 0x379   : >> { %1546 = vpush %v453_v13 }
 0x37a   : >> { %1548 = vpush %v445_v14 }
 0x3aa   : >> { %s1547_s20 = spop %1546 }
 0x3ab   : >> { %s1549_s15 = spop %1548 }
 0x3ac   : >> { %s456_s24 = smul.f32 1e-10, %s1549_s15 }
 0x3ae   : >> { %p457_p11 = scmp.le.f32.partialorder %s1547_s20, %s456_s24 }
 0x3b0   : >> { %p459_p12 = por %p458_p10, %p457_p11 }
 0x3b2   : > { %907 = sbr.rel (!%p459_p12) target bundleno = 278 (0x116), region = 481 }
 0x3b9 PF: > { %s912_s23 = smov [#allocation18]  ;;  %v916_v6 = vmov %v1751_v6  ;;  %v919_v7 = vmov %v1753_v7  ;;  %v955_v15 = vld [vmem:[#allocation10] sm:$0xf]  ;;  %v961_v16 = vld [vmem:[#allocation12] sm:$0xf]  ;;  %s2034_s17 = scalar_lea.vmem [#allocation11], %s1747_s28 }
 0x3ba   : > { %v936_v6 = vmov %v1751_v6  ;;  %v939_v7 = vmov %v1753_v7  ;;  %v920_v17 = vld [vmem:[%s912_s23] sm:$0x7]  ;;  %vm923_vm10 = vcmp.eq.s32.totalorder %v919_v7, %v916_v6  ;;  %957 = vst [vmem:[%s2034_s17] sm:$0xf] %v955_v15  ;;  %s2035_s27 = scalar_lea.vmem [#allocation13], %s1747_s28  ;;  %v973_v19 = vld [vmem:[#allocation16] sm:$0xf] }
 0x3bb   : > { %vm943_vm11 = vcmp.eq.s32.totalorder %v939_v7, %v936_v6  ;;  %963 = vst [vmem:[%s2035_s27] sm:$0xf] %v961_v16  ;;  %v967_v18 = vld [vmem:[#allocation14] sm:$0xf]  ;;  %v924_v20 = vsel %vm923_vm10, %v920_v17, 0.0  ;;  %s932_s29 = smov [#allocation21]  ;;  %s2036_s16 = scalar_lea.vmem [#allocation15], %s1747_s28 }
 0x3bc   : > { %969 = vst [vmem:[%s2036_s16] sm:$0xf] %v967_v18  ;;  %s2037_s30 = scalar_lea.vmem [#allocation17], %s1747_s28  ;;  %v925_v21 = vrot.slane %v924_v20, 4  ;;  %v940_v22 = vld [vmem:[%s932_s29] sm:$0x7]  ;;  %s908_s21 = sand.u32 7, %s1710_s12  }
 0x3bd   : > { %975 = vst [vmem:[%s2037_s30] sm:$0xf] %v973_v19  ;;  %v944_v23 = vsel %vm943_vm11, %v940_v22, 0.0  ;;  %s2038_s25 = scalar_lea.vmem [#allocation8], %s1749_s18  ;;  %s2039_s11 = scalar_lea.vmem [#allocation9], %s1749_s18 }
 0x3be   : > { %v926_v24 = vadd.f32 %v925_v21, %v924_v20  ;;  %v945_v25 = vrot.slane %v944_v23, 4  ;;  %s909_s26 = scalar_lea.vmem %s2038_s25, %s908_s21 [#allocation8]  ;;  %s911_s22 = scalar_lea.vmem %s2039_s11, %s908_s21 [#allocation9] }
 0x3bf   : > { %s913_s26 = smov %s909_s26  ;;  %s933_s22 = smov %s911_s22 }
 0x3c0   : > { %v927_v6 = vrot.slane %v926_v24, 2  ;;  %v946_v7 = vadd.f32 %v945_v25, %v944_v23  ;;  %s1003_s14 = sshrl.u32 (%p1724_p3), %s1710_s12, 3  ;;  %s2040_s20 = scalar_lea.vmem (%p1724_p3), [#allocation8], %s1749_s18 }
 0x3c1   : > { %s1534_s15 = sshll.u32 (%p1724_p3), %s1003_s14, 3 }
 0x3c2   : > { %v928_v26 = vadd.f32 %v927_v6, %v926_v24  ;;  %v947_v27 = vrot.slane %v946_v7, 2  ;;  %s1005_s17 = scalar_lea.vmem (%p1724_p3), %s2025_s4, %s1534_s15 }
 0x3c4   : > { %v929_v28 = vrot.slane %v928_v26, 1  ;;  %v948_v29 = vadd.f32 %v947_v27, %v946_v7  ;;  %1002 = sbr.rel (!%p1724_p3) target bundleno = 977 (0x3d1), region = 158 }
 0x3c6   : > { %v930_v30 = vadd.f32 %v929_v28, %v928_v26  ;;  %v949_v31 = vrot.slane %v948_v29, 1 }
 0x3c8   : > { %931 = vst [vmem:[%s913_s26] sm:$0x1] %v930_v30  ;;  %v950_v32 = vadd.f32 %v949_v31, %v948_v29 }
 0x3ca   : > { %951 = vst [vmem:[%s933_s22] sm:$0x1] %v950_v32 }
 0x3cf   : > { %v1033_v33 = vld [vmem:[%s2040_s20] sm:$0xff] }
 0x3d0   : > { %1034 = vst [vmem:[%s1005_s17] sm:$0xff] %v1033_v33 }
 0x3d1 PF: > { %1040 = sbr.rel (!%p1724_p3) target bundleno = 985 (0x3d9), region = 196  ;;  %s1041_s27 = sshrl.u32 (%p1724_p3), %s1710_s12, 3 }
 0x3d2   : > { %s2041_s29 = scalar_lea.vmem (%p1724_p3), [#allocation9], %s1749_s18  ;;  %s1535_s16 = sshll.u32 (%p1724_p3), %s1041_s27, 3 }
 0x3d3   : > { %s1043_s25 = scalar_lea.vmem (%p1724_p3), %s2026_s5, %s1535_s16 }
 0x3d7   : > { %v1071_v34 = vld [vmem:[%s2041_s29] sm:$0xff] (%p1724_p3) }
 0x3d8   : > { %1072 = vst [vmem:[%s1043_s25] sm:$0xff] %v1071_v34 }
 0x3d9 PF: > { %s1536_s26 = sshll.u32 %s1710_s12, 2  ;;  %s2042_s19 = scalar_lea.vmem [#allocation11], %s1747_s28 }
 0x3da   : > { %v1093_v35 = vld [vmem:[%s2042_s19] sm:$0xf]  ;;  %s2043_s11 = scalar_lea.vmem [#allocation13], %s1747_s28  ;;  %s1077_s14 = scalar_lea.vmem %s2027_s6, %s1536_s26 }
 0x3db   : > { %v1126_v36 = vld [vmem:[%s2043_s11] sm:$0xf]  ;;  %s1110_s24 = scalar_lea.vmem %s2028_s7, %s1536_s26  ;;  %s2044_s23 = scalar_lea.vmem [#allocation15], %s1747_s28  ;;  %1094 = vst [vmem:[%s1077_s14] sm:$0xf] %v1093_v35 }
 0x3dc   : > { %v1159_v37 = vld [vmem:[%s2044_s23] sm:$0xf]  ;;  %s2045_s17 = scalar_lea.vmem [#allocation17], %s1747_s28  ;;  %1127 = vst [vmem:[%s1110_s24] sm:$0xf] %v1126_v36  ;;  %s1143_s29 = scalar_lea.vmem %s2029_s8, %s1536_s26 }
 0x3dd   : > { %v1192_v38 = vld [vmem:[%s2045_s17] sm:$0xf]  ;;  %s1176_s21 = scalar_lea.vmem %s2030_s9, %s1536_s26  ;;  %1160 = vst [vmem:[%s1143_s29] sm:$0xf] %v1159_v37 }
 0x3de   : > { %1193 = vst [vmem:[%s1176_s21] sm:$0xf] %v1192_v38 }
 0x3df PF: > { %s2046_s25 = sld [smem:[#allocation31_spill]]  ;;  %p13_p13 = scmp.ge.s32.totalorder %s1713_s13, 10  }
 0x3e0   : > { %s2047_s30 = smov %s1627_s10  ;;  %s2049_s11 = smov %s1713_s13 }
 0x3e1   :  { %15 = sbr.rel (!%p13_p13) target bundleno = 2 (0x2), region = 492 }
 0x3e5   : > { %s2048_s10 = smov %s2046_s25 }

// kernel: reverse.5
= control target key start
LH: loop header
LB: loop body
LE: loop exit
PB: predicated region body
PF: predicated region fallthrough
CT: control target
= control target key end

     0   :  { %v2_v0 = vlaneseq  ;;  %s97_s0 = inlined_call_operand.vmem [shape: f32[8,5], index: 0, kind: input, shape index: {}]   ;;  %s98_s1 = inlined_call_operand.vmem [shape: f32[8,5], index: 1, kind: output, shape index: {}]  }
   0x1   :  { %v32_v2 = vld [vmem:[%s97_s0] sm:$0xff] }
   0x2   :  { %v3_v1 = vsub.s32 4, %v2_v0 }
   0x4   :  { %4 = vset.pattern.permute.xlu0 %v3_v1 }
   0x5   :  { %38 = vperm.xlu0 %4, %v32_v2  }
  0x84   :  { %v39_v3 = vpop.permute.xlu0 %38 }
  0x85   :  { %69 = vst [vmem:[%s98_s1] sm:$0xff] %v39_v3 }

// kernel: custom-call.32
= control target key start
LH: loop header
LB: loop body
LE: loop exit
PB: predicated region body
PF: predicated region fallthrough
CT: control target
= control target key end

     0   :  { %s640_s9 = smov 0   ;;  %s642_s10 = smov 0   ;;  %s790_s0 = inlined_call_operand.vmem [shape: f32[8,5,5], index: 0, kind: input, shape index: {}]   ;;  %s791_s1 = inlined_call_operand.vmem [shape: f32[8,5,5], index: 1, kind: output, shape index: {0}]   ;;  %s792_s2 = inlined_call_operand.vmem [shape: f32[8,5], index: 2, kind: output, shape index: {1}]  }
   0x1   :  { %s644_s11 = smov 0   ;;  %s646_s12 = smov 0  }
   0x2   :  { %s648_s13 = smov 0  }
   0x3 LB: > { %s28_s14 = sadd.s32 1, %s613_s12  ;;  %s495_s15 = sadd.s32 4294967295, %s617_s13   ;;  %s617_s13 = sphi %s648_s13, %s9_s13   ;;  %s613_s12 = sphi %s646_s12, %s799_s12   ;;  %s609_s11 = sphi %s644_s11, %s798_s11   ;;  %s605_s10 = sphi %s642_s10, %s797_s10   ;;  %s601_s9 = sphi %s640_s9, %s796_s9  }
   0x4   : > { %p30_p0 = scmp.ge.s32.totalorder %s28_s14, 8  ;;  %s33_s16 = ssub.s32 0, %s613_s12 }
   0x5   : > { %s497_s17 = smin.u32 %s613_s12, %s33_s16  ;;  %p57_p1 = scmp.ne.s32.totalorder %s605_s10, %s601_s9 }
   0x6   : > { %s801_s14 = smov (%p30_p0, %s28_s14), 0  ;;  %s35_s18 = sshrl.u32 %s497_s17, 3 }
   0x7   : > { %s39_s19 = ssub.s32 0, %s801_s14  ;;  %p58_p2 = scmp.eq.s32.totalorder %s495_s15, 7 }
   0x8   : > { %s498_s20 = smin.u32 %s39_s19, %s801_s14  ;;  %s47_s24 = sadd.s32 1, %s605_s10 }
   0x9   : > { %s41_s21 = sshrl.u32 %s498_s20, 3  ;;  %p675_p3 = por %p58_p2, %p57_p1 }
   0xa   : > { %s44_s23 = ssub.s32 %s35_s18, %s41_s21  ;;  %p500_p5 = scmp.ge.s32.totalorder %s617_s13, 8 }
   0xb   : > { %p45_p4 = scmp.eq.s32.totalorder %s44_s23, 0  ;;  %s82_s26 = sand.u32 (!%p500_p5), 1, %s617_s13  }
   0xc   : > { %80 = sbr.rel (%p500_p5) target bundleno = 19 (0x13), region = 16  ;;  %s502_s27 = sshll.u32 (!%p500_p5), %s613_s12, 3 }
   0xd   : > { %s681_s25 = scalar_select %p45_p4, %s605_s10, %s47_s24  }
   0xe   : > { %s501_s28 = sshll.u32 (!%p500_p5), %s82_s26, 3  ;;  %s88_s3 = scalar_lea.vmem (!%p500_p5), %s790_s0, %s502_s27 }
   0xf   : > { %v116_v0 = vld [vmem:[%s88_s3] sm:$0xff] (!%p500_p5)  ;;  %s84_s4 = scalar_lea.vmem (!%p500_p5), [#allocation0], %s501_s28 }
  0x10   : > { %117 = vst [vmem:[%s84_s4] sm:$0xff] (!%p500_p5), %v116_v0 }
  0x13 PF: > { %p503_p6 = scmp.ge.s32.totalorder %s617_s13, 1  ;;  %p122_p7 = scmp.lt.s32.totalorder %s617_s13, 9 }
  0x15   : > { %p123_p8 = pnand %p503_p6, %p122_p7 }
  0x17   : > { %126 = sbr.rel (%p123_p8) target bundleno = 330 (0x14a), region = 54 }
  0x1e   : > { %s129_s5 = sand.u32 1, %s495_s15   ;;  %s143_s6 = sand.u32 1, %s601_s9   ;;  %v623_v2 = vmov 0.0  }
  0x1f   : > { %s504_s7 = sshll.u32 %s129_s5, 3  ;;  %s692_s8 = sshll.u32 %s143_s6, 3 }
  0x20   : > { %s152_s16 = sand.u32 7, %s609_s11   ;;  %s131_s17 = scalar_lea.vmem [#allocation0], %s504_s7 }
  0x21   : > { %v154_v1 = vld [vmem:[%s131_s17] sm:$0xff]  ;;  %s145_s18 = scalar_lea.vmem [#allocation2], %s692_s8  ;;  %s700_s20 = scalar_lea.vmem [#allocation1], %s504_s7 }
  0x22   : > { %s698_s19 = scalar_lea.vmem %s145_s18, %s152_s16 [#allocation2]  ;;  %155 = vst [vmem:[%s700_s20] sm:$0xff] %v154_v1  ;;  %s704_s9 = smov 0  }
  0x23   : > { %156 = vst [vmem:[%s698_s19] sm:$0x1] %v623_v2 }
  0x24 LB: >> { %v164_v3 = vlaneseq  ;;  %v713_v5 = vstv %s621_s9  ;;  %s191_s15 = scalar_lea.vmem %s700_s20, %s621_s9 [#allocation1]  ;;  %s249_s21 = scalar_lea.vmem [#allocation3], %s621_s9  ;;  %v624_v59 = vmov 1.0   ;;  %s621_s9 = sphi %s704_s9, %s162_s9  }
  0x25   : >> { %s266_s23 = smov [#allocation3] }
  0x26   : >> { %v710_v4 = vshrl.u32 %v164_v3, 7  ;;  %v243_v48 = vand.u32 127, %v164_v3 }
  0x28   : >> { %vm168_vm0 = vcmp.gt.s32.totalorder %v710_v4, %v713_v5  ;;  %vm169_vm1 = vcmp.lt.s32.totalorder %v710_v4, 5  ;;  %v230_v4 = vmov %v710_v4  ;;  %vm731_vm12 = vcmp.eq.s32.totalorder %v243_v48, %v713_v5 }
  0x29   : >> { %v163_v6 = vld [vmem:[%s700_s20] sm:$0xff]  ;;  %vm170_vm2 = vmand %vm168_vm0, %vm169_vm1  ;;  %v192_v15 = vld [vmem:[%s191_s15] ss:$0 sm:$0xff]  ;;  %s227_s20 = smov %s700_s20  ;;  %vm234_vm9 = vcmp.gt.s32.totalorder %v230_v4, %v713_v5  ;;  %vm235_vm10 = vcmp.lt.s32.totalorder %v230_v4, 5  ;;  %v269_v4 = vmov %v710_v4  ;;  %vm295_vm15 = vcmp.gt.s32.totalorder %v243_v48, %v713_v5 }
  0x2a   : >> { %v171_v7 = vsel %vm170_vm2, %v163_v6, 0.0  ;;  %v193_v16 = vand.u32 2147483647, %v192_v15  ;;  %vm218_vm8 = vcmp.lt.f32.partialorder %v192_v15, 0.0  ;;  %v231_v45 = vld [vmem:[%s227_s20] sm:$0xff]  ;;  %vm236_vm11 = vmand %vm234_vm9, %vm235_vm10  ;;  %s265_s20 = smov %s700_s20  ;;  %vm274_vm13 = vcmp.lt.s32.totalorder %v269_v4, 5 }
  0x2b   : >> { %v172_v8 = vmul.f32 %v171_v7, %v171_v7  ;;  %v237_v49 = vsel %vm236_vm11, %v231_v45, 0.0  ;;  %v262_v60 = vld [vmem:[%s698_s19] ss:$0 sm:$0xff]  ;;  %v286_v4 = vmov %v710_v4 }
  0x2c   : >> { %v194_v21 = vmax.f32 %v193_v16, 0.0  ;;  %v272_v63 = vld [vmem:[%s265_s20] sm:$0xff]  ;;  %s282_s20 = smov %s265_s20  ;;  %vm303_vm14 = vcmp.ge.s32.totalorder %v286_v4, %v713_v5 }
  0x2d   : >> { %v173_v9 = vrot.slane %v172_v8, 4  ;;  %vm304_vm0 = vmand %vm731_vm12, %vm303_vm14  ;;  %s307_s24 = scalar_lea.vmem %s282_s20, %s621_s9  ;;  %s162_s9 = sadd.s32 1, %s621_s9  }
  0x2e   : >> { %p159_p9 = scmp.ge.s32.totalorder %s162_s9, 5  }
  0x2f   : >> { %v174_v10 = vadd.f32 %v173_v9, %v172_v8  ;;  %s510_s26 = sshll.u32 (%p159_p9), %s609_s11, 3 }
  0x30   : > { %s326_s29 = scalar_lea.vmem (%p159_p9), %s791_s1, %s510_s26 }
  0x31   : >> { %v175_v11 = vrot.slane %v174_v10, 2 }
  0x33   : >> { %v176_v12 = vadd.f32 %v175_v11, %v174_v10 }
  0x35   : >> { %v177_v13 = vrot.slane %v176_v12, 1 }
  0x37   : >> { %v178_v14 = vadd.f32 %v177_v13, %v176_v12  ;;  %v293_v13 = vld [vmem:[%s282_s20] sm:$0xff] }
  0x39   : >> { %565 = vrsqrt.f32 %v178_v14  ;;  %vm181_vm3 = vcmp.eq.f32.partialorder %v178_v14, inf  ;;  %v184_v18 = vand.u32 2147483648, %v178_v14  ;;  %vm183_vm4 = vcmp.eq.f32.partialorder %v178_v14, 0.0 }
  0x43   : >> { %v566_v17 = vpop.eup %565 }
  0x44   : >> { %v180_v19 = vmul.f32 %v566_v17, %v178_v14 }
  0x46   : >> { %v182_v20 = vsel %vm181_vm3, %v178_v14, %v180_v19 }
  0x47   : >> { %v185_v22 = vsel %vm183_vm4, %v184_v18, %v182_v20 }
  0x48   : >> { %v195_v23 = vand.u32 2147483647, %v185_v22 }
  0x4a   : >> { %v196_v24 = vmax.f32 %v194_v21, %v195_v23 }
  0x4c   : >> { %567 = vrcp.f32 %v196_v24  ;;  %vm208_vm7 = vcmp.eq.f32.partialorder %v196_v24, 0.0 }
  0x56   : >> { %v568_v25 = vpop.eup %567 }
  0x57   : >> { %v198_v26 = vmul.f32 %v568_v25, %v193_v16  ;;  %v201_v27 = vmul.f32 0.0, %v568_v25  ;;  %v205_v28 = vmul.f32 %v568_v25, %v195_v23 }
  0x59   : >> { %v199_v29 = vmul.f32 %v198_v26, %v198_v26  ;;  %v202_v30 = vmul.f32 %v201_v27, %v201_v27  ;;  %v206_v31 = vmul.f32 %v205_v28, %v205_v28 }
  0x5b   : >> { %v203_v32 = vadd.f32 %v202_v30, %v199_v29 }
  0x5d   : >> { %v207_v33 = vadd.f32 %v206_v31, %v203_v32 }
  0x5f   : >> { %569 = vrsqrt.f32 %v207_v33  ;;  %vm211_vm5 = vcmp.eq.f32.partialorder %v207_v33, inf  ;;  %v214_v35 = vand.u32 2147483648, %v207_v33  ;;  %vm213_vm6 = vcmp.eq.f32.partialorder %v207_v33, 0.0 }
  0x69   : >> { %v570_v34 = vpop.eup %569 }
  0x6a   : >> { %v210_v36 = vmul.f32 %v570_v34, %v207_v33 }
  0x6c   : >> { %v212_v37 = vsel %vm211_vm5, %v207_v33, %v210_v36 }
  0x6d   : >> { %v215_v38 = vsel %vm213_vm6, %v214_v35, %v212_v37 }
  0x6e   : >> { %v216_v39 = vmul.f32 %v215_v38, %v196_v24 }
  0x70   : >> { %v217_v40 = vsel %vm208_vm7, 0.0, %v216_v39 }
  0x71   : >> { %v219_v41 = vxor.u32 2147483648, %v217_v40 }
  0x73   : >> { %v220_v42 = vsel %vm218_vm8, %v217_v40, %v219_v41 }
  0x74   : >> { %v723_v43 = vsel %vm183_vm4, %v192_v15, %v220_v42  ;;  %571 = vrcp.f32 %v220_v42  ;;  %v221_v46 = vsub.f32 %v220_v42, %v192_v15 }
  0x75   : >> { %v226_v44 = vsub.f32 %v192_v15, %v723_v43 }
  0x77   : >> { %573 = vrcp.f32 %v226_v44 }
  0x7e   : >> { %v572_v47 = vpop.eup %571 }
  0x7f   : >> { %v223_v50 = vmul.f32 %v572_v47, %v221_v46 }
  0x81   : >> { %v574_v51 = vpop.eup %573  ;;  %v225_v55 = vsel %vm183_vm4, 0.0, %v223_v50 }
  0x82   : >> { %v239_v52 = vmul.f32 %v574_v51, %v237_v49  ;;  %v255_v57 = vsel %vm731_vm12, %v225_v55, 0.0 }
  0x84   : >> { %v240_v54 = vsel %vm183_vm4, 0.0, %v239_v52 }
  0x85   : >> { %v245_v56 = vsel %vm731_vm12, %v240_v54, 0.0 }
  0x86   : >> { %246 = vadd.xlane.f32.xlu0 %v245_v56 }
  0x8a   : >> { %256 = vadd.xlane.f32.xlu0 %v255_v57 }
 0x113   : >> { %v247_v58 = vpop.xlane.xlu0 %246 }
 0x114   : >> { %248 = vst [vmem:[#allocation3] sm:$0xff] %v247_v58 }
 0x115   : >> { %250 = vst [vmem:[%s249_s21] sm:$0x1] %v624_v59 }
 0x117   : >> { %v257_v61 = vpop.xlane.xlu0 %256 }
 0x118   : >> { %v263_v62 = vsel %vm731_vm12, %v257_v61, %v262_v60 }
 0x119   : >> { %264 = vst [vmem:[%s698_s19] sm:$0x1] %v263_v62 }
 0x11c   : >> { %v271_v0 = vld [vmem:[%s266_s23] sm:$0xff]  ;;  %s283_s23 = smov %s266_s23 }
 0x11d   : >> { %v273_v1 = vmul.f32 %v272_v63, %v271_v0  ;;  %v291_v12 = vld [vmem:[%s283_s23] sm:$0xff] }
 0x11f   : >> { %v275_v2 = vsel %vm274_vm13, %v273_v1, 0.0 }
 0x120   : >> { %v276_v3 = vrot.slane %v275_v2, 4 }
 0x122   : >> { %v277_v6 = vadd.f32 %v276_v3, %v275_v2 }
 0x124   : >> { %v278_v7 = vrot.slane %v277_v6, 2 }
 0x126   : >> { %v279_v8 = vadd.f32 %v278_v7, %v277_v6 }
 0x128   : >> { %v280_v9 = vrot.slane %v279_v8, 1 }
 0x12a   : >> { %v281_v10 = vadd.f32 %v280_v9, %v279_v8 }
 0x12c   : >> { %v287_v11 = vmul.f32 %v281_v10, %v257_v61 }
 0x12e   : >> { %v292_v14 = vmul.f32 %v291_v12, %v287_v11 }
 0x130   : >> { %v296_v15 = vsub.f32 %v293_v13, %v292_v14 }
 0x132   : >> { %v297_v16 = vsel %vm295_vm15, %v296_v15, %v293_v13 }
 0x133   : >> { %v305_v17 = vsel %vm304_vm0, %v291_v12, %v297_v16 }
 0x134   : >> { %306 = vst [vmem:[%s282_s20] sm:$0xff] %v305_v17 }
 0x137   : > { %161 = sbr.rel (!%p159_p9) target bundleno = 36 (0x24), region = 179 }
 0x13b   : >> { %v308_v18 = vld [vmem:[%s307_s24] ss:$0 sm:$0xff] }
 0x13c   : >> { %v313_v19 = vsel %vm731_vm12, %v723_v43, %v308_v18 }
 0x13d   : >> { %314 = vst [vmem:[%s307_s24] sm:$0x1] %v313_v19 }
 0x13e   : > { %p362_p10 = scmp.lt.s32.totalorder (%p675_p3), %s609_s11, 0  ;;  %s363_s30 = ssub.s32 (%p675_p3), 0, %s609_s11  ;;  %v397_v5 = vld [vmem:[%s145_s18] sm:$0xff] (%p675_p3) }
 0x13f   : > { %361 = sbr.rel (!%p675_p3) target bundleno = 330 (0x14a), region = 99  ;;  %s511_s3 = smin.u32 (%p675_p3), %s609_s11, %s363_s30 }
 0x140   : > { %s365_s4 = sshrl.u32 (%p675_p3), %s511_s3, 3 }
 0x141   : > { %s366_s5 = ssub.s32 (%p675_p3), 0, %s365_s4 }
 0x144   : > { %v354_v4 = vld [vmem:[%s700_s20] sm:$0xff] }
 0x145   : > { %355 = vst [vmem:[%s326_s29] sm:$0xff] %v354_v4 }
 0x146   : > { %s803_s5 = smov (!%p362_p10, %s366_s5), %s365_s4 }
 0x147   : > { %s512_s6 = sshll.u32 %s803_s5, 3 }
 0x148   : > { %s369_s17 = scalar_lea.vmem %s792_s2, %s512_s6 }
 0x149   : > { %398 = vst [vmem:[%s369_s17] sm:$0xff] %v397_v5 }
 0x14a PF: > { %s9_s13 = sadd.s32 1, %s617_s13   ;;  %s796_s9 = smov %s605_s10 }
 0x14b   : > { %p6_p11 = scmp.ge.s32.totalorder %s9_s13, 10   ;;  %s797_s10 = smov %s681_s25 }
 0x14c   : > { %s798_s11 = smov %s613_s12  ;;  %s799_s12 = smov %s801_s14 }
 0x14d   :  { %8 = sbr.rel (!%p6_p11) target bundleno = 3 (0x3), region = 190 }

// kernel: custom-call.62
= control target key start
LH: loop header
LB: loop body
LE: loop exit
PB: predicated region body
PF: predicated region fallthrough
CT: control target
= control target key end

     0   :  { %4 = vsyncpa [#allocation1], 0  ;;  %s1190_s0 = inlined_call_operand.hbm [shape: f32[4,32,3], index: 0, kind: input, shape index: {}]   ;;  %s1191_s1 = inlined_call_operand.vmem [shape: f32[4,32,3], index: 1, kind: output, shape index: {0}]   ;;  %s1192_s2 = inlined_call_operand.vmem [shape: f32[4,3], index: 2, kind: output, shape index: {1}]  }
   0x1   :  { %6 = vsyncpa [#allocation1 + $0x1], 0  ;;  %s903_s9 = smov 0   ;;  %s905_s10 = smov 0  }
   0x2   :  { %s907_s11 = smov 0   ;;  %s909_s12 = smov 0  }
   0x3   :  { %s911_s13 = smov 0  }
   0x4 LB: > { %s689_s14 = sadd.s32 4294967295, %s877_s13   ;;  %s31_s15 = sadd.s32 1, %s873_s12  ;;  %s877_s13 = sphi %s911_s13, %s12_s13   ;;  %s873_s12 = sphi %s909_s12, %s1208_s12   ;;  %s869_s11 = sphi %s907_s11, %s1207_s11   ;;  %s865_s10 = sphi %s905_s10, %s1206_s10   ;;  %s861_s9 = sphi %s903_s9, %s1205_s9  }
   0x5   : > { %p33_p0 = scmp.ge.s32.totalorder %s31_s15, 4  ;;  %s36_s16 = ssub.s32 0, %s873_s12 }
   0x6   : > { %s50_s17 = sadd.s32 1, %s865_s10  ;;  %s691_s18 = smin.u32 %s873_s12, %s36_s16 }
   0x7   : > { %s1210_s15 = smov (%p33_p0, %s31_s15), 0  ;;  %p60_p1 = scmp.ne.s32.totalorder %s865_s10, %s861_s9 }
   0x8   : > { %s38_s19 = sshrl.u32 %s691_s18, 3  ;;  %s42_s20 = ssub.s32 0, %s1210_s15 }
   0x9   : > { %s692_s21 = smin.u32 %s42_s20, %s1210_s15  ;;  %p61_p2 = scmp.eq.s32.totalorder %s689_s14, 3 }
   0xa   : > { %s44_s22 = sshrl.u32 %s692_s21, 3  ;;  %p742_p4 = scmp.lt.s32.totalorder %s877_s13, 4 }
   0xb   : > { %p941_p3 = por %p61_p2, %p60_p1  ;;  %s84_s24 = sand.u32 1, %s877_s13  }
   0xc   : > { %s47_s25 = ssub.s32 %s38_s19, %s44_s22  ;;  %s695_s26 = sshll.u32 %s84_s24, 5 }
   0xd   : > { %p48_p5 = scmp.eq.s32.totalorder %s47_s25, 0  ;;  %s738_s27 = sshll.u32 %s873_s12, 9 }
   0xe   : > { %s954_s3 = scalar_lea.hbm %s1190_s0, %s738_s27  ;;  %s88_s4 = scalar_lea.vmem [#allocation0], %s695_s26 }
   0xf   : > { %s949_s28 = scalar_select %p48_p5, %s865_s10, %s50_s17  }
  0x10   : > { %s98_s5 = sshll.u32 %s88_s4, 4  ;;  %s959_s6 = scalar_lea.sflag [#allocation1], %s84_s24  ;;  %s956_s5 = int_to_ptr.vmem [resolvable:$true] %s98_s5 }
  0x11   : > { %s805_s7 = scalar_lea.hbm %s954_s3, 512  ;;  %s809_s17 = scalar_lea.hbm %s1190_s0, 2048 }
  0x12   : > { %p806_p7 = scmp.ne.s32.totalorder %s954_s3, %s805_s7  ;;  %p810_p10 = scmp.lt.u32.totalorder %s954_s3, %s1190_s0 }
  0x13   : > { %p811_p11 = scmp.lt.u32.totalorder %s809_s17, %s805_s7  ;;  %p813_p13 = scmp.lt.u32.totalorder %s805_s7, %s954_s3 }
  0x14   : > { %p807_p8 = pnand %p806_p7, %p742_p4 }
  0x15   : > { %p812_p12 = por %p811_p11, %p810_p10 }
  0x16   : > { %p808_p9 = pneg %p807_p8 }
  0x17   : > { %p814_p0 = por %p813_p13, %p812_p12 }
  0x19   : > { %p815_p1 = pnand %p814_p0, %p808_p9 }
  0x1b   : > { %818 = shalt.err (!%p815_p1)
}
  0x1c   : > { %s819_s20 = scalar_lea.vmem %s956_s5, 512  ;;  %s883_s21 = smov [#allocation0]  }
  0x1d   : > { %p820_p2 = scmp.ne.s32.totalorder %s956_s5, %s819_s20  ;;  %s823_s22 = sshll.u32 %s883_s21, 4  ;;  %s824_s22 = int_to_ptr.vmem [resolvable:$false] %s823_s22 }
  0x1e   : > { %s825_s24 = scalar_lea.vmem %s824_s22, 1024  ;;  %p826_p8 = scmp.lt.s32.totalorder %s956_s5, %s824_s22 }
  0x1f   : > { %p821_p5 = pnand %p820_p2, %p742_p4  ;;  %p827_p6 = scmp.lt.s32.totalorder %s825_s24, %s819_s20 }
  0x21   : > { %p822_p7 = pneg %p821_p5  ;;  %p828_p10 = por %p827_p6, %p826_p8 }
  0x23   : > { %p829_p11 = pnand %p828_p10, %p822_p7 }
  0x25   : > { %832 = shalt.err (!%p829_p11)
}
  0x26   : > { %s884_s25 = smov 128   ;;  %s885_s26 = smov 8  }
  0x27   : > { %741 = dma.hbm_to_vmem [thread:$0]  (%p742_p4), %s954_s3, 512, %s956_s5, %s959_s6, %s884_s25, %s884_s25, %s885_s26  }
  0x28   : > { %p106_p9 = scmp.lt.s32.totalorder %s877_s13, 5  ;;  %p1194_p12 = scmp.ge.s32.totalorder %s877_s13, 1 }
  0x2a   : > { %p107_p13 = pnand %p1194_p12, %p106_p9 }
  0x2c   : > { %110 = sbr.rel (%p107_p13) target bundleno = 372 (0x174), region = 20 }
  0x33   : > { %s112_s27 = sand.u32 1, %s689_s14  }
  0x34   : > { %s699_s29 = sshll.u32 %s112_s27, 5  ;;  %s113_s30 = scalar_lea.sflag [#allocation1], %s112_s27 }
  0x35   : > { %s116_s4 = scalar_lea.vmem [#allocation0], %s699_s29 }
  0x36   : > { %857 = dma.done.wait %s113_s30, 512  }
  0x37   : > { %858 = vsyncadd %s113_s30, 4294966784  ;;  %s141_s7 = sand.u32 7, %s869_s11   ;;  %s130_s8 = sand.u32 1, %s861_s9   ;;  %v886_v0 = vmov 0.0   ;;  %v143_v1 = vld [vmem:[%s116_s4] sm:$0xff]  ;;  %v702_v2 = vld [vmem:[%s116_s4 + $0x8] sm:$0xff] }
  0x38   : > { %s990_s16 = scalar_lea.vmem [#allocation3], %s141_s7  ;;  %s993_s3 = sshll.u32 %s130_s8, 2  ;;  %v704_v3 = vld [vmem:[%s116_s4 + $0x10] sm:$0xff]  ;;  %v706_v4 = vld [vmem:[%s116_s4 + $0x18] sm:$0xff] }
  0x39   : > { %157 = vst [vmem:[%s990_s16] sm:$0x1] %v886_v0  ;;  %s995_s14 = scalar_lea.vmem [#allocation2], %s699_s29  ;;  %s132_s9 = scalar_lea.vmem [#allocation4], %s993_s3 }
  0x3a   : > { %144 = vst [vmem:[%s995_s14] sm:$0xff] %v143_v1  ;;  %703 = vst [vmem:[%s995_s14 + $0x8] sm:$0xff] %v702_v2  ;;  %s1002_s5 = smov 0  }
  0x3b   : > { %705 = vst [vmem:[%s995_s14 + $0x10] sm:$0xff] %v704_v3  ;;  %707 = vst [vmem:[%s995_s14 + $0x18] sm:$0xff] %v706_v4 }
  0x3c LB: >> { %v165_v5 = vlaneseq  ;;  %v1012_v8 = vstv %s881_s5  ;;  %s222_s6 = scalar_lea.vmem %s995_s14, %s881_s5 [#allocation2]  ;;  %s334_s17 = scalar_lea.vmem [#allocation5], %s881_s5  ;;  %s881_s5 = sphi %s1002_s5, %s163_s5  }
  0x3d   : >> { %s351_s18 = smov [#allocation5] }
  0x3e   : >> { %v1009_v7 = vshrl.u32 %v165_v5, 7 }
  0x40   : >> { %vm169_vm0 = vcmp.gt.s32.totalorder %v1009_v7, %v1012_v8  ;;  %v176_v10 = vadd.s32 8, %v1009_v7  ;;  %v186_v12 = vadd.s32 16, %v1009_v7  ;;  %v196_v14 = vadd.s32 24, %v1009_v7 }
  0x41   : >> { %v164_v6 = vld [vmem:[%s995_s14] sm:$0xff]  ;;  %v708_v9 = vld [vmem:[%s995_s14 + $0x8] sm:$0xff]  ;;  %v261_v7 = vmov %v1009_v7 }
  0x42   : >> { %v709_v11 = vld [vmem:[%s995_s14 + $0x10] sm:$0xff]  ;;  %v710_v13 = vld [vmem:[%s995_s14 + $0x18] sm:$0xff]  ;;  %v170_v15 = vsel %vm169_vm0, %v164_v6, 0.0  ;;  %vm178_vm1 = vcmp.gt.s32.totalorder %v176_v10, %v1012_v8  ;;  %vm188_vm2 = vcmp.gt.s32.totalorder %v186_v12, %v1012_v8  ;;  %vm198_vm3 = vcmp.gt.s32.totalorder %v196_v14, %v1012_v8  ;;  %v1030_v32 = vld [vmem:[%s222_s6] ss:$0 sm:$0xff]  ;;  %s258_s14 = smov %s995_s14 }
  0x43   : >> { %v171_v16 = vmul.f32 %v170_v15, %v170_v15  ;;  %v179_v17 = vsel %vm178_vm1, %v708_v9, 0.0  ;;  %v189_v18 = vsel %vm188_vm2, %v709_v11, 0.0  ;;  %v201_v19 = vsel %vm198_vm3, %v710_v13, 0.0  ;;  %v713_v1 = vld [vmem:[%s258_s14 + $0x10] sm:$0xff]  ;;  %v262_v2 = vld [vmem:[%s258_s14] sm:$0xff]  ;;  %v714_v3 = vld [vmem:[%s258_s14 + $0x18] sm:$0xff] }
  0x44   : >> { %v180_v20 = vmul.f32 %v179_v17, %v179_v17  ;;  %v190_v21 = vmul.f32 %v189_v18, %v189_v18  ;;  %v202_v23 = vmul.f32 %v201_v19, %v201_v19  ;;  %v224_v33 = vand.u32 2147483647, %v1030_v32  ;;  %v712_v4 = vld [vmem:[%s258_s14 + $0x8] sm:$0xff]  ;;  %s1087_s14 = smov %s995_s14 }
  0x45   : >> { %vm249_vm9 = vcmp.lt.f32.partialorder %v1030_v32, 0.0  ;;  %v316_v62 = vadd.s32 24, %v261_v7  ;;  %v298_v63 = vadd.s32 16, %v261_v7  ;;  %v280_v0 = vadd.s32 8, %v261_v7 }
  0x46   : >> { %v181_v22 = vadd.f32 %v180_v20, %v171_v16  ;;  %v225_v38 = vmax.f32 %v224_v33, 0.0  ;;  %vm265_vm12 = vcmp.gt.s32.totalorder %v261_v7, %v1012_v8  ;;  %v1055_v6 = vand.u32 127, %v165_v5 }
  0x47   : >> { %vm318_vm10 = vcmp.gt.s32.totalorder %v316_v62, %v1012_v8  ;;  %vm319_vm11 = vcmp.lt.s32.totalorder %v316_v62, 32  ;;  %vm300_vm13 = vcmp.gt.s32.totalorder %v298_v63, %v1012_v8  ;;  %vm282_vm15 = vcmp.gt.s32.totalorder %v280_v0, %v1012_v8 }
  0x48   : >> { %v191_v24 = vadd.f32 %v190_v21, %v181_v22  ;;  %vm320_vm14 = vmand %vm318_vm10, %vm319_vm11  ;;  %v266_v9 = vsel %vm265_vm12, %v262_v2, 0.0  ;;  %v301_v10 = vsel %vm300_vm13, %v713_v1, 0.0  ;;  %v283_v12 = vsel %vm282_vm15, %v712_v4, 0.0 }
  0x49   : >> { %v321_v11 = vsel %vm320_vm14, %v714_v3, 0.0  ;;  %vm1060_vm0 = vcmp.eq.s32.totalorder %v1055_v6, %v1012_v8  ;;  %v354_v7 = vmov %v1009_v7 }
  0x4a   : >> { %v203_v25 = vadd.f32 %v202_v23, %v191_v24 }
  0x4c   : >> { %v204_v26 = vrot.slane %v203_v25, 4 }
  0x4e   : >> { %v205_v27 = vadd.f32 %v204_v26, %v203_v25 }
  0x50   : >> { %v206_v28 = vrot.slane %v205_v27, 2 }
  0x52   : >> { %v207_v29 = vadd.f32 %v206_v28, %v205_v27 }
  0x54   : >> { %v208_v30 = vrot.slane %v207_v29, 1 }
  0x56   : >> { %v1025_v31 = vadd.f32 %v208_v30, %v207_v29 }
  0x58   : >> { %795 = vrsqrt.f32 %v1025_v31  ;;  %vm212_vm4 = vcmp.eq.f32.partialorder %v1025_v31, inf  ;;  %v215_v35 = vand.u32 2147483648, %v1025_v31  ;;  %vm214_vm5 = vcmp.eq.f32.partialorder %v1025_v31, 0.0 }
  0x62   : >> { %v796_v34 = vpop.eup %795 }
  0x63   : >> { %v211_v36 = vmul.f32 %v796_v34, %v1025_v31 }
  0x65   : >> { %v213_v37 = vsel %vm212_vm4, %v1025_v31, %v211_v36  ;;  %v887_v31 = vmov 1.0   ;;  %v347_v36 = vld [vmem:[%s990_s16] ss:$0 sm:$0xff] }
  0x66   : >> { %v216_v39 = vsel %vm214_vm5, %v215_v35, %v213_v37 }
  0x67   : >> { %v226_v40 = vand.u32 2147483647, %v216_v39  ;;  %v357_v39 = vld [vmem:[%s1087_s14] sm:$0xff] }
  0x69   : >> { %v227_v41 = vmax.f32 %v225_v38, %v226_v40 }
  0x6b   : >> { %797 = vrcp.f32 %v227_v41  ;;  %vm239_vm8 = vcmp.eq.f32.partialorder %v227_v41, 0.0 }
  0x75   : >> { %v798_v42 = vpop.eup %797 }
  0x76   : >> { %v229_v43 = vmul.f32 %v798_v42, %v224_v33  ;;  %v232_v44 = vmul.f32 0.0, %v798_v42  ;;  %v236_v45 = vmul.f32 %v798_v42, %v226_v40  ;;  %v716_v40 = vld [vmem:[%s1087_s14 + $0x8] sm:$0xff]  ;;  %v373_v42 = vadd.s32 24, %v354_v7 }
  0x77   : >> { %v392_v7 = vmov %v1009_v7 }
  0x78   : >> { %v230_v46 = vmul.f32 %v229_v43, %v229_v43  ;;  %v233_v47 = vmul.f32 %v232_v44, %v232_v44  ;;  %v237_v48 = vmul.f32 %v236_v45, %v236_v45  ;;  %v720_v43 = vld [vmem:[%s1087_s14 + $0x18] sm:$0xff]  ;;  %vm379_vm1 = vcmp.lt.s32.totalorder %v373_v42, 32 }
  0x79   : >> { %v434_v63 = vadd.s32 16, %v392_v7  ;;  %vm409_vm2 = vcmp.ge.s32.totalorder %v392_v7, %v1012_v8  ;;  %v455_v0 = vadd.s32 24, %v392_v7 }
  0x7a   : >> { %v234_v49 = vadd.f32 %v233_v47, %v230_v46  ;;  %vm1108_vm4 = vmand %vm1060_vm0, %vm409_vm2 }
  0x7c   : >> { %v238_v50 = vadd.f32 %v237_v48, %v234_v49 }
  0x7e   : >> { %799 = vrsqrt.f32 %v238_v50  ;;  %vm242_vm6 = vcmp.eq.f32.partialorder %v238_v50, inf  ;;  %v245_v52 = vand.u32 2147483648, %v238_v50  ;;  %vm244_vm7 = vcmp.eq.f32.partialorder %v238_v50, 0.0 }
  0x88   : >> { %v800_v51 = vpop.eup %799 }
  0x89   : >> { %v241_v53 = vmul.f32 %v800_v51, %v238_v50 }
  0x8b   : >> { %v243_v54 = vsel %vm242_vm6, %v238_v50, %v241_v53  ;;  %vm472_vm6 = vcmp.ge.s32.totalorder %v455_v0, %v1012_v8 }
  0x8c   : >> { %v246_v55 = vsel %vm244_vm7, %v245_v52, %v243_v54  ;;  %vm1131_vm10 = vmand %vm1060_vm0, %vm472_vm6 }
  0x8d   : >> { %v247_v56 = vmul.f32 %v246_v55, %v227_v41  ;;  %v718_v41 = vld [vmem:[%s1087_s14 + $0x10] sm:$0xff]  ;;  %s1099_s14 = smov %s1087_s14 }
  0x8e   : >> { %v399_v2 = vld [vmem:[%s1099_s14] sm:$0xff]  ;;  %v722_v3 = vld [vmem:[%s1099_s14 + $0x8] sm:$0xff]  ;;  %v725_v4 = vld [vmem:[%s1099_s14 + $0x10] sm:$0xff]  ;;  %s476_s19 = scalar_lea.vmem %s1099_s14, %s881_s5  ;;  %s163_s5 = sadd.s32 1, %s881_s5  }
  0x8f   : >> { %v248_v57 = vsel %vm239_vm8, 0.0, %v247_v56  ;;  %vm401_vm8 = vcmp.gt.s32.totalorder %v1055_v6, %v1012_v8  ;;  %p160_p4 = scmp.ge.s32.totalorder %s163_s5, 3  }
  0x90   : >> { %v250_v58 = vxor.u32 2147483648, %v248_v57  ;;  %s739_s20 = sshll.u32 (%p160_p4), %s869_s11, 5 }
  0x91   : > { %s503_s24 = scalar_lea.vmem (%p160_p4), %s1191_s1, %s739_s20 }
  0x92   : >> { %v251_v59 = vsel %vm249_vm9, %v248_v57, %v250_v58 }
  0x93   : >> { %v1044_v60 = vsel %vm214_vm5, %v1030_v32, %v251_v59  ;;  %801 = vrcp.f32 %v251_v59  ;;  %v252_v13 = vsub.f32 %v251_v59, %v1030_v32 }
  0x94   : >> { %v257_v61 = vsub.f32 %v1030_v32, %v1044_v60 }
  0x96   : >> { %803 = vrcp.f32 %v257_v61  ;;  %v413_v61 = vadd.s32 8, %v392_v7 }
  0x98   : >> { %vm430_vm3 = vcmp.ge.s32.totalorder %v413_v61, %v1012_v8 }
  0x99   : >> { %vm1117_vm7 = vmand %vm1060_vm0, %vm430_vm3 }
  0x9d   : >> { %v802_v14 = vpop.eup %801 }
  0x9e   : >> { %v254_v5 = vmul.f32 %v802_v14, %v252_v13 }
  0xa0   : >> { %v804_v15 = vpop.eup %803  ;;  %v256_v29 = vsel %vm214_vm5, 0.0, %v254_v5 }
  0xa1   : >> { %v303_v17 = vmul.f32 %v804_v15, %v301_v10  ;;  %v268_v18 = vmul.f32 %v804_v15, %v266_v9  ;;  %v323_v19 = vmul.f32 %v804_v15, %v321_v11  ;;  %v285_v20 = vmul.f32 %v804_v15, %v283_v12  ;;  %v728_v11 = vld [vmem:[%s1099_s14 + $0x18] sm:$0xff] }
  0xa2   : >> { %v340_v30 = vsel %vm1060_vm0, %v256_v29, 0.0 }
  0xa3   : >> { %v304_v21 = vsel %vm214_vm5, 0.0, %v303_v17  ;;  %v269_v22 = vsel %vm214_vm5, 0.0, %v268_v18  ;;  %v324_v23 = vsel %vm214_vm5, 0.0, %v323_v19  ;;  %v286_v24 = vsel %vm214_vm5, 0.0, %v285_v20 }
  0xa4   : >> { %v309_v25 = vsel %vm1060_vm0, %v304_v21, 0.0  ;;  %v274_v26 = vsel %vm1060_vm0, %v269_v22, 0.0  ;;  %v329_v27 = vsel %vm1060_vm0, %v324_v23, 0.0  ;;  %v291_v28 = vsel %vm1060_vm0, %v286_v24, 0.0 }
  0xa5   : >> { %310 = vadd.xlane.f32.xlu1 %v309_v25  ;;  %275 = vadd.xlane.f32.xlu0 %v274_v26  ;;  %vm451_vm5 = vcmp.ge.s32.totalorder %v434_v63, %v1012_v8 }
  0xa6   : >> { %vm1125_vm9 = vmand %vm1060_vm0, %vm451_vm5 }
  0xa9   : >> { %330 = vadd.xlane.f32.xlu1 %v329_v27  ;;  %292 = vadd.xlane.f32.xlu0 %v291_v28 }
  0xad   : >> { %341 = vadd.xlane.f32.xlu0 %v340_v30 }
 0x132   : >> { %v311_v32 = vpop.xlane.xlu1 %310  ;;  %v276_v33 = vpop.xlane.xlu0 %275 }
 0x133   : >> { %313 = vst [vmem:[#allocation5 + $0x10] sm:$0xff] %v311_v32  ;;  %277 = vst [vmem:[#allocation5] sm:$0xff] %v276_v33 }
 0x136   : >> { %v331_v34 = vpop.xlane.xlu1 %330  ;;  %v293_v35 = vpop.xlane.xlu0 %292 }
 0x137   : >> { %333 = vst [vmem:[#allocation5 + $0x18] sm:$0xff] %v331_v34  ;;  %295 = vst [vmem:[#allocation5 + $0x8] sm:$0xff] %v293_v35 }
 0x138   : >> { %335 = vst [vmem:[%s334_s17] sm:$0x1] %v887_v31 }
 0x13a   : >> { %v342_v37 = vpop.xlane.xlu0 %341 }
 0x13b   : >> { %v348_v38 = vsel %vm1060_vm0, %v342_v37, %v347_v36 }
 0x13c   : >> { %349 = vst [vmem:[%s990_s16] sm:$0x1] %v348_v38 }
 0x13f   : >> { %v356_v44 = vld [vmem:[%s351_s18] sm:$0xff]  ;;  %v715_v45 = vld [vmem:[%s351_s18 + $0x8] sm:$0xff]  ;;  %v717_v46 = vld [vmem:[%s351_s18 + $0x10] sm:$0xff] }
 0x140   : >> { %v358_v47 = vmul.f32 %v357_v39, %v356_v44  ;;  %v364_v48 = vmul.f32 %v716_v40, %v715_v45  ;;  %v719_v49 = vld [vmem:[%s351_s18 + $0x18] sm:$0xff]  ;;  %v371_v52 = vmul.f32 %v718_v41, %v717_v46  ;;  %s389_s18 = smov %s351_s18 }
 0x141   : >> { %v378_v50 = vmul.f32 %v720_v43, %v719_v49  ;;  %v397_v9 = vld [vmem:[%s389_s18] sm:$0xff]  ;;  %v721_v13 = vld [vmem:[%s389_s18 + $0x8] sm:$0xff]  ;;  %v724_v14 = vld [vmem:[%s389_s18 + $0x10] sm:$0xff] }
 0x142   : >> { %v365_v51 = vadd.f32 %v364_v48, %v358_v47  ;;  %v727_v7 = vld [vmem:[%s389_s18 + $0x18] sm:$0xff] }
 0x143   : >> { %v380_v54 = vsel %vm379_vm1, %v378_v50, 0.0  ;;  %v487_v35 = vld [vmem:[#allocation3] sm:$0xf] (%p160_p4) }
 0x144   : >> { %v372_v53 = vadd.f32 %v371_v52, %v365_v51  ;;  %489 = vst [vmem:[%s132_s9] sm:$0xf] (%p160_p4), %v487_v35 }
 0x146   : >> { %v381_v55 = vadd.f32 %v380_v54, %v372_v53 }
 0x148   : >> { %v382_v56 = vrot.slane %v381_v55, 4 }
 0x14a   : >> { %v383_v57 = vadd.f32 %v382_v56, %v381_v55 }
 0x14c   : >> { %v384_v58 = vrot.slane %v383_v57, 2 }
 0x14e   : >> { %v385_v59 = vadd.f32 %v384_v58, %v383_v57 }
 0x150   : >> { %v386_v62 = vrot.slane %v385_v59, 1 }
 0x152   : >> { %v387_v1 = vadd.f32 %v386_v62, %v385_v59 }
 0x154   : >> { %v393_v12 = vmul.f32 %v387_v1, %v342_v37 }
 0x156   : >> { %v398_v17 = vmul.f32 %v397_v9, %v393_v12  ;;  %v418_v18 = vmul.f32 %v721_v13, %v393_v12  ;;  %v439_v19 = vmul.f32 %v724_v14, %v393_v12  ;;  %v460_v20 = vmul.f32 %v727_v7, %v393_v12 }
 0x158   : >> { %v402_v22 = vsub.f32 %v399_v2, %v398_v17  ;;  %v423_v23 = vsub.f32 %v722_v3, %v418_v18  ;;  %v444_v8 = vsub.f32 %v725_v4, %v439_v19  ;;  %v465_v6 = vsub.f32 %v728_v11, %v460_v20 }
 0x15a   : >> { %v403_v24 = vsel %vm401_vm8, %v402_v22, %v399_v2  ;;  %v424_v25 = vsel %vm401_vm8, %v423_v23, %v722_v3  ;;  %v445_v26 = vsel %vm401_vm8, %v444_v8, %v725_v4  ;;  %v466_v27 = vsel %vm401_vm8, %v465_v6, %v728_v11 }
 0x15b   : >> { %v411_v28 = vsel %vm1108_vm4, %v397_v9, %v403_v24  ;;  %v432_v29 = vsel %vm1117_vm7, %v721_v13, %v424_v25  ;;  %v453_v30 = vsel %vm1125_vm9, %v724_v14, %v445_v26  ;;  %v474_v32 = vsel %vm1131_vm10, %v727_v7, %v466_v27 }
 0x15c   : >> { %412 = vst [vmem:[%s1099_s14] sm:$0xff] %v411_v28  ;;  %723 = vst [vmem:[%s1099_s14 + $0x8] sm:$0xff] %v432_v29 }
 0x15d   : >> { %726 = vst [vmem:[%s1099_s14 + $0x10] sm:$0xff] %v453_v30  ;;  %729 = vst [vmem:[%s1099_s14 + $0x18] sm:$0xff] %v474_v32 }
 0x160   : > { %162 = sbr.rel (!%p160_p4) target bundleno = 60 (0x3c), region = 169 }
 0x164   : >> { %v477_v33 = vld [vmem:[%s476_s19] ss:$0 sm:$0xff] }
 0x165   : >> { %v482_v34 = vsel %vm1060_vm0, %v1044_v60, %v477_v33 }
 0x166   : >> { %483 = vst [vmem:[%s476_s19] sm:$0x1] %v482_v34 }
 0x167   : > { %p551_p6 = scmp.lt.s32.totalorder (%p941_p3), %s869_s11, 0  ;;  %s552_s25 = ssub.s32 (%p941_p3), 0, %s869_s11  ;;  %v574_v37 = vld [vmem:[%s132_s9] sm:$0xf] (%p941_p3) }
 0x168   : > { %s734_s26 = smin.u32 (%p941_p3), %s869_s11, %s552_s25 }
 0x169   : > { %550 = sbr.rel (!%p941_p3) target bundleno = 372 (0x174), region = 65  ;;  %s554_s27 = sshrl.u32 (%p941_p3), %s734_s26, 3 }
 0x16a   : > { %s555_s29 = ssub.s32 (%p941_p3), 0, %s554_s27 }
 0x16d   : > { %v537_v31 = vld [vmem:[%s995_s14] sm:$0xff]  ;;  %v539_v36 = vld [vmem:[%s995_s14 + $0x8] sm:$0xff]  ;;  %v541_v60 = vld [vmem:[%s995_s14 + $0x10] sm:$0xff] }
 0x16e   : > { %v543_v16 = vld [vmem:[%s995_s14 + $0x18] sm:$0xff]  ;;  %538 = vst [vmem:[%s503_s24] sm:$0xff] %v537_v31  ;;  %540 = vst [vmem:[%s503_s24 + $0x8] sm:$0xff] %v539_v36 }
 0x16f   : > { %542 = vst [vmem:[%s503_s24 + $0x10] sm:$0xff] %v541_v60  ;;  %544 = vst [vmem:[%s503_s24 + $0x18] sm:$0xff] %v543_v16 }
 0x170   : > { %s1212_s29 = smov (!%p551_p6, %s555_s29), %s554_s27 }
 0x171   : > { %s735_s30 = sshll.u32 %s1212_s29, 2 }
 0x172   : > { %s558_s8 = scalar_lea.vmem %s1192_s2, %s735_s30 }
 0x173   : > { %575 = vst [vmem:[%s558_s8] sm:$0xf] %v574_v37 }
 0x174 PF: > { %s12_s13 = sadd.s32 1, %s877_s13   ;;  %s1205_s9 = smov %s865_s10 }
 0x175   : > { %p9_p3 = scmp.ge.s32.totalorder %s12_s13, 6   ;;  %s1206_s10 = smov %s949_s28 }
 0x176   : > { %s1207_s11 = smov %s873_s12  ;;  %s1208_s12 = smov %s1210_s15 }
 0x177   :  { %11 = sbr.rel (!%p9_p3) target bundleno = 4 (0x4), region = 180 }
 0x17e   :  { %606 = vsyncpa [#allocation1], 1 }
 0x17f   :  { %608 = vsyncpa [#allocation1 + $0x1], 1 }

// kernel: custom-call.64
= control target key start
LH: loop header
LB: loop body
LE: loop exit
PB: predicated region body
PF: predicated region fallthrough
CT: control target
= control target key end

     0   :  { %s236_s6 = smov 0   ;;  %s263_s0 = inlined_call_operand.vmem [shape: f32[4,3,3], index: 0, kind: input, shape index: {}]   ;;  %s264_s1 = inlined_call_operand.vmem [shape: f32[4,3,3], index: 1, kind: output, shape index: {}]  }
   0x1 LB: > { %s198_s7 = sadd.s32 4294967295, %s224_s6   ;;  %p200_p0 = scmp.ge.s32.totalorder %s224_s6, 4  ;;  %s224_s6 = sphi %s236_s6, %s7_s6  }
   0x2   : > { %s23_s8 = sand.u32 (!%p200_p0), 1, %s224_s6   ;;  %s202_s9 = sshll.u32 (!%p200_p0), %s224_s6, 2 }
   0x3   : > { %21 = sbr.rel (%p200_p0) target bundleno = 10 (0xa), region = 16  ;;  %s201_s10 = sshll.u32 (!%p200_p0), %s23_s8, 2 }
   0x4   : > { %s27_s13 = scalar_lea.vmem (!%p200_p0), %s263_s0, %s202_s9  ;;  %s25_s14 = scalar_lea.vmem (!%p200_p0), [#allocation1], %s201_s10 }
   0x5   : > { %v43_v0 = vld [vmem:[%s27_s13] sm:$0xf] (!%p200_p0) }
   0x6   : > { %44 = vst [vmem:[%s25_s14] sm:$0xf] (!%p200_p0), %v43_v0 }
   0xa PF: > { %p203_p1 = scmp.ge.s32.totalorder %s224_s6, 1  ;;  %p60_p2 = scmp.lt.s32.totalorder %s224_s6, 5 }
   0xc   : > { %p61_p3 = pnand %p203_p1, %p60_p2 }
   0xd   : > { %s252_s15 = sand.u32 (!%p61_p3), 1, %s198_s7   ;;  %v82_v1 = vlaneseq (!%p61_p3)  ;;  %vm96_vm1 = vcmask (!%p61_p3), 23552   ;;  %s207_s19 = sshll.u32 (!%p61_p3), %s198_s7, 2 }
   0xe   : > { %64 = sbr.rel (%p61_p3) target bundleno = 334 (0x14e), region = 50  ;;  %s204_s16 = sshll.u32 (!%p61_p3), %s252_s15, 2 }
   0xf   : > { %s73_s17 = scalar_lea.vmem (!%p61_p3), [#allocation1], %s204_s16  ;;  %v83_v3 = vand.u32 (!%p61_p3), 127, %v82_v1  ;;  %v85_v4 = vshrl.u32 (!%p61_p3), %v82_v1, 7  ;;  %s77_s18 = scalar_lea.vmem (!%p61_p3), [#allocation3], %s204_s16 }
  0x10   : > { %v80_v2 = vld [vmem:[%s73_s17] sm:$0xf] (!%p61_p3)  ;;  %s128_s22 = scalar_lea.vmem (!%p61_p3), %s264_s1, %s207_s19 }
  0x11   : > { %81 = vst [vmem:[#allocation0] sm:$0xf] (!%p61_p3), %v80_v2  ;;  %vm91_vm0 = vcmp.eq.s32.totalorder (!%p61_p3), %v83_v3, 0  ;;  %vm87_vm2 = vcmp.eq.s32.totalorder (!%p61_p3), %v83_v3, %v85_v4  ;;  %vm100_vm3 = vcmp.eq.s32.totalorder (!%p61_p3), %v83_v3, 1  ;;  %vm111_vm4 = vcmp.eq.s32.totalorder (!%p61_p3), %v83_v3, 2 }
  0x18   : > { %v88_v5 = vld [vmem:[#allocation0] sm:$0xff] }
  0x19   : > { %v95_v6 = vld [vmem:[#allocation0 + $0x1] ss:$0 sm:$0xff]  ;;  %v92_v7 = vsel %vm91_vm0, %v88_v5, 1.0  ;;  %v106_v11 = vld [vmem:[#allocation0 + $0x2] ss:$0 sm:$0xff] }
  0x1a   : > { %v97_v8 = vsel %vm96_vm1, %v95_v6, 0.0  ;;  %v93_v9 = vsel %vm87_vm2, %v92_v7, 0.0  ;;  %v108_v12 = vsel %vm96_vm1, %v106_v11, 0.0 }
  0x1b   : > { %v101_v10 = vmul.f32 %v97_v8, %v93_v9 }
  0x1d   : > { %102 = vadd.xlane.f32.xlu0 %v101_v10 }
  0xaa   : > { %v103_v13 = vpop.xlane.xlu0 %102 }
  0xab   : > { %v104_v14 = vsel %vm100_vm3, %v103_v13, %v93_v9 }
  0xac   : > { %v112_v15 = vmul.f32 %v108_v12, %v104_v14 }
  0xae   : > { %113 = vadd.xlane.f32.xlu0 %v112_v15 }
 0x13b   : > { %v114_v16 = vpop.xlane.xlu0 %113 }
 0x13c   : > { %v115_v17 = vsel %vm111_vm4, %v114_v16, %v104_v14 }
 0x13d   : > { %116 = vst [vmem:[#allocation2] sm:$0xff] %v115_v17 }
 0x144   : > { %v120_v18 = vld [vmem:[#allocation2] sm:$0xf] }
 0x145   : > { %122 = vst [vmem:[%s77_s18] sm:$0xf] %v120_v18 }
 0x14c   : > { %v144_v19 = vld [vmem:[%s77_s18] sm:$0xf] }
 0x14d   : > { %145 = vst [vmem:[%s128_s22] sm:$0xf] %v144_v19 }
 0x14e PF: > { %s7_s6 = sadd.s32 1, %s224_s6  }
 0x14f   : > { %p4_p4 = scmp.ge.s32.totalorder %s7_s6, 6  }
 0x151   :  { %6 = sbr.rel (!%p4_p4) target bundleno = 1 (0x1), region = 112 }

// kernel: custom-call.240
= control target key start
LH: loop header
LB: loop body
LE: loop exit
PB: predicated region body
PF: predicated region fallthrough
CT: control target
= control target key end

     0   :  { %s645_s9 = smov 0   ;;  %s647_s10 = smov 0   ;;  %s795_s0 = inlined_call_operand.vmem [shape: f32[4,6,3], index: 0, kind: input, shape index: {}]   ;;  %s796_s1 = inlined_call_operand.vmem [shape: f32[4,6,3], index: 1, kind: output, shape index: {0}]   ;;  %s797_s2 = inlined_call_operand.vmem [shape: f32[4,3], index: 2, kind: output, shape index: {1}]  }
   0x1   :  { %s649_s11 = smov 0   ;;  %s651_s12 = smov 0  }
   0x2   :  { %s653_s13 = smov 0  }
   0x3 LB: > { %s28_s14 = sadd.s32 1, %s618_s12  ;;  %s500_s15 = sadd.s32 4294967295, %s622_s13   ;;  %s622_s13 = sphi %s653_s13, %s9_s13   ;;  %s618_s12 = sphi %s651_s12, %s804_s12   ;;  %s614_s11 = sphi %s649_s11, %s803_s11   ;;  %s610_s10 = sphi %s647_s10, %s802_s10   ;;  %s606_s9 = sphi %s645_s9, %s801_s9  }
   0x4   : > { %p30_p0 = scmp.ge.s32.totalorder %s28_s14, 4  ;;  %s33_s16 = ssub.s32 0, %s618_s12 }
   0x5   : > { %s502_s17 = smin.u32 %s618_s12, %s33_s16  ;;  %p57_p1 = scmp.ne.s32.totalorder %s610_s10, %s606_s9 }
   0x6   : > { %s806_s14 = smov (%p30_p0, %s28_s14), 0  ;;  %s35_s18 = sshrl.u32 %s502_s17, 3 }
   0x7   : > { %s39_s19 = ssub.s32 0, %s806_s14  ;;  %p58_p2 = scmp.eq.s32.totalorder %s500_s15, 3 }
   0x8   : > { %s503_s20 = smin.u32 %s39_s19, %s806_s14  ;;  %s47_s24 = sadd.s32 1, %s610_s10 }
   0x9   : > { %s41_s21 = sshrl.u32 %s503_s20, 3  ;;  %p680_p3 = por %p58_p2, %p57_p1 }
   0xa   : > { %s44_s23 = ssub.s32 %s35_s18, %s41_s21  ;;  %p505_p5 = scmp.ge.s32.totalorder %s622_s13, 4 }
   0xb   : > { %p45_p4 = scmp.eq.s32.totalorder %s44_s23, 0  ;;  %s82_s26 = sand.u32 (!%p505_p5), 1, %s622_s13  }
   0xc   : > { %80 = sbr.rel (%p505_p5) target bundleno = 19 (0x13), region = 16  ;;  %s507_s27 = sshll.u32 (!%p505_p5), %s618_s12, 3 }
   0xd   : > { %s686_s25 = scalar_select %p45_p4, %s610_s10, %s47_s24  }
   0xe   : > { %s506_s28 = sshll.u32 (!%p505_p5), %s82_s26, 3  ;;  %s88_s3 = scalar_lea.vmem (!%p505_p5), %s795_s0, %s507_s27 }
   0xf   : > { %v116_v0 = vld [vmem:[%s88_s3] sm:$0xff] (!%p505_p5)  ;;  %s84_s4 = scalar_lea.vmem (!%p505_p5), [#allocation0], %s506_s28 }
  0x10   : > { %117 = vst [vmem:[%s84_s4] sm:$0xff] (!%p505_p5), %v116_v0 }
  0x13 PF: > { %p508_p6 = scmp.ge.s32.totalorder %s622_s13, 1  ;;  %p122_p7 = scmp.lt.s32.totalorder %s622_s13, 5 }
  0x15   : > { %p123_p8 = pnand %p508_p6, %p122_p7 }
  0x17   : > { %126 = sbr.rel (%p123_p8) target bundleno = 330 (0x14a), region = 54 }
  0x1e   : > { %s129_s5 = sand.u32 1, %s500_s15   ;;  %s143_s6 = sand.u32 1, %s606_s9   ;;  %v628_v2 = vmov 0.0  }
  0x1f   : > { %s509_s7 = sshll.u32 %s129_s5, 3  ;;  %s697_s8 = sshll.u32 %s143_s6, 2 }
  0x20   : > { %s152_s16 = sand.u32 7, %s614_s11   ;;  %s131_s17 = scalar_lea.vmem [#allocation0], %s509_s7 }
  0x21   : > { %v154_v1 = vld [vmem:[%s131_s17] sm:$0xff]  ;;  %s700_s18 = scalar_lea.vmem [#allocation1], %s509_s7  ;;  %s703_s19 = scalar_lea.vmem [#allocation2], %s152_s16 }
  0x22   : > { %155 = vst [vmem:[%s700_s18] sm:$0xff] %v154_v1  ;;  %156 = vst [vmem:[%s703_s19] sm:$0x1] %v628_v2  ;;  %s145_s15 = scalar_lea.vmem [#allocation3], %s697_s8  ;;  %s707_s20 = smov 0  }
  0x23 LB: >> { %v164_v3 = vlaneseq  ;;  %v716_v5 = vstv %s626_s20  ;;  %s191_s9 = scalar_lea.vmem %s700_s18, %s626_s20 [#allocation1]  ;;  %s249_s21 = scalar_lea.vmem [#allocation4], %s626_s20  ;;  %v629_v59 = vmov 1.0   ;;  %s626_s20 = sphi %s707_s20, %s162_s20  }
  0x24   : >> { %s266_s23 = smov [#allocation4] }
  0x25   : >> { %v713_v4 = vshrl.u32 %v164_v3, 7  ;;  %v243_v48 = vand.u32 127, %v164_v3 }
  0x27   : >> { %vm168_vm0 = vcmp.gt.s32.totalorder %v713_v4, %v716_v5  ;;  %vm169_vm1 = vcmp.lt.s32.totalorder %v713_v4, 6  ;;  %v230_v4 = vmov %v713_v4  ;;  %vm734_vm12 = vcmp.eq.s32.totalorder %v243_v48, %v716_v5 }
  0x28   : >> { %vm170_vm2 = vmand %vm168_vm0, %vm169_vm1  ;;  %vm234_vm9 = vcmp.gt.s32.totalorder %v230_v4, %v716_v5  ;;  %vm235_vm10 = vcmp.lt.s32.totalorder %v230_v4, 6  ;;  %v269_v4 = vmov %v713_v4  ;;  %vm295_vm15 = vcmp.gt.s32.totalorder %v243_v48, %v716_v5 }
  0x29   : >> { %v163_v6 = vld [vmem:[%s700_s18] sm:$0xff]  ;;  %v192_v15 = vld [vmem:[%s191_s9] ss:$0 sm:$0xff]  ;;  %s227_s18 = smov %s700_s18  ;;  %vm236_vm11 = vmand %vm234_vm9, %vm235_vm10  ;;  %vm274_vm13 = vcmp.lt.s32.totalorder %v269_v4, 6  ;;  %v286_v4 = vmov %v713_v4 }
  0x2a   : >> { %v171_v7 = vsel %vm170_vm2, %v163_v6, 0.0  ;;  %v193_v16 = vand.u32 2147483647, %v192_v15  ;;  %vm218_vm8 = vcmp.lt.f32.partialorder %v192_v15, 0.0  ;;  %v231_v45 = vld [vmem:[%s227_s18] sm:$0xff]  ;;  %s265_s18 = smov %s700_s18  ;;  %vm303_vm14 = vcmp.ge.s32.totalorder %v286_v4, %v716_v5 }
  0x2b   : >> { %v172_v8 = vmul.f32 %v171_v7, %v171_v7  ;;  %v237_v49 = vsel %vm236_vm11, %v231_v45, 0.0  ;;  %v262_v60 = vld [vmem:[%s703_s19] ss:$0 sm:$0xff]  ;;  %vm304_vm0 = vmand %vm734_vm12, %vm303_vm14 }
  0x2c   : >> { %v194_v21 = vmax.f32 %v193_v16, 0.0  ;;  %v272_v63 = vld [vmem:[%s265_s18] sm:$0xff]  ;;  %s282_s18 = smov %s265_s18 }
  0x2d   : >> { %v173_v9 = vrot.slane %v172_v8, 4  ;;  %s307_s24 = scalar_lea.vmem %s282_s18, %s626_s20  ;;  %s162_s20 = sadd.s32 1, %s626_s20  }
  0x2e   : >> { %p159_p9 = scmp.ge.s32.totalorder %s162_s20, 3  }
  0x2f   : >> { %v174_v10 = vadd.f32 %v173_v9, %v172_v8  ;;  %s515_s26 = sshll.u32 (%p159_p9), %s614_s11, 3 }
  0x30   : > { %s332_s29 = scalar_lea.vmem (%p159_p9), %s796_s1, %s515_s26 }
  0x31   : >> { %v175_v11 = vrot.slane %v174_v10, 2 }
  0x33   : >> { %v176_v12 = vadd.f32 %v175_v11, %v174_v10 }
  0x35   : >> { %v177_v13 = vrot.slane %v176_v12, 1 }
  0x37   : >> { %v178_v14 = vadd.f32 %v177_v13, %v176_v12  ;;  %v293_v13 = vld [vmem:[%s282_s18] sm:$0xff] }
  0x39   : >> { %570 = vrsqrt.f32 %v178_v14  ;;  %vm181_vm3 = vcmp.eq.f32.partialorder %v178_v14, inf  ;;  %v184_v18 = vand.u32 2147483648, %v178_v14  ;;  %vm183_vm4 = vcmp.eq.f32.partialorder %v178_v14, 0.0 }
  0x43   : >> { %v571_v17 = vpop.eup %570 }
  0x44   : >> { %v180_v19 = vmul.f32 %v571_v17, %v178_v14 }
  0x46   : >> { %v182_v20 = vsel %vm181_vm3, %v178_v14, %v180_v19 }
  0x47   : >> { %v185_v22 = vsel %vm183_vm4, %v184_v18, %v182_v20 }
  0x48   : >> { %v195_v23 = vand.u32 2147483647, %v185_v22 }
  0x4a   : >> { %v196_v24 = vmax.f32 %v194_v21, %v195_v23 }
  0x4c   : >> { %572 = vrcp.f32 %v196_v24  ;;  %vm208_vm7 = vcmp.eq.f32.partialorder %v196_v24, 0.0 }
  0x56   : >> { %v573_v25 = vpop.eup %572 }
  0x57   : >> { %v198_v26 = vmul.f32 %v573_v25, %v193_v16  ;;  %v201_v27 = vmul.f32 0.0, %v573_v25  ;;  %v205_v28 = vmul.f32 %v573_v25, %v195_v23 }
  0x59   : >> { %v199_v29 = vmul.f32 %v198_v26, %v198_v26  ;;  %v202_v30 = vmul.f32 %v201_v27, %v201_v27  ;;  %v206_v31 = vmul.f32 %v205_v28, %v205_v28 }
  0x5b   : >> { %v203_v32 = vadd.f32 %v202_v30, %v199_v29 }
  0x5d   : >> { %v207_v33 = vadd.f32 %v206_v31, %v203_v32 }
  0x5f   : >> { %574 = vrsqrt.f32 %v207_v33  ;;  %vm211_vm5 = vcmp.eq.f32.partialorder %v207_v33, inf  ;;  %v214_v35 = vand.u32 2147483648, %v207_v33  ;;  %vm213_vm6 = vcmp.eq.f32.partialorder %v207_v33, 0.0 }
  0x69   : >> { %v575_v34 = vpop.eup %574 }
  0x6a   : >> { %v210_v36 = vmul.f32 %v575_v34, %v207_v33 }
  0x6c   : >> { %v212_v37 = vsel %vm211_vm5, %v207_v33, %v210_v36 }
  0x6d   : >> { %v215_v38 = vsel %vm213_vm6, %v214_v35, %v212_v37 }
  0x6e   : >> { %v216_v39 = vmul.f32 %v215_v38, %v196_v24 }
  0x70   : >> { %v217_v40 = vsel %vm208_vm7, 0.0, %v216_v39 }
  0x71   : >> { %v219_v41 = vxor.u32 2147483648, %v217_v40 }
  0x73   : >> { %v220_v42 = vsel %vm218_vm8, %v217_v40, %v219_v41 }
  0x74   : >> { %v726_v43 = vsel %vm183_vm4, %v192_v15, %v220_v42  ;;  %576 = vrcp.f32 %v220_v42  ;;  %v221_v46 = vsub.f32 %v220_v42, %v192_v15 }
  0x75   : >> { %v226_v44 = vsub.f32 %v192_v15, %v726_v43 }
  0x77   : >> { %578 = vrcp.f32 %v226_v44 }
  0x7e   : >> { %v577_v47 = vpop.eup %576 }
  0x7f   : >> { %v223_v50 = vmul.f32 %v577_v47, %v221_v46 }
  0x81   : >> { %v579_v51 = vpop.eup %578  ;;  %v225_v55 = vsel %vm183_vm4, 0.0, %v223_v50 }
  0x82   : >> { %v239_v52 = vmul.f32 %v579_v51, %v237_v49  ;;  %v255_v57 = vsel %vm734_vm12, %v225_v55, 0.0 }
  0x84   : >> { %v240_v54 = vsel %vm183_vm4, 0.0, %v239_v52 }
  0x85   : >> { %v245_v56 = vsel %vm734_vm12, %v240_v54, 0.0 }
  0x86   : >> { %246 = vadd.xlane.f32.xlu0 %v245_v56 }
  0x8a   : >> { %256 = vadd.xlane.f32.xlu0 %v255_v57 }
 0x113   : >> { %v247_v58 = vpop.xlane.xlu0 %246 }
 0x114   : >> { %248 = vst [vmem:[#allocation4] sm:$0xff] %v247_v58 }
 0x115   : >> { %250 = vst [vmem:[%s249_s21] sm:$0x1] %v629_v59 }
 0x117   : >> { %v257_v61 = vpop.xlane.xlu0 %256 }
 0x118   : >> { %v263_v62 = vsel %vm734_vm12, %v257_v61, %v262_v60 }
 0x119   : >> { %264 = vst [vmem:[%s703_s19] sm:$0x1] %v263_v62 }
 0x11c   : >> { %v271_v0 = vld [vmem:[%s266_s23] sm:$0xff]  ;;  %s283_s23 = smov %s266_s23 }
 0x11d   : >> { %v273_v1 = vmul.f32 %v272_v63, %v271_v0  ;;  %v291_v12 = vld [vmem:[%s283_s23] sm:$0xff] }
 0x11f   : >> { %v275_v2 = vsel %vm274_vm13, %v273_v1, 0.0 }
 0x120   : >> { %v276_v3 = vrot.slane %v275_v2, 4  ;;  %v318_v4 = vld [vmem:[#allocation2] sm:$0xf] (%p159_p9) }
 0x121   : > { %320 = vst [vmem:[%s145_s15] sm:$0xf] (%p159_p9), %v318_v4 }
 0x122   : >> { %v277_v6 = vadd.f32 %v276_v3, %v275_v2 }
 0x124   : >> { %v278_v7 = vrot.slane %v277_v6, 2 }
 0x126   : >> { %v279_v8 = vadd.f32 %v278_v7, %v277_v6 }
 0x128   : >> { %v280_v9 = vrot.slane %v279_v8, 1 }
 0x12a   : >> { %v281_v10 = vadd.f32 %v280_v9, %v279_v8 }
 0x12c   : >> { %v287_v11 = vmul.f32 %v281_v10, %v257_v61 }
 0x12e   : >> { %v292_v14 = vmul.f32 %v291_v12, %v287_v11 }
 0x130   : >> { %v296_v15 = vsub.f32 %v293_v13, %v292_v14 }
 0x132   : >> { %v297_v16 = vsel %vm295_vm15, %v296_v15, %v293_v13 }
 0x133   : >> { %v305_v17 = vsel %vm304_vm0, %v291_v12, %v297_v16 }
 0x134   : >> { %306 = vst [vmem:[%s282_s18] sm:$0xff] %v305_v17 }
 0x137   : > { %161 = sbr.rel (!%p159_p9) target bundleno = 35 (0x23), region = 175 }
 0x13b   : >> { %v308_v18 = vld [vmem:[%s307_s24] ss:$0 sm:$0xff] }
 0x13c   : >> { %v313_v19 = vsel %vm734_vm12, %v726_v43, %v308_v18 }
 0x13d   : >> { %314 = vst [vmem:[%s307_s24] sm:$0x1] %v313_v19 }
 0x13e   : > { %p368_p10 = scmp.lt.s32.totalorder (%p680_p3), %s614_s11, 0  ;;  %s369_s30 = ssub.s32 (%p680_p3), 0, %s614_s11  ;;  %v391_v20 = vld [vmem:[%s145_s15] sm:$0xf] (%p680_p3) }
 0x13f   : > { %367 = sbr.rel (!%p680_p3) target bundleno = 330 (0x14a), region = 99  ;;  %s516_s3 = smin.u32 (%p680_p3), %s614_s11, %s369_s30 }
 0x140   : > { %s371_s4 = sshrl.u32 (%p680_p3), %s516_s3, 3 }
 0x141   : > { %s372_s5 = ssub.s32 (%p680_p3), 0, %s371_s4 }
 0x144   : > { %v360_v5 = vld [vmem:[%s700_s18] sm:$0xff] }
 0x145   : > { %361 = vst [vmem:[%s332_s29] sm:$0xff] %v360_v5 }
 0x146   : > { %s808_s5 = smov (!%p368_p10, %s372_s5), %s371_s4 }
 0x147   : > { %s517_s6 = sshll.u32 %s808_s5, 2 }
 0x148   : > { %s375_s17 = scalar_lea.vmem %s797_s2, %s517_s6 }
 0x149   : > { %392 = vst [vmem:[%s375_s17] sm:$0xf] %v391_v20 }
 0x14a PF: > { %s9_s13 = sadd.s32 1, %s622_s13   ;;  %s801_s9 = smov %s610_s10 }
 0x14b   : > { %p6_p11 = scmp.ge.s32.totalorder %s9_s13, 6   ;;  %s802_s10 = smov %s686_s25 }
 0x14c   : > { %s803_s11 = smov %s618_s12  ;;  %s804_s12 = smov %s806_s14 }
 0x14d   :  { %8 = sbr.rel (!%p6_p11) target bundleno = 3 (0x3), region = 186 }

// kernel: _lambda_.4
= control target key start
LH: loop header
LB: loop body
LE: loop exit
PB: predicated region body
PF: predicated region fallthrough
CT: control target
= control target key end

     0   :  { %vm42_vm0 = vcmask 261120   ;;  %v426_v3 = vmov 0.0|0.0   ;;  %vm427_vm1 = vmmov 0   ;;  %v428_v4 = vmov 0.0   ;;  %s537_s2 = inlined_call_operand.vmem [shape: f32[32,128], index: 2, kind: input, shape index: {}]   ;;  %s538_s0 = inlined_call_operand.vmem [shape: f32[1,32,32], index: 0, kind: input, shape index: {}]   ;;  %s539_s3 = inlined_call_operand.vmem [shape: f32[32,128], index: 3, kind: input, shape index: {}]   ;;  %s540_s1 = inlined_call_operand.vmem [shape: f32[8,32], index: 1, kind: input, shape index: {}]   ;;  %s541_s4 = inlined_call_operand.vmem [shape: f32[1,128], index: 4, kind: input, shape index: {}]   ;;  %s542_s5 = inlined_call_operand.vmem [shape: f32[1,128], index: 5, kind: input, shape index: {}]   ;;  %s543_s6 = inlined_call_operand.vmem [shape: f32[1,8,128], index: 6, kind: output, shape index: {}]  }
   0x1   :  { %v38_v0 = vld [vmem:[%s537_s2] sm:$0xff]  ;;  %v39_v1 = vld [vmem:[%s537_s2 + $0x8] sm:$0xff]  ;;  %v40_v2 = vld [vmem:[%s537_s2 + $0x10] sm:$0xff]  ;;  %407 = vmatprep.subr.bf16.mxu1 %v426_v3  ;;  %396 = vmatprep.mubr.msk.f32.mxu1 %vm427_vm1, %v428_v4  ;;  %v303_v29 = vlaneseq }
   0x2   :  { %v399_v5 = vpack.c.bf16 %v39_v1, %v38_v0  ;;  %v41_v6 = vld [vmem:[%s537_s2 + $0x18] sm:$0xff]  ;;  %v34_v7 = vld [vmem:[%s538_s0] sm:$0xff]  ;;  %v35_v8 = vld [vmem:[%s538_s0 + $0x8] sm:$0xff] }
   0x3   :  { %v403_v9 = vpack.c.bf16 %v41_v6, %v40_v2  ;;  %382 = vmatprep.mubr.msk.f32.mxu0 %vm42_vm0, %v34_v7  ;;  %v36_v10 = vld [vmem:[%s538_s0 + $0x10] sm:$0xff]  ;;  %v37_v11 = vld [vmem:[%s538_s0 + $0x18] sm:$0xff]  ;;  %v212_v12 = vld [vmem:[%s539_s3] sm:$0xff]  ;;  %v154_v13 = vmul.f32 %v35_v8, %v34_v7  ;;  %v140_v18 = vmul.f32 %v34_v7, %v34_v7  ;;  %v513_v30 = vshrl.u32 %v303_v29, 7 }
   0x4   :  { %400 = vmatprep.subr.bf16.mxu0 %v399_v5  ;;  %v213_v14 = vld [vmem:[%s539_s3 + $0x8] sm:$0xff]  ;;  %v214_v15 = vld [vmem:[%s539_s3 + $0x10] sm:$0xff]  ;;  %v215_v16 = vld [vmem:[%s539_s3 + $0x18] sm:$0xff]  ;;  %v168_v17 = vmul.f32 %v37_v11, %v34_v7  ;;  %v161_v19 = vmul.f32 %v36_v10, %v34_v7  ;;  %v515_v31 = vand.u32 127, %v303_v29 }
   0x5   :  { %402 = vmatpush3.bf16.msra.mxu0 %v399_v5  ;;  %v408_v20 = vpack.c.bf16 %v213_v14, %v212_v12  ;;  %v155_v21 = vsel %vm42_vm0, %v154_v13, 0.0  ;;  %v199_v22 = vld [vmem:[%s540_s1] sm:$0xff]  ;;  %v411_v24 = vpack.c.bf16 %v215_v16, %v214_v15  ;;  %v141_v27 = vsel %vm42_vm0, %v140_v18, 0.0 }
   0x6   :  { %404 = vmatprep.subr.bf16.mxu0 %v403_v9  ;;  %v169_v23 = vsel %vm42_vm0, %v168_v17, 0.0  ;;  %156 = vadd.xlane.f32.xlu0 %v155_v21  ;;  %v162_v25 = vsel %vm42_vm0, %v161_v19, 0.0  ;;  %v200_v26 = vmul.f32 %v199_v22, %v199_v22  ;;  %vm326_vm2 = vcmp.eq.s32.totalorder %v513_v30, 0  ;;  %v358_v42 = vld [vmem:[%s541_s4] ss:$0 sm:$0xff] }
   0x7   :  { %409 = vmatpush3.bf16.msra.mxu1 %v408_v20  ;;  %170 = vadd.xlane.f32.xlu1 %v169_v23  ;;  %vm327_vm3 = vcmp.eq.s32.totalorder %v515_v31, 0  ;;  %v359_v57 = vld [vmem:[%s542_s5] ss:$0 sm:$0xff]  ;;  %vm312_vm11 = vcmp.ne.s32.totalorder %v513_v30, %v515_v31  ;;  %vm314_vm12 = vcmp.lt.s32.totalorder %v515_v31, 8 }
   0x8   :  { %410 = vmatprep.subr.bf16.mxu1 %v426_v3  ;;  %v201_v28 = vsel %vm42_vm0, %v200_v26, 0.0  ;;  %vm519_vm4 = vmand %vm326_vm2, %vm327_vm3 }
   0x9   :  { %406 = vmatpush3.bf16.msra.mxu0 %v403_v9  ;;  %vm316_vm13 = vmand %vm312_vm11, %vm314_vm12 }
   0xa   :  { %163 = vadd.xlane.f32.xlu0 %v162_v25 }
   0xb   :  { %412 = vmatpush3.bf16.msra.mxu1 %v411_v24  ;;  %142 = vadd.xlane.f32.xlu1 %v141_v27 }
   0xc   :  { %383 = vmatmul.mubr.msk.f32.vlgmr.msra.gmra.mrb[0].mxu0 %vm42_vm0, %v35_v8 }
   0xd   :  { %385 = vmatprep.mubr.msk.f32.mxu0 %vm42_vm0, %v36_v10 }
   0xe   :  { %397 = vmatmul.mubr.msk.f32.vlgmr.msra.gmra.mrb[0].mxu1 %vm42_vm0, %v199_v22  ;;  %202 = vadd.xlane.f32.xlu0 %v201_v28 }
  0x10   :  { %386 = vmatmul.mubr.msk.f32.gmra.mrb[2].mxu0 %vm42_vm0, %v37_v11 }
  0x93   :  { %v157_v33 = vpop.xlane.xlu0 %156 }
  0x94   :  { %v171_v34 = vpop.xlane.xlu1 %170 }
  0x97   :  { %v164_v38 = vpop.xlane.xlu0 %163 }
  0x98   :  { %v143_v43 = vpop.xlane.xlu1 %142 }
  0x99   :  { %v151_v48 = vadd.f32 %v358_v42, %v143_v43 }
  0x9b   :  { %v203_v58 = vpop.xlane.xlu0 %202 }
  0x9c   :  { %v211_v60 = vadd.f32 %v359_v57, %v203_v58 }
  0xdf   :  { %v384_v35 = vpop.f32.mrb[0].mxu0 }
  0xe0   :  { %v121_v36 = vpop.f32.mrb[1].mxu0  ;;  %v158_v40 = vsub.f32 %v384_v35, %v157_v33 }
  0xe1   :  { %v285_v37 = vpop.f32.mrb[0].mxu1  ;;  %v152_v49 = vmul.f32 2.0, %v121_v36 }
  0xe2   :  { %v398_v39 = vpop.f32.mrb[1].mxu1  ;;  %v159_v47 = vmul.f32 %v158_v40, %v158_v40  ;;  %v289_v59 = vmul.f32 2.0, %v285_v37 }
  0xe3   :  { %v387_v41 = vpop.f32.mrb[2].mxu0  ;;  %v153_v53 = vsub.f32 %v151_v48, %v152_v49 }
  0xe4   :  { %v131_v44 = vpop.f32.mrb[3].mxu0  ;;  %v172_v45 = vsub.f32 %v387_v41, %v171_v34  ;;  %v290_v62 = vsub.f32 %v211_v60, %v289_v59 }
  0xe5   :  { %v165_v46 = vsub.f32 %v131_v44, %v164_v38 }
  0xe6   :  { %v173_v51 = vmul.f32 %v172_v45, %v172_v45  ;;  %v291_v4 = vmax.f32 %v290_v62, 0.0 }
  0xe7   :  { %v166_v50 = vmul.f32 %v165_v46, %v165_v46 }
  0xe8   :  { %vm294_vm9 = vcmp.eq.f32.partialorder %v291_v4, inf  ;;  %v297_v18 = vand.u32 2147483648, %v291_v4  ;;  %vm296_vm10 = vcmp.eq.f32.partialorder %v291_v4, 0.0 }
  0xe9   :  { %v167_v52 = vadd.f32 %v166_v50, %v159_v47 }
  0xeb   :  { %v174_v54 = vadd.f32 %v173_v51, %v167_v52 }
  0xed   :  { %v175_v55 = vsub.f32 %v153_v53, %v174_v54  ;;  %416 = vrsqrt.f32 %v174_v54  ;;  %vm190_vm5 = vcmp.eq.f32.partialorder %v174_v54, inf  ;;  %v193_v0 = vand.u32 2147483648, %v174_v54 }
  0xee   :  { %vm192_vm6 = vcmp.eq.f32.partialorder %v174_v54, 0.0 }
  0xef   :  { %v176_v56 = vmax.f32 %v175_v55, 0.0 }
  0xf1   :  { %418 = vrsqrt.f32 %v176_v56  ;;  %vm179_vm7 = vcmp.eq.f32.partialorder %v176_v56, inf  ;;  %v182_v6 = vand.u32 2147483648, %v176_v56  ;;  %vm181_vm8 = vcmp.eq.f32.partialorder %v176_v56, 0.0 }
  0xf2   :  { %420 = vrsqrt.f32 %v291_v4 }
  0xf7   :  { %v417_v61 = vpop.eup %416 }
  0xf8   :  { %v189_v63 = vmul.f32 %v417_v61, %v174_v54 }
  0xfa   :  { %v191_v1 = vsel %vm190_vm5, %v174_v54, %v189_v63 }
  0xfb   :  { %v419_v2 = vpop.eup %418  ;;  %v194_v3 = vsel %vm192_vm6, %v193_v0, %v191_v1 }
  0xfc   :  { %v178_v5 = vmul.f32 %v419_v2, %v176_v56  ;;  %v195_v7 = vadd.f32 1.0, %v194_v3  ;;  %v421_v14 = vpop.eup %420 }
  0xfd   :  { %v293_v15 = vmul.f32 %v421_v14, %v291_v4 }
  0xfe   :  { %v180_v8 = vsel %vm179_vm7, %v176_v56, %v178_v5  ;;  %v196_v11 = vmul.f32 %v195_v7, %v195_v7 }
  0xff   :  { %v183_v9 = vsel %vm181_vm8, %v182_v6, %v180_v8  ;;  %v295_v20 = vsel %vm294_vm9, %v291_v4, %v293_v15 }
 0x100   :  { %v184_v10 = vmul.f32 0.70422536, %v183_v9  ;;  %422 = vrcp.f32 %v196_v11  ;;  %v298_v22 = vsel %vm296_vm10, %v297_v18, %v295_v20 }
 0x102   :  { %v185_v12 = vadd.f32 1.0, %v184_v10 }
 0x104   :  { %v186_v13 = vmul.f32 %v185_v12, %v185_v12 }
 0x106   :  { %424 = vrcp.f32 %v186_v13 }
 0x10a   :  { %v423_v16 = vpop.eup %422 }
 0x110   :  { %v425_v17 = vpop.eup %424 }
 0x111   :  { %v198_v19 = vmul.f32 %v425_v17, %v423_v16 }
 0x113   :  { %v299_v21 = vsub.f32 1.0, %v198_v19 }
 0x115   :  { %v300_v23 = vsub.f32 %v299_v21, %v298_v22 }
 0x117   :  { %v301_v24 = vmul.f32 %v300_v23, %v300_v23 }
 0x119   :  { %v317_v25 = vsel %vm316_vm13, %v301_v24, 0.0 }
 0x11a   :  { %318 = vadd.xlane.f32.xlu1 %v317_v25 }
 0x1a7   :  { %v319_v26 = vpop.xlane.xlu1 %318 }
 0x1a8   :  { %v320_v27 = vrot.slane %v319_v26, 4 }
 0x1aa   :  { %v321_v28 = vadd.f32 %v320_v27, %v319_v26 }
 0x1ac   :  { %v322_v29 = vrot.slane %v321_v28, 2 }
 0x1ae   :  { %v323_v33 = vadd.f32 %v322_v29, %v321_v28 }
 0x1b0   :  { %v324_v34 = vrot.slane %v323_v33, 1 }
 0x1b2   :  { %v325_v35 = vadd.f32 %v324_v34, %v323_v33 }
 0x1b4   :  { %v329_v36 = vsel %vm519_vm4, %v325_v35, 0.0 }
 0x1b5   :  { %330 = vst [vmem:[%s543_s6] sm:$0xff] %v329_v36 }

// kernel: custom-call.217
= control target key start
LH: loop header
LB: loop body
LE: loop exit
PB: predicated region body
PF: predicated region fallthrough
CT: control target
= control target key end

     0   :  { %s6_s0 = inlined_call_operand.hbm [shape: pred[4], index: 0, kind: output, shape index: {}]  }

// kernel: custom-call.238
= control target key start
LH: loop header
LB: loop body
LE: loop exit
PB: predicated region body
PF: predicated region fallthrough
CT: control target
= control target key end

     0   :  { %s343_s6 = smov 0   ;;  %s345_s7 = smov 0   ;;  %s390_s0 = inlined_call_operand.vmem [shape: f32[4,3,3], index: 0, kind: input, shape index: {}]   ;;  %s391_s1 = inlined_call_operand.vmem [shape: f32[4,3,3], index: 1, kind: output, shape index: {}]  }
   0x1   :  { %s347_s8 = smov 0  }
   0x2 LB: > { %s265_s9 = sadd.s32 4294967295, %s330_s8   ;;  %s26_s10 = sadd.s32 1, %s326_s7  ;;  %s330_s8 = sphi %s347_s8, %s7_s8   ;;  %s326_s7 = sphi %s345_s7, %s393_s7   ;;  %s322_s6 = sphi %s343_s6, %s392_s6  }
   0x3   : > { %p28_p0 = scmp.ge.s32.totalorder %s26_s10, 4  ;;  %p267_p1 = scmp.ge.s32.totalorder %s330_s8, 4 }
   0x4   : > { %s42_s11 = sand.u32 (!%p267_p1), 1, %s330_s8   ;;  %s269_s12 = sshll.u32 (!%p267_p1), %s326_s7, 2 }
   0x5   : > { %s395_s10 = smov (%p28_p0, %s26_s10), 0  ;;  %40 = sbr.rel (%p267_p1) target bundleno = 12 (0xc), region = 16 }
   0x6   : > { %s268_s13 = sshll.u32 (!%p267_p1), %s42_s11, 2  ;;  %s48_s16 = scalar_lea.vmem (!%p267_p1), %s390_s0, %s269_s12 }
   0x7   : > { %v64_v0 = vld [vmem:[%s48_s16] sm:$0xf] (!%p267_p1)  ;;  %s44_s17 = scalar_lea.vmem (!%p267_p1), [#allocation1], %s268_s13 }
   0x8   : > { %65 = vst [vmem:[%s44_s17] sm:$0xf] (!%p267_p1), %v64_v0 }
   0xc PF: > { %p270_p2 = scmp.ge.s32.totalorder %s330_s8, 1  ;;  %p81_p3 = scmp.lt.s32.totalorder %s330_s8, 5 }
   0xe   : > { %p82_p4 = pnand %p270_p2, %p81_p3 }
   0xf   : > { %v332_v1 = vmov (!%p82_p4), 0.0   ;;  %s370_s18 = sand.u32 (!%p82_p4), 1, %s265_s9   ;;  %vm104_vm0 = vcmask (!%p82_p4), 7168   ;;  %vm122_vm1 = vcmask (!%p82_p4), 15368   ;;  %vm139_vm2 = vcmask (!%p82_p4), 1047553   ;;  %s274_s22 = sshll.u32 (!%p82_p4), %s322_s6, 2 }
  0x10   : > { %85 = sbr.rel (%p82_p4) target bundleno = 541 (0x21d), region = 50  ;;  %103 = vst [vmem:[#allocation2] sm:$0xff] (!%p82_p4), %v332_v1  ;;  %s271_s19 = sshll.u32 (!%p82_p4), %s370_s18, 2  ;;  %vm140_vm3 = vmand (!%p82_p4), %vm122_vm1, %vm139_vm2  ;;  %vm144_vm4 = vcmask (!%p82_p4), 23568   ;;  %vm161_vm5 = vcmask (!%p82_p4), 1047554  }
  0x11   : > { %s94_s20 = scalar_lea.vmem (!%p82_p4), [#allocation1], %s271_s19  ;;  %vm162_vm6 = vmand (!%p82_p4), %vm144_vm4, %vm161_vm5  ;;  %s98_s21 = scalar_lea.vmem (!%p82_p4), [#allocation3], %s271_s19 }
  0x12   : > { %v101_v5 = vld [vmem:[%s94_s20] sm:$0xf] (!%p82_p4)  ;;  %s179_s25 = scalar_lea.vmem (!%p82_p4), %s391_s1, %s274_s22 }
  0x13   : > { %102 = vst [vmem:[#allocation0] sm:$0xf] (!%p82_p4), %v101_v5 }
  0x17   : > { %v105_v2 = vld [vmem:[#allocation2] ss:$0 sm:$0xff] }
  0x18   : > { %v107_v3 = vmul.f32 %v105_v2, %v105_v2  ;;  %v114_v4 = vmul.f32 0.0, %v105_v2 }
  0x1a   : > { %108 = vadd.xlane.f32.xlu0 %v107_v3  ;;  %v106_v6 = vld [vmem:[#allocation0] ss:$0 sm:$0xff]  ;;  %v126_v18 = vld [vmem:[#allocation0 + $0x1] ss:$0 sm:$0xff]  ;;  %v148_v30 = vld [vmem:[#allocation0 + $0x2] ss:$0 sm:$0xff] }
  0x1b   : > { %v112_v10 = vld [vmem:[#allocation0] sm:$0xff] }
  0x1e   : > { %115 = vadd.xlane.f32.xlu0 %v114_v4 }
  0xa7   : > { %v109_v7 = vpop.xlane.xlu0 %108 }
  0xa8   : > { %v110_v8 = vsub.f32 %v106_v6, %v109_v7 }
  0xaa   : > { %302 = vrsqrt.f32 %v110_v8 }
  0xab   : > { %v116_v9 = vpop.xlane.xlu0 %115 }
  0xac   : > { %v117_v11 = vsub.f32 %v112_v10, %v116_v9 }
  0xb4   : > { %v303_v12 = vpop.eup %302 }
  0xb5   : > { %v118_v13 = vmul.f32 %v303_v12, %v117_v11 }
  0xb7   : > { %v119_v14 = vsel %vm104_vm0, %v118_v13, 0.0 }
  0xb8   : > { %121 = vst [vmem:[#allocation2] sm:$0xff] %v119_v14 }
  0xbf   : > { %v124_v15 = vld [vmem:[#allocation2 + $0x1] ss:$0 sm:$0xff] }
  0xc0   : > { %v127_v16 = vmul.f32 %v124_v15, %v124_v15  ;;  %v134_v17 = vmul.f32 %v124_v15, %v119_v14 }
  0xc2   : > { %128 = vadd.xlane.f32.xlu1 %v127_v16 }
  0xc6   : > { %135 = vadd.xlane.f32.xlu1 %v134_v17 }
 0x14f   : > { %v129_v19 = vpop.xlane.xlu1 %128 }
 0x150   : > { %v130_v20 = vsub.f32 %v126_v18, %v129_v19 }
 0x152   : > { %304 = vrsqrt.f32 %v130_v20 }
 0x153   : > { %v136_v21 = vpop.xlane.xlu1 %135 }
 0x154   : > { %v137_v22 = vsub.f32 %v112_v10, %v136_v21 }
 0x15c   : > { %v305_v23 = vpop.eup %304 }
 0x15d   : > { %v138_v24 = vmul.f32 %v305_v23, %v137_v22 }
 0x15f   : > { %v141_v25 = vsel %vm140_vm3, %v138_v24, 0.0 }
 0x160   : > { %v142_v26 = vadd.f32 %v141_v25, %v119_v14 }
 0x162   : > { %143 = vst [vmem:[#allocation2] sm:$0xff] %v142_v26 }
 0x169   : > { %v146_v27 = vld [vmem:[#allocation2 + $0x2] ss:$0 sm:$0xff] }
 0x16a   : > { %v156_v28 = vmul.f32 %v146_v27, %v142_v26  ;;  %v149_v29 = vmul.f32 %v146_v27, %v146_v27 }
 0x16c   : > { %157 = vadd.xlane.f32.xlu1 %v156_v28  ;;  %150 = vadd.xlane.f32.xlu0 %v149_v29 }
 0x1f9   : > { %v151_v31 = vpop.xlane.xlu0 %150  ;;  %v158_v33 = vpop.xlane.xlu1 %157 }
 0x1fa   : > { %v152_v32 = vsub.f32 %v148_v30, %v151_v31  ;;  %v159_v34 = vsub.f32 %v112_v10, %v158_v33 }
 0x1fc   : > { %306 = vrsqrt.f32 %v152_v32 }
 0x206   : > { %v307_v35 = vpop.eup %306 }
 0x207   : > { %v160_v36 = vmul.f32 %v307_v35, %v159_v34 }
 0x209   : > { %v163_v37 = vsel %vm162_vm6, %v160_v36, 0.0 }
 0x20a   : > { %v164_v38 = vadd.f32 %v163_v37, %v142_v26 }
 0x20c   : > { %165 = vst [vmem:[#allocation2] sm:$0xff] %v164_v38 }
 0x213   : > { %v169_v39 = vld [vmem:[#allocation2] sm:$0xf] }
 0x214   : > { %171 = vst [vmem:[%s98_s21] sm:$0xf] %v169_v39 }
 0x21b   : > { %v195_v40 = vld [vmem:[%s98_s21] sm:$0xf] }
 0x21c   : > { %196 = vst [vmem:[%s179_s25] sm:$0xf] %v195_v40 }
 0x21d PF: > { %s7_s8 = sadd.s32 1, %s330_s8   ;;  %s392_s6 = smov %s326_s7 }
 0x21e   : > { %p4_p5 = scmp.ge.s32.totalorder %s7_s8, 6   ;;  %s393_s7 = smov %s395_s10 }
 0x220   :  { %6 = sbr.rel (!%p4_p5) target bundleno = 2 (0x2), region = 114 }

// kernel: custom-call.239
= control target key start
LH: loop header
LB: loop body
LE: loop exit
PB: predicated region body
PF: predicated region fallthrough
CT: control target
= control target key end

     0   :  { %s343_s6 = smov 0   ;;  %s345_s7 = smov 0   ;;  %s390_s0 = inlined_call_operand.vmem [shape: f32[4,1,3,3], index: 0, kind: input, shape index: {}]   ;;  %s391_s1 = inlined_call_operand.vmem [shape: f32[4,1,3,3], index: 1, kind: output, shape index: {}]  }
   0x1   :  { %s347_s8 = smov 0  }
   0x2 LB: > { %s269_s9 = sadd.s32 4294967295, %s330_s8   ;;  %s33_s10 = sadd.s32 1, %s326_s7  ;;  %s330_s8 = sphi %s347_s8, %s7_s8   ;;  %s326_s7 = sphi %s345_s7, %s393_s7   ;;  %s322_s6 = sphi %s343_s6, %s392_s6  }
   0x3   : > { %p35_p0 = scmp.ge.s32.totalorder %s33_s10, 4  ;;  %p271_p1 = scmp.ge.s32.totalorder %s330_s8, 4 }
   0x4   : > { %s49_s11 = sand.u32 (!%p271_p1), 1, %s330_s8   ;;  %s273_s12 = sshll.u32 (!%p271_p1), %s326_s7, 2 }
   0x5   : > { %s395_s10 = smov (%p35_p0, %s33_s10), 0  ;;  %47 = sbr.rel (%p271_p1) target bundleno = 12 (0xc), region = 16 }
   0x6   : > { %s272_s13 = sshll.u32 (!%p271_p1), %s49_s11, 2  ;;  %s56_s16 = scalar_lea.vmem (!%p271_p1), %s390_s0, %s273_s12 }
   0x7   : > { %v72_v0 = vld [vmem:[%s56_s16] sm:$0xf] (!%p271_p1)  ;;  %s51_s17 = scalar_lea.vmem (!%p271_p1), [#allocation1], %s272_s13 }
   0x8   : > { %73 = vst [vmem:[%s51_s17] sm:$0xf] (!%p271_p1), %v72_v0 }
   0xc PF: > { %p274_p2 = scmp.ge.s32.totalorder %s330_s8, 1  ;;  %p89_p3 = scmp.lt.s32.totalorder %s330_s8, 5 }
   0xe   : > { %p90_p4 = pnand %p274_p2, %p89_p3 }
  0x10   : > { %93 = sbr.rel (%p90_p4) target bundleno = 511 (0x1ff), region = 50 }
  0x17   : > { %s370_s18 = sand.u32 1, %s269_s9   ;;  %v111_v1 = vlaneseq  ;;  %v332_v11 = vmov -1.0   ;;  %s278_s22 = sshll.u32 %s322_s6, 2 }
  0x18   : > { %s275_s19 = sshll.u32 %s370_s18, 2  ;;  %s178_s25 = scalar_lea.vmem %s391_s1, %s278_s22 }
  0x19   : > { %s102_s20 = scalar_lea.vmem [#allocation1], %s275_s19  ;;  %v112_v3 = vand.u32 127, %v111_v1  ;;  %v115_v4 = vshrl.u32 %v111_v1, 7  ;;  %s106_s21 = scalar_lea.vmem [#allocation3], %s275_s19 }
  0x1a   : > { %v109_v2 = vld [vmem:[%s102_s20] sm:$0xf] }
  0x1b   : > { %110 = vst [vmem:[#allocation0] sm:$0xf] %v109_v2  ;;  %vm113_vm0 = vcmp.lt.s32.totalorder %v112_v3, 3  ;;  %vm122_vm1 = vcmp.ge.s32.totalorder %v115_v4, %v112_v3  ;;  %vm117_vm2 = vcmp.eq.s32.totalorder %v115_v4, %v112_v3  ;;  %vm136_vm4 = vcmp.eq.s32.totalorder %v112_v3, 0 }
  0x1c   : > { %vm123_vm3 = vmand %vm122_vm1, %vm113_vm0  ;;  %vm133_vm5 = vcmp.eq.s32.totalorder %v112_v3, %v115_v4  ;;  %v137_v12 = vsel %vm136_vm4, 1.0, %v332_v11  ;;  %vm144_vm6 = vcmp.eq.s32.totalorder %v112_v3, 1  ;;  %vm154_vm7 = vcmp.eq.s32.totalorder %v112_v3, 2 }
  0x1d   : > { %v138_v13 = vsel %vm133_vm5, %v137_v12, 0.0 }
  0x22   : > { %v118_v5 = vld [vmem:[#allocation0] sm:$0xff] }
  0x23   : > { %v119_v6 = vsel %vm117_vm2, %v118_v5, 0.0  ;;  %v124_v7 = vsel %vm123_vm3, %v118_v5, 0.0 }
  0x24   : > { %120 = vadd.xlane.f32.xlu0 %v119_v6 }
  0xb1   : > { %v121_v8 = vpop.xlane.xlu0 %120 }
  0xb2   : > { %306 = vrcp.f32 %v121_v8  ;;  %vm161_vm8 = vweird.f32 %v121_v8 }
  0xbc   : > { %v307_v9 = vpop.eup %306 }
  0xbd   : > { %v126_v10 = vmul.f32 %v307_v9, %v124_v7 }
  0xbf   : > { %127 = vst [vmem:[#allocation4] sm:$0xff] %v126_v10 }
  0xc6   : > { %v140_v14 = vld [vmem:[#allocation4 + $0x1] ss:$0 sm:$0xff]  ;;  %v150_v17 = vld [vmem:[#allocation4 + $0x2] ss:$0 sm:$0xff] }
  0xc7   : > { %v141_v15 = vxor.u32 2147483648, %v140_v14  ;;  %v151_v19 = vxor.u32 2147483648, %v150_v17 }
  0xc9   : > { %v145_v16 = vmul.f32 %v141_v15, %v138_v13 }
  0xcb   : > { %146 = vadd.xlane.f32.xlu0 %v145_v16 }
 0x158   : > { %v147_v18 = vpop.xlane.xlu0 %146 }
 0x159   : > { %v148_v20 = vsel %vm144_vm6, %v147_v18, %v138_v13 }
 0x15a   : > { %v155_v21 = vmul.f32 %v151_v19, %v148_v20 }
 0x15c   : > { %156 = vadd.xlane.f32.xlu1 %v155_v21 }
 0x1e9   : > { %v157_v22 = vpop.xlane.xlu1 %156 }
 0x1ea   : > { %v158_v23 = vsel %vm154_vm7, %v157_v22, %v148_v20 }
 0x1eb   : > { %v160_v24 = vmul.f32 %v307_v9, %v158_v23 }
 0x1ed   : > { %v162_v25 = vsel %vm161_vm8, %v158_v23, %v160_v24 }
 0x1ee   : > { %163 = vst [vmem:[#allocation2] sm:$0xff] %v162_v25 }
 0x1f5   : > { %v167_v26 = vld [vmem:[#allocation2] sm:$0xf] }
 0x1f6   : > { %169 = vst [vmem:[%s106_s21] sm:$0xf] %v167_v26 }
 0x1fd   : > { %v194_v27 = vld [vmem:[%s106_s21] sm:$0xf] }
 0x1fe   : > { %195 = vst [vmem:[%s178_s25] sm:$0xf] %v194_v27 }
 0x1ff PF: > { %s7_s8 = sadd.s32 1, %s330_s8   ;;  %s392_s6 = smov %s326_s7 }
 0x200   : > { %p4_p5 = scmp.ge.s32.totalorder %s7_s8, 6   ;;  %s393_s7 = smov %s395_s10 }
 0x202   :  { %6 = sbr.rel (!%p4_p5) target bundleno = 2 (0x2), region = 112 }

// kernel: custom-call.65
= control target key start
LH: loop header
LB: loop body
LE: loop exit
PB: predicated region body
PF: predicated region fallthrough
CT: control target
= control target key end

     0   :  { %s1704_s30 = smov 0   ;;  %s1706_s10 = smov 0   ;;  %s2030_s0 = inlined_call_operand.vmem [shape: f32[4,2,2], index: 0, kind: input, shape index: {}]   ;;  %s2031_s1 = inlined_call_operand.vmem [shape: f32[4,2,2], index: 1, kind: input, shape index: {}]   ;;  %s2032_s2 = inlined_call_operand.vmem [shape: f32[4,2,2], index: 2, kind: input, shape index: {}]   ;;  %s2033_s3 = inlined_call_operand.vmem [shape: f32[4,2,2], index: 3, kind: input, shape index: {}]   ;;  %s2034_s4 = inlined_call_operand.vmem [shape: f32[4,2], index: 4, kind: output, shape index: {0}]   ;;  %s2035_s5 = inlined_call_operand.vmem [shape: f32[4,2], index: 5, kind: output, shape index: {1}]   ;;  %s2036_s6 = inlined_call_operand.vmem [shape: f32[4,2,2], index: 6, kind: output, shape index: {2}]   ;;  %s2037_s7 = inlined_call_operand.vmem [shape: f32[4,2,2], index: 7, kind: output, shape index: {3}]   ;;  %s2038_s8 = inlined_call_operand.vmem [shape: f32[4,2,2], index: 8, kind: output, shape index: {4}]   ;;  %s2039_s9 = inlined_call_operand.vmem [shape: f32[4,2,2], index: 9, kind: output, shape index: {5}]  }
   0x1   :  { %s1708_s11 = smov 0  }
   0x2 LB: > { %s1720_s12 = sadd.s32 4294967295, %s1641_s11   ;;  %s1723_s13 = sadd.s32 1, %s1641_s11   ;;  %s1641_s11 = sphi %s1708_s11, %s2058_s11   ;;  %s1637_s10 = sphi %s1706_s10, %s2057_s10   ;;  %s1633_s30 = sphi %s1704_s30, %s2056_s30  }
   0x3   : > { %s20_s14 = sshrl.u32 %s1641_s11, 3  ;;  %s21_s15 = sshrl.u32 %s1723_s13, 3 }
   0x4   : > { %s22_s16 = ssub.s32 %s20_s14, %s21_s15  ;;  %s25_s17 = sadd.s32 1, %s1637_s10 }
   0x5   : > { %p23_p0 = scmp.eq.s32.totalorder %s22_s16, 0  ;;  %p35_p1 = scmp.ne.s32.totalorder %s1637_s10, %s1633_s30 }
   0x6   : > { %p36_p2 = scmp.eq.s32.totalorder %s1720_s12, 3  ;;  %p1502_p4 = scmp.ge.s32.totalorder %s1641_s11, 4 }
   0x7   : > { %s1732_s18 = scalar_select %p23_p0, %s1637_s10, %s25_s17  }
   0x8   : > { %p1734_p3 = por %p36_p2, %p35_p1  ;;  %86 = sbr.rel (%p1502_p4) target bundleno = 17 (0x11), region = 16 }
   0x9   : > { %2040 = sst [smem:[#allocation33_spill]] %s1732_s18  ;;  %s88_s20 = sand.u32 (!%p1502_p4), 1, %s1641_s11  }
   0xa   : > { %s1504_s21 = sshll.u32 (!%p1502_p4), %s1641_s11, 1  ;;  %s1503_s22 = sshll.u32 (!%p1502_p4), %s88_s20, 1 }
   0xb   : > { %s92_s25 = scalar_lea.vmem (!%p1502_p4), %s2030_s0, %s1504_s21  ;;  %s90_s26 = scalar_lea.vmem (!%p1502_p4), [#allocation1], %s1503_s22 }
   0xc   : > { %v108_v0 = vld [vmem:[%s92_s25] sm:$0x3] (!%p1502_p4)  ;;  %s129_s29 = scalar_lea.vmem (!%p1502_p4), %s2031_s1, %s1504_s21  ;;  %s166_s16 = scalar_lea.vmem (!%p1502_p4), %s2032_s2, %s1504_s21 }
   0xd   : > { %109 = vst [vmem:[%s90_s26] sm:$0x3] (!%p1502_p4), %v108_v0  ;;  %v145_v1 = vld [vmem:[%s129_s29] sm:$0x3] (!%p1502_p4)  ;;  %s127_s17 = scalar_lea.vmem (!%p1502_p4), [#allocation3], %s1503_s22  ;;  %s203_s23 = scalar_lea.vmem (!%p1502_p4), %s2033_s3, %s1504_s21 }
   0xe   : > { %146 = vst [vmem:[%s127_s17] sm:$0x3] (!%p1502_p4), %v145_v1  ;;  %v182_v2 = vld [vmem:[%s166_s16] sm:$0x3] (!%p1502_p4)  ;;  %s164_s24 = scalar_lea.vmem (!%p1502_p4), [#allocation5], %s1503_s22  ;;  %s201_s25 = scalar_lea.vmem (!%p1502_p4), [#allocation7], %s1503_s22 }
   0xf   : > { %183 = vst [vmem:[%s164_s24] sm:$0x3] %v182_v2  ;;  %v219_v3 = vld [vmem:[%s203_s23] sm:$0x3] }
  0x10   : > { %220 = vst [vmem:[%s201_s25] sm:$0x3] %v219_v3 }
  0x11 PF: > { %p1511_p5 = scmp.ge.s32.totalorder %s1641_s11, 1  ;;  %p236_p6 = scmp.lt.s32.totalorder %s1641_s11, 5 }
  0x13   : > { %p237_p7 = pnand %p1511_p5, %p236_p6 }
  0x15   : > { %240 = sbr.rel (%p237_p7) target bundleno = 999 (0x3e7), region = 140 }
  0x1c   : > { %s259_s26 = sand.u32 1, %s1720_s12   ;;  %s277_s27 = sand.u32 1, %s1633_s30   ;;  %v337_v4 = vlaneseq  ;;  %v1651_v5 = vmov 0.0  }
  0x1d   : > { %s1757_s28 = sshll.u32 %s259_s26, 1  ;;  %s1759_s18 = sshll.u32 %s277_s27, 2  ;;  %332 = vst [vmem:[#allocation12] sm:$0xff] %v1651_v5  ;;  %333 = vst [vmem:[#allocation14] sm:$0xff] %v1651_v5 }
  0x1e   : > { %334 = vst [vmem:[#allocation16] sm:$0xff] %v1651_v5  ;;  %335 = vst [vmem:[#allocation18] sm:$0xff] %v1651_v5  ;;  %v1761_v6 = vand.u32 127, %v337_v4  ;;  %v1763_v7 = vshrl.u32 %v337_v4, 7  ;;  %s261_s11 = scalar_lea.vmem [#allocation1], %s1757_s28  ;;  %s265_s30 = scalar_lea.vmem [#allocation3], %s1757_s28 }
  0x1f   : > { %v304_v8 = vld [vmem:[%s261_s11] sm:$0x3]  ;;  %v308_v9 = vld [vmem:[%s265_s30] sm:$0x3]  ;;  %s269_s21 = scalar_lea.vmem [#allocation5], %s1757_s28  ;;  %s273_s22 = scalar_lea.vmem [#allocation7], %s1757_s28 }
  0x20   : > { %305 = vst [vmem:[#allocation0] sm:$0x3] %v304_v8  ;;  %309 = vst [vmem:[#allocation2] sm:$0x3] %v308_v9  ;;  %v312_v10 = vld [vmem:[%s269_s21] sm:$0x3]  ;;  %v339_v6 = vmov %v1761_v6  ;;  %v342_v7 = vmov %v1763_v7 }
  0x21   : > { %v316_v11 = vld [vmem:[%s273_s22] sm:$0x3]  ;;  %313 = vst [vmem:[#allocation4] sm:$0x3] %v312_v10  ;;  %v352_v6 = vmov %v1761_v6  ;;  %v355_v7 = vmov %v1763_v7  ;;  %s320_s29 = smov [#allocation20]  ;;  %s323_s14 = smov [#allocation21]  ;;  %vm346_vm0 = vcmp.eq.s32.totalorder %v342_v7, %v339_v6 }
  0x22   : > { %317 = vst [vmem:[#allocation6] sm:$0x3] %v316_v11  ;;  %vm359_vm1 = vcmp.eq.s32.totalorder %v355_v7, %v352_v6  ;;  %s336_s15 = smov [#allocation12]  ;;  %s349_s16 = smov [#allocation18]  ;;  %vm1391_vm2 = vcmp.lt.s32.totalorder %v1761_v6, 2  ;;  %v1383_v6 = vmov %v1761_v6  ;;  %v1386_v7 = vmov %v1763_v7 }
  0x23   : > { %s326_s17 = smov [#allocation22]  ;;  %s329_s20 = smov [#allocation23]  ;;  %vm1396_vm3 = vcmp.eq.s32.totalorder %v1386_v7, %v1383_v6  ;;  %v1434_v6 = vmov %v1761_v6  ;;  %v1403_v7 = vmov %v1763_v7 }
  0x24   : > { %v343_v12 = vld [vmem:[%s336_s15] sm:$0x3]  ;;  %s1387_s30 = smov [#allocation20]  ;;  %s1404_s21 = smov [#allocation21]  ;;  %v1400_v6 = vmov %v1761_v6  ;;  %v1437_v7 = vmov %v1763_v7 }
  0x25   : > { %v356_v13 = vld [vmem:[%s349_s16] sm:$0x3]  ;;  %v347_v16 = vsel %vm346_vm0, 1.0, %v343_v12  ;;  %s1421_s22 = smov [#allocation22]  ;;  %v1417_v6 = vmov %v1761_v6  ;;  %v1420_v7 = vmov %v1763_v7  ;;  %vm1447_vm4 = vcmp.eq.s32.totalorder %v1437_v7, %v1434_v6 }
  0x26   : > { %v360_v17 = vsel %vm359_vm1, 1.0, %v356_v13  ;;  %348 = vst [vmem:[%s336_s15] sm:$0x3] %v347_v16 }
  0x27   : > { %v321_v14 = vld [vmem:[#allocation0] sm:$0xff]  ;;  %v324_v15 = vld [vmem:[#allocation2] sm:$0xff]  ;;  %361 = vst [vmem:[%s349_s16] sm:$0x3] %v360_v17 }
  0x28   : > { %322 = vst [vmem:[%s320_s29] sm:$0xff] %v321_v14  ;;  %325 = vst [vmem:[%s323_s14] sm:$0xff] %v324_v15  ;;  %v327_v18 = vld [vmem:[#allocation4] sm:$0xff]  ;;  %s1438_s29 = smov [#allocation23] }
  0x29   : > { %v330_v19 = vld [vmem:[#allocation6] sm:$0xff]  ;;  %328 = vst [vmem:[%s326_s17] sm:$0xff] %v327_v18 }
  0x2a   : > { %331 = vst [vmem:[%s329_s20] sm:$0xff] %v330_v19 }
  0x2f   : > { %v1393_v20 = vld [vmem:[%s1387_s30] sm:$0x3] }
  0x30   : > { %v1410_v21 = vld [vmem:[%s1404_s21] sm:$0x3]  ;;  %v1394_v22 = vsel %vm1391_vm2, %v1393_v20, 0.0 }
  0x31   : > { %v1411_v23 = vsel %vm1391_vm2, %v1410_v21, 0.0  ;;  %v1427_v24 = vld [vmem:[%s1421_s22] sm:$0x3]  ;;  %v1395_v26 = vmul.f32 %v1394_v22, %v1394_v22 }
  0x32   : > { %v1444_v25 = vld [vmem:[%s1438_s29] sm:$0x3]  ;;  %v1412_v27 = vmul.f32 %v1411_v23, %v1411_v23  ;;  %v1428_v28 = vsel %vm1391_vm2, %v1427_v24, 0.0 }
  0x33   : > { %v1445_v29 = vsel %vm1391_vm2, %v1444_v25, 0.0  ;;  %v1429_v30 = vmul.f32 %v1428_v28, %v1428_v28  ;;  %v1397_v33 = vsel %vm1396_vm3, 0.0, %v1395_v26 }
  0x34   : > { %v1414_v31 = vadd.f32 %v1412_v27, %v1395_v26  ;;  %v1446_v32 = vmul.f32 %v1445_v29, %v1445_v29  ;;  %v1413_v34 = vadd.f32 %v1412_v27, %v1397_v33 }
  0x36   : > { %v1431_v35 = vadd.f32 %v1429_v30, %v1414_v31  ;;  %v1430_v36 = vadd.f32 %v1429_v30, %v1413_v34  ;;  %v1448_v37 = vsel %vm1447_vm4, 0.0, %v1446_v32 }
  0x38   : > { %v1450_v38 = vadd.f32 %v1446_v32, %v1431_v35  ;;  %v1449_v39 = vadd.f32 %v1448_v37, %v1430_v36 }
  0x3a   : > { %1451 = vadd.xlane.f32.xlu0 %v1450_v38 }
  0x3e   : > { %1459 = vadd.xlane.f32.xlu0 %v1449_v39 }
  0xc7   : > { %v1452_v40 = vpop.xlane.xlu0 %1451 }
  0xc8   : > { %v1453_v41 = vrot.slane %v1452_v40, 4 }
  0xca   : > { %v1454_v42 = vadd.f32 %v1453_v41, %v1452_v40 }
  0xcb   : > { %v1460_v43 = vpop.xlane.xlu0 %1459 }
  0xcc   : > { %v1455_v44 = vrot.slane %v1454_v42, 2  ;;  %v1461_v45 = vrot.slane %v1460_v43, 4 }
  0xce   : > { %v1462_v46 = vadd.f32 %v1461_v45, %v1460_v43  ;;  %v1456_v47 = vadd.f32 %v1455_v44, %v1454_v42 }
  0xd0   : > { %v1463_v48 = vrot.slane %v1462_v46, 2  ;;  %v1457_v50 = vrot.slane %v1456_v47, 1 }
  0xd2   : > { %v1464_v49 = vadd.f32 %v1463_v48, %v1462_v46  ;;  %v1458_v53 = vadd.f32 %v1457_v50, %v1456_v47 }
  0xd4   : > { %v1465_v51 = vrot.slane %v1464_v49, 1 }
  0xd6   : > { %v1466_v52 = vadd.f32 %v1465_v51, %v1464_v49 }
  0xd8   : > { %1552 = vpush %v1466_v52 }
  0xd9   : > { %1554 = vpush %v1458_v53 }
 0x109   : > { %s1553_s14 = spop %1552 }
 0x10a   : > { %s1555_s15 = spop %1554 }
 0x10b   : > { %s1469_s16 = smul.f32 1e-10, %s1555_s15 }
 0x10d   : > { %p1470_p8 = scmp.le.f32.partialorder %s1553_s14, %s1469_s16 }
 0x10e   : > { %s1797_s17 = smov (!%p1470_p8), 0  }
 0x10f   : > { %1473 = sbr.rel (%p1470_p8) target bundleno = 953 (0x3b9), region = 467 }
 0x116 LB: >> { %s1802_s20 = smov 0   ;;  %s1645_s17 = sphi %s1797_s17, %s2042_s17  }
 0x117 LB: >>> { %s466_s30 = smov [#allocation20]  ;;  %v470_v6 = vmov %v1761_v6  ;;  %v473_v7 = vmov %v1763_v7  ;;  %s486_s21 = smov [#allocation21]  ;;  %vm789_vm14 = vcmp.eq.s32.totalorder %v1763_v7, 0  ;;  %vm801_vm15 = vcmp.eq.s32.totalorder %v1763_v7, 1  ;;  %s1649_s20 = sphi %s1802_s20, %s465_s20  }
 0x118   : >>> { %v490_v6 = vmov %v1761_v6  ;;  %v493_v7 = vmov %v1763_v7  ;;  %v474_v54 = vld [vmem:[%s466_s30] sm:$0x3]  ;;  %vm477_vm5 = vcmp.eq.s32.totalorder %v473_v7, %v470_v6  ;;  %s506_s22 = smov [#allocation23]  ;;  %s467_s29 = smov [#allocation24] }
 0x119   : >>> { %vm497_vm6 = vcmp.eq.s32.totalorder %v493_v7, %v490_v6  ;;  %v510_v6 = vmov %v1761_v6  ;;  %v513_v7 = vmov %v1763_v7  ;;  %v478_v55 = vsel %vm477_vm5, %v474_v54, 0.0  ;;  %v494_v56 = vld [vmem:[%s486_s21] sm:$0x3]  ;;  %s487_s14 = smov [#allocation25]  ;;  %s507_s15 = smov [#allocation26] }
 0x11a   : >>> { %vm517_vm7 = vcmp.eq.s32.totalorder %v513_v7, %v510_v6  ;;  %v479_v57 = vrot.slane %v478_v55, 4  ;;  %v498_v58 = vsel %vm497_vm6, %v494_v56, 0.0  ;;  %v514_v59 = vld [vmem:[%s506_s22] sm:$0x3]  ;;  %s530_s16 = smov [#allocation25]  ;;  %s528_s30 = smov [#allocation24]  ;;  %v579_v6 = vmov %v1761_v6 }
 0x11b   : >>> { %v499_v60 = vrot.slane %v498_v58, 4  ;;  %v518_v61 = vsel %vm517_vm7, %v514_v59, 0.0  ;;  %s532_s21 = smov [#allocation26]  ;;  %s567_s22 = smov [#allocation27]  ;;  %v582_v7 = vmov %v1763_v7  ;;  %v594_v6 = vmov %v1761_v6 }
 0x11c   : >>> { %v480_v62 = vadd.f32 %v479_v57, %v478_v55  ;;  %v519_v63 = vrot.slane %v518_v61, 4  ;;  %v597_v7 = vmov %v1763_v7  ;;  %vm584_vm12 = vcmp.eq.s32.totalorder %v582_v7, %v579_v6  ;;  %s1821_s24 = smov [#allocation22]  ;;  %s1827_s23 = smov [#allocation14] }
 0x11d   : >>> { %v500_v0 = vadd.f32 %v499_v60, %v498_v58  ;;  %vm599_vm13 = vcmp.eq.s32.totalorder %v597_v7, %v594_v6  ;;  %s829_s11 = smov [#allocation31]  ;;  %s1833_s27 = smov [#allocation18]  ;;  %v615_v55 = vld [vmem:[%s1821_s24] sm:$0x3]  ;;  %v692_v6 = vmov %v1761_v6  ;;  %v695_v7 = vmov %v1763_v7 }
 0x11e   : >>> { %v481_v1 = vrot.slane %v480_v62, 2  ;;  %v520_v2 = vadd.f32 %v519_v63, %v518_v61  ;;  %v838_v58 = vld [vmem:[%s1827_s23] sm:$0x3]  ;;  %s607_s26 = smov [#allocation32]  ;;  %s831_s25 = smov [#allocation32]  ;;  %v706_v6 = vmov %v1761_v6  ;;  %v709_v7 = vmov %v1763_v7 }
 0x11f   : >>> { %v501_v3 = vrot.slane %v500_v0, 2  ;;  %v840_v61 = vld [vmem:[%s1833_s27] sm:$0x3]  ;;  %vm699_vm0 = vcmp.eq.s32.totalorder %v695_v7, %v692_v6  ;;  %v665_v6 = vmov %v1761_v6  ;;  %v668_v7 = vmov %v1763_v7  ;;  %s465_s20 = sadd.s32 1, %s1649_s20  }
 0x120   : >>> { %v482_v4 = vadd.f32 %v481_v1, %v480_v62  ;;  %v521_v5 = vrot.slane %v520_v2, 2  ;;  %v679_v6 = vmov %v1761_v6  ;;  %v682_v7 = vmov %v1763_v7  ;;  %p462_p9 = scmp.ge.s32.totalorder %s465_s20, 3  }
 0x121   : >>> { %v502_v8 = vadd.f32 %v501_v3, %v500_v0  ;;  %vm714_vm1 = vcmp.eq.s32.totalorder %v709_v7, %v706_v6  ;;  %vm673_vm3 = vcmp.eq.s32.totalorder %v668_v7, %v665_v6  ;;  %vm686_vm4 = vcmp.eq.s32.totalorder %v682_v7, %v679_v6 }
 0x122   : >>> { %v483_v9 = vrot.slane %v482_v4, 1  ;;  %v522_v10 = vadd.f32 %v521_v5, %v520_v2  ;;  %vm728_vm5 = vcmp.eq.s32.totalorder %v1761_v6, 0  ;;  %vm732_vm6 = vcmp.eq.s32.totalorder %v1761_v6, 1 }
 0x123   : >>> { %v503_v11 = vrot.slane %v502_v8, 1  ;;  %v366_v6 = vmov (%p462_p9), %v1761_v6  ;;  %v369_v7 = vmov (%p462_p9), %v1763_v7 }
 0x124   : >>> { %v484_v12 = vadd.f32 %v483_v9, %v482_v4  ;;  %v523_v13 = vrot.slane %v522_v10, 1  ;;  %v419_v6 = vmov (%p462_p9), %v1761_v6  ;;  %vm381_vm7 = vcmp.eq.s32.totalorder (%p462_p9), %v369_v7, %v366_v6 }
 0x125   : >>> { %v504_v14 = vadd.f32 %v503_v11, %v502_v8  ;;  %v422_v7 = vmov (%p462_p9), %v1763_v7  ;;  %v385_v6 = vmov (%p462_p9), %v1761_v6 }
 0x126   : >>> { %485 = vst [vmem:[%s467_s29] sm:$0x1] %v484_v12  ;;  %v524_v15 = vadd.f32 %v523_v13, %v522_v10  ;;  %s569_s29 = smov [#allocation28]  ;;  %v388_v7 = vmov (%p462_p9), %v1763_v7  ;;  %v402_v6 = vmov (%p462_p9), %v1761_v6 }
 0x127   : >>> { %505 = vst [vmem:[%s487_s14] sm:$0x1] %v504_v14  ;;  %s526_s14 = smov [#allocation29]  ;;  %v405_v7 = vmov (%p462_p9), %v1763_v7 }
 0x128   : >>> { %525 = vst [vmem:[%s507_s15] sm:$0x1] %v524_v15  ;;  %s527_s15 = smov [#allocation30]  ;;  %s571_s14 = smov %s526_s14 }
 0x129   : >>> { %s573_s15 = smov %s527_s15 }
 0x12d   : >>> { %v529_v18 = vld [vmem:[%s528_s30] sm:$0xff]  ;;  %s590_s30 = smov [#allocation30] }
 0x12e   : >>> { %v531_v16 = vld [vmem:[%s530_s16] sm:$0xff]  ;;  %v552_v31 = vand.u32 2147483647, %v529_v18  ;;  %s575_s16 = smov [#allocation29] }
 0x12f   : >>> { %v535_v17 = vmul.f32 2.0, %v531_v16  ;;  %v533_v19 = vld [vmem:[%s532_s21] sm:$0xff]  ;;  %v553_v36 = vand.u32 2147483647, %v531_v16  ;;  %s588_s21 = smov [#allocation31] }
 0x130   : >>> { %v534_v20 = vsub.f32 %v533_v19, %v529_v18  ;;  %v554_v32 = vand.u32 2147483647, %v533_v19 }
 0x131   : >>> { %1603 = vrcp.f32 %v535_v17 }
 0x132   : >>> { %v555_v35 = vmin.f32 %v552_v31, %v554_v32 }
 0x134   : >>> { %v556_v37 = vmul.f32 1.1920929e-08, %v555_v35 }
 0x136   : >>> { %vm557_vm11 = vcmp.le.f32.partialorder %v553_v36, %v556_v37 }
 0x13b   : >>> { %v1604_v21 = vpop.eup %1603 }
 0x13c   : >>> { %v537_v22 = vmul.f32 %v1604_v21, %v534_v20 }
 0x13e   : >>> { %v539_v23 = vmul.f32 %v537_v22, %v537_v22  ;;  %vm538_vm10 = vcmp.ge.f32.partialorder %v537_v22, 0.0 }
 0x140   : >>> { %v540_v24 = vadd.f32 1.0, %v539_v23 }
 0x142   : >>> { %1605 = vrsqrt.f32 %v540_v24  ;;  %vm543_vm8 = vcmp.eq.f32.partialorder %v540_v24, inf  ;;  %v546_v26 = vand.u32 2147483648, %v540_v24  ;;  %vm545_vm9 = vcmp.eq.f32.partialorder %v540_v24, 0.0 }
 0x14c   : >>> { %v1606_v25 = vpop.eup %1605 }
 0x14d   : >>> { %v542_v27 = vmul.f32 %v1606_v25, %v540_v24 }
 0x14f   : >>> { %v544_v28 = vsel %vm543_vm8, %v540_v24, %v542_v27  ;;  %vm434_vm8 = vcmp.eq.s32.totalorder (%p462_p9), %v422_v7, %v419_v6 }
 0x150   : >>> { %v547_v29 = vsel %vm545_vm9, %v546_v26, %v544_v28 }
 0x151   : >>> { %v548_v30 = vxor.u32 2147483648, %v547_v29 }
 0x153   : >>> { %v549_v33 = vsel %vm538_vm10, %v547_v29, %v548_v30 }
 0x154   : >>> { %v550_v34 = vadd.f32 %v549_v33, %v537_v22 }
 0x156   : >>> { %1607 = vrcp.f32 %v550_v34 }
 0x160   : >>> { %v1608_v38 = vpop.eup %1607 }
 0x161   : >>> { %v558_v39 = vsel %vm557_vm11, 0.0, %v1608_v38 }
 0x162   : >>> { %v559_v40 = vmul.f32 %v558_v39, %v558_v39  ;;  %v563_v41 = vmul.f32 %v558_v39, %v531_v16 }
 0x164   : >>> { %v560_v42 = vadd.f32 1.0, %v559_v40  ;;  %v564_v43 = vsub.f32 %v529_v18, %v563_v41  ;;  %v566_v44 = vadd.f32 %v563_v41, %v533_v19 }
 0x166   : >>> { %1609 = vrsqrt.f32 %v560_v42  ;;  %568 = vst [vmem:[%s567_s22] sm:$0xff] %v564_v43  ;;  %570 = vst [vmem:[%s569_s29] sm:$0xff] %v566_v44  ;;  %s605_s22 = smov [#allocation31]  ;;  %s1817_s29 = smov [#allocation20] }
 0x167   : >>> { %v613_v53 = vld [vmem:[%s1817_s29] sm:$0x3] }
 0x170   : >>> { %v1610_v45 = vpop.eup %1609 }
 0x171   : >>> { %572 = vst [vmem:[%s571_s14] sm:$0xff] %v1610_v45  ;;  %v562_v46 = vmul.f32 %v1610_v45, %v558_v39  ;;  %s603_s14 = smov [#allocation32] }
 0x173   : >>> { %574 = vst [vmem:[%s573_s15] sm:$0xff] %v562_v46  ;;  %s1819_s15 = smov [#allocation21] }
 0x174   : >>> { %v614_v54 = vld [vmem:[%s1819_s15] sm:$0x3] }
 0x178   : >>> { %v576_v47 = vld [vmem:[%s575_s16] ss:$0 sm:$0xff]  ;;  %s1823_s16 = smov [#allocation23] }
 0x179   : >>> { %v585_v48 = vsel %vm584_vm12, %v576_v47, 0.0  ;;  %v616_v56 = vld [vmem:[%s1823_s16] sm:$0x3] }
 0x17a   : >>> { %586 = vadd.xlane.f32.xlu0 %v585_v48  ;;  %v591_v49 = vld [vmem:[%s590_s30] ss:$0 sm:$0xff]  ;;  %s1825_s30 = smov [#allocation12] }
 0x17b   : >>> { %v600_v50 = vsel %vm599_vm13, %v591_v49, 0.0  ;;  %v837_v57 = vld [vmem:[%s1825_s30] sm:$0x3] }
 0x17e   : >>> { %601 = vadd.xlane.f32.xlu0 %v600_v50 }
 0x207   : >>> { %v587_v51 = vpop.xlane.xlu0 %586 }
 0x208   : >>> { %589 = vst [vmem:[%s588_s21] sm:$0xff] %v587_v51  ;;  %s1829_s21 = smov [#allocation16] }
 0x209   : >>> { %v839_v59 = vld [vmem:[%s1829_s21] sm:$0x3] }
 0x20b   : >>> { %v602_v52 = vpop.xlane.xlu0 %601 }
 0x20c   : >>> { %604 = vst [vmem:[%s603_s14] sm:$0xff] %v602_v52  ;;  %s1853_s14 = smov [#allocation23] }
 0x20f   : >>> { %v606_v60 = vld [vmem:[%s605_s22] sm:$0xff]  ;;  %s1851_s22 = smov [#allocation22] }
 0x210   : >>> { %v830_v62 = vld [vmem:[%s829_s11] sm:$0xff]  ;;  %v617_v63 = vmul.f32 %v613_v53, %v606_v60  ;;  %v620_v0 = vmul.f32 %v614_v54, %v606_v60  ;;  %v624_v1 = vmul.f32 %v615_v55, %v606_v60  ;;  %v627_v2 = vmul.f32 %v616_v56, %v606_v60  ;;  %s1849_s11 = smov [#allocation12] }
 0x211   : >>> { %v841_v3 = vmul.f32 %v837_v57, %v830_v62  ;;  %v844_v4 = vmul.f32 %v838_v58, %v830_v62  ;;  %v848_v5 = vmul.f32 %v839_v59, %v830_v62  ;;  %v851_v8 = vmul.f32 %v840_v61, %v830_v62 }
 0x213   : >>> { %v608_v9 = vld [vmem:[%s607_s26] sm:$0xff]  ;;  %s635_s26 = smov [#allocation30] }
 0x214   : >>> { %v832_v10 = vld [vmem:[%s831_s25] sm:$0xff]  ;;  %v618_v11 = vmul.f32 %v615_v55, %v608_v9  ;;  %v621_v12 = vmul.f32 %v616_v56, %v608_v9  ;;  %v623_v13 = vmul.f32 %v613_v53, %v608_v9  ;;  %v626_v14 = vmul.f32 %v614_v54, %v608_v9  ;;  %s633_s25 = smov [#allocation29] }
 0x215   : >>> { %v842_v15 = vmul.f32 %v839_v59, %v832_v10  ;;  %v845_v16 = vmul.f32 %v840_v61, %v832_v10  ;;  %v847_v17 = vmul.f32 %v837_v57, %v832_v10  ;;  %v850_v18 = vmul.f32 %v838_v58, %v832_v10  ;;  %v634_v27 = vld [vmem:[%s633_s25] ss:$0 sm:$0xff]  ;;  %s662_s25 = smov [#allocation27] }
 0x216   : >>> { %v619_v19 = vsub.f32 %v617_v63, %v618_v11  ;;  %v622_v20 = vsub.f32 %v620_v0, %v621_v12  ;;  %v625_v21 = vadd.f32 %v624_v1, %v623_v13  ;;  %v628_v22 = vadd.f32 %v627_v2, %v626_v14  ;;  %v636_v28 = vld [vmem:[%s635_s26] ss:$0 sm:$0xff]  ;;  %s661_s26 = smov [#allocation20] }
 0x217   : >>> { %v843_v23 = vsub.f32 %v841_v3, %v842_v15  ;;  %v846_v24 = vsub.f32 %v844_v4, %v845_v16  ;;  %v849_v25 = vadd.f32 %v848_v5, %v847_v17  ;;  %v852_v26 = vadd.f32 %v851_v8, %v850_v18  ;;  %v669_v63 = vld [vmem:[%s662_s25] ss:$0 sm:$0xff]  ;;  %s905_s25 = sadd.s32 (%p462_p9), 1, %s1645_s17  }
 0x218   : >>> { %630 = vst [vmem:[%s1819_s15] sm:$0x3] %v622_v20  ;;  %632 = vst [vmem:[%s1823_s16] sm:$0x3] %v628_v22  ;;  %s1855_s15 = smov [#allocation20]  ;;  %s703_s16 = smov [#allocation28] }
 0x219   : >>> { %629 = vst [vmem:[%s1817_s29] sm:$0x3] %v619_v19  ;;  %631 = vst [vmem:[%s1821_s24] sm:$0x3] %v625_v21  ;;  %s1857_s24 = smov [#allocation16]  ;;  %s1865_s29 = smov [#allocation21]  ;;  %v710_v59 = vld [vmem:[%s703_s16] ss:$0 sm:$0xff] }
 0x21a   : >>> { %853 = vst [vmem:[%s1825_s30] sm:$0x3] %v843_v23  ;;  %854 = vst [vmem:[%s1827_s23] sm:$0x3] %v846_v24  ;;  %s1859_s23 = smov [#allocation14]  ;;  %s689_s30 = smov [#allocation22] }
 0x21b   : >>> { %855 = vst [vmem:[%s1829_s21] sm:$0x3] %v849_v25  ;;  %856 = vst [vmem:[%s1833_s27] sm:$0x3] %v852_v26  ;;  %s1863_s27 = smov [#allocation18]  ;;  %s702_s21 = smov [#allocation23] }
 0x21c   : >>> { %s805_s16 = smov [#allocation21]  ;;  %p458_p10 = scmp.ge.s32.totalorder (%p462_p9), %s905_s25, 15 }
 0x21d   : >> { %s2042_s17 = smov (%p462_p9), %s905_s25 }
 0x21f   : >>> { %v644_v30 = vld [vmem:[%s1853_s14] sm:$0x3] }
 0x220   : >>> { %v643_v29 = vld [vmem:[%s1851_s22] sm:$0x3]  ;;  %v652_v36 = vmul.f32 %v644_v30, %v636_v28  ;;  %v655_v42 = vmul.f32 %v644_v30, %v634_v27 }
 0x221   : >>> { %v641_v31 = vld [vmem:[%s1855_s15] sm:$0x3]  ;;  %v651_v35 = vmul.f32 %v643_v29, %v634_v27  ;;  %v654_v37 = vmul.f32 %v643_v29, %v636_v28 }
 0x222   : >>> { %v859_v32 = vld [vmem:[%s1849_s11] ss:$0 sm:$0xff]  ;;  %v1531_v34 = vld [vmem:[%s1849_s11 + $0x1] ss:$0 sm:$0xff]  ;;  %v645_v48 = vmul.f32 %v641_v31, %v634_v27  ;;  %v648_v49 = vmul.f32 %v641_v31, %v636_v28 }
 0x223   : >>> { %v1530_v33 = vld [vmem:[%s1849_s11 - $0x1] sm:$0x2]  ;;  %v1533_v40 = vld [vmem:[%s1857_s24 + $0x1] sm:$0x1]  ;;  %v653_v47 = vsub.f32 %v651_v35, %v652_v36  ;;  %v656_v53 = vadd.f32 %v655_v42, %v654_v37 }
 0x224   : >>> { %v866_v38 = vsel %vm789_vm14, %v859_v32, %v1530_v33  ;;  %v870_v39 = vld [vmem:[%s1857_s24] ss:$0 sm:$0xff]  ;;  %v878_v43 = vsel %vm801_vm15, %v1531_v34, %v1533_v40  ;;  %v1535_v45 = vld [vmem:[%s1859_s23 + $0x1] ss:$0 sm:$0xff] }
 0x225   : >>> { %v883_v41 = vld [vmem:[%s1859_s23] ss:$0 sm:$0xff]  ;;  %869 = vst [vmem:[%s1849_s11] sm:$0x3] %v866_v38  ;;  %880 = vst [vmem:[%s1857_s24] sm:$0x3] %v878_v43  ;;  %v1537_v51 = vld [vmem:[%s1863_s27 + $0x1] sm:$0x1] }
 0x226   : >>> { %v1534_v44 = vld [vmem:[%s1859_s23 - $0x1] sm:$0x2]  ;;  %1532 = vst [vmem:[%s1849_s11 + $0x1] sm:$0x1] %v870_v39  ;;  %v902_v54 = vsel %vm801_vm15, %v1535_v45, %v1537_v51  ;;  %659 = vst [vmem:[%s1851_s22] sm:$0x3] %v653_v47  ;;  %s676_s11 = smov [#allocation21] }
 0x227   : >>> { %v894_v46 = vld [vmem:[%s1863_s27] ss:$0 sm:$0xff]  ;;  %v890_v50 = vsel %vm789_vm14, %v883_v41, %v1534_v44  ;;  %660 = vst [vmem:[%s1853_s14] sm:$0x3] %v656_v53  ;;  %s1907_s22 = smov [#allocation22]  ;;  %s1652_s14 = smov 1  }
 0x228   : >>> { %v642_v52 = vld [vmem:[%s1865_s29] sm:$0x3]  ;;  %893 = vst [vmem:[%s1859_s23] sm:$0x3] %v890_v50  ;;  %904 = vst [vmem:[%s1863_s27] sm:$0x3] %v902_v54  ;;  %s718_s24 = smov [#allocation21]  ;;  %s1910_s27 = smov [#allocation23] }
 0x229   : >>> { %v646_v55 = vmul.f32 %v642_v52, %v636_v28  ;;  %v649_v56 = vmul.f32 %v642_v52, %v634_v27  ;;  %1536 = vst [vmem:[%s1859_s23 + $0x1] sm:$0x1] %v894_v46  ;;  %s1653_s23 = smov 127  }
 0x22b   : >>> { %v647_v57 = vsub.f32 %v645_v48, %v646_v55  ;;  %v650_v58 = vadd.f32 %v649_v56, %v648_v49 }
 0x22d   : >>> { %657 = vst [vmem:[%s1855_s15] sm:$0x3] %v647_v57  ;;  %658 = vst [vmem:[%s1865_s29] sm:$0x3] %v650_v58  ;;  %v696_v60 = vld [vmem:[%s689_s30] sm:$0x3]  ;;  %s717_s15 = smov [#allocation20]  ;;  %s781_s29 = smov [#allocation20] }
 0x22e   : >>> { %v700_v61 = vsel %vm699_vm0, 0.0, %v696_v60  ;;  %v711_v62 = vld [vmem:[%s702_s21] sm:$0x3] }
 0x22f   : >>> { %701 = vst [vmem:[%s689_s30] sm:$0x3] %v700_v61  ;;  %v715_v0 = vsel %vm714_vm1, %v710_v59, %v711_v62  ;;  %s782_s30 = smov [#allocation22] }
 0x230   : >>> { %716 = vst [vmem:[%s702_s21] sm:$0x3] %v715_v0  ;;  %s806_s21 = smov [#allocation23] }
 0x234   : >>> { %v670_v1 = vld [vmem:[%s661_s26] sm:$0x3] }
 0x235   : >>> { %v683_v2 = vld [vmem:[%s676_s11] sm:$0x3]  ;;  %v674_v3 = vsel %vm673_vm3, %v669_v63, %v670_v1 }
 0x236   : >>> { %v687_v4 = vsel %vm686_vm4, 0.0, %v683_v2  ;;  %675 = vst [vmem:[%s661_s26] sm:$0x3] %v674_v3  ;;  %v755_v5 = vld [vmem:[%s1907_s22] sm:$0x3]  ;;  %s370_s26 = smov (%p462_p9), [#allocation20] }
 0x237   : >>> { %688 = vst [vmem:[%s676_s11] sm:$0x3] %v687_v4  ;;  %756 = vrot.lane.b32.xlu0 %v755_v5, %s1652_s14  ;;  %v751_v11 = vld [vmem:[%s1910_s27] sm:$0x3]  ;;  %s389_s11 = smov (%p462_p9), [#allocation21] }
 0x238   : >>> { %v772_v12 = vld [vmem:[%s1910_s27] sm:$0x3] }
 0x239   : >>> { %v754_v30 = vld [vmem:[%s1907_s22] sm:$0x3] }
 0x23d   : >>> { %v723_v8 = vld [vmem:[%s717_s15] sm:$0x3] }
 0x23e   : >>> { %724 = vrot.lane.b32.xlu1 %v723_v8, %s1652_s14  ;;  %v719_v9 = vld [vmem:[%s718_s24] sm:$0x3] }
 0x23f   : >>> { %v740_v10 = vld [vmem:[%s718_s24] sm:$0x3] }
 0x240   : >>> { %v722_v18 = vld [vmem:[%s717_s15] sm:$0x3] }
 0x242   : >>> { %720 = vrot.lane.b32.xlu1 %v719_v9, %s1652_s14 }
 0x246   : >>> { %741 = vrot.lane.b32.xlu1 %v740_v10, %s1653_s23 }
 0x24a   : >>> { %752 = vrot.lane.b32.xlu1 %v751_v11, %s1652_s14  ;;  %s423_s14 = smov (%p462_p9), [#allocation23] }
 0x24e   : >>> { %773 = vrot.lane.b32.xlu1 %v772_v12, %s1653_s23 }
 0x2a9   : >>> { %v757_v20 = vpop.permute.xlu0 %756 }
 0x2aa   : >>> { %v761_v22 = vsel %vm728_vm5, %v755_v5, %v757_v20 }
 0x2b0   : >>> { %v725_v13 = vpop.permute.xlu1 %724 }
 0x2b1   : >>> { %v729_v14 = vsel %vm728_vm5, %v723_v8, %v725_v13 }
 0x2b4   : >>> { %v721_v15 = vpop.permute.xlu1 %720 }
 0x2b5   : >>> { %v733_v16 = vsel %vm732_vm6, %v721_v15, %v729_v14 }
 0x2b6   : >>> { %v739_v17 = vsel %vm1391_vm2, %v733_v16, 0.0 }
 0x2b7   : >>> { %747 = vst [vmem:[%s717_s15] sm:$0x3] %v739_v17 }
 0x2b8   : >>> { %v742_v19 = vpop.permute.xlu1 %741 }
 0x2b9   : >>> { %v746_v21 = vsel %vm732_vm6, %v722_v18, %v742_v19 }
 0x2ba   : >>> { %748 = vst [vmem:[%s718_s24] sm:$0x3] %v746_v21 }
 0x2bc   : >>> { %v753_v23 = vpop.permute.xlu1 %752 }
 0x2bd   : >>> { %v765_v24 = vsel %vm732_vm6, %v753_v23, %v761_v22 }
 0x2be   : >>> { %v783_v25 = vld [vmem:[%s781_s29] ss:$0 sm:$0xff]  ;;  %v1523_v27 = vld [vmem:[%s781_s29 + $0x1] ss:$0 sm:$0xff]  ;;  %v771_v29 = vsel %vm1391_vm2, %v765_v24, 0.0 }
 0x2bf   : >>> { %v1522_v26 = vld [vmem:[%s781_s29 - $0x1] sm:$0x2]  ;;  %779 = vst [vmem:[%s1907_s22] sm:$0x3] %v771_v29  ;;  %s406_s22 = smov (%p462_p9), [#allocation22] }
 0x2c0   : >>> { %v790_v28 = vsel %vm789_vm14, %v783_v25, %v1522_v26  ;;  %v774_v31 = vpop.permute.xlu1 %773 }
 0x2c1   : >>> { %793 = vst [vmem:[%s781_s29] sm:$0x3] %v790_v28  ;;  %v807_v32 = vld [vmem:[%s805_s16] ss:$0 sm:$0xff]  ;;  %v1527_v34 = vld [vmem:[%s805_s16 + $0x1] ss:$0 sm:$0xff]  ;;  %v778_v35 = vsel %vm732_vm6, %v754_v30, %v774_v31 }
 0x2c2   : >>> { %v1526_v33 = vld [vmem:[%s805_s16 - $0x1] sm:$0x2]  ;;  %780 = vst [vmem:[%s1910_s27] sm:$0x3] %v778_v35 }
 0x2c3   : >>> { %v814_v36 = vsel %vm789_vm14, %v807_v32, %v1526_v33 }
 0x2c4   : >>> { %817 = vst [vmem:[%s805_s16] sm:$0x3] %v814_v36 }
 0x2c6   : >>> { %v794_v37 = vld [vmem:[%s782_s30] ss:$0 sm:$0xff]  ;;  %v1525_v38 = vld [vmem:[%s782_s30 + $0x1] sm:$0x1] }
 0x2c7   : >>> { %1524 = vst [vmem:[%s781_s29 + $0x1] sm:$0x1] %v794_v37  ;;  %v802_v39 = vsel %vm801_vm15, %v1523_v27, %v1525_v38  ;;  %464 = sbr.rel (!%p462_p9) target bundleno = 279 (0x117), region = 462 }
 0x2c8   : >>> { %804 = vst [vmem:[%s782_s30] sm:$0x3] %v802_v39 }
 0x2c9   : >>> { %v818_v40 = vld [vmem:[%s806_s21] ss:$0 sm:$0xff]  ;;  %v1529_v41 = vld [vmem:[%s806_s21 + $0x1] sm:$0x1] }
 0x2ca   : >>> { %1528 = vst [vmem:[%s805_s16 + $0x1] sm:$0x1] %v818_v40  ;;  %v826_v42 = vsel %vm801_vm15, %v1527_v34, %v1529_v41 }
 0x2cb   : >>> { %828 = vst [vmem:[%s806_s21] sm:$0x3] %v826_v42 }
 0x2ce   : >> { %v376_v43 = vld [vmem:[%s370_s26] sm:$0x3] }
 0x2cf   : >> { %v377_v45 = vsel %vm1391_vm2, %v376_v43, 0.0  ;;  %v412_v47 = vld [vmem:[%s406_s22] sm:$0x3] }
 0x2d0   : >> { %v378_v49 = vmul.f32 %v377_v45, %v377_v45  ;;  %v413_v51 = vsel %vm1391_vm2, %v412_v47, 0.0 }
 0x2d1   : >> { %v395_v44 = vld [vmem:[%s389_s11] sm:$0x3]  ;;  %v414_v53 = vmul.f32 %v413_v51, %v413_v51 }
 0x2d2   : >> { %v396_v46 = vsel %vm1391_vm2, %v395_v44, 0.0  ;;  %v429_v48 = vld [vmem:[%s423_s14] sm:$0x3]  ;;  %v382_v56 = vsel %vm381_vm7, 0.0, %v378_v49 }
 0x2d3   : >> { %v397_v50 = vmul.f32 %v396_v46, %v396_v46  ;;  %v430_v52 = vsel %vm1391_vm2, %v429_v48, 0.0 }
 0x2d4   : >> { %v431_v55 = vmul.f32 %v430_v52, %v430_v52 }
 0x2d5   : >> { %v399_v54 = vadd.f32 %v397_v50, %v378_v49  ;;  %v398_v57 = vadd.f32 %v397_v50, %v382_v56 }
 0x2d6   : >> { %v435_v60 = vsel %vm434_vm8, 0.0, %v431_v55 }
 0x2d7   : >> { %v416_v58 = vadd.f32 %v414_v53, %v399_v54  ;;  %v415_v59 = vadd.f32 %v414_v53, %v398_v57 }
 0x2d9   : >> { %v437_v61 = vadd.f32 %v431_v55, %v416_v58  ;;  %v436_v62 = vadd.f32 %v435_v60, %v415_v59 }
 0x2db   : >> { %438 = vadd.xlane.f32.xlu0 %v437_v61 }
 0x2df   : >> { %446 = vadd.xlane.f32.xlu0 %v436_v62 }
 0x368   : >> { %v439_v63 = vpop.xlane.xlu0 %438 }
 0x369   : >> { %v440_v0 = vrot.slane %v439_v63, 4 }
 0x36b   : >> { %v441_v1 = vadd.f32 %v440_v0, %v439_v63 }
 0x36c   : >> { %v447_v2 = vpop.xlane.xlu0 %446 }
 0x36d   : >> { %v442_v3 = vrot.slane %v441_v1, 2  ;;  %v448_v4 = vrot.slane %v447_v2, 4 }
 0x36f   : >> { %v449_v5 = vadd.f32 %v448_v4, %v447_v2  ;;  %v443_v8 = vadd.f32 %v442_v3, %v441_v1 }
 0x371   : >> { %v450_v9 = vrot.slane %v449_v5, 2  ;;  %v444_v11 = vrot.slane %v443_v8, 1 }
 0x373   : >> { %v451_v10 = vadd.f32 %v450_v9, %v449_v5  ;;  %v445_v14 = vadd.f32 %v444_v11, %v443_v8 }
 0x375   : >> { %v452_v12 = vrot.slane %v451_v10, 1 }
 0x377   : >> { %v453_v13 = vadd.f32 %v452_v12, %v451_v10 }
 0x379   : >> { %1556 = vpush %v453_v13 }
 0x37a   : >> { %1558 = vpush %v445_v14 }
 0x3aa   : >> { %s1557_s20 = spop %1556 }
 0x3ab   : >> { %s1559_s15 = spop %1558 }
 0x3ac   : >> { %s456_s24 = smul.f32 1e-10, %s1559_s15 }
 0x3ae   : >> { %p457_p11 = scmp.le.f32.partialorder %s1557_s20, %s456_s24 }
 0x3b0   : >> { %p459_p12 = por %p458_p10, %p457_p11 }
 0x3b2   : > { %907 = sbr.rel (!%p459_p12) target bundleno = 278 (0x116), region = 473 }
 0x3b9 PF: > { %s912_s23 = smov [#allocation20]  ;;  %v916_v6 = vmov %v1761_v6  ;;  %v919_v7 = vmov %v1763_v7  ;;  %v967_v15 = vld [vmem:[#allocation12] sm:$0x3]  ;;  %v973_v16 = vld [vmem:[#allocation14] sm:$0x3]  ;;  %s2043_s17 = scalar_lea.vmem [#allocation13], %s1757_s28 }
 0x3ba   : > { %v936_v6 = vmov %v1761_v6  ;;  %v939_v7 = vmov %v1763_v7  ;;  %v920_v17 = vld [vmem:[%s912_s23] sm:$0x3]  ;;  %vm923_vm9 = vcmp.eq.s32.totalorder %v919_v7, %v916_v6  ;;  %969 = vst [vmem:[%s2043_s17] sm:$0x3] %v967_v15  ;;  %s2044_s27 = scalar_lea.vmem [#allocation15], %s1757_s28  ;;  %v979_v18 = vld [vmem:[#allocation16] sm:$0x3] }
 0x3bb   : > { %vm943_vm10 = vcmp.eq.s32.totalorder %v939_v7, %v936_v6  ;;  %975 = vst [vmem:[%s2044_s27] sm:$0x3] %v973_v16  ;;  %v924_v19 = vsel %vm923_vm9, %v920_v17, 0.0  ;;  %s932_s29 = smov [#allocation23]  ;;  %s2045_s16 = scalar_lea.vmem [#allocation17], %s1757_s28  ;;  %v985_v20 = vld [vmem:[#allocation18] sm:$0x3] }
 0x3bc   : > { %981 = vst [vmem:[%s2045_s16] sm:$0x3] %v979_v18  ;;  %v925_v21 = vrot.slane %v924_v19, 4  ;;  %v940_v22 = vld [vmem:[%s932_s29] sm:$0x3]  ;;  %s2046_s30 = scalar_lea.vmem [#allocation19], %s1757_s28  ;;  %s908_s21 = sand.u32 7, %s1720_s12  }
 0x3bd   : > { %987 = vst [vmem:[%s2046_s30] sm:$0x3] %v985_v20  ;;  %v944_v23 = vsel %vm943_vm10, %v940_v22, 0.0  ;;  %s909_s25 = scalar_lea.vmem [#allocation8], %s908_s21  ;;  %s911_s26 = scalar_lea.vmem [#allocation10], %s908_s21 }
 0x3be   : > { %v926_v24 = vadd.f32 %v925_v21, %v924_v19  ;;  %v945_v25 = vrot.slane %v944_v23, 4  ;;  %s913_s25 = smov %s909_s25  ;;  %s933_s26 = smov %s911_s26 }
 0x3bf   : > { %s2047_s11 = scalar_lea.vmem [#allocation9], %s1759_s18  ;;  %s2048_s22 = scalar_lea.vmem [#allocation11], %s1759_s18 }
 0x3c0   : > { %v927_v26 = vrot.slane %v926_v24, 2  ;;  %v946_v6 = vadd.f32 %v945_v25, %v944_v23  ;;  %s1015_s14 = sshrl.u32 (%p1734_p3), %s1720_s12, 3  ;;  %s2049_s20 = scalar_lea.vmem (%p1734_p3), [#allocation9], %s1759_s18 }
 0x3c1   : > { %s1544_s15 = sshll.u32 (%p1734_p3), %s1015_s14, 2 }
 0x3c2   : > { %v928_v7 = vadd.f32 %v927_v26, %v926_v24  ;;  %v947_v27 = vrot.slane %v946_v6, 2  ;;  %s1017_s17 = scalar_lea.vmem (%p1734_p3), %s2034_s4, %s1544_s15 }
 0x3c4   : > { %v929_v28 = vrot.slane %v928_v7, 1  ;;  %v948_v29 = vadd.f32 %v947_v27, %v946_v6 }
 0x3c6   : > { %v930_v30 = vadd.f32 %v929_v28, %v928_v7  ;;  %v949_v31 = vrot.slane %v948_v29, 1 }
 0x3c8   : > { %931 = vst [vmem:[%s913_s25] sm:$0x1] %v930_v30  ;;  %v950_v32 = vadd.f32 %v949_v31, %v948_v29 }
 0x3ca   : > { %951 = vst [vmem:[%s933_s26] sm:$0x1] %v950_v32 }
 0x3cc   : > { %1014 = sbr.rel (!%p1734_p3) target bundleno = 985 (0x3d9), region = 158 }
 0x3cf   : > { %v955_v33 = vld [vmem:[#allocation8] sm:$0xf] }
 0x3d0   : > { %957 = vst [vmem:[%s2047_s11] sm:$0xf] %v955_v33 }
 0x3d1   : > { %v961_v34 = vld [vmem:[#allocation10] sm:$0xf] }
 0x3d2   : > { %963 = vst [vmem:[%s2048_s22] sm:$0xf] %v961_v34 }
 0x3d7   : > { %v1033_v35 = vld [vmem:[%s2049_s20] sm:$0xf] }
 0x3d8   : > { %1034 = vst [vmem:[%s1017_s17] sm:$0xf] %v1033_v35 }
 0x3d9 PF: > { %1051 = sbr.rel (!%p1734_p3) target bundleno = 993 (0x3e1), region = 192  ;;  %s1052_s27 = sshrl.u32 (%p1734_p3), %s1720_s12, 3 }
 0x3da   : > { %s2050_s29 = scalar_lea.vmem (%p1734_p3), [#allocation11], %s1759_s18  ;;  %s1545_s16 = sshll.u32 (%p1734_p3), %s1052_s27, 2 }
 0x3db   : > { %s1054_s25 = scalar_lea.vmem (%p1734_p3), %s2035_s5, %s1545_s16 }
 0x3df   : > { %v1070_v36 = vld [vmem:[%s2050_s29] sm:$0xf] (%p1734_p3) }
 0x3e0   : > { %1071 = vst [vmem:[%s1054_s25] sm:$0xf] %v1070_v36 }
 0x3e1 PF: > { %s1546_s26 = sshll.u32 %s1720_s12, 1  ;;  %s2051_s19 = scalar_lea.vmem [#allocation13], %s1757_s28 }
 0x3e2   : > { %v1103_v37 = vld [vmem:[%s2051_s19] sm:$0x3]  ;;  %s2052_s11 = scalar_lea.vmem [#allocation15], %s1757_s28  ;;  %s1087_s14 = scalar_lea.vmem %s2036_s6, %s1546_s26 }
 0x3e3   : > { %v1136_v38 = vld [vmem:[%s2052_s11] sm:$0x3]  ;;  %s1120_s24 = scalar_lea.vmem %s2037_s7, %s1546_s26  ;;  %s2053_s23 = scalar_lea.vmem [#allocation17], %s1757_s28  ;;  %1104 = vst [vmem:[%s1087_s14] sm:$0x3] %v1103_v37 }
 0x3e4   : > { %v1169_v39 = vld [vmem:[%s2053_s23] sm:$0x3]  ;;  %s2054_s17 = scalar_lea.vmem [#allocation19], %s1757_s28  ;;  %1137 = vst [vmem:[%s1120_s24] sm:$0x3] %v1136_v38  ;;  %s1153_s29 = scalar_lea.vmem %s2038_s8, %s1546_s26 }
 0x3e5   : > { %v1202_v40 = vld [vmem:[%s2054_s17] sm:$0x3]  ;;  %s1186_s21 = scalar_lea.vmem %s2039_s9, %s1546_s26  ;;  %1170 = vst [vmem:[%s1153_s29] sm:$0x3] %v1169_v39 }
 0x3e6   : > { %1203 = vst [vmem:[%s1186_s21] sm:$0x3] %v1202_v40 }
 0x3e7 PF: > { %s2055_s25 = sld [smem:[#allocation33_spill]]  ;;  %p13_p13 = scmp.ge.s32.totalorder %s1723_s13, 6  }
 0x3e8   : > { %s2056_s30 = smov %s1637_s10  ;;  %s2058_s11 = smov %s1723_s13 }
 0x3e9   :  { %15 = sbr.rel (!%p13_p13) target bundleno = 2 (0x2), region = 484 }
 0x3ed   : > { %s2057_s10 = smov %s2055_s25 }

// kernel: reverse.1
= control target key start
LH: loop header
LB: loop body
LE: loop exit
PB: predicated region body
PF: predicated region fallthrough
CT: control target
= control target key end

     0   :  { %v2_v0 = vlaneseq  ;;  %s105_s0 = inlined_call_operand.vmem [shape: f32[4,3], index: 0, kind: input, shape index: {}]   ;;  %s106_s1 = inlined_call_operand.vmem [shape: f32[4,3], index: 1, kind: output, shape index: {}]  }
   0x2   :  { %v3_v1 = vsub.s32 2, %v2_v0 }
   0x4   :  { %4 = vset.pattern.permute.xlu0 %v3_v1 }
   0x5   :  { %v20_v2 = vld [vmem:[%s105_s0] sm:$0xf] }
   0x6   :  { %21 = vst [vmem:[#allocation1] sm:$0xf] %v20_v2 }
   0xd   :  { %v38_v3 = vld [vmem:[#allocation1] sm:$0xf] }
   0xe   :  { %39 = vst [vmem:[#allocation0] sm:$0xf] %v38_v3 }
  0x15   :  { %v40_v4 = vld [vmem:[#allocation0] sm:$0xff] }
  0x16   :  { %41 = vperm.xlu0 %4, %v40_v4  }
  0x95   :  { %v42_v5 = vpop.permute.xlu0 %41 }
  0x96   :  { %43 = vst [vmem:[#allocation2] sm:$0xff] %v42_v5 }
  0x9d   :  { %v47_v6 = vld [vmem:[#allocation2] sm:$0xf] }
  0x9e   :  { %49 = vst [vmem:[#allocation3] sm:$0xf] %v47_v6 }
  0xa5   :  { %v65_v7 = vld [vmem:[#allocation3] sm:$0xf] }
  0xa6   :  { %66 = vst [vmem:[%s106_s1] sm:$0xf] %v65_v7 }

// kernel: custom-call.50
= control target key start
LH: loop header
LB: loop body
LE: loop exit
PB: predicated region body
PF: predicated region fallthrough
CT: control target
= control target key end

     0   :  { %s653_s9 = smov 0   ;;  %s655_s10 = smov 0   ;;  %s799_s0 = inlined_call_operand.vmem [shape: f32[4,3,3], index: 0, kind: input, shape index: {}]   ;;  %s800_s1 = inlined_call_operand.vmem [shape: f32[4,3,3], index: 1, kind: output, shape index: {0}]   ;;  %s801_s2 = inlined_call_operand.vmem [shape: f32[4,3], index: 2, kind: output, shape index: {1}]  }
   0x1   :  { %s657_s11 = smov 0   ;;  %s659_s12 = smov 0  }
   0x2   :  { %s661_s13 = smov 0  }
   0x3 LB: > { %s28_s14 = sadd.s32 1, %s626_s12  ;;  %s508_s15 = sadd.s32 4294967295, %s630_s13   ;;  %s630_s13 = sphi %s661_s13, %s9_s13   ;;  %s626_s12 = sphi %s659_s12, %s808_s12   ;;  %s622_s11 = sphi %s657_s11, %s807_s11   ;;  %s618_s10 = sphi %s655_s10, %s806_s10   ;;  %s614_s9 = sphi %s653_s9, %s805_s9  }
   0x4   : > { %p30_p0 = scmp.ge.s32.totalorder %s28_s14, 4  ;;  %s33_s16 = ssub.s32 0, %s626_s12 }
   0x5   : > { %s510_s17 = smin.u32 %s626_s12, %s33_s16  ;;  %p57_p1 = scmp.ne.s32.totalorder %s618_s10, %s614_s9 }
   0x6   : > { %s810_s14 = smov (%p30_p0, %s28_s14), 0  ;;  %s35_s18 = sshrl.u32 %s510_s17, 3 }
   0x7   : > { %s39_s19 = ssub.s32 0, %s810_s14  ;;  %p58_p2 = scmp.eq.s32.totalorder %s508_s15, 3 }
   0x8   : > { %s511_s20 = smin.u32 %s39_s19, %s810_s14  ;;  %s47_s24 = sadd.s32 1, %s618_s10 }
   0x9   : > { %s41_s21 = sshrl.u32 %s511_s20, 3  ;;  %p688_p3 = por %p58_p2, %p57_p1 }
   0xa   : > { %s44_s23 = ssub.s32 %s35_s18, %s41_s21  ;;  %p513_p5 = scmp.ge.s32.totalorder %s630_s13, 4 }
   0xb   : > { %p45_p4 = scmp.eq.s32.totalorder %s44_s23, 0  ;;  %s82_s26 = sand.u32 (!%p513_p5), 1, %s630_s13  }
   0xc   : > { %80 = sbr.rel (%p513_p5) target bundleno = 19 (0x13), region = 16  ;;  %s515_s27 = sshll.u32 (!%p513_p5), %s626_s12, 2 }
   0xd   : > { %s694_s25 = scalar_select %p45_p4, %s618_s10, %s47_s24  }
   0xe   : > { %s514_s28 = sshll.u32 (!%p513_p5), %s82_s26, 2  ;;  %s88_s3 = scalar_lea.vmem (!%p513_p5), %s799_s0, %s515_s27 }
   0xf   : > { %v104_v0 = vld [vmem:[%s88_s3] sm:$0xf] (!%p513_p5)  ;;  %s84_s4 = scalar_lea.vmem (!%p513_p5), [#allocation1], %s514_s28 }
  0x10   : > { %105 = vst [vmem:[%s84_s4] sm:$0xf] (!%p513_p5), %v104_v0 }
  0x13 PF: > { %p516_p6 = scmp.ge.s32.totalorder %s630_s13, 1  ;;  %p121_p7 = scmp.lt.s32.totalorder %s630_s13, 5 }
  0x15   : > { %p122_p8 = pnand %p516_p6, %p121_p7 }
  0x17   : > { %125 = sbr.rel (%p122_p8) target bundleno = 346 (0x15a), region = 50 }
  0x1e   : > { %s132_s5 = sand.u32 1, %s508_s15   ;;  %s142_s6 = sand.u32 1, %s614_s9   ;;  %v636_v2 = vmov 0.0  }
  0x1f   : > { %s517_s7 = sshll.u32 %s132_s5, 2  ;;  %s705_s8 = sshll.u32 %s142_s6, 2 }
  0x20   : > { %s134_s16 = scalar_lea.vmem [#allocation1], %s517_s7  ;;  %s155_s17 = sand.u32 7, %s622_s11  }
  0x21   : > { %v147_v1 = vld [vmem:[%s134_s16] sm:$0xf]  ;;  %s708_s18 = scalar_lea.vmem [#allocation4], %s155_s17  ;;  %s711_s19 = scalar_lea.vmem [#allocation3], %s517_s7 }
  0x22   : > { %148 = vst [vmem:[#allocation0] sm:$0xf] %v147_v1  ;;  %159 = vst [vmem:[%s708_s18] sm:$0x1] %v636_v2  ;;  %s144_s15 = scalar_lea.vmem [#allocation5], %s705_s8  ;;  %s714_s20 = smov 0  }
  0x29   : > { %v157_v3 = vld [vmem:[#allocation0] sm:$0xff] }
  0x2a   : > { %158 = vst [vmem:[#allocation2] sm:$0xff] %v157_v3 }
  0x2b LB: >> { %v167_v4 = vlaneseq  ;;  %v723_v6 = vstv %s634_s20  ;;  %s194_s9 = scalar_lea.vmem [#allocation2], %s634_s20  ;;  %s230_s21 = smov [#allocation2]  ;;  %v637_v60 = vmov 1.0   ;;  %v265_v61 = vld [vmem:[%s708_s18] ss:$0 sm:$0xff]  ;;  %s634_s20 = sphi %s714_s20, %s165_s20  }
  0x2c   : >> { %s252_s23 = scalar_lea.vmem [#allocation6], %s634_s20  ;;  %s268_s24 = smov [#allocation2] }
  0x2d   : >> { %v720_v5 = vshrl.u32 %v167_v4, 7  ;;  %v246_v49 = vand.u32 127, %v167_v4  ;;  %s269_s26 = smov [#allocation6] }
  0x2f   : >> { %vm171_vm0 = vcmp.gt.s32.totalorder %v720_v5, %v723_v6  ;;  %vm172_vm1 = vcmp.lt.s32.totalorder %v720_v5, 3  ;;  %v233_v5 = vmov %v720_v5  ;;  %vm738_vm12 = vcmp.eq.s32.totalorder %v246_v49, %v723_v6 }
  0x30   : >> { %vm173_vm2 = vmand %vm171_vm0, %vm172_vm1  ;;  %vm237_vm9 = vcmp.gt.s32.totalorder %v233_v5, %v723_v6  ;;  %vm238_vm10 = vcmp.lt.s32.totalorder %v233_v5, 3  ;;  %v272_v5 = vmov %v720_v5  ;;  %vm298_vm15 = vcmp.gt.s32.totalorder %v246_v49, %v723_v6 }
  0x31   : >> { %v166_v7 = vld [vmem:[#allocation2] sm:$0xff]  ;;  %v195_v16 = vld [vmem:[%s194_s9] ss:$0 sm:$0xff]  ;;  %vm239_vm11 = vmand %vm237_vm9, %vm238_vm10  ;;  %vm277_vm13 = vcmp.lt.s32.totalorder %v272_v5, 3  ;;  %v289_v5 = vmov %v720_v5 }
  0x32   : >> { %v174_v8 = vsel %vm173_vm2, %v166_v7, 0.0  ;;  %v196_v17 = vand.u32 2147483647, %v195_v16  ;;  %vm221_vm8 = vcmp.lt.f32.partialorder %v195_v16, 0.0  ;;  %v234_v46 = vld [vmem:[%s230_s21] sm:$0xff]  ;;  %vm306_vm14 = vcmp.ge.s32.totalorder %v289_v5, %v723_v6 }
  0x33   : >> { %v175_v9 = vmul.f32 %v174_v8, %v174_v8  ;;  %v240_v50 = vsel %vm239_vm11, %v234_v46, 0.0  ;;  %v275_v0 = vld [vmem:[%s268_s24] sm:$0xff]  ;;  %s285_s24 = smov %s268_s24  ;;  %vm307_vm0 = vmand %vm738_vm12, %vm306_vm14 }
  0x34   : >> { %v197_v22 = vmax.f32 %v196_v17, 0.0  ;;  %s310_s27 = scalar_lea.vmem %s285_s24, %s634_s20  ;;  %s165_s20 = sadd.s32 1, %s634_s20  }
  0x35   : >> { %v176_v10 = vrot.slane %v175_v9, 4  ;;  %p162_p9 = scmp.ge.s32.totalorder %s165_s20, 3  }
  0x36   : > { %s523_s28 = sshll.u32 (%p162_p9), %s622_s11, 2 }
  0x37   : >> { %v177_v11 = vadd.f32 %v176_v10, %v175_v9  ;;  %s341_s3 = scalar_lea.vmem (%p162_p9), %s800_s1, %s523_s28 }
  0x39   : >> { %v178_v12 = vrot.slane %v177_v11, 2 }
  0x3b   : >> { %v179_v13 = vadd.f32 %v178_v12, %v177_v11 }
  0x3d   : >> { %v180_v14 = vrot.slane %v179_v13, 1 }
  0x3f   : >> { %v181_v15 = vadd.f32 %v180_v14, %v179_v13  ;;  %v296_v14 = vld [vmem:[%s285_s24] sm:$0xff] }
  0x41   : >> { %578 = vrsqrt.f32 %v181_v15  ;;  %vm184_vm3 = vcmp.eq.f32.partialorder %v181_v15, inf  ;;  %v187_v19 = vand.u32 2147483648, %v181_v15  ;;  %vm186_vm4 = vcmp.eq.f32.partialorder %v181_v15, 0.0 }
  0x4b   : >> { %v579_v18 = vpop.eup %578 }
  0x4c   : >> { %v183_v20 = vmul.f32 %v579_v18, %v181_v15 }
  0x4e   : >> { %v185_v21 = vsel %vm184_vm3, %v181_v15, %v183_v20 }
  0x4f   : >> { %v188_v23 = vsel %vm186_vm4, %v187_v19, %v185_v21 }
  0x50   : >> { %v198_v24 = vand.u32 2147483647, %v188_v23 }
  0x52   : >> { %v199_v25 = vmax.f32 %v197_v22, %v198_v24 }
  0x54   : >> { %580 = vrcp.f32 %v199_v25  ;;  %vm211_vm7 = vcmp.eq.f32.partialorder %v199_v25, 0.0 }
  0x5e   : >> { %v581_v26 = vpop.eup %580 }
  0x5f   : >> { %v201_v27 = vmul.f32 %v581_v26, %v196_v17  ;;  %v204_v28 = vmul.f32 0.0, %v581_v26  ;;  %v208_v29 = vmul.f32 %v581_v26, %v198_v24 }
  0x61   : >> { %v202_v30 = vmul.f32 %v201_v27, %v201_v27  ;;  %v205_v31 = vmul.f32 %v204_v28, %v204_v28  ;;  %v209_v32 = vmul.f32 %v208_v29, %v208_v29 }
  0x63   : >> { %v206_v33 = vadd.f32 %v205_v31, %v202_v30 }
  0x65   : >> { %v210_v34 = vadd.f32 %v209_v32, %v206_v33 }
  0x67   : >> { %582 = vrsqrt.f32 %v210_v34  ;;  %vm214_vm5 = vcmp.eq.f32.partialorder %v210_v34, inf  ;;  %v217_v36 = vand.u32 2147483648, %v210_v34  ;;  %vm216_vm6 = vcmp.eq.f32.partialorder %v210_v34, 0.0 }
  0x71   : >> { %v583_v35 = vpop.eup %582 }
  0x72   : >> { %v213_v37 = vmul.f32 %v583_v35, %v210_v34 }
  0x74   : >> { %v215_v38 = vsel %vm214_vm5, %v210_v34, %v213_v37 }
  0x75   : >> { %v218_v39 = vsel %vm216_vm6, %v217_v36, %v215_v38 }
  0x76   : >> { %v219_v40 = vmul.f32 %v218_v39, %v199_v25 }
  0x78   : >> { %v220_v41 = vsel %vm211_vm7, 0.0, %v219_v40 }
  0x79   : >> { %v222_v42 = vxor.u32 2147483648, %v220_v41 }
  0x7b   : >> { %v223_v43 = vsel %vm221_vm8, %v220_v41, %v222_v42 }
  0x7c   : >> { %v731_v44 = vsel %vm186_vm4, %v195_v16, %v223_v43  ;;  %584 = vrcp.f32 %v223_v43  ;;  %v224_v47 = vsub.f32 %v223_v43, %v195_v16 }
  0x7d   : >> { %v229_v45 = vsub.f32 %v195_v16, %v731_v44 }
  0x7f   : >> { %586 = vrcp.f32 %v229_v45 }
  0x86   : >> { %v585_v48 = vpop.eup %584 }
  0x87   : >> { %v226_v51 = vmul.f32 %v585_v48, %v224_v47 }
  0x89   : >> { %v587_v52 = vpop.eup %586  ;;  %v228_v56 = vsel %vm186_vm4, 0.0, %v226_v51 }
  0x8a   : >> { %v242_v53 = vmul.f32 %v587_v52, %v240_v50  ;;  %v258_v58 = vsel %vm738_vm12, %v228_v56, 0.0 }
  0x8c   : >> { %v243_v55 = vsel %vm186_vm4, 0.0, %v242_v53 }
  0x8d   : >> { %v248_v57 = vsel %vm738_vm12, %v243_v55, 0.0 }
  0x8e   : >> { %249 = vadd.xlane.f32.xlu0 %v248_v57 }
  0x92   : >> { %259 = vadd.xlane.f32.xlu0 %v258_v58 }
 0x11b   : >> { %v250_v59 = vpop.xlane.xlu0 %249 }
 0x11c   : >> { %251 = vst [vmem:[#allocation6] sm:$0xff] %v250_v59 }
 0x11d   : >> { %253 = vst [vmem:[%s252_s23] sm:$0x1] %v637_v60 }
 0x11f   : >> { %v260_v62 = vpop.xlane.xlu0 %259 }
 0x120   : >> { %v266_v63 = vsel %vm738_vm12, %v260_v62, %v265_v61 }
 0x121   : >> { %267 = vst [vmem:[%s708_s18] sm:$0x1] %v266_v63 }
 0x124   : >> { %v274_v1 = vld [vmem:[%s269_s26] sm:$0xff]  ;;  %s286_s26 = smov %s269_s26 }
 0x125   : >> { %v276_v2 = vmul.f32 %v275_v0, %v274_v1  ;;  %v294_v13 = vld [vmem:[%s286_s26] sm:$0xff] }
 0x127   : >> { %v278_v3 = vsel %vm277_vm13, %v276_v2, 0.0 }
 0x128   : >> { %v279_v4 = vrot.slane %v278_v3, 4  ;;  %v327_v6 = vld [vmem:[#allocation4] sm:$0xf] (%p162_p9) }
 0x129   : > { %329 = vst [vmem:[%s144_s15] sm:$0xf] (%p162_p9), %v327_v6 }
 0x12a   : >> { %v280_v7 = vadd.f32 %v279_v4, %v278_v3 }
 0x12c   : >> { %v281_v8 = vrot.slane %v280_v7, 2 }
 0x12e   : >> { %v282_v9 = vadd.f32 %v281_v8, %v280_v7 }
 0x130   : >> { %v283_v10 = vrot.slane %v282_v9, 1 }
 0x132   : >> { %v284_v11 = vadd.f32 %v283_v10, %v282_v9 }
 0x134   : >> { %v290_v12 = vmul.f32 %v284_v11, %v260_v62 }
 0x136   : >> { %v295_v15 = vmul.f32 %v294_v13, %v290_v12 }
 0x138   : >> { %v299_v16 = vsub.f32 %v296_v14, %v295_v15 }
 0x13a   : >> { %v300_v17 = vsel %vm298_vm15, %v299_v16, %v296_v14 }
 0x13b   : >> { %v308_v18 = vsel %vm307_vm0, %v294_v13, %v300_v17 }
 0x13c   : >> { %309 = vst [vmem:[%s285_s24] sm:$0xff] %v308_v18 }
 0x13f   : > { %164 = sbr.rel (!%p162_p9) target bundleno = 43 (0x2b), region = 167 }
 0x143   : >> { %v311_v19 = vld [vmem:[%s310_s27] ss:$0 sm:$0xff] }
 0x144   : >> { %v316_v20 = vsel %vm738_vm12, %v731_v44, %v311_v19 }
 0x145   : >> { %317 = vst [vmem:[%s310_s27] sm:$0x1] %v316_v20 }
 0x146   : > { %p376_p10 = scmp.lt.s32.totalorder (%p688_p3), %s622_s11, 0  ;;  %s377_s4 = ssub.s32 (%p688_p3), 0, %s622_s11  ;;  %v399_v22 = vld [vmem:[%s144_s15] sm:$0xf] (%p688_p3) }
 0x147   : > { %s524_s5 = smin.u32 (%p688_p3), %s622_s11, %s377_s4 }
 0x148   : > { %s379_s6 = sshrl.u32 (%p688_p3), %s524_s5, 3 }
 0x149   : > { %s380_s7 = ssub.s32 (%p688_p3), 0, %s379_s6 }
 0x14c   : > { %v321_v5 = vld [vmem:[#allocation2] sm:$0xf] }
 0x14d   : > { %323 = vst [vmem:[%s711_s19] sm:$0xf] %v321_v5 }
 0x14f   : > { %375 = sbr.rel (!%p688_p3) target bundleno = 346 (0x15a), region = 91 }
 0x154   : > { %v357_v21 = vld [vmem:[%s711_s19] sm:$0xf] }
 0x155   : > { %358 = vst [vmem:[%s341_s3] sm:$0xf] %v357_v21 }
 0x156   : > { %s812_s7 = smov (!%p376_p10, %s380_s7), %s379_s6 }
 0x157   : > { %s525_s16 = sshll.u32 %s812_s7, 2 }
 0x158   : > { %s383_s19 = scalar_lea.vmem %s801_s2, %s525_s16 }
 0x159   : > { %400 = vst [vmem:[%s383_s19] sm:$0xf] %v399_v22 }
 0x15a PF: > { %s9_s13 = sadd.s32 1, %s630_s13   ;;  %s805_s9 = smov %s618_s10 }
 0x15b   : > { %p6_p11 = scmp.ge.s32.totalorder %s9_s13, 6   ;;  %s806_s10 = smov %s694_s25 }
 0x15c   : > { %s807_s11 = smov %s626_s12  ;;  %s808_s12 = smov %s810_s14 }
 0x15d   :  { %8 = sbr.rel (!%p6_p11) target bundleno = 3 (0x3), region = 178 }

// kernel: _lambda_.5
= control target key start
LH: loop header
LB: loop body
LE: loop exit
PB: predicated region body
PF: predicated region fallthrough
CT: control target
= control target key end

     0   :  { %v1069_v0 = vmov 0.0|0.0   ;;  %vm1070_vm0 = vmmov 0   ;;  %v1071_v8 = vmov 0.0   ;;  %vm44_vm1 = vcmask 261120   ;;  %s1413_s2 = inlined_call_operand.vmem [shape: f32[32,128], index: 2, kind: input, shape index: {}]   ;;  %s1414_s3 = inlined_call_operand.vmem [shape: f32[32,128], index: 3, kind: input, shape index: {}]   ;;  %s1415_s6 = inlined_call_operand.vmem [shape: f32[3,32,128], index: 6, kind: input, shape index: {}]   ;;  %s1416_s0 = inlined_call_operand.vmem [shape: f32[56,32], index: 0, kind: input, shape index: {}]   ;;  %s1417_s1 = inlined_call_operand.vmem [shape: f32[32,32], index: 1, kind: input, shape index: {}]   ;;  %s1418_s4 = inlined_call_operand.vmem [shape: f32[1,128], index: 4, kind: input, shape index: {}]   ;;  %s1419_s5 = inlined_call_operand.vmem [shape: f32[1,128], index: 5, kind: input, shape index: {}]   ;;  %s1420_s7 = inlined_call_operand.vmem [shape: f32[1,8,128], index: 7, kind: output, shape index: {0}]   ;;  %s1421_s8 = inlined_call_operand.vmem [shape: f32[1,8,128], index: 8, kind: output, shape index: {1}]  }
   0x1   :  { %1006 = vmatprep.subr.bf16.mxu0 %v1069_v0  ;;  %1012 = vmatprep.subr.bf16.mxu1 %v1069_v0  ;;  %v1120_v1 = vld [vmem:[%s1413_s2] sm:$0xff]  ;;  %v1125_v2 = vld [vmem:[%s1413_s2 + $0x8] sm:$0xff]  ;;  %v1142_v6 = vld [vmem:[%s1413_s2 + $0x10] sm:$0xff] }
   0x2   :  { %v1130_v3 = vld [vmem:[%s1414_s3] sm:$0xff]  ;;  %v1007_v4 = vpack.c.bf16 %v1125_v2, %v1120_v1  ;;  %v1137_v5 = vld [vmem:[%s1414_s3 + $0x8] sm:$0xff]  ;;  %v1147_v7 = vld [vmem:[%s1413_s2 + $0x18] sm:$0xff]  ;;  %932 = vmatprep.mubr.msk.f32.mxu0 %vm1070_vm0, %v1071_v8  ;;  %961 = vmatprep.mubr.msk.f32.mxu1 %vm1070_vm0, %v1071_v8 }
   0x3   :  { %v1013_v9 = vpack.c.bf16 %v1137_v5, %v1130_v3  ;;  %v1158_v10 = vld [vmem:[%s1414_s3 + $0x10] sm:$0xff]  ;;  %v1163_v11 = vld [vmem:[%s1414_s3 + $0x18] sm:$0xff]  ;;  %v1010_v12 = vpack.c.bf16 %v1147_v7, %v1142_v6  ;;  %v329_v13 = vld [vmem:[%s1415_s6] sm:$0xff] }
   0x4   :  { %1008 = vmatpush3.bf16.msra.mxu0 %v1007_v4  ;;  %v330_v14 = vld [vmem:[%s1415_s6 + $0x8] sm:$0xff]  ;;  %v1016_v15 = vpack.c.bf16 %v1163_v11, %v1158_v10  ;;  %v430_v16 = vmul.f32 %v329_v13, %v1130_v3  ;;  %v331_v18 = vld [vmem:[%s1415_s6 + $0x10] sm:$0xff]  ;;  %v443_v20 = vmul.f32 %v329_v13, %v1120_v1  ;;  %v332_v22 = vld [vmem:[%s1415_s6 + $0x18] sm:$0xff] }
   0x5   :  { %1014 = vmatpush3.bf16.msra.mxu1 %v1013_v9  ;;  %1009 = vmatprep.subr.bf16.mxu0 %v1069_v0  ;;  %v431_v17 = vmul.f32 %v330_v14, %v1137_v5  ;;  %v1018_v19 = vpack.c.bf16 %v330_v14, %v329_v13  ;;  %v444_v21 = vmul.f32 %v330_v14, %v1125_v2  ;;  %v867_v28 = vld [vmem:[%s1415_s6 + $0x20] sm:$0xff]  ;;  %v868_v29 = vld [vmem:[%s1415_s6 + $0x28] sm:$0xff]  ;;  %v869_v38 = vld [vmem:[%s1415_s6 + $0x30] sm:$0xff] }
   0x6   :  { %1015 = vmatprep.subr.bf16.mxu1 %v1069_v0  ;;  %v432_v23 = vmul.f32 %v331_v18, %v1158_v10  ;;  %v1187_v25 = vmul.f32 %v332_v22, %v1163_v11  ;;  %v445_v26 = vmul.f32 %v331_v18, %v1142_v6  ;;  %v1191_v27 = vmul.f32 %v332_v22, %v1147_v7  ;;  %v1202_v30 = vld [vmem:[%s1416_s0] sm:$0xff]  ;;  %v870_v39 = vld [vmem:[%s1415_s6 + $0x38] sm:$0xff]  ;;  %v876_v49 = vld [vmem:[%s1415_s6 + $0x48] sm:$0xff] }
   0x7   :  { %v434_v24 = vadd.f32 %v431_v17, %v430_v16  ;;  %v447_v31 = vadd.f32 %v444_v21, %v443_v20  ;;  %v558_v32 = vmul.f32 %v867_v28, %v1130_v3  ;;  %v559_v33 = vmul.f32 %v868_v29, %v1137_v5  ;;  %v1221_v41 = vld [vmem:[%s1417_s1] sm:$0xff]  ;;  %v37_v51 = vld [vmem:[%s1416_s0 + $0x8] sm:$0xff]  ;;  %v877_v58 = vld [vmem:[%s1415_s6 + $0x50] sm:$0xff] }
   0x8   :  { %1011 = vmatpush3.bf16.msra.mxu0 %v1010_v12  ;;  %v1022_v34 = vpack.c.bf16 %v332_v22, %v331_v18  ;;  %v571_v36 = vmul.f32 %v867_v28, %v1120_v1  ;;  %v572_v37 = vmul.f32 %v868_v29, %v1125_v2  ;;  %v560_v43 = vmul.f32 %v869_v38, %v1158_v10  ;;  %v875_v48 = vld [vmem:[%s1415_s6 + $0x40] sm:$0xff]  ;;  %v878_v59 = vld [vmem:[%s1415_s6 + $0x58] sm:$0xff]  ;;  %v246_v12 = vld [vmem:[%s1417_s1 + $0x8] sm:$0xff] }
   0x9   :  { %1017 = vmatpush3.bf16.msra.mxu1 %v1016_v15  ;;  %v1206_v35 = vadd.f32 %v434_v24, %v432_v23  ;;  %v1216_v40 = vadd.f32 %v447_v31, %v445_v26  ;;  %v562_v42 = vadd.f32 %v559_v33, %v558_v32  ;;  %v1225_v44 = vmul.f32 %v870_v39, %v1163_v11  ;;  %v39_v61 = vld [vmem:[%s1416_s0 + $0x18] sm:$0xff]  ;;  %v247_v13 = vld [vmem:[%s1417_s1 + $0x10] sm:$0xff]  ;;  %v41_v15 = vld [vmem:[%s1416_s0 + $0x28] sm:$0xff] }
   0xa   :  { %1019 = vmatprep.subr.bf16.mxu1 %v1018_v19  ;;  %v575_v45 = vadd.f32 %v572_v37, %v571_v36  ;;  %v573_v46 = vmul.f32 %v869_v38, %v1142_v6  ;;  %v1231_v47 = vmul.f32 %v870_v39, %v1147_v7  ;;  %v43_v50 = vmul.f32 %v1202_v30, %v1202_v30  ;;  %v40_v17 = vld [vmem:[%s1416_s0 + $0x20] sm:$0xff]  ;;  %v248_v22 = vld [vmem:[%s1417_s1 + $0x18] sm:$0xff]  ;;  %v42_v24 = vld [vmem:[%s1416_s0 + $0x30] sm:$0xff] }
   0xb   :  { %933 = vmatmul.mubr.msk.f32.vlgmr.msra.gmra.mrb[0].mxu0 %vm44_vm1, %v1202_v30  ;;  %v1248_v52 = vadd.f32 %v562_v42, %v560_v43  ;;  %v686_v53 = vmul.f32 %v875_v48, %v1130_v3  ;;  %v687_v54 = vmul.f32 %v876_v49, %v1137_v5  ;;  %v699_v56 = vmul.f32 %v875_v48, %v1120_v1  ;;  %v38_v1 = vld [vmem:[%s1416_s0 + $0x10] sm:$0xff] }
   0xc   :  { %962 = vmatmul.mubr.msk.f32.vlgmr.msra.gmra.mrb[0].mxu1 %vm44_vm1, %v1202_v30  ;;  %935 = vmatprep.mubr.msk.f32.mxu0 %vm1070_vm0, %v1071_v8  ;;  %v1254_v55 = vadd.f32 %v575_v45, %v573_v46  ;;  %v700_v57 = vmul.f32 %v876_v49, %v1125_v2  ;;  %v1026_v60 = vpack.c.bf16 %v868_v29, %v867_v28  ;;  %v45_v18 = vsel %vm44_vm1, %v43_v50, 0.0 }
   0xd   :  { %1021 = vmatpush3.bf16.msra.mxu1 %v1018_v19  ;;  %972 = vmatprep.mubr.msk.f32.mxu1 %vm44_vm1, %v1221_v41  ;;  %v690_v62 = vadd.f32 %v687_v54, %v686_v53  ;;  %v688_v63 = vmul.f32 %v877_v58, %v1158_v10  ;;  %v1269_v0 = vmul.f32 %v878_v59, %v1163_v11 }
   0xe   :  { %1023 = vmatprep.subr.bf16.mxu1 %v1022_v34  ;;  %v703_v2 = vadd.f32 %v700_v57, %v699_v56  ;;  %v701_v3 = vmul.f32 %v877_v58, %v1142_v6  ;;  %v1277_v4 = vmul.f32 %v878_v59, %v1147_v7  ;;  %v207_v5 = vmul.f32 %v39_v61, %v1202_v30 }
   0xf   :  { %936 = vmatmul.mubr.msk.f32.gmra.mrb[2].mxu0 %vm44_vm1, %v37_v51  ;;  %v1282_v9 = vadd.f32 %v690_v62, %v688_v63  ;;  %v179_v10 = vmul.f32 %v37_v51, %v1202_v30  ;;  %v193_v11 = vmul.f32 %v38_v1, %v1202_v30  ;;  %v1030_v14 = vpack.c.bf16 %v870_v39, %v869_v38 }
  0x10   :  { %938 = vmatprep.mubr.msk.f32.mxu0 %vm1070_vm0, %v1071_v8  ;;  %v704_v6 = vadd.f32 %v703_v2, %v701_v3  ;;  %v208_v7 = vsel %vm44_vm1, %v207_v5, 0.0  ;;  %v198_v19 = vmul.f32 %v41_v15, %v1202_v30  ;;  %v184_v21 = vmul.f32 %v40_v17, %v1202_v30 }
  0x11   :  { %1025 = vmatpush3.bf16.msra.mxu1 %v1022_v34  ;;  %209 = vadd.xlane.f32.xlu1 %v208_v7  ;;  %v180_v16 = vsel %vm44_vm1, %v179_v10, 0.0  ;;  %v194_v20 = vsel %vm44_vm1, %v193_v11, 0.0  ;;  %v1034_v23 = vpack.c.bf16 %v876_v49, %v875_v48  ;;  %v212_v29 = vmul.f32 %v42_v24, %v1202_v30 }
  0x12   :  { %1027 = vmatprep.subr.bf16.mxu1 %v1026_v60  ;;  %181 = vadd.xlane.f32.xlu0 %v180_v16  ;;  %v199_v26 = vsel %vm44_vm1, %v198_v19, 0.0  ;;  %v185_v28 = vsel %vm44_vm1, %v184_v21, 0.0  ;;  %v1038_v31 = vpack.c.bf16 %v878_v59, %v877_v58  ;;  %v436_v30 = vadd.f32 %v1206_v35, %v1187_v25 }
  0x13   :  { %939 = vmatmul.mubr.msk.f32.gmra.mrb[4].mxu0 %vm44_vm1, %v38_v1  ;;  %v213_v32 = vsel %vm44_vm1, %v212_v29, 0.0  ;;  %v449_v33 = vadd.f32 %v1216_v40, %v1191_v27  ;;  %v564_v34 = vadd.f32 %v1248_v52, %v1225_v44  ;;  %v577_v36 = vadd.f32 %v1254_v55, %v1231_v47 }
  0x14   :  { %973 = vmatmul.mubr.msk.f32.vlgmr.msra.gmra.mrb[2].mxu1 %vm44_vm1, %v246_v12  ;;  %941 = vmatprep.mubr.msk.f32.mxu0 %vm1070_vm0, %v1071_v8  ;;  %v692_v37 = vadd.f32 %v1282_v9, %v1269_v0  ;;  %v705_v38 = vadd.f32 %v704_v6, %v1277_v4  ;;  %v437_v39 = vrot.slane %v436_v30, 4 }
  0x15   :  { %1029 = vmatpush3.bf16.msra.mxu1 %v1026_v60  ;;  %975 = vmatprep.mubr.msk.f32.mxu1 %vm44_vm1, %v247_v13  ;;  %v565_v45 = vrot.slane %v564_v34, 4  ;;  %v578_v46 = vrot.slane %v577_v36, 4 }
  0x16   :  { %1031 = vmatprep.subr.bf16.mxu1 %v1030_v14  ;;  %46 = vadd.xlane.f32.xlu1 %v45_v18  ;;  %v438_v42 = vadd.f32 %v437_v39, %v436_v30  ;;  %v693_v47 = vrot.slane %v692_v37, 4  ;;  %v706_v55 = vrot.slane %v705_v38, 4 }
  0x17   :  { %942 = vmatmul.mubr.msk.f32.gmra.mrb[6].mxu0 %vm44_vm1, %v39_v61  ;;  %195 = vadd.xlane.f32.xlu0 %v194_v20  ;;  %v566_v27 = vadd.f32 %v565_v45, %v564_v34  ;;  %v579_v44 = vadd.f32 %v578_v46, %v577_v36 }
  0x18   :  { %976 = vmatmul.mubr.msk.f32.gmra.mrb[4].mxu1 %vm44_vm1, %v248_v22  ;;  %944 = vmatprep.mubr.msk.f32.mxu0 %vm1070_vm0, %v1071_v8  ;;  %v439_v25 = vrot.slane %v438_v42, 2  ;;  %v694_v60 = vadd.f32 %v693_v47, %v692_v37  ;;  %v707_v2 = vadd.f32 %v706_v55, %v705_v38 }
  0x19   :  { %1033 = vmatpush3.bf16.msra.mxu1 %v1030_v14  ;;  %986 = vmatprep.mubr.msk.f32.mxu1 %vm44_vm1, %v1221_v41  ;;  %v567_v54 = vrot.slane %v566_v27, 2  ;;  %v580_v58 = vrot.slane %v579_v44, 2 }
  0x1a   :  { %1035 = vmatprep.subr.bf16.mxu1 %v1034_v23  ;;  %200 = vadd.xlane.f32.xlu1 %v199_v26  ;;  %v440_v40 = vadd.f32 %v439_v25, %v438_v42  ;;  %v695_v10 = vrot.slane %v694_v60, 2  ;;  %v708_v16 = vrot.slane %v707_v2, 2 }
  0x1b   :  { %945 = vmatmul.mubr.msk.f32.gmra.mrb[8].mxu0 %vm44_vm1, %v40_v17  ;;  %186 = vadd.xlane.f32.xlu0 %v185_v28  ;;  %v568_v1 = vadd.f32 %v567_v54, %v566_v27  ;;  %v581_v5 = vadd.f32 %v580_v58, %v579_v44 }
  0x1c   :  { %987 = vmatmul.mubr.msk.f32.vlgmr.msra.gmra.mrb[6].mxu1 %vm44_vm1, %v246_v12  ;;  %947 = vmatprep.mubr.msk.f32.mxu0 %vm1070_vm0, %v1071_v8  ;;  %v441_v56 = vrot.slane %v440_v40, 1 }
  0x1d   :  { %1037 = vmatpush3.bf16.msra.mxu1 %v1034_v23  ;;  %989 = vmatprep.mubr.msk.f32.mxu1 %vm44_vm1, %v247_v13  ;;  %v582_v20 = vrot.slane %v581_v5, 1  ;;  %v696_v23 = vadd.f32 %v695_v10, %v694_v60 }
  0x1e   :  { %1039 = vmatprep.subr.bf16.mxu1 %v1038_v31  ;;  %v442_v3 = vadd.f32 %v441_v56, %v440_v40 }
  0x1f   :  { %948 = vmatmul.mubr.msk.f32.gmra.mrb[10].mxu0 %vm44_vm1, %v41_v15  ;;  %214 = vadd.xlane.f32.xlu0 %v213_v32  ;;  %v569_v15 = vrot.slane %v568_v1, 1  ;;  %v583_v37 = vadd.f32 %v582_v20, %v581_v5 }
  0x20   :  { %990 = vmatmul.mubr.msk.f32.gmra.mrb[8].mxu1 %vm44_vm1, %v248_v22  ;;  %950 = vmatprep.mubr.msk.f32.mxu0 %vm1070_vm0, %v1071_v8 }
  0x21   :  { %1041 = vmatpush3.bf16.msra.mxu1 %v1038_v31  ;;  %1000 = vmatprep.mubr.msk.f32.mxu1 %vm44_vm1, %v1221_v41  ;;  %v450_v41 = vrot.slane %v449_v33, 4  ;;  %v570_v36 = vadd.f32 %v569_v15, %v568_v1 }
  0x23   :  { %951 = vmatmul.mubr.msk.f32.gmra.mrb[12].mxu0 %vm44_vm1, %v42_v24  ;;  %v451_v43 = vadd.f32 %v450_v41, %v449_v33  ;;  %v709_v33 = vadd.f32 %v708_v16, %v707_v2  ;;  %v697_v41 = vrot.slane %v696_v23, 1 }
  0x24   :  { %1001 = vmatmul.mubr.msk.f32.vlgmr.msra.gmra.mrb[10].mxu1 %vm44_vm1, %v246_v12 }
  0x25   :  { %1003 = vmatprep.mubr.msk.f32.mxu1 %vm44_vm1, %v247_v13  ;;  %v452_v35 = vrot.slane %v451_v43, 2  ;;  %v860_v13 = vld [vmem:[%s1418_s4] ss:$0 sm:$0xff]  ;;  %v698_v54 = vadd.f32 %v697_v41, %v696_v23 }
  0x27   :  { %v453_v48 = vadd.f32 %v452_v35, %v451_v43 }
  0x28   :  { %1004 = vmatmul.mubr.msk.f32.gmra.mrb[12].mxu1 %vm44_vm1, %v248_v22 }
  0x29   :  { %v454_v57 = vrot.slane %v453_v48, 1 }
  0x2b   :  { %v455_v4 = vadd.f32 %v454_v57, %v453_v48  ;;  %v710_v48 = vrot.slane %v709_v33, 1 }
  0x9e   :  { %v210_v63 = vpop.xlane.xlu1 %209 }
  0x9f   :  { %v182_v49 = vpop.xlane.xlu0 %181 }
  0xa3   :  { %v47_v21 = vpop.xlane.xlu1 %46 }
  0xa4   :  { %v196_v0 = vpop.xlane.xlu0 %195  ;;  %v176_v24 = vadd.f32 %v860_v13, %v47_v21 }
  0xa7   :  { %v201_v40 = vpop.xlane.xlu1 %200 }
  0xa8   :  { %v187_v38 = vpop.xlane.xlu0 %186 }
  0xac   :  { %v215_v2 = vpop.xlane.xlu0 %214 }
  0xde   :  { %v135_v50 = vpop.f32.mrb[0].mxu0 }
  0xdf   :  { %v1351_v51 = vpop.f32.mrb[0].mxu1  ;;  %v934_v52 = vpop.f32.mrb[1].mxu0  ;;  %v177_v26 = vmul.f32 2.0, %v135_v50 }
  0xe0   :  { %v963_v53 = vpop.f32.mrb[1].mxu1 }
  0xe1   :  { %v178_v42 = vsub.f32 %v176_v24, %v177_v26 }
  0xe2   :  { %v140_v59 = vpop.f32.mrb[2].mxu0 }
  0xe3   :  { %v183_v61 = vsub.f32 %v140_v59, %v182_v49  ;;  %v937_v62 = vpop.f32.mrb[3].mxu0 }
  0xe5   :  { %v189_v11 = vmul.f32 %v183_v61, %v183_v61 }
  0xe6   :  { %v145_v9 = vpop.f32.mrb[4].mxu0 }
  0xe7   :  { %v974_v12 = vpop.f32.mrb[2].mxu1  ;;  %v197_v6 = vsub.f32 %v145_v9, %v196_v0  ;;  %v940_v7 = vpop.f32.mrb[5].mxu0  ;;  %v711_v9 = vadd.f32 %v710_v48, %v709_v33 }
  0xe8   :  { %v411_v14 = vpop.f32.mrb[3].mxu1  ;;  %v462_v35 = vmul.f32 %v974_v12, %v974_v12 }
  0xe9   :  { %v456_v17 = vsub.f32 %v411_v14, %v442_v3  ;;  %v457_v18 = vsub.f32 %v411_v14, %v455_v4  ;;  %v203_v19 = vmul.f32 %v197_v6, %v197_v6  ;;  %v862_v3 = vld [vmem:[%s1419_s5] ss:$0 sm:$0xff] }
  0xea   :  { %v150_v22 = vpop.f32.mrb[6].mxu0 }
  0xeb   :  { %v204_v28 = vadd.f32 %v203_v19, %v189_v11  ;;  %v211_v29 = vsub.f32 %v150_v22, %v210_v63  ;;  %v977_v31 = vpop.f32.mrb[4].mxu1  ;;  %v943_v32 = vpop.f32.mrb[7].mxu0  ;;  %v458_v61 = vmul.f32 %v456_v17, %v456_v17  ;;  %v460_v62 = vmul.f32 %v457_v18, %v457_v18 }
  0xec   :  { %v421_v30 = vpop.f32.mrb[5].mxu1  ;;  %v464_v63 = vmul.f32 %v977_v31, %v977_v31  ;;  %v327_v17 = vmul.f32 2.0, %v1351_v51  ;;  %v326_v18 = vadd.f32 %v862_v3, %v47_v21 }
  0xed   :  { %v217_v34 = vmul.f32 %v211_v29, %v211_v29  ;;  %v463_v4 = vmul.f32 %v421_v30, %v421_v30 }
  0xee   :  { %v155_v39 = vpop.f32.mrb[8].mxu0 }
  0xef   :  { %v218_v43 = vadd.f32 %v217_v34, %v204_v28  ;;  %v988_v45 = vpop.f32.mrb[6].mxu1  ;;  %v946_v25 = vpop.f32.mrb[9].mxu0  ;;  %v188_v47 = vsub.f32 %v155_v39, %v187_v38 }
  0xf0   :  { %v590_v46 = vmul.f32 %v988_v45, %v988_v45  ;;  %v539_v27 = vpop.f32.mrb[7].mxu1 }
  0xf1   :  { %v221_v44 = vsub.f32 %v178_v42, %v218_v43  ;;  %v584_v49 = vsub.f32 %v539_v27, %v570_v36  ;;  %v585_v50 = vsub.f32 %v539_v27, %v583_v37  ;;  %v191_v5 = vmul.f32 %v188_v47, %v188_v47 }
  0xf2   :  { %v593_v52 = vadd.f32 %v590_v46, %v462_v35  ;;  %v160_v53 = vpop.f32.mrb[10].mxu0  ;;  %v328_v37 = vsub.f32 %v326_v18, %v327_v17 }
  0xf3   :  { %v222_v55 = vmax.f32 %v221_v44, 0.0  ;;  %v586_v56 = vmul.f32 %v584_v49, %v584_v49  ;;  %v588_v57 = vmul.f32 %v585_v50, %v585_v50  ;;  %v991_v58 = vpop.f32.mrb[8].mxu1  ;;  %v202_v59 = vsub.f32 %v160_v53, %v201_v40  ;;  %v949_v60 = vpop.f32.mrb[11].mxu0 }
  0xf4   :  { %v592_v0 = vmul.f32 %v991_v58, %v991_v58  ;;  %v549_v1 = vpop.f32.mrb[9].mxu1 }
  0xf5   :  { %1045 = vrsqrt.f32 %v222_v55  ;;  %v587_v10 = vadd.f32 %v586_v56, %v458_v61  ;;  %v589_v11 = vadd.f32 %v588_v57, %v460_v62  ;;  %v591_v6 = vmul.f32 %v549_v1, %v549_v1 }
  0xf6   :  { %v595_v12 = vadd.f32 %v592_v0, %v464_v63  ;;  %v165_v7 = vpop.f32.mrb[12].mxu0  ;;  %v205_v13 = vmul.f32 %v202_v59, %v202_v59  ;;  %vm225_vm2 = vcmp.eq.f32.partialorder %v222_v55, inf  ;;  %v228_v45 = vand.u32 2147483648, %v222_v55 }
  0xf7   :  { %v1002_v14 = vpop.f32.mrb[10].mxu1  ;;  %v216_v15 = vsub.f32 %v165_v7, %v215_v2  ;;  %v952_v16 = vpop.f32.mrb[13].mxu0  ;;  %v594_v19 = vadd.f32 %v591_v6, %v463_v4  ;;  %vm227_vm3 = vcmp.eq.f32.partialorder %v222_v55, 0.0  ;;  %v1366_v62 = vmax.f32 %v328_v37, 0.0 }
  0xf8   :  { %v718_v20 = vmul.f32 %v1002_v14, %v1002_v14  ;;  %v667_v22 = vpop.f32.mrb[11].mxu1  ;;  %v206_v23 = vadd.f32 %v205_v13, %v191_v5  ;;  %v757_v6 = vlaneseq }
  0xf9   :  { %v219_v24 = vmul.f32 %v216_v15, %v216_v15  ;;  %v712_v26 = vsub.f32 %v667_v22, %v698_v54  ;;  %v713_v28 = vsub.f32 %v667_v22, %v711_v9  ;;  %vm752_vm12 = vcmp.eq.f32.partialorder %v1366_v62, inf }
  0xfa   :  { %v1360_v29 = vadd.f32 %v718_v20, %v593_v52  ;;  %v1372_v17 = vshrl.u32 %v757_v6, 7  ;;  %v1374_v18 = vand.u32 127, %v757_v6  ;;  %vm754_vm0 = vcmp.eq.f32.partialorder %v1366_v62, 0.0 }
  0xfb   :  { %v220_v31 = vadd.f32 %v219_v24, %v206_v23  ;;  %v714_v32 = vmul.f32 %v712_v26, %v712_v26  ;;  %v716_v30 = vmul.f32 %v713_v28, %v713_v28  ;;  %v1005_v33 = vpop.f32.mrb[12].mxu1 }
  0xfc   :  { %v720_v34 = vmul.f32 %v1005_v33, %v1005_v33  ;;  %v677_v36 = vpop.f32.mrb[13].mxu1  ;;  %vm764_vm10 = vcmp.lt.s32.totalorder %v1372_v17, 4  ;;  %vm765_vm11 = vcmp.lt.s32.totalorder %v1374_v18, 8  ;;  %vm788_vm14 = vcmp.eq.f32.partialorder %v1360_v29, inf }
  0xfd   :  { %1047 = vrsqrt.f32 %v220_v31  ;;  %v715_v38 = vadd.f32 %v714_v32, %v587_v10  ;;  %v717_v51 = vadd.f32 %v716_v30, %v589_v11  ;;  %v719_v39 = vmul.f32 %v677_v36, %v677_v36  ;;  %vm766_vm1 = vmand %vm764_vm10, %vm765_vm11 }
  0xfe   :  { %v1362_v21 = vadd.f32 %v720_v34, %v595_v12  ;;  %vm236_vm4 = vcmp.eq.f32.partialorder %v220_v31, inf  ;;  %v239_v50 = vand.u32 2147483648, %v220_v31  ;;  %vm238_vm5 = vcmp.eq.f32.partialorder %v220_v31, 0.0 }
  0xff   :  { %v1046_v41 = vpop.eup %1045  ;;  %v724_v43 = vsub.f32 %v328_v37, %v715_v38  ;;  %1049 = vrsqrt.f32 %v717_v51  ;;  %v1364_v25 = vadd.f32 %v719_v39, %v594_v19  ;;  %vm739_vm6 = vcmp.eq.f32.partialorder %v717_v51, inf }
 0x100   :  { %v224_v42 = vmul.f32 %v1046_v41, %v222_v55  ;;  %v742_v58 = vand.u32 2147483648, %v717_v51  ;;  %vm741_vm7 = vcmp.eq.f32.partialorder %v717_v51, 0.0  ;;  %vm802_vm15 = vcmp.eq.f32.partialorder %v1362_v21, inf }
 0x101   :  { %v725_v46 = vmax.f32 %v724_v43, 0.0  ;;  %vm795_vm13 = vcmp.eq.f32.partialorder %v1364_v25, inf  ;;  %v798_v33 = vand.u32 2147483648, %v1364_v25  ;;  %v791_v34 = vand.u32 2147483648, %v1360_v29 }
 0x102   :  { %v226_v35 = vsel %vm225_vm2, %v222_v55, %v224_v42  ;;  %v805_v36 = vand.u32 2147483648, %v1362_v21  ;;  %vm797_vm2 = vcmp.eq.f32.partialorder %v1364_v25, 0.0  ;;  %v755_v42 = vand.u32 2147483648, %v1366_v62 }
 0x103   :  { %v229_v27 = vsel %vm227_vm3, %v228_v45, %v226_v35  ;;  %1051 = vrsqrt.f32 %v725_v46  ;;  %vm728_vm8 = vcmp.eq.f32.partialorder %v725_v46, inf  ;;  %v731_v0 = vand.u32 2147483648, %v725_v46 }
 0x104   :  { %v230_v40 = vmul.f32 0.70422536, %v229_v27  ;;  %vm730_vm9 = vcmp.eq.f32.partialorder %v725_v46, 0.0  ;;  %vm790_vm3 = vcmp.eq.f32.partialorder %v1360_v29, 0.0  ;;  %v883_v27 = vsel %vm766_vm1, 1.0, %v1071_v8 }
 0x106   :  { %v231_v44 = vadd.f32 1.0, %v230_v40 }
 0x107   :  { %v1048_v48 = vpop.eup %1047 }
 0x108   :  { %v235_v49 = vmul.f32 %v1048_v48, %v220_v31  ;;  %v232_v56 = vmul.f32 %v231_v44, %v231_v44 }
 0x109   :  { %v1050_v47 = vpop.eup %1049 }
 0x10a   :  { %v237_v52 = vsel %vm236_vm4, %v220_v31, %v235_v49  ;;  %v738_v54 = vmul.f32 %v1050_v47, %v717_v51  ;;  %1053 = vrcp.f32 %v232_v56  ;;  %vm804_vm4 = vcmp.eq.f32.partialorder %v1362_v21, 0.0 }
 0x10b   :  { %v240_v53 = vsel %vm238_vm5, %v239_v50, %v237_v52  ;;  %vm781_vm5 = vcmp.eq.s32.totalorder %v1372_v17, 0 }
 0x10c   :  { %v241_v57 = vadd.f32 1.0, %v240_v53  ;;  %v740_v59 = vsel %vm739_vm6, %v717_v51, %v738_v54  ;;  %vm782_vm6 = vcmp.eq.s32.totalorder %v1374_v18, 0 }
 0x10d   :  { %v1052_v55 = vpop.eup %1051  ;;  %v743_v61 = vsel %vm741_vm7, %v742_v58, %v740_v59  ;;  %vm783_vm7 = vmand %vm781_vm5, %vm782_vm6 }
 0x10e   :  { %v242_v60 = vmul.f32 %v241_v57, %v241_v57  ;;  %v727_v63 = vmul.f32 %v1052_v55, %v725_v46  ;;  %v744_v1 = vadd.f32 1.0, %v743_v61 }
 0x110   :  { %1055 = vrcp.f32 %v242_v60  ;;  %v729_v2 = vsel %vm728_vm8, %v725_v46, %v727_v63  ;;  %v745_v5 = vmul.f32 %v744_v1, %v744_v1 }
 0x111   :  { %1057 = vrsqrt.f32 %v1360_v29  ;;  %v732_v3 = vsel %vm730_vm9, %v731_v0, %v729_v2 }
 0x112   :  { %1059 = vrsqrt.f32 %v1362_v21  ;;  %v733_v4 = vmul.f32 0.70422536, %v732_v3 }
 0x113   :  { %1061 = vrsqrt.f32 %v1364_v25 }
 0x114   :  { %1063 = vrsqrt.f32 %v1366_v62  ;;  %v734_v9 = vadd.f32 1.0, %v733_v4  ;;  %v1054_v11 = vpop.eup %1053 }
 0x115   :  { %1065 = vrcp.f32 %v745_v5 }
 0x116   :  { %v735_v10 = vmul.f32 %v734_v9, %v734_v9 }
 0x118   :  { %1067 = vrcp.f32 %v735_v10 }
 0x11a   :  { %v1056_v12 = vpop.eup %1055 }
 0x11b   :  { %v1058_v7 = vpop.eup %1057  ;;  %v244_v13 = vmul.f32 %v1056_v12, %v1054_v11 }
 0x11c   :  { %v1060_v14 = vpop.eup %1059  ;;  %v787_v20 = vmul.f32 %v1058_v7, %v1360_v29 }
 0x11d   :  { %v1062_v15 = vpop.eup %1061  ;;  %v801_v22 = vmul.f32 %v1060_v14, %v1362_v21 }
 0x11e   :  { %v1064_v16 = vpop.eup %1063  ;;  %v794_v19 = vmul.f32 %v1062_v15, %v1364_v25  ;;  %v789_v32 = vsel %vm788_vm14, %v1360_v29, %v787_v20 }
 0x11f   :  { %v751_v23 = vmul.f32 %v1064_v16, %v1366_v62  ;;  %v1066_v24 = vpop.eup %1065  ;;  %v803_v30 = vsel %vm802_vm15, %v1362_v21, %v801_v22  ;;  %v792_v39 = vsel %vm790_vm3, %v791_v34, %v789_v32 }
 0x120   :  { %v796_v31 = vsel %vm795_vm13, %v1364_v25, %v794_v19  ;;  %v806_v41 = vsel %vm804_vm4, %v805_v36, %v803_v30 }
 0x121   :  { %v753_v37 = vsel %vm752_vm12, %v1366_v62, %v751_v23  ;;  %v799_v51 = vsel %vm797_vm2, %v798_v33, %v796_v31 }
 0x122   :  { %v1068_v26 = vpop.eup %1067  ;;  %v756_v40 = vsel %vm754_vm0, %v755_v42, %v753_v37 }
 0x123   :  { %v747_v28 = vmul.f32 %v1068_v26, %v1066_v24 }
 0x125   :  { %v748_v38 = vadd.f32 %v747_v28, %v244_v13 }
 0x127   :  { %v819_v43 = vsub.f32 %v748_v38, %v799_v51  ;;  %v807_v45 = vsub.f32 %v748_v38, %v792_v39  ;;  %v831_v35 = vsub.f32 %v748_v38, %v806_v41  ;;  %v769_v46 = vsub.f32 1.0, %v748_v38 }
 0x129   :  { %v820_v48 = vmul.f32 %v819_v43, %v819_v43  ;;  %v808_v25 = vmul.f32 %v807_v45, %v807_v45  ;;  %v770_v44 = vsub.f32 %v769_v46, %v756_v40  ;;  %v832_v21 = vmul.f32 %v831_v35, %v831_v35 }
 0x12b   :  { %v821_v29 = vmul.f32 %v883_v27, %v820_v48  ;;  %v809_v49 = vmul.f32 %v883_v27, %v808_v25  ;;  %v771_v50 = vmul.f32 %v770_v44, %v770_v44  ;;  %v833_v47 = vmul.f32 %v883_v27, %v832_v21 }
 0x12d   :  { %822 = vadd.xlane.f32.xlu0 %v821_v29  ;;  %810 = vadd.xlane.f32.xlu1 %v809_v49  ;;  %v772_v52 = vmul.f32 %v883_v27, %v771_v50 }
 0x131   :  { %834 = vadd.xlane.f32.xlu1 %v833_v47  ;;  %773 = vadd.xlane.f32.xlu0 %v772_v52 }
 0x1ba   :  { %v823_v53 = vpop.xlane.xlu0 %822  ;;  %v811_v54 = vpop.xlane.xlu1 %810 }
 0x1bb   :  { %v824_v56 = vrot.slane %v823_v53, 4  ;;  %v812_v8 = vrot.slane %v811_v54, 4 }
 0x1bd   :  { %v825_v57 = vadd.f32 %v824_v56, %v823_v53  ;;  %v813_v58 = vadd.f32 %v812_v8, %v811_v54 }
 0x1be   :  { %v835_v59 = vpop.xlane.xlu1 %834  ;;  %v774_v55 = vpop.xlane.xlu0 %773 }
 0x1bf   :  { %v826_v60 = vrot.slane %v825_v57, 2  ;;  %v814_v61 = vrot.slane %v813_v58, 2  ;;  %v836_v62 = vrot.slane %v835_v59, 4  ;;  %v775_v63 = vrot.slane %v774_v55, 4 }
 0x1c1   :  { %v827_v0 = vadd.f32 %v826_v60, %v825_v57  ;;  %v815_v1 = vadd.f32 %v814_v61, %v813_v58  ;;  %v837_v2 = vadd.f32 %v836_v62, %v835_v59  ;;  %v776_v3 = vadd.f32 %v775_v63, %v774_v55 }
 0x1c3   :  { %v828_v4 = vrot.slane %v827_v0, 1  ;;  %v816_v5 = vrot.slane %v815_v1, 1  ;;  %v838_v9 = vrot.slane %v837_v2, 2  ;;  %v777_v10 = vrot.slane %v776_v3, 2 }
 0x1c5   :  { %v829_v11 = vadd.f32 %v828_v4, %v827_v0  ;;  %v817_v12 = vadd.f32 %v816_v5, %v815_v1  ;;  %v839_v6 = vadd.f32 %v838_v9, %v837_v2  ;;  %v778_v7 = vadd.f32 %v777_v10, %v776_v3 }
 0x1c7   :  { %v840_v13 = vrot.slane %v839_v6, 1  ;;  %v779_v14 = vrot.slane %v778_v7, 1  ;;  %v830_v15 = vadd.f32 %v829_v11, %v817_v12 }
 0x1c9   :  { %v841_v16 = vadd.f32 %v840_v13, %v839_v6  ;;  %v780_v19 = vadd.f32 %v779_v14, %v778_v7 }
 0x1cb   :  { %v842_v20 = vadd.f32 %v841_v16, %v830_v15  ;;  %v784_v22 = vsel %vm783_vm7, %v780_v19, 0.0 }
 0x1cc   :  { %785 = vst [vmem:[%s1420_s7] sm:$0xff] %v784_v22 }
 0x1cd   :  { %v843_v23 = vsel %vm783_vm7, %v842_v20, 0.0 }
 0x1ce   :  { %844 = vst [vmem:[%s1421_s8] sm:$0xff] %v843_v23 }

</bundles_post_ra>
